<compile_context>
chip_gen: v6e
topology: v6e:2x2x1
jax: 0.10.0
libtpu: 0.0.40
codegen_flags: <defaults>
</compile_context>

<pallas_src>
import jax
import jax.numpy as jnp
from jax.experimental import pallas as pl
from jax.experimental.pallas import tpu as pltpu


def _round_up(x, m):
    return (x + m - 1) // m * m


# ----------------------------------------------------------------------------
# Fused forward kernel (B batch elements per grid step)
# ----------------------------------------------------------------------------
def _make_kernel(H, W):
    H2, W2 = H // 2, W // 2

    def kernel(x_ref, w1, b1, w2, b2, w3, b3, w4, b4,
               mf, mh, sel1, sel2, wl, bl, o_ref, patch):
        B = x_ref.shape[0]
        cinp = x_ref.shape[1]        # padded input channels (8)
        chp = w1.shape[0]            # padded hidden channels (24)

        def conv3x3_relu(act, cpad, mask_ref, w_ref, b_ref, Wc):
            """'same' 3x3 conv + bias + ReLU.  act: (cpad, Sc), Sc = Hc*Wc."""
            Sc = act.shape[1]
            K = 9 * cpad
            for dy in range(3):
                for dx in range(3):
                    k = 3 * dy + dx
                    off = (dy - 1) * Wc + (dx - 1)      # lane offset of neighbor
                    if off == 0:
                        tap = act                       # center tap, always valid
                    else:
                        # tap[:, l] = act[:, l + off]  (lane rotation, XLU slot)
                        tap = pltpu.roll(act, (-off) % Sc, axis=1)
                        # zero the positions whose neighbor is outside the image
                        tap = tap * mask_ref[k:k + 1, :]
                    # sublane-aligned (cpad % 8 == 0), full-lane-width store
                    patch[k * cpad:(k + 1) * cpad, 0:Sc] = tap
            y = jnp.dot(w_ref[...], patch[0:K, 0:Sc],
                        preferred_element_type=jnp.float32)   # (chp, Sc)
            return jnp.maximum(y + b_ref[...], 0.0)

        def maxpool2x2(y, Wc, sel_ref):
            """MaxPool2d(2,2): roll+max pairs, then 0/1 selection matmul."""
            Sc = y.shape[1]
            t = jnp.maximum(y, pltpu.roll(y, Sc - 1, axis=1))   # pair over w
            t = jnp.maximum(t, pltpu.roll(t, Sc - Wc, axis=1))  # pair over h
            # compact the (even h, even w) lanes -> pooled lane layout
            return jnp.dot(t, sel_ref[...], preferred_element_type=jnp.float32)

        lane = jax.lax.broadcasted_iota(jnp.int32, (1, 1, B), 2)
        res = jnp.zeros((1, 1, B), jnp.float32)

        for b in range(B):                                   # unrolled
            a = x_ref[b]                                     # (cinp, H*W)
            # block_1
            a = conv3x3_relu(a, cinp, mf, w1, b1, W)         # (chp, H*W)
            a = conv3x3_relu(a, chp, mf, w2, b2, W)
            a = maxpool2x2(a, W, sel1)                       # (chp, H2*W2)
            # block_2
            a = conv3x3_relu(a, chp, mh, w3, b3, W2)
            a = conv3x3_relu(a, chp, mh, w4, b4, W2)
            a = maxpool2x2(a, W2, sel2)                      # (chp, H4*W4)
            # classifier: Flatten + Linear(550 -> 1) as multiply + reduce
            prod = a * wl[...]                               # (chp, H4*W4)
            val = jnp.sum(prod, axis=1, keepdims=True)       # (chp, 1)
            val = jnp.sum(val, axis=0, keepdims=True) + bl[...]   # (1, 1)
            res = jnp.where(lane == b, val.reshape(1, 1, 1), res)

        o_ref[...] = res                                     # one grouped store

    return kernel


# ----------------------------------------------------------------------------
# Wrapper
# ----------------------------------------------------------------------------
def _forward(x_nchw, prepped, *, block_b=2):
    """x_nchw: (N, Cin, H, W) float32; prepped: output of prepare_params()."""
    x = x_nchw.astype(jnp.float32)
    N, cin, H, W = x.shape
    assert H % 4 == 0 and W % 4 == 0, "two MaxPool2d(2) stages need H,W % 4 == 0"

    chp = prepped["w1"].shape[0]          # padded hidden channels (24)
    cinp = prepped["w1"].shape[1] // 9    # padded input channels (8)
    B = block_b if (N % block_b == 0) else 1
    G = N // B
    S1 = H * W
    S2 = (H // 2) * (W // 2)
    S4 = (H // 4) * (W // 4)
    Kmax = 9 * max(cinp, chp)
    f32 = jnp.float32

    # NCHW -> (N, C_pad, H*W): contiguous reshape + tiny channel zero-pad,
    # no spatial transpose.
    x3 = x.reshape(N, cin, S1)
    if cinp > cin:
        x3 = jnp.pad(x3, ((0, 0), (0, cinp - cin), (0, 0)))

    kernel = _make_kernel(H, W)
    const = lambda n: (0, 0)              # resident blocks: fetched once

    out = pl.pallas_call(
        kernel,
        grid=(G,),
        in_specs=[
            pl.BlockSpec((B, cinp, S1), lambda n: (n, 0, 0)),   # x
            pl.BlockSpec((chp, 9 * cinp), const),               # w1
            pl.BlockSpec((chp, 1), const),                      # b1
            pl.BlockSpec((chp, 9 * chp), const),                # w2
            pl.BlockSpec((chp, 1), const),                      # b2
            pl.BlockSpec((chp, 9 * chp), const),                # w3
            pl.BlockSpec((chp, 1), const),                      # b3
            pl.BlockSpec((chp, 9 * chp), const),                # w4
            pl.BlockSpec((chp, 1), const),                      # b4
            pl.BlockSpec((9, S1), const),                       # masks, full res
            pl.BlockSpec((9, S2), const),                       # masks, half res
            pl.BlockSpec((S1, S2), const),                      # pool selector 1
            pl.BlockSpec((S2, S4), const),                      # pool selector 2
            pl.BlockSpec((chp, S4), const),                     # classifier W
            pl.BlockSpec((1, 1), const),                        # classifier b
        ],
        out_specs=pl.BlockSpec((1, 1, B), lambda n: (n, 0, 0)),
        out_shape=jax.ShapeDtypeStruct((G, 1, B), f32),
        scratch_shapes=[pltpu.VMEM((Kmax, S1), f32)],           # shared patches
        compiler_params=pltpu.CompilerParams(
            dimension_semantics=("parallel",)),                 # v7x: 2 TCs
    )(x3, prepped["w1"], prepped["b1"], prepped["w2"], prepped["b2"],
      prepped["w3"], prepped["b3"], prepped["w4"], prepped["b4"],
      prepped["mask_full"], prepped["mask_half"], prepped["sel1"],
      prepped["sel2"], prepped["wl"], prepped["bl"])
    return out.reshape(N, 1)


simple_cnn_forward = jax.jit(_forward, static_argnames=("block_b",))


# ----------------------------------------------------------------------------
# One-time parameter re-layout (hoisted out of the per-call path)
# ----------------------------------------------------------------------------
def prepare_params(params, spatial):
    w1 = params["w1"]
    ch, cin = w1.shape[0], w1.shape[1]
    chp = _round_up(ch, 8)                 # 22 -> 24
    cinp = _round_up(cin, 8)               # 4  -> 8
    H = W = spatial
    H2 = W2 = H // 2
    H4 = W4 = H // 4
    assert params["wl"].shape[1] == ch * H4 * W4

    def conv_w(w, cpad_in):
        # (Cout, Cin, 3, 3) -> (chp, 9*cpad_in), col index = (3*dy+dx)*cpad_in + ci
        cout, cin_ = w.shape[0], w.shape[1]
        wr = jnp.transpose(w, (0, 2, 3, 1)).reshape(cout, 9, cin_)
        wr = jnp.pad(wr, ((0, chp - cout), (0, 0), (0, cpad_in - cin_)))
        return wr.reshape(chp, 9 * cpad_in).astype(jnp.float32)

    def conv_b(b):
        return jnp.pad(b, (0, chp - b.shape[0])).reshape(chp, 1).astype(jnp.float32)

    def conv_masks(Hc, Wc):
        # (9, Hc*Wc) 0/1 masks: tap (dy,dx) valid where the neighbor is in-bounds
        h = jnp.repeat(jnp.arange(Hc), Wc)
        w_ = jnp.tile(jnp.arange(Wc), Hc)
        rows = []
        for dy in range(3):
            for dx in range(3):
                ok = ((h + (dy - 1) >= 0) & (h + (dy - 1) < Hc) &
                      (w_ + (dx - 1) >= 0) & (w_ + (dx - 1) < Wc))
                rows.append(ok)
        return jnp.stack(rows, 0).astype(jnp.float32)

    def pool_sel(Hc, Wc):
        # (Hc*Wc, Ho*Wo) one-hot columns picking lane (2*h2)*Wc + 2*w2
        Ho, Wo = Hc // 2, Wc // 2
        m = jnp.arange(Ho * Wo)
        src = 2 * (m // Wo) * Wc + 2 * (m % Wo)
        return jnp.zeros((Hc * Wc, Ho * Wo), jnp.float32).at[src, m].set(1.0)

    # Classifier weight: PyTorch flattens NCHW as index c*(H4*W4) + h4*W4 + w4,
    # which is exactly a (ch, H4*W4) reshape in the kernel's (C, spatial) layout.
    wl = params["wl"].reshape(ch, H4 * W4)
    wl = jnp.pad(wl, ((0, chp - ch), (0, 0))).astype(jnp.float32)

    return {
        "w1": conv_w(params["w1"], cinp), "b1": conv_b(params["b1"]),
        "w2": conv_w(params["w2"], chp),  "b2": conv_b(params["b2"]),
        "w3": conv_w(params["w3"], chp),  "b3": conv_b(params["b3"]),
        "w4": conv_w(params["w4"], chp),  "b4": conv_b(params["b4"]),
        "mask_full": conv_masks(H, W),
        "mask_half": conv_masks(H2, W2),
        "sel1": pool_sel(H, W),
        "sel2": pool_sel(H2, W2),
        "wl": wl,
        "bl": params["bl"].reshape(1, 1).astype(jnp.float32),
    }


# ----------------------------------------------------------------------------
# Deterministic synthetic parameters (shapes match the nn.Module)
# ----------------------------------------------------------------------------
def init_params(key, in_channels, hidden_units, flat_features):
    def u(k, shape, scale):
        return jax.random.uniform(k, shape, jnp.float32, -scale, scale)

    ks = jax.random.split(key, 10)
    Hn = hidden_units
    return {
        "w1": u(ks[0], (Hn, in_channels, 3, 3), 0.2), "b1": u(ks[1], (Hn,), 0.2),
        "w2": u(ks[2], (Hn, Hn, 3, 3), 0.1),          "b2": u(ks[3], (Hn,), 0.1),
        "w3": u(ks[4], (Hn, Hn, 3, 3), 0.1),          "b3": u(ks[5], (Hn,), 0.1),
        "w4": u(ks[6], (Hn, Hn, 3, 3), 0.1),          "b4": u(ks[7], (Hn,), 0.1),
        "wl": u(ks[8], (1, flat_features), 0.05),     "bl": u(ks[9], (1,), 0.05),
    }


if __name__ == "__main__":
    N, C_IN, HW = 4, 4, 20
    HIDDEN = 22                                   # 22 * (20//4) * (20//4) = 550
    FLAT = HIDDEN * (HW // 4) * (HW // 4)
    assert FLAT == 550                            # matches nn.Linear(in_features=550)

    key = jax.random.PRNGKey(0)
    kx, kp = jax.random.split(key)
    x = jax.random.normal(kx, (N, C_IN, HW, HW), jnp.float32)
    params = init_params(kp, C_IN, HIDDEN, FLAT)
    prepped = prepare_params(params, HW)

    out = jax.block_until_ready(simple_cnn_forward(x, prepped))
    assert out.shape == (N, 1), out.shape
    assert out.dtype == jnp.float32
    assert bool(jnp.all(jnp.isfinite(out)))
    print("KERNEL_OK")
</pallas_src>

<mosaic_0001>
module attributes {stable_mosaic.version = 11 : i64} {
  func.func @kernel(%arg0: i32, %arg1: memref<2x8x400xf32, #tpu.memory_space<vmem>>, %arg2: memref<24x72xf32, #tpu.memory_space<vmem>>, %arg3: memref<24x1xf32, #tpu.memory_space<vmem>>, %arg4: memref<24x216xf32, #tpu.memory_space<vmem>>, %arg5: memref<24x1xf32, #tpu.memory_space<vmem>>, %arg6: memref<24x216xf32, #tpu.memory_space<vmem>>, %arg7: memref<24x1xf32, #tpu.memory_space<vmem>>, %arg8: memref<24x216xf32, #tpu.memory_space<vmem>>, %arg9: memref<24x1xf32, #tpu.memory_space<vmem>>, %arg10: memref<9x400xf32, #tpu.memory_space<vmem>>, %arg11: memref<9x100xf32, #tpu.memory_space<vmem>>, %arg12: memref<400x100xf32, #tpu.memory_space<vmem>>, %arg13: memref<100x25xf32, #tpu.memory_space<vmem>>, %arg14: memref<24x25xf32, #tpu.memory_space<vmem>>, %arg15: memref<1x1xf32, #tpu.memory_space<vmem>>, %arg16: memref<1x1x2xf32, #tpu.memory_space<vmem>>, %arg17: memref<216x400xf32, #tpu.memory_space<vmem>>) attributes {dimension_semantics = [#tpu.dimension_semantics<parallel>], iteration_bounds = array<i64: 2>, scalar_prefetch = 0 : i64, scratch_operands = 1 : i64, tpu.core_type = #tpu.core_type<tc>, window_params = [{transform_indices = @transform_0, window_bounds = array<i64: 2, 8, 400>}, {pipeline_mode = #tpu.pipeline_mode<synchronous>, transform_indices = @transform_1, window_bounds = array<i64: 24, 72>}, {pipeline_mode = #tpu.pipeline_mode<synchronous>, transform_indices = @transform_2, window_bounds = array<i64: 24, 1>}, {pipeline_mode = #tpu.pipeline_mode<synchronous>, transform_indices = @transform_3, window_bounds = array<i64: 24, 216>}, {pipeline_mode = #tpu.pipeline_mode<synchronous>, transform_indices = @transform_4, window_bounds = array<i64: 24, 1>}, {pipeline_mode = #tpu.pipeline_mode<synchronous>, transform_indices = @transform_5, window_bounds = array<i64: 24, 216>}, {pipeline_mode = #tpu.pipeline_mode<synchronous>, transform_indices = @transform_6, window_bounds = array<i64: 24, 1>}, {pipeline_mode = #tpu.pipeline_mode<synchronous>, transform_indices = @transform_7, window_bounds = array<i64: 24, 216>}, {pipeline_mode = #tpu.pipeline_mode<synchronous>, transform_indices = @transform_8, window_bounds = array<i64: 24, 1>}, {pipeline_mode = #tpu.pipeline_mode<synchronous>, transform_indices = @transform_9, window_bounds = array<i64: 9, 400>}, {pipeline_mode = #tpu.pipeline_mode<synchronous>, transform_indices = @transform_10, window_bounds = array<i64: 9, 100>}, {pipeline_mode = #tpu.pipeline_mode<synchronous>, transform_indices = @transform_11, window_bounds = array<i64: 400, 100>}, {pipeline_mode = #tpu.pipeline_mode<synchronous>, transform_indices = @transform_12, window_bounds = array<i64: 100, 25>}, {pipeline_mode = #tpu.pipeline_mode<synchronous>, transform_indices = @transform_13, window_bounds = array<i64: 24, 25>}, {pipeline_mode = #tpu.pipeline_mode<synchronous>, transform_indices = @transform_14, window_bounds = array<i64: 1, 1>}, {transform_indices = @transform_15, window_bounds = array<i64: 1, 1, 2>}]} {
    %0 = tpu.iota {dimensions = array<i32: 2>} : vector<1x1x2xi32>
    %cst = arith.constant 0.000000e+00 : f32
    %1 = vector.broadcast %cst : f32 to vector<1x1x2xf32>
    %c0 = arith.constant 0 : index
    %c0_0 = arith.constant 0 : index
    %c0_1 = arith.constant 0 : index
    %2 = vector.load %arg1[%c0, %c0_0, %c0_1] : memref<2x8x400xf32, #tpu.memory_space<vmem>>, vector<1x8x400xf32>
    %3 = vector.shape_cast %2 : vector<1x8x400xf32> to vector<8x400xf32>
    %c21_i32 = arith.constant 21 : i32
    %4 = tpu.dynamic_rotate %3 by %c21_i32 dim 1 : vector<8x400xf32>, i32 -> vector<8x400xf32>
    %c0_2 = arith.constant 0 : index
    %c0_3 = arith.constant 0 : index
    %5 = vector.load %arg10[%c0_2, %c0_3] : memref<9x400xf32, #tpu.memory_space<vmem>>, vector<1x400xf32>
    %6 = vector.broadcast %5 : vector<1x400xf32> to vector<8x400xf32>
    %7 = arith.mulf %4, %6 : vector<8x400xf32>
    %c0_4 = arith.constant 0 : index
    %c0_5 = arith.constant 0 : index
    %8 = vector.load %arg17[%c0_4, %c0_5] : memref<216x400xf32, #tpu.memory_space<vmem>>, vector<8x400xf32>
    tpu.vector_store %arg17[%c0_4, %c0_5], %7 {strides = array<i32>} : memref<216x400xf32, #tpu.memory_space<vmem>>, vector<8x400xf32>,
    %c20_i32 = arith.constant 20 : i32
    %9 = tpu.dynamic_rotate %3 by %c20_i32 dim 1 : vector<8x400xf32>, i32 -> vector<8x400xf32>
    %c1 = arith.constant 1 : index
    %c0_6 = arith.constant 0 : index
    %10 = vector.load %arg10[%c1, %c0_6] : memref<9x400xf32, #tpu.memory_space<vmem>>, vector<1x400xf32>
    %11 = vector.broadcast %10 : vector<1x400xf32> to vector<8x400xf32>
    %12 = arith.mulf %9, %11 : vector<8x400xf32>
    %c8 = arith.constant 8 : index
    %c0_7 = arith.constant 0 : index
    %13 = vector.load %arg17[%c8, %c0_7] : memref<216x400xf32, #tpu.memory_space<vmem>>, vector<8x400xf32>
    tpu.vector_store %arg17[%c8, %c0_7], %12 {strides = array<i32>} : memref<216x400xf32, #tpu.memory_space<vmem>>, vector<8x400xf32>,
    %c19_i32 = arith.constant 19 : i32
    %14 = tpu.dynamic_rotate %3 by %c19_i32 dim 1 : vector<8x400xf32>, i32 -> vector<8x400xf32>
    %c2 = arith.constant 2 : index
    %c0_8 = arith.constant 0 : index
    %15 = vector.load %arg10[%c2, %c0_8] : memref<9x400xf32, #tpu.memory_space<vmem>>, vector<1x400xf32>
    %16 = vector.broadcast %15 : vector<1x400xf32> to vector<8x400xf32>
    %17 = arith.mulf %14, %16 : vector<8x400xf32>
    %c16 = arith.constant 16 : index
    %c0_9 = arith.constant 0 : index
    %18 = vector.load %arg17[%c16, %c0_9] : memref<216x400xf32, #tpu.memory_space<vmem>>, vector<8x400xf32>
    tpu.vector_store %arg17[%c16, %c0_9], %17 {strides = array<i32>} : memref<216x400xf32, #tpu.memory_space<vmem>>, vector<8x400xf32>,
    %c1_i32 = arith.constant 1 : i32
    %19 = tpu.dynamic_rotate %3 by %c1_i32 dim 1 : vector<8x400xf32>, i32 -> vector<8x400xf32>
    %c3 = arith.constant 3 : index
    %c0_10 = arith.constant 0 : index
    %20 = vector.load %arg10[%c3, %c0_10] : memref<9x400xf32, #tpu.memory_space<vmem>>, vector<1x400xf32>
    %21 = vector.broadcast %20 : vector<1x400xf32> to vector<8x400xf32>
    %22 = arith.mulf %19, %21 : vector<8x400xf32>
    %c24 = arith.constant 24 : index
    %c0_11 = arith.constant 0 : index
    %23 = vector.load %arg17[%c24, %c0_11] : memref<216x400xf32, #tpu.memory_space<vmem>>, vector<8x400xf32>
    tpu.vector_store %arg17[%c24, %c0_11], %22 {strides = array<i32>} : memref<216x400xf32, #tpu.memory_space<vmem>>, vector<8x400xf32>,
    %c32 = arith.constant 32 : index
    %c0_12 = arith.constant 0 : index
    %24 = vector.load %arg17[%c32, %c0_12] : memref<216x400xf32, #tpu.memory_space<vmem>>, vector<8x400xf32>
    tpu.vector_store %arg17[%c32, %c0_12], %3 {strides = array<i32>} : memref<216x400xf32, #tpu.memory_space<vmem>>, vector<8x400xf32>,
    %c399_i32 = arith.constant 399 : i32
    %25 = tpu.dynamic_rotate %3 by %c399_i32 dim 1 : vector<8x400xf32>, i32 -> vector<8x400xf32>
    %c5 = arith.constant 5 : index
    %c0_13 = arith.constant 0 : index
    %26 = vector.load %arg10[%c5, %c0_13] : memref<9x400xf32, #tpu.memory_space<vmem>>, vector<1x400xf32>
    %27 = vector.broadcast %26 : vector<1x400xf32> to vector<8x400xf32>
    %28 = arith.mulf %25, %27 : vector<8x400xf32>
    %c40 = arith.constant 40 : index
    %c0_14 = arith.constant 0 : index
    %29 = vector.load %arg17[%c40, %c0_14] : memref<216x400xf32, #tpu.memory_space<vmem>>, vector<8x400xf32>
    tpu.vector_store %arg17[%c40, %c0_14], %28 {strides = array<i32>} : memref<216x400xf32, #tpu.memory_space<vmem>>, vector<8x400xf32>,
    %c381_i32 = arith.constant 381 : i32
    %30 = tpu.dynamic_rotate %3 by %c381_i32 dim 1 : vector<8x400xf32>, i32 -> vector<8x400xf32>
    %c6 = arith.constant 6 : index
    %c0_15 = arith.constant 0 : index
    %31 = vector.load %arg10[%c6, %c0_15] : memref<9x400xf32, #tpu.memory_space<vmem>>, vector<1x400xf32>
    %32 = vector.broadcast %31 : vector<1x400xf32> to vector<8x400xf32>
    %33 = arith.mulf %30, %32 : vector<8x400xf32>
    %c48 = arith.constant 48 : index
    %c0_16 = arith.constant 0 : index
    %34 = vector.load %arg17[%c48, %c0_16] : memref<216x400xf32, #tpu.memory_space<vmem>>, vector<8x400xf32>
    tpu.vector_store %arg17[%c48, %c0_16], %33 {strides = array<i32>} : memref<216x400xf32, #tpu.memory_space<vmem>>, vector<8x400xf32>,
    %c380_i32 = arith.constant 380 : i32
    %35 = tpu.dynamic_rotate %3 by %c380_i32 dim 1 : vector<8x400xf32>, i32 -> vector<8x400xf32>
    %c7 = arith.constant 7 : index
    %c0_17 = arith.constant 0 : index
    %36 = vector.load %arg10[%c7, %c0_17] : memref<9x400xf32, #tpu.memory_space<vmem>>, vector<1x400xf32>
    %37 = vector.broadcast %36 : vector<1x400xf32> to vector<8x400xf32>
    %38 = arith.mulf %35, %37 : vector<8x400xf32>
    %c56 = arith.constant 56 : index
    %c0_18 = arith.constant 0 : index
    %39 = vector.load %arg17[%c56, %c0_18] : memref<216x400xf32, #tpu.memory_space<vmem>>, vector<8x400xf32>
    tpu.vector_store %arg17[%c56, %c0_18], %38 {strides = array<i32>} : memref<216x400xf32, #tpu.memory_space<vmem>>, vector<8x400xf32>,
    %c379_i32 = arith.constant 379 : i32
    %40 = tpu.dynamic_rotate %3 by %c379_i32 dim 1 : vector<8x400xf32>, i32 -> vector<8x400xf32>
    %c8_19 = arith.constant 8 : index
    %c0_20 = arith.constant 0 : index
    %41 = vector.load %arg10[%c8_19, %c0_20] : memref<9x400xf32, #tpu.memory_space<vmem>>, vector<1x400xf32>
    %42 = vector.broadcast %41 : vector<1x400xf32> to vector<8x400xf32>
    %43 = arith.mulf %40, %42 : vector<8x400xf32>
    %c64 = arith.constant 64 : index
    %c0_21 = arith.constant 0 : index
    %44 = vector.load %arg17[%c64, %c0_21] : memref<216x400xf32, #tpu.memory_space<vmem>>, vector<8x400xf32>
    tpu.vector_store %arg17[%c64, %c0_21], %43 {strides = array<i32>} : memref<216x400xf32, #tpu.memory_space<vmem>>, vector<8x400xf32>,
    %c0_22 = arith.constant 0 : index
    %c0_23 = arith.constant 0 : index
    %45 = vector.load %arg2[%c0_22, %c0_23] : memref<24x72xf32, #tpu.memory_space<vmem>>, vector<24x72xf32>
    %c0_24 = arith.constant 0 : index
    %c0_25 = arith.constant 0 : index
    %46 = vector.load %arg17[%c0_24, %c0_25] : memref<216x400xf32, #tpu.memory_space<vmem>>, vector<72x400xf32>
    %cst_26 = arith.constant dense<0.000000e+00> : vector<24x400xf32>
    %47 = tpu.matmul %45, %46, %cst_26 {dimension_numbers = #tpu.dot_dimension_numbers<[1], [0], [0], [1], [0, 0, 1, 1], [], []>} : vector<24x72xf32>, vector<72x400xf32>, vector<24x400xf32> -> vector<24x400xf32>
    %c0_27 = arith.constant 0 : index
    %c0_28 = arith.constant 0 : index
    %48 = vector.load %arg3[%c0_27, %c0_28] : memref<24x1xf32, #tpu.memory_space<vmem>>, vector<24x1xf32>
    %49 = vector.broadcast %48 : vector<24x1xf32> to vector<24x400xf32>
    %50 = arith.addf %47, %49 : vector<24x400xf32>
    %cst_29 = arith.constant 0.000000e+00 : f32
    %51 = vector.broadcast %cst_29 : f32 to vector<24x400xf32>
    %52 = arith.maximumf %50, %51 : vector<24x400xf32>
    %c21_i32_30 = arith.constant 21 : i32
    %53 = tpu.dynamic_rotate %52 by %c21_i32_30 dim 1 : vector<24x400xf32>, i32 -> vector<24x400xf32>
    %c0_31 = arith.constant 0 : index
    %c0_32 = arith.constant 0 : index
    %54 = vector.load %arg10[%c0_31, %c0_32] : memref<9x400xf32, #tpu.memory_space<vmem>>, vector<1x400xf32>
    %55 = vector.broadcast %54 : vector<1x400xf32> to vector<24x400xf32>
    %56 = arith.mulf %53, %55 : vector<24x400xf32>
    %c0_33 = arith.constant 0 : index
    %c0_34 = arith.constant 0 : index
    %57 = vector.load %arg17[%c0_33, %c0_34] : memref<216x400xf32, #tpu.memory_space<vmem>>, vector<24x400xf32>
    tpu.vector_store %arg17[%c0_33, %c0_34], %56 {strides = array<i32>} : memref<216x400xf32, #tpu.memory_space<vmem>>, vector<24x400xf32>,
    %c20_i32_35 = arith.constant 20 : i32
    %58 = tpu.dynamic_rotate %52 by %c20_i32_35 dim 1 : vector<24x400xf32>, i32 -> vector<24x400xf32>
    %c1_36 = arith.constant 1 : index
    %c0_37 = arith.constant 0 : index
    %59 = vector.load %arg10[%c1_36, %c0_37] : memref<9x400xf32, #tpu.memory_space<vmem>>, vector<1x400xf32>
    %60 = vector.broadcast %59 : vector<1x400xf32> to vector<24x400xf32>
    %61 = arith.mulf %58, %60 : vector<24x400xf32>
    %c24_38 = arith.constant 24 : index
    %c0_39 = arith.constant 0 : index
    %62 = vector.load %arg17[%c24_38, %c0_39] : memref<216x400xf32, #tpu.memory_space<vmem>>, vector<24x400xf32>
    tpu.vector_store %arg17[%c24_38, %c0_39], %61 {strides = array<i32>} : memref<216x400xf32, #tpu.memory_space<vmem>>, vector<24x400xf32>,
    %c19_i32_40 = arith.constant 19 : i32
    %63 = tpu.dynamic_rotate %52 by %c19_i32_40 dim 1 : vector<24x400xf32>, i32 -> vector<24x400xf32>
    %c2_41 = arith.constant 2 : index
    %c0_42 = arith.constant 0 : index
    %64 = vector.load %arg10[%c2_41, %c0_42] : memref<9x400xf32, #tpu.memory_space<vmem>>, vector<1x400xf32>
    %65 = vector.broadcast %64 : vector<1x400xf32> to vector<24x400xf32>
    %66 = arith.mulf %63, %65 : vector<24x400xf32>
    %c48_43 = arith.constant 48 : index
    %c0_44 = arith.constant 0 : index
    %67 = vector.load %arg17[%c48_43, %c0_44] : memref<216x400xf32, #tpu.memory_space<vmem>>, vector<24x400xf32>
    tpu.vector_store %arg17[%c48_43, %c0_44], %66 {strides = array<i32>} : memref<216x400xf32, #tpu.memory_space<vmem>>, vector<24x400xf32>,
    %c1_i32_45 = arith.constant 1 : i32
    %68 = tpu.dynamic_rotate %52 by %c1_i32_45 dim 1 : vector<24x400xf32>, i32 -> vector<24x400xf32>
    %c3_46 = arith.constant 3 : index
    %c0_47 = arith.constant 0 : index
    %69 = vector.load %arg10[%c3_46, %c0_47] : memref<9x400xf32, #tpu.memory_space<vmem>>, vector<1x400xf32>
    %70 = vector.broadcast %69 : vector<1x400xf32> to vector<24x400xf32>
    %71 = arith.mulf %68, %70 : vector<24x400xf32>
    %c72 = arith.constant 72 : index
    %c0_48 = arith.constant 0 : index
    %72 = vector.load %arg17[%c72, %c0_48] : memref<216x400xf32, #tpu.memory_space<vmem>>, vector<24x400xf32>
    tpu.vector_store %arg17[%c72, %c0_48], %71 {strides = array<i32>} : memref<216x400xf32, #tpu.memory_space<vmem>>, vector<24x400xf32>,
    %c96 = arith.constant 96 : index
    %c0_49 = arith.constant 0 : index
    %73 = vector.load %arg17[%c96, %c0_49] : memref<216x400xf32, #tpu.memory_space<vmem>>, vector<24x400xf32>
    tpu.vector_store %arg17[%c96, %c0_49], %52 {strides = array<i32>} : memref<216x400xf32, #tpu.memory_space<vmem>>, vector<24x400xf32>,
    %c399_i32_50 = arith.constant 399 : i32
    %74 = tpu.dynamic_rotate %52 by %c399_i32_50 dim 1 : vector<24x400xf32>, i32 -> vector<24x400xf32>
    %c5_51 = arith.constant 5 : index
    %c0_52 = arith.constant 0 : index
    %75 = vector.load %arg10[%c5_51, %c0_52] : memref<9x400xf32, #tpu.memory_space<vmem>>, vector<1x400xf32>
    %76 = vector.broadcast %75 : vector<1x400xf32> to vector<24x400xf32>
    %77 = arith.mulf %74, %76 : vector<24x400xf32>
    %c120 = arith.constant 120 : index
    %c0_53 = arith.constant 0 : index
    %78 = vector.load %arg17[%c120, %c0_53] : memref<216x400xf32, #tpu.memory_space<vmem>>, vector<24x400xf32>
    tpu.vector_store %arg17[%c120, %c0_53], %77 {strides = array<i32>} : memref<216x400xf32, #tpu.memory_space<vmem>>, vector<24x400xf32>,
    %c381_i32_54 = arith.constant 381 : i32
    %79 = tpu.dynamic_rotate %52 by %c381_i32_54 dim 1 : vector<24x400xf32>, i32 -> vector<24x400xf32>
    %c6_55 = arith.constant 6 : index
    %c0_56 = arith.constant 0 : index
    %80 = vector.load %arg10[%c6_55, %c0_56] : memref<9x400xf32, #tpu.memory_space<vmem>>, vector<1x400xf32>
    %81 = vector.broadcast %80 : vector<1x400xf32> to vector<24x400xf32>
    %82 = arith.mulf %79, %81 : vector<24x400xf32>
    %c144 = arith.constant 144 : index
    %c0_57 = arith.constant 0 : index
    %83 = vector.load %arg17[%c144, %c0_57] : memref<216x400xf32, #tpu.memory_space<vmem>>, vector<24x400xf32>
    tpu.vector_store %arg17[%c144, %c0_57], %82 {strides = array<i32>} : memref<216x400xf32, #tpu.memory_space<vmem>>, vector<24x400xf32>,
    %c380_i32_58 = arith.constant 380 : i32
    %84 = tpu.dynamic_rotate %52 by %c380_i32_58 dim 1 : vector<24x400xf32>, i32 -> vector<24x400xf32>
    %c7_59 = arith.constant 7 : index
    %c0_60 = arith.constant 0 : index
    %85 = vector.load %arg10[%c7_59, %c0_60] : memref<9x400xf32, #tpu.memory_space<vmem>>, vector<1x400xf32>
    %86 = vector.broadcast %85 : vector<1x400xf32> to vector<24x400xf32>
    %87 = arith.mulf %84, %86 : vector<24x400xf32>
    %c168 = arith.constant 168 : index
    %c0_61 = arith.constant 0 : index
    %88 = vector.load %arg17[%c168, %c0_61] : memref<216x400xf32, #tpu.memory_space<vmem>>, vector<24x400xf32>
    tpu.vector_store %arg17[%c168, %c0_61], %87 {strides = array<i32>} : memref<216x400xf32, #tpu.memory_space<vmem>>, vector<24x400xf32>,
    %c379_i32_62 = arith.constant 379 : i32
    %89 = tpu.dynamic_rotate %52 by %c379_i32_62 dim 1 : vector<24x400xf32>, i32 -> vector<24x400xf32>
    %c8_63 = arith.constant 8 : index
    %c0_64 = arith.constant 0 : index
    %90 = vector.load %arg10[%c8_63, %c0_64] : memref<9x400xf32, #tpu.memory_space<vmem>>, vector<1x400xf32>
    %91 = vector.broadcast %90 : vector<1x400xf32> to vector<24x400xf32>
    %92 = arith.mulf %89, %91 : vector<24x400xf32>
    %c192 = arith.constant 192 : index
    %c0_65 = arith.constant 0 : index
    %93 = vector.load %arg17[%c192, %c0_65] : memref<216x400xf32, #tpu.memory_space<vmem>>, vector<24x400xf32>
    tpu.vector_store %arg17[%c192, %c0_65], %92 {strides = array<i32>} : memref<216x400xf32, #tpu.memory_space<vmem>>, vector<24x400xf32>,
    %c0_66 = arith.constant 0 : index
    %c0_67 = arith.constant 0 : index
    %94 = vector.load %arg4[%c0_66, %c0_67] : memref<24x216xf32, #tpu.memory_space<vmem>>, vector<24x216xf32>
    %c0_68 = arith.constant 0 : index
    %c0_69 = arith.constant 0 : index
    %95 = vector.load %arg17[%c0_68, %c0_69] : memref<216x400xf32, #tpu.memory_space<vmem>>, vector<216x400xf32>
    %cst_70 = arith.constant dense<0.000000e+00> : vector<24x400xf32>
    %96 = tpu.matmul %94, %95, %cst_70 {dimension_numbers = #tpu.dot_dimension_numbers<[1], [0], [0], [1], [0, 0, 1, 1], [], []>} : vector<24x216xf32>, vector<216x400xf32>, vector<24x400xf32> -> vector<24x400xf32>
    %c0_71 = arith.constant 0 : index
    %c0_72 = arith.constant 0 : index
    %97 = vector.load %arg5[%c0_71, %c0_72] : memref<24x1xf32, #tpu.memory_space<vmem>>, vector<24x1xf32>
    %98 = vector.broadcast %97 : vector<24x1xf32> to vector<24x400xf32>
    %99 = arith.addf %96, %98 : vector<24x400xf32>
    %cst_73 = arith.constant 0.000000e+00 : f32
    %100 = vector.broadcast %cst_73 : f32 to vector<24x400xf32>
    %101 = arith.maximumf %99, %100 : vector<24x400xf32>
    %c399_i32_74 = arith.constant 399 : i32
    %102 = tpu.dynamic_rotate %101 by %c399_i32_74 dim 1 : vector<24x400xf32>, i32 -> vector<24x400xf32>
    %103 = arith.maximumf %101, %102 : vector<24x400xf32>
    %c380_i32_75 = arith.constant 380 : i32
    %104 = tpu.dynamic_rotate %103 by %c380_i32_75 dim 1 : vector<24x400xf32>, i32 -> vector<24x400xf32>
    %105 = arith.maximumf %103, %104 : vector<24x400xf32>
    %c0_76 = arith.constant 0 : index
    %c0_77 = arith.constant 0 : index
    %106 = vector.load %arg12[%c0_76, %c0_77] : memref<400x100xf32, #tpu.memory_space<vmem>>, vector<400x100xf32>
    %cst_78 = arith.constant dense<0.000000e+00> : vector<24x100xf32>
    %107 = tpu.matmul %105, %106, %cst_78 {dimension_numbers = #tpu.dot_dimension_numbers<[1], [0], [0], [1], [0, 0, 1, 1], [], []>} : vector<24x400xf32>, vector<400x100xf32>, vector<24x100xf32> -> vector<24x100xf32>
    %c11_i32 = arith.constant 11 : i32
    %108 = tpu.dynamic_rotate %107 by %c11_i32 dim 1 : vector<24x100xf32>, i32 -> vector<24x100xf32>
    %c0_79 = arith.constant 0 : index
    %c0_80 = arith.constant 0 : index
    %109 = vector.load %arg11[%c0_79, %c0_80] : memref<9x100xf32, #tpu.memory_space<vmem>>, vector<1x100xf32>
    %110 = vector.broadcast %109 : vector<1x100xf32> to vector<24x100xf32>
    %111 = arith.mulf %108, %110 : vector<24x100xf32>
    %c0_81 = arith.constant 0 : index
    %c0_82 = arith.constant 0 : index
    %112 = vector.load %arg17[%c0_81, %c0_82] : memref<216x400xf32, #tpu.memory_space<vmem>>, vector<24x100xf32>
    tpu.vector_store %arg17[%c0_81, %c0_82], %111 {strides = array<i32>} : memref<216x400xf32, #tpu.memory_space<vmem>>, vector<24x100xf32>,
    %c10_i32 = arith.constant 10 : i32
    %113 = tpu.dynamic_rotate %107 by %c10_i32 dim 1 : vector<24x100xf32>, i32 -> vector<24x100xf32>
    %c1_83 = arith.constant 1 : index
    %c0_84 = arith.constant 0 : index
    %114 = vector.load %arg11[%c1_83, %c0_84] : memref<9x100xf32, #tpu.memory_space<vmem>>, vector<1x100xf32>
    %115 = vector.broadcast %114 : vector<1x100xf32> to vector<24x100xf32>
    %116 = arith.mulf %113, %115 : vector<24x100xf32>
    %c24_85 = arith.constant 24 : index
    %c0_86 = arith.constant 0 : index
    %117 = vector.load %arg17[%c24_85, %c0_86] : memref<216x400xf32, #tpu.memory_space<vmem>>, vector<24x100xf32>
    tpu.vector_store %arg17[%c24_85, %c0_86], %116 {strides = array<i32>} : memref<216x400xf32, #tpu.memory_space<vmem>>, vector<24x100xf32>,
    %c9_i32 = arith.constant 9 : i32
    %118 = tpu.dynamic_rotate %107 by %c9_i32 dim 1 : vector<24x100xf32>, i32 -> vector<24x100xf32>
    %c2_87 = arith.constant 2 : index
    %c0_88 = arith.constant 0 : index
    %119 = vector.load %arg11[%c2_87, %c0_88] : memref<9x100xf32, #tpu.memory_space<vmem>>, vector<1x100xf32>
    %120 = vector.broadcast %119 : vector<1x100xf32> to vector<24x100xf32>
    %121 = arith.mulf %118, %120 : vector<24x100xf32>
    %c48_89 = arith.constant 48 : index
    %c0_90 = arith.constant 0 : index
    %122 = vector.load %arg17[%c48_89, %c0_90] : memref<216x400xf32, #tpu.memory_space<vmem>>, vector<24x100xf32>
    tpu.vector_store %arg17[%c48_89, %c0_90], %121 {strides = array<i32>} : memref<216x400xf32, #tpu.memory_space<vmem>>, vector<24x100xf32>,
    %c1_i32_91 = arith.constant 1 : i32
    %123 = tpu.dynamic_rotate %107 by %c1_i32_91 dim 1 : vector<24x100xf32>, i32 -> vector<24x100xf32>
    %c3_92 = arith.constant 3 : index
    %c0_93 = arith.constant 0 : index
    %124 = vector.load %arg11[%c3_92, %c0_93] : memref<9x100xf32, #tpu.memory_space<vmem>>, vector<1x100xf32>
    %125 = vector.broadcast %124 : vector<1x100xf32> to vector<24x100xf32>
    %126 = arith.mulf %123, %125 : vector<24x100xf32>
    %c72_94 = arith.constant 72 : index
    %c0_95 = arith.constant 0 : index
    %127 = vector.load %arg17[%c72_94, %c0_95] : memref<216x400xf32, #tpu.memory_space<vmem>>, vector<24x100xf32>
    tpu.vector_store %arg17[%c72_94, %c0_95], %126 {strides = array<i32>} : memref<216x400xf32, #tpu.memory_space<vmem>>, vector<24x100xf32>,
    %c96_96 = arith.constant 96 : index
    %c0_97 = arith.constant 0 : index
    %128 = vector.load %arg17[%c96_96, %c0_97] : memref<216x400xf32, #tpu.memory_space<vmem>>, vector<24x100xf32>
    tpu.vector_store %arg17[%c96_96, %c0_97], %107 {strides = array<i32>} : memref<216x400xf32, #tpu.memory_space<vmem>>, vector<24x100xf32>,
    %c99_i32 = arith.constant 99 : i32
    %129 = tpu.dynamic_rotate %107 by %c99_i32 dim 1 : vector<24x100xf32>, i32 -> vector<24x100xf32>
    %c5_98 = arith.constant 5 : index
    %c0_99 = arith.constant 0 : index
    %130 = vector.load %arg11[%c5_98, %c0_99] : memref<9x100xf32, #tpu.memory_space<vmem>>, vector<1x100xf32>
    %131 = vector.broadcast %130 : vector<1x100xf32> to vector<24x100xf32>
    %132 = arith.mulf %129, %131 : vector<24x100xf32>
    %c120_100 = arith.constant 120 : index
    %c0_101 = arith.constant 0 : index
    %133 = vector.load %arg17[%c120_100, %c0_101] : memref<216x400xf32, #tpu.memory_space<vmem>>, vector<24x100xf32>
    tpu.vector_store %arg17[%c120_100, %c0_101], %132 {strides = array<i32>} : memref<216x400xf32, #tpu.memory_space<vmem>>, vector<24x100xf32>,
    %c91_i32 = arith.constant 91 : i32
    %134 = tpu.dynamic_rotate %107 by %c91_i32 dim 1 : vector<24x100xf32>, i32 -> vector<24x100xf32>
    %c6_102 = arith.constant 6 : index
    %c0_103 = arith.constant 0 : index
    %135 = vector.load %arg11[%c6_102, %c0_103] : memref<9x100xf32, #tpu.memory_space<vmem>>, vector<1x100xf32>
    %136 = vector.broadcast %135 : vector<1x100xf32> to vector<24x100xf32>
    %137 = arith.mulf %134, %136 : vector<24x100xf32>
    %c144_104 = arith.constant 144 : index
    %c0_105 = arith.constant 0 : index
    %138 = vector.load %arg17[%c144_104, %c0_105] : memref<216x400xf32, #tpu.memory_space<vmem>>, vector<24x100xf32>
    tpu.vector_store %arg17[%c144_104, %c0_105], %137 {strides = array<i32>} : memref<216x400xf32, #tpu.memory_space<vmem>>, vector<24x100xf32>,
    %c90_i32 = arith.constant 90 : i32
    %139 = tpu.dynamic_rotate %107 by %c90_i32 dim 1 : vector<24x100xf32>, i32 -> vector<24x100xf32>
    %c7_106 = arith.constant 7 : index
    %c0_107 = arith.constant 0 : index
    %140 = vector.load %arg11[%c7_106, %c0_107] : memref<9x100xf32, #tpu.memory_space<vmem>>, vector<1x100xf32>
    %141 = vector.broadcast %140 : vector<1x100xf32> to vector<24x100xf32>
    %142 = arith.mulf %139, %141 : vector<24x100xf32>
    %c168_108 = arith.constant 168 : index
    %c0_109 = arith.constant 0 : index
    %143 = vector.load %arg17[%c168_108, %c0_109] : memref<216x400xf32, #tpu.memory_space<vmem>>, vector<24x100xf32>
    tpu.vector_store %arg17[%c168_108, %c0_109], %142 {strides = array<i32>} : memref<216x400xf32, #tpu.memory_space<vmem>>, vector<24x100xf32>,
    %c89_i32 = arith.constant 89 : i32
    %144 = tpu.dynamic_rotate %107 by %c89_i32 dim 1 : vector<24x100xf32>, i32 -> vector<24x100xf32>
    %c8_110 = arith.constant 8 : index
    %c0_111 = arith.constant 0 : index
    %145 = vector.load %arg11[%c8_110, %c0_111] : memref<9x100xf32, #tpu.memory_space<vmem>>, vector<1x100xf32>
    %146 = vector.broadcast %145 : vector<1x100xf32> to vector<24x100xf32>
    %147 = arith.mulf %144, %146 : vector<24x100xf32>
    %c192_112 = arith.constant 192 : index
    %c0_113 = arith.constant 0 : index
    %148 = vector.load %arg17[%c192_112, %c0_113] : memref<216x400xf32, #tpu.memory_space<vmem>>, vector<24x100xf32>
    tpu.vector_store %arg17[%c192_112, %c0_113], %147 {strides = array<i32>} : memref<216x400xf32, #tpu.memory_space<vmem>>, vector<24x100xf32>,
    %c0_114 = arith.constant 0 : index
    %c0_115 = arith.constant 0 : index
    %149 = vector.load %arg6[%c0_114, %c0_115] : memref<24x216xf32, #tpu.memory_space<vmem>>, vector<24x216xf32>
    %c0_116 = arith.constant 0 : index
    %c0_117 = arith.constant 0 : index
    %150 = vector.load %arg17[%c0_116, %c0_117] : memref<216x400xf32, #tpu.memory_space<vmem>>, vector<216x100xf32>
    %cst_118 = arith.constant dense<0.000000e+00> : vector<24x100xf32>
    %151 = tpu.matmul %149, %150, %cst_118 {dimension_numbers = #tpu.dot_dimension_numbers<[1], [0], [0], [1], [0, 0, 1, 1], [], []>} : vector<24x216xf32>, vector<216x100xf32>, vector<24x100xf32> -> vector<24x100xf32>
    %c0_119 = arith.constant 0 : index
    %c0_120 = arith.constant 0 : index
    %152 = vector.load %arg7[%c0_119, %c0_120] : memref<24x1xf32, #tpu.memory_space<vmem>>, vector<24x1xf32>
    %153 = vector.broadcast %152 : vector<24x1xf32> to vector<24x100xf32>
    %154 = arith.addf %151, %153 : vector<24x100xf32>
    %cst_121 = arith.constant 0.000000e+00 : f32
    %155 = vector.broadcast %cst_121 : f32 to vector<24x100xf32>
    %156 = arith.maximumf %154, %155 : vector<24x100xf32>
    %c11_i32_122 = arith.constant 11 : i32
    %157 = tpu.dynamic_rotate %156 by %c11_i32_122 dim 1 : vector<24x100xf32>, i32 -> vector<24x100xf32>
    %c0_123 = arith.constant 0 : index
    %c0_124 = arith.constant 0 : index
    %158 = vector.load %arg11[%c0_123, %c0_124] : memref<9x100xf32, #tpu.memory_space<vmem>>, vector<1x100xf32>
    %159 = vector.broadcast %158 : vector<1x100xf32> to vector<24x100xf32>
    %160 = arith.mulf %157, %159 : vector<24x100xf32>
    %c0_125 = arith.constant 0 : index
    %c0_126 = arith.constant 0 : index
    %161 = vector.load %arg17[%c0_125, %c0_126] : memref<216x400xf32, #tpu.memory_space<vmem>>, vector<24x100xf32>
    tpu.vector_store %arg17[%c0_125, %c0_126], %160 {strides = array<i32>} : memref<216x400xf32, #tpu.memory_space<vmem>>, vector<24x100xf32>,
    %c10_i32_127 = arith.constant 10 : i32
    %162 = tpu.dynamic_rotate %156 by %c10_i32_127 dim 1 : vector<24x100xf32>, i32 -> vector<24x100xf32>
    %c1_128 = arith.constant 1 : index
    %c0_129 = arith.constant 0 : index
    %163 = vector.load %arg11[%c1_128, %c0_129] : memref<9x100xf32, #tpu.memory_space<vmem>>, vector<1x100xf32>
    %164 = vector.broadcast %163 : vector<1x100xf32> to vector<24x100xf32>
    %165 = arith.mulf %162, %164 : vector<24x100xf32>
    %c24_130 = arith.constant 24 : index
    %c0_131 = arith.constant 0 : index
    %166 = vector.load %arg17[%c24_130, %c0_131] : memref<216x400xf32, #tpu.memory_space<vmem>>, vector<24x100xf32>
    tpu.vector_store %arg17[%c24_130, %c0_131], %165 {strides = array<i32>} : memref<216x400xf32, #tpu.memory_space<vmem>>, vector<24x100xf32>,
    %c9_i32_132 = arith.constant 9 : i32
    %167 = tpu.dynamic_rotate %156 by %c9_i32_132 dim 1 : vector<24x100xf32>, i32 -> vector<24x100xf32>
    %c2_133 = arith.constant 2 : index
    %c0_134 = arith.constant 0 : index
    %168 = vector.load %arg11[%c2_133, %c0_134] : memref<9x100xf32, #tpu.memory_space<vmem>>, vector<1x100xf32>
    %169 = vector.broadcast %168 : vector<1x100xf32> to vector<24x100xf32>
    %170 = arith.mulf %167, %169 : vector<24x100xf32>
    %c48_135 = arith.constant 48 : index
    %c0_136 = arith.constant 0 : index
    %171 = vector.load %arg17[%c48_135, %c0_136] : memref<216x400xf32, #tpu.memory_space<vmem>>, vector<24x100xf32>
    tpu.vector_store %arg17[%c48_135, %c0_136], %170 {strides = array<i32>} : memref<216x400xf32, #tpu.memory_space<vmem>>, vector<24x100xf32>,
    %c1_i32_137 = arith.constant 1 : i32
    %172 = tpu.dynamic_rotate %156 by %c1_i32_137 dim 1 : vector<24x100xf32>, i32 -> vector<24x100xf32>
    %c3_138 = arith.constant 3 : index
    %c0_139 = arith.constant 0 : index
    %173 = vector.load %arg11[%c3_138, %c0_139] : memref<9x100xf32, #tpu.memory_space<vmem>>, vector<1x100xf32>
    %174 = vector.broadcast %173 : vector<1x100xf32> to vector<24x100xf32>
    %175 = arith.mulf %172, %174 : vector<24x100xf32>
    %c72_140 = arith.constant 72 : index
    %c0_141 = arith.constant 0 : index
    %176 = vector.load %arg17[%c72_140, %c0_141] : memref<216x400xf32, #tpu.memory_space<vmem>>, vector<24x100xf32>
    tpu.vector_store %arg17[%c72_140, %c0_141], %175 {strides = array<i32>} : memref<216x400xf32, #tpu.memory_space<vmem>>, vector<24x100xf32>,
    %c96_142 = arith.constant 96 : index
    %c0_143 = arith.constant 0 : index
    %177 = vector.load %arg17[%c96_142, %c0_143] : memref<216x400xf32, #tpu.memory_space<vmem>>, vector<24x100xf32>
    tpu.vector_store %arg17[%c96_142, %c0_143], %156 {strides = array<i32>} : memref<216x400xf32, #tpu.memory_space<vmem>>, vector<24x100xf32>,
    %c99_i32_144 = arith.constant 99 : i32
    %178 = tpu.dynamic_rotate %156 by %c99_i32_144 dim 1 : vector<24x100xf32>, i32 -> vector<24x100xf32>
    %c5_145 = arith.constant 5 : index
    %c0_146 = arith.constant 0 : index
    %179 = vector.load %arg11[%c5_145, %c0_146] : memref<9x100xf32, #tpu.memory_space<vmem>>, vector<1x100xf32>
    %180 = vector.broadcast %179 : vector<1x100xf32> to vector<24x100xf32>
    %181 = arith.mulf %178, %180 : vector<24x100xf32>
    %c120_147 = arith.constant 120 : index
    %c0_148 = arith.constant 0 : index
    %182 = vector.load %arg17[%c120_147, %c0_148] : memref<216x400xf32, #tpu.memory_space<vmem>>, vector<24x100xf32>
    tpu.vector_store %arg17[%c120_147, %c0_148], %181 {strides = array<i32>} : memref<216x400xf32, #tpu.memory_space<vmem>>, vector<24x100xf32>,
    %c91_i32_149 = arith.constant 91 : i32
    %183 = tpu.dynamic_rotate %156 by %c91_i32_149 dim 1 : vector<24x100xf32>, i32 -> vector<24x100xf32>
    %c6_150 = arith.constant 6 : index
    %c0_151 = arith.constant 0 : index
    %184 = vector.load %arg11[%c6_150, %c0_151] : memref<9x100xf32, #tpu.memory_space<vmem>>, vector<1x100xf32>
    %185 = vector.broadcast %184 : vector<1x100xf32> to vector<24x100xf32>
    %186 = arith.mulf %183, %185 : vector<24x100xf32>
    %c144_152 = arith.constant 144 : index
    %c0_153 = arith.constant 0 : index
    %187 = vector.load %arg17[%c144_152, %c0_153] : memref<216x400xf32, #tpu.memory_space<vmem>>, vector<24x100xf32>
    tpu.vector_store %arg17[%c144_152, %c0_153], %186 {strides = array<i32>} : memref<216x400xf32, #tpu.memory_space<vmem>>, vector<24x100xf32>,
    %c90_i32_154 = arith.constant 90 : i32
    %188 = tpu.dynamic_rotate %156 by %c90_i32_154 dim 1 : vector<24x100xf32>, i32 -> vector<24x100xf32>
    %c7_155 = arith.constant 7 : index
    %c0_156 = arith.constant 0 : index
    %189 = vector.load %arg11[%c7_155, %c0_156] : memref<9x100xf32, #tpu.memory_space<vmem>>, vector<1x100xf32>
    %190 = vector.broadcast %189 : vector<1x100xf32> to vector<24x100xf32>
    %191 = arith.mulf %188, %190 : vector<24x100xf32>
    %c168_157 = arith.constant 168 : index
    %c0_158 = arith.constant 0 : index
    %192 = vector.load %arg17[%c168_157, %c0_158] : memref<216x400xf32, #tpu.memory_space<vmem>>, vector<24x100xf32>
    tpu.vector_store %arg17[%c168_157, %c0_158], %191 {strides = array<i32>} : memref<216x400xf32, #tpu.memory_space<vmem>>, vector<24x100xf32>,
    %c89_i32_159 = arith.constant 89 : i32
    %193 = tpu.dynamic_rotate %156 by %c89_i32_159 dim 1 : vector<24x100xf32>, i32 -> vector<24x100xf32>
    %c8_160 = arith.constant 8 : index
    %c0_161 = arith.constant 0 : index
    %194 = vector.load %arg11[%c8_160, %c0_161] : memref<9x100xf32, #tpu.memory_space<vmem>>, vector<1x100xf32>
    %195 = vector.broadcast %194 : vector<1x100xf32> to vector<24x100xf32>
    %196 = arith.mulf %193, %195 : vector<24x100xf32>
    %c192_162 = arith.constant 192 : index
    %c0_163 = arith.constant 0 : index
    %197 = vector.load %arg17[%c192_162, %c0_163] : memref<216x400xf32, #tpu.memory_space<vmem>>, vector<24x100xf32>
    tpu.vector_store %arg17[%c192_162, %c0_163], %196 {strides = array<i32>} : memref<216x400xf32, #tpu.memory_space<vmem>>, vector<24x100xf32>,
    %c0_164 = arith.constant 0 : index
    %c0_165 = arith.constant 0 : index
    %198 = vector.load %arg8[%c0_164, %c0_165] : memref<24x216xf32, #tpu.memory_space<vmem>>, vector<24x216xf32>
    %c0_166 = arith.constant 0 : index
    %c0_167 = arith.constant 0 : index
    %199 = vector.load %arg17[%c0_166, %c0_167] : memref<216x400xf32, #tpu.memory_space<vmem>>, vector<216x100xf32>
    %cst_168 = arith.constant dense<0.000000e+00> : vector<24x100xf32>
    %200 = tpu.matmul %198, %199, %cst_168 {dimension_numbers = #tpu.dot_dimension_numbers<[1], [0], [0], [1], [0, 0, 1, 1], [], []>} : vector<24x216xf32>, vector<216x100xf32>, vector<24x100xf32> -> vector<24x100xf32>
    %c0_169 = arith.constant 0 : index
    %c0_170 = arith.constant 0 : index
    %201 = vector.load %arg9[%c0_169, %c0_170] : memref<24x1xf32, #tpu.memory_space<vmem>>, vector<24x1xf32>
    %202 = vector.broadcast %201 : vector<24x1xf32> to vector<24x100xf32>
    %203 = arith.addf %200, %202 : vector<24x100xf32>
    %cst_171 = arith.constant 0.000000e+00 : f32
    %204 = vector.broadcast %cst_171 : f32 to vector<24x100xf32>
    %205 = arith.maximumf %203, %204 : vector<24x100xf32>
    %c99_i32_172 = arith.constant 99 : i32
    %206 = tpu.dynamic_rotate %205 by %c99_i32_172 dim 1 : vector<24x100xf32>, i32 -> vector<24x100xf32>
    %207 = arith.maximumf %205, %206 : vector<24x100xf32>
    %c90_i32_173 = arith.constant 90 : i32
    %208 = tpu.dynamic_rotate %207 by %c90_i32_173 dim 1 : vector<24x100xf32>, i32 -> vector<24x100xf32>
    %209 = arith.maximumf %207, %208 : vector<24x100xf32>
    %c0_174 = arith.constant 0 : index
    %c0_175 = arith.constant 0 : index
    %210 = vector.load %arg13[%c0_174, %c0_175] : memref<100x25xf32, #tpu.memory_space<vmem>>, vector<100x25xf32>
    %cst_176 = arith.constant dense<0.000000e+00> : vector<24x25xf32>
    %211 = tpu.matmul %209, %210, %cst_176 {dimension_numbers = #tpu.dot_dimension_numbers<[1], [0], [0], [1], [0, 0, 1, 1], [], []>} : vector<24x100xf32>, vector<100x25xf32>, vector<24x25xf32> -> vector<24x25xf32>
    %c0_177 = arith.constant 0 : index
    %c0_178 = arith.constant 0 : index
    %212 = vector.load %arg14[%c0_177, %c0_178] : memref<24x25xf32, #tpu.memory_space<vmem>>, vector<24x25xf32>
    %213 = arith.mulf %211, %212 : vector<24x25xf32>
    %cst_179 = arith.constant dense<0.000000e+00> : vector<24xf32>
    %214 = vector.multi_reduction <add>, %213, %cst_179 [1] : vector<24x25xf32> to vector<24xf32>
    %215 = vector.shape_cast %214 : vector<24xf32> to vector<24x1xf32>
    %cst_180 = arith.constant dense<0.000000e+00> : vector<1xf32>
    %216 = vector.multi_reduction <add>, %215, %cst_180 [0] : vector<24x1xf32> to vector<1xf32>
    %217 = vector.shape_cast %216 : vector<1xf32> to vector<1x1xf32>
    %c0_181 = arith.constant 0 : index
    %c0_182 = arith.constant 0 : index
    %218 = vector.load %arg15[%c0_181, %c0_182] : memref<1x1xf32, #tpu.memory_space<vmem>>, vector<1x1xf32>
    %219 = arith.addf %217, %218 : vector<1x1xf32>
    %c0_i32 = arith.constant 0 : i32
    %220 = vector.broadcast %c0_i32 : i32 to vector<1x1x2xi32>
    %221 = arith.cmpi eq, %0, %220 : vector<1x1x2xi32>
    %222 = vector.shape_cast %219 : vector<1x1xf32> to vector<1x1x1xf32>
    %223 = vector.shape_cast %222 : vector<1x1x1xf32> to vector<1x1x1xf32>
    %224 = vector.broadcast %223 : vector<1x1x1xf32> to vector<1x1x2xf32>
    %225 = arith.select %221, %224, %1 : vector<1x1x2xi1>, vector<1x1x2xf32>
    %c1_183 = arith.constant 1 : index
    %c0_184 = arith.constant 0 : index
    %c0_185 = arith.constant 0 : index
    %226 = vector.load %arg1[%c1_183, %c0_184, %c0_185] : memref<2x8x400xf32, #tpu.memory_space<vmem>>, vector<1x8x400xf32>
    %227 = vector.shape_cast %226 : vector<1x8x400xf32> to vector<8x400xf32>
    %c21_i32_186 = arith.constant 21 : i32
    %228 = tpu.dynamic_rotate %227 by %c21_i32_186 dim 1 : vector<8x400xf32>, i32 -> vector<8x400xf32>
    %c0_187 = arith.constant 0 : index
    %c0_188 = arith.constant 0 : index
    %229 = vector.load %arg10[%c0_187, %c0_188] : memref<9x400xf32, #tpu.memory_space<vmem>>, vector<1x400xf32>
    %230 = vector.broadcast %229 : vector<1x400xf32> to vector<8x400xf32>
    %231 = arith.mulf %228, %230 : vector<8x400xf32>
    %c0_189 = arith.constant 0 : index
    %c0_190 = arith.constant 0 : index
    %232 = vector.load %arg17[%c0_189, %c0_190] : memref<216x400xf32, #tpu.memory_space<vmem>>, vector<8x400xf32>
    tpu.vector_store %arg17[%c0_189, %c0_190], %231 {strides = array<i32>} : memref<216x400xf32, #tpu.memory_space<vmem>>, vector<8x400xf32>,
    %c20_i32_191 = arith.constant 20 : i32
    %233 = tpu.dynamic_rotate %227 by %c20_i32_191 dim 1 : vector<8x400xf32>, i32 -> vector<8x400xf32>
    %c1_192 = arith.constant 1 : index
    %c0_193 = arith.constant 0 : index
    %234 = vector.load %arg10[%c1_192, %c0_193] : memref<9x400xf32, #tpu.memory_space<vmem>>, vector<1x400xf32>
    %235 = vector.broadcast %234 : vector<1x400xf32> to vector<8x400xf32>
    %236 = arith.mulf %233, %235 : vector<8x400xf32>
    %c8_194 = arith.constant 8 : index
    %c0_195 = arith.constant 0 : index
    %237 = vector.load %arg17[%c8_194, %c0_195] : memref<216x400xf32, #tpu.memory_space<vmem>>, vector<8x400xf32>
    tpu.vector_store %arg17[%c8_194, %c0_195], %236 {strides = array<i32>} : memref<216x400xf32, #tpu.memory_space<vmem>>, vector<8x400xf32>,
    %c19_i32_196 = arith.constant 19 : i32
    %238 = tpu.dynamic_rotate %227 by %c19_i32_196 dim 1 : vector<8x400xf32>, i32 -> vector<8x400xf32>
    %c2_197 = arith.constant 2 : index
    %c0_198 = arith.constant 0 : index
    %239 = vector.load %arg10[%c2_197, %c0_198] : memref<9x400xf32, #tpu.memory_space<vmem>>, vector<1x400xf32>
    %240 = vector.broadcast %239 : vector<1x400xf32> to vector<8x400xf32>
    %241 = arith.mulf %238, %240 : vector<8x400xf32>
    %c16_199 = arith.constant 16 : index
    %c0_200 = arith.constant 0 : index
    %242 = vector.load %arg17[%c16_199, %c0_200] : memref<216x400xf32, #tpu.memory_space<vmem>>, vector<8x400xf32>
    tpu.vector_store %arg17[%c16_199, %c0_200], %241 {strides = array<i32>} : memref<216x400xf32, #tpu.memory_space<vmem>>, vector<8x400xf32>,
    %c1_i32_201 = arith.constant 1 : i32
    %243 = tpu.dynamic_rotate %227 by %c1_i32_201 dim 1 : vector<8x400xf32>, i32 -> vector<8x400xf32>
    %c3_202 = arith.constant 3 : index
    %c0_203 = arith.constant 0 : index
    %244 = vector.load %arg10[%c3_202, %c0_203] : memref<9x400xf32, #tpu.memory_space<vmem>>, vector<1x400xf32>
    %245 = vector.broadcast %244 : vector<1x400xf32> to vector<8x400xf32>
    %246 = arith.mulf %243, %245 : vector<8x400xf32>
    %c24_204 = arith.constant 24 : index
    %c0_205 = arith.constant 0 : index
    %247 = vector.load %arg17[%c24_204, %c0_205] : memref<216x400xf32, #tpu.memory_space<vmem>>, vector<8x400xf32>
    tpu.vector_store %arg17[%c24_204, %c0_205], %246 {strides = array<i32>} : memref<216x400xf32, #tpu.memory_space<vmem>>, vector<8x400xf32>,
    %c32_206 = arith.constant 32 : index
    %c0_207 = arith.constant 0 : index
    %248 = vector.load %arg17[%c32_206, %c0_207] : memref<216x400xf32, #tpu.memory_space<vmem>>, vector<8x400xf32>
    tpu.vector_store %arg17[%c32_206, %c0_207], %227 {strides = array<i32>} : memref<216x400xf32, #tpu.memory_space<vmem>>, vector<8x400xf32>,
    %c399_i32_208 = arith.constant 399 : i32
    %249 = tpu.dynamic_rotate %227 by %c399_i32_208 dim 1 : vector<8x400xf32>, i32 -> vector<8x400xf32>
    %c5_209 = arith.constant 5 : index
    %c0_210 = arith.constant 0 : index
    %250 = vector.load %arg10[%c5_209, %c0_210] : memref<9x400xf32, #tpu.memory_space<vmem>>, vector<1x400xf32>
    %251 = vector.broadcast %250 : vector<1x400xf32> to vector<8x400xf32>
    %252 = arith.mulf %249, %251 : vector<8x400xf32>
    %c40_211 = arith.constant 40 : index
    %c0_212 = arith.constant 0 : index
    %253 = vector.load %arg17[%c40_211, %c0_212] : memref<216x400xf32, #tpu.memory_space<vmem>>, vector<8x400xf32>
    tpu.vector_store %arg17[%c40_211, %c0_212], %252 {strides = array<i32>} : memref<216x400xf32, #tpu.memory_space<vmem>>, vector<8x400xf32>,
    %c381_i32_213 = arith.constant 381 : i32
    %254 = tpu.dynamic_rotate %227 by %c381_i32_213 dim 1 : vector<8x400xf32>, i32 -> vector<8x400xf32>
    %c6_214 = arith.constant 6 : index
    %c0_215 = arith.constant 0 : index
    %255 = vector.load %arg10[%c6_214, %c0_215] : memref<9x400xf32, #tpu.memory_space<vmem>>, vector<1x400xf32>
    %256 = vector.broadcast %255 : vector<1x400xf32> to vector<8x400xf32>
    %257 = arith.mulf %254, %256 : vector<8x400xf32>
    %c48_216 = arith.constant 48 : index
    %c0_217 = arith.constant 0 : index
    %258 = vector.load %arg17[%c48_216, %c0_217] : memref<216x400xf32, #tpu.memory_space<vmem>>, vector<8x400xf32>
    tpu.vector_store %arg17[%c48_216, %c0_217], %257 {strides = array<i32>} : memref<216x400xf32, #tpu.memory_space<vmem>>, vector<8x400xf32>,
    %c380_i32_218 = arith.constant 380 : i32
    %259 = tpu.dynamic_rotate %227 by %c380_i32_218 dim 1 : vector<8x400xf32>, i32 -> vector<8x400xf32>
    %c7_219 = arith.constant 7 : index
    %c0_220 = arith.constant 0 : index
    %260 = vector.load %arg10[%c7_219, %c0_220] : memref<9x400xf32, #tpu.memory_space<vmem>>, vector<1x400xf32>
    %261 = vector.broadcast %260 : vector<1x400xf32> to vector<8x400xf32>
    %262 = arith.mulf %259, %261 : vector<8x400xf32>
    %c56_221 = arith.constant 56 : index
    %c0_222 = arith.constant 0 : index
    %263 = vector.load %arg17[%c56_221, %c0_222] : memref<216x400xf32, #tpu.memory_space<vmem>>, vector<8x400xf32>
    tpu.vector_store %arg17[%c56_221, %c0_222], %262 {strides = array<i32>} : memref<216x400xf32, #tpu.memory_space<vmem>>, vector<8x400xf32>,
    %c379_i32_223 = arith.constant 379 : i32
    %264 = tpu.dynamic_rotate %227 by %c379_i32_223 dim 1 : vector<8x400xf32>, i32 -> vector<8x400xf32>
    %c8_224 = arith.constant 8 : index
    %c0_225 = arith.constant 0 : index
    %265 = vector.load %arg10[%c8_224, %c0_225] : memref<9x400xf32, #tpu.memory_space<vmem>>, vector<1x400xf32>
    %266 = vector.broadcast %265 : vector<1x400xf32> to vector<8x400xf32>
    %267 = arith.mulf %264, %266 : vector<8x400xf32>
    %c64_226 = arith.constant 64 : index
    %c0_227 = arith.constant 0 : index
    %268 = vector.load %arg17[%c64_226, %c0_227] : memref<216x400xf32, #tpu.memory_space<vmem>>, vector<8x400xf32>
    tpu.vector_store %arg17[%c64_226, %c0_227], %267 {strides = array<i32>} : memref<216x400xf32, #tpu.memory_space<vmem>>, vector<8x400xf32>,
    %c0_228 = arith.constant 0 : index
    %c0_229 = arith.constant 0 : index
    %269 = vector.load %arg2[%c0_228, %c0_229] : memref<24x72xf32, #tpu.memory_space<vmem>>, vector<24x72xf32>
    %c0_230 = arith.constant 0 : index
    %c0_231 = arith.constant 0 : index
    %270 = vector.load %arg17[%c0_230, %c0_231] : memref<216x400xf32, #tpu.memory_space<vmem>>, vector<72x400xf32>
    %cst_232 = arith.constant dense<0.000000e+00> : vector<24x400xf32>
    %271 = tpu.matmul %269, %270, %cst_232 {dimension_numbers = #tpu.dot_dimension_numbers<[1], [0], [0], [1], [0, 0, 1, 1], [], []>} : vector<24x72xf32>, vector<72x400xf32>, vector<24x400xf32> -> vector<24x400xf32>
    %c0_233 = arith.constant 0 : index
    %c0_234 = arith.constant 0 : index
    %272 = vector.load %arg3[%c0_233, %c0_234] : memref<24x1xf32, #tpu.memory_space<vmem>>, vector<24x1xf32>
    %273 = vector.broadcast %272 : vector<24x1xf32> to vector<24x400xf32>
    %274 = arith.addf %271, %273 : vector<24x400xf32>
    %cst_235 = arith.constant 0.000000e+00 : f32
    %275 = vector.broadcast %cst_235 : f32 to vector<24x400xf32>
    %276 = arith.maximumf %274, %275 : vector<24x400xf32>
    %c21_i32_236 = arith.constant 21 : i32
    %277 = tpu.dynamic_rotate %276 by %c21_i32_236 dim 1 : vector<24x400xf32>, i32 -> vector<24x400xf32>
    %c0_237 = arith.constant 0 : index
    %c0_238 = arith.constant 0 : index
    %278 = vector.load %arg10[%c0_237, %c0_238] : memref<9x400xf32, #tpu.memory_space<vmem>>, vector<1x400xf32>
    %279 = vector.broadcast %278 : vector<1x400xf32> to vector<24x400xf32>
    %280 = arith.mulf %277, %279 : vector<24x400xf32>
    %c0_239 = arith.constant 0 : index
    %c0_240 = arith.constant 0 : index
    %281 = vector.load %arg17[%c0_239, %c0_240] : memref<216x400xf32, #tpu.memory_space<vmem>>, vector<24x400xf32>
    tpu.vector_store %arg17[%c0_239, %c0_240], %280 {strides = array<i32>} : memref<216x400xf32, #tpu.memory_space<vmem>>, vector<24x400xf32>,
    %c20_i32_241 = arith.constant 20 : i32
    %282 = tpu.dynamic_rotate %276 by %c20_i32_241 dim 1 : vector<24x400xf32>, i32 -> vector<24x400xf32>
    %c1_242 = arith.constant 1 : index
    %c0_243 = arith.constant 0 : index
    %283 = vector.load %arg10[%c1_242, %c0_243] : memref<9x400xf32, #tpu.memory_space<vmem>>, vector<1x400xf32>
    %284 = vector.broadcast %283 : vector<1x400xf32> to vector<24x400xf32>
    %285 = arith.mulf %282, %284 : vector<24x400xf32>
    %c24_244 = arith.constant 24 : index
    %c0_245 = arith.constant 0 : index
    %286 = vector.load %arg17[%c24_244, %c0_245] : memref<216x400xf32, #tpu.memory_space<vmem>>, vector<24x400xf32>
    tpu.vector_store %arg17[%c24_244, %c0_245], %285 {strides = array<i32>} : memref<216x400xf32, #tpu.memory_space<vmem>>, vector<24x400xf32>,
    %c19_i32_246 = arith.constant 19 : i32
    %287 = tpu.dynamic_rotate %276 by %c19_i32_246 dim 1 : vector<24x400xf32>, i32 -> vector<24x400xf32>
    %c2_247 = arith.constant 2 : index
    %c0_248 = arith.constant 0 : index
    %288 = vector.load %arg10[%c2_247, %c0_248] : memref<9x400xf32, #tpu.memory_space<vmem>>, vector<1x400xf32>
    %289 = vector.broadcast %288 : vector<1x400xf32> to vector<24x400xf32>
    %290 = arith.mulf %287, %289 : vector<24x400xf32>
    %c48_249 = arith.constant 48 : index
    %c0_250 = arith.constant 0 : index
    %291 = vector.load %arg17[%c48_249, %c0_250] : memref<216x400xf32, #tpu.memory_space<vmem>>, vector<24x400xf32>
    tpu.vector_store %arg17[%c48_249, %c0_250], %290 {strides = array<i32>} : memref<216x400xf32, #tpu.memory_space<vmem>>, vector<24x400xf32>,
    %c1_i32_251 = arith.constant 1 : i32
    %292 = tpu.dynamic_rotate %276 by %c1_i32_251 dim 1 : vector<24x400xf32>, i32 -> vector<24x400xf32>
    %c3_252 = arith.constant 3 : index
    %c0_253 = arith.constant 0 : index
    %293 = vector.load %arg10[%c3_252, %c0_253] : memref<9x400xf32, #tpu.memory_space<vmem>>, vector<1x400xf32>
    %294 = vector.broadcast %293 : vector<1x400xf32> to vector<24x400xf32>
    %295 = arith.mulf %292, %294 : vector<24x400xf32>
    %c72_254 = arith.constant 72 : index
    %c0_255 = arith.constant 0 : index
    %296 = vector.load %arg17[%c72_254, %c0_255] : memref<216x400xf32, #tpu.memory_space<vmem>>, vector<24x400xf32>
    tpu.vector_store %arg17[%c72_254, %c0_255], %295 {strides = array<i32>} : memref<216x400xf32, #tpu.memory_space<vmem>>, vector<24x400xf32>,
    %c96_256 = arith.constant 96 : index
    %c0_257 = arith.constant 0 : index
    %297 = vector.load %arg17[%c96_256, %c0_257] : memref<216x400xf32, #tpu.memory_space<vmem>>, vector<24x400xf32>
    tpu.vector_store %arg17[%c96_256, %c0_257], %276 {strides = array<i32>} : memref<216x400xf32, #tpu.memory_space<vmem>>, vector<24x400xf32>,
    %c399_i32_258 = arith.constant 399 : i32
    %298 = tpu.dynamic_rotate %276 by %c399_i32_258 dim 1 : vector<24x400xf32>, i32 -> vector<24x400xf32>
    %c5_259 = arith.constant 5 : index
    %c0_260 = arith.constant 0 : index
    %299 = vector.load %arg10[%c5_259, %c0_260] : memref<9x400xf32, #tpu.memory_space<vmem>>, vector<1x400xf32>
    %300 = vector.broadcast %299 : vector<1x400xf32> to vector<24x400xf32>
    %301 = arith.mulf %298, %300 : vector<24x400xf32>
    %c120_261 = arith.constant 120 : index
    %c0_262 = arith.constant 0 : index
    %302 = vector.load %arg17[%c120_261, %c0_262] : memref<216x400xf32, #tpu.memory_space<vmem>>, vector<24x400xf32>
    tpu.vector_store %arg17[%c120_261, %c0_262], %301 {strides = array<i32>} : memref<216x400xf32, #tpu.memory_space<vmem>>, vector<24x400xf32>,
    %c381_i32_263 = arith.constant 381 : i32
    %303 = tpu.dynamic_rotate %276 by %c381_i32_263 dim 1 : vector<24x400xf32>, i32 -> vector<24x400xf32>
    %c6_264 = arith.constant 6 : index
    %c0_265 = arith.constant 0 : index
    %304 = vector.load %arg10[%c6_264, %c0_265] : memref<9x400xf32, #tpu.memory_space<vmem>>, vector<1x400xf32>
    %305 = vector.broadcast %304 : vector<1x400xf32> to vector<24x400xf32>
    %306 = arith.mulf %303, %305 : vector<24x400xf32>
    %c144_266 = arith.constant 144 : index
    %c0_267 = arith.constant 0 : index
    %307 = vector.load %arg17[%c144_266, %c0_267] : memref<216x400xf32, #tpu.memory_space<vmem>>, vector<24x400xf32>
    tpu.vector_store %arg17[%c144_266, %c0_267], %306 {strides = array<i32>} : memref<216x400xf32, #tpu.memory_space<vmem>>, vector<24x400xf32>,
    %c380_i32_268 = arith.constant 380 : i32
    %308 = tpu.dynamic_rotate %276 by %c380_i32_268 dim 1 : vector<24x400xf32>, i32 -> vector<24x400xf32>
    %c7_269 = arith.constant 7 : index
    %c0_270 = arith.constant 0 : index
    %309 = vector.load %arg10[%c7_269, %c0_270] : memref<9x400xf32, #tpu.memory_space<vmem>>, vector<1x400xf32>
    %310 = vector.broadcast %309 : vector<1x400xf32> to vector<24x400xf32>
    %311 = arith.mulf %308, %310 : vector<24x400xf32>
    %c168_271 = arith.constant 168 : index
    %c0_272 = arith.constant 0 : index
    %312 = vector.load %arg17[%c168_271, %c0_272] : memref<216x400xf32, #tpu.memory_space<vmem>>, vector<24x400xf32>
    tpu.vector_store %arg17[%c168_271, %c0_272], %311 {strides = array<i32>} : memref<216x400xf32, #tpu.memory_space<vmem>>, vector<24x400xf32>,
    %c379_i32_273 = arith.constant 379 : i32
    %313 = tpu.dynamic_rotate %276 by %c379_i32_273 dim 1 : vector<24x400xf32>, i32 -> vector<24x400xf32>
    %c8_274 = arith.constant 8 : index
    %c0_275 = arith.constant 0 : index
    %314 = vector.load %arg10[%c8_274, %c0_275] : memref<9x400xf32, #tpu.memory_space<vmem>>, vector<1x400xf32>
    %315 = vector.broadcast %314 : vector<1x400xf32> to vector<24x400xf32>
    %316 = arith.mulf %313, %315 : vector<24x400xf32>
    %c192_276 = arith.constant 192 : index
    %c0_277 = arith.constant 0 : index
    %317 = vector.load %arg17[%c192_276, %c0_277] : memref<216x400xf32, #tpu.memory_space<vmem>>, vector<24x400xf32>
    tpu.vector_store %arg17[%c192_276, %c0_277], %316 {strides = array<i32>} : memref<216x400xf32, #tpu.memory_space<vmem>>, vector<24x400xf32>,
    %c0_278 = arith.constant 0 : index
    %c0_279 = arith.constant 0 : index
    %318 = vector.load %arg4[%c0_278, %c0_279] : memref<24x216xf32, #tpu.memory_space<vmem>>, vector<24x216xf32>
    %c0_280 = arith.constant 0 : index
    %c0_281 = arith.constant 0 : index
    %319 = vector.load %arg17[%c0_280, %c0_281] : memref<216x400xf32, #tpu.memory_space<vmem>>, vector<216x400xf32>
    %cst_282 = arith.constant dense<0.000000e+00> : vector<24x400xf32>
    %320 = tpu.matmul %318, %319, %cst_282 {dimension_numbers = #tpu.dot_dimension_numbers<[1], [0], [0], [1], [0, 0, 1, 1], [], []>} : vector<24x216xf32>, vector<216x400xf32>, vector<24x400xf32> -> vector<24x400xf32>
    %c0_283 = arith.constant 0 : index
    %c0_284 = arith.constant 0 : index
    %321 = vector.load %arg5[%c0_283, %c0_284] : memref<24x1xf32, #tpu.memory_space<vmem>>, vector<24x1xf32>
    %322 = vector.broadcast %321 : vector<24x1xf32> to vector<24x400xf32>
    %323 = arith.addf %320, %322 : vector<24x400xf32>
    %cst_285 = arith.constant 0.000000e+00 : f32
    %324 = vector.broadcast %cst_285 : f32 to vector<24x400xf32>
    %325 = arith.maximumf %323, %324 : vector<24x400xf32>
    %c399_i32_286 = arith.constant 399 : i32
    %326 = tpu.dynamic_rotate %325 by %c399_i32_286 dim 1 : vector<24x400xf32>, i32 -> vector<24x400xf32>
    %327 = arith.maximumf %325, %326 : vector<24x400xf32>
    %c380_i32_287 = arith.constant 380 : i32
    %328 = tpu.dynamic_rotate %327 by %c380_i32_287 dim 1 : vector<24x400xf32>, i32 -> vector<24x400xf32>
    %329 = arith.maximumf %327, %328 : vector<24x400xf32>
    %c0_288 = arith.constant 0 : index
    %c0_289 = arith.constant 0 : index
    %330 = vector.load %arg12[%c0_288, %c0_289] : memref<400x100xf32, #tpu.memory_space<vmem>>, vector<400x100xf32>
    %cst_290 = arith.constant dense<0.000000e+00> : vector<24x100xf32>
    %331 = tpu.matmul %329, %330, %cst_290 {dimension_numbers = #tpu.dot_dimension_numbers<[1], [0], [0], [1], [0, 0, 1, 1], [], []>} : vector<24x400xf32>, vector<400x100xf32>, vector<24x100xf32> -> vector<24x100xf32>
    %c11_i32_291 = arith.constant 11 : i32
    %332 = tpu.dynamic_rotate %331 by %c11_i32_291 dim 1 : vector<24x100xf32>, i32 -> vector<24x100xf32>
    %c0_292 = arith.constant 0 : index
    %c0_293 = arith.constant 0 : index
    %333 = vector.load %arg11[%c0_292, %c0_293] : memref<9x100xf32, #tpu.memory_space<vmem>>, vector<1x100xf32>
    %334 = vector.broadcast %333 : vector<1x100xf32> to vector<24x100xf32>
    %335 = arith.mulf %332, %334 : vector<24x100xf32>
    %c0_294 = arith.constant 0 : index
    %c0_295 = arith.constant 0 : index
    %336 = vector.load %arg17[%c0_294, %c0_295] : memref<216x400xf32, #tpu.memory_space<vmem>>, vector<24x100xf32>
    tpu.vector_store %arg17[%c0_294, %c0_295], %335 {strides = array<i32>} : memref<216x400xf32, #tpu.memory_space<vmem>>, vector<24x100xf32>,
    %c10_i32_296 = arith.constant 10 : i32
    %337 = tpu.dynamic_rotate %331 by %c10_i32_296 dim 1 : vector<24x100xf32>, i32 -> vector<24x100xf32>
    %c1_297 = arith.constant 1 : index
    %c0_298 = arith.constant 0 : index
    %338 = vector.load %arg11[%c1_297, %c0_298] : memref<9x100xf32, #tpu.memory_space<vmem>>, vector<1x100xf32>
    %339 = vector.broadcast %338 : vector<1x100xf32> to vector<24x100xf32>
    %340 = arith.mulf %337, %339 : vector<24x100xf32>
    %c24_299 = arith.constant 24 : index
    %c0_300 = arith.constant 0 : index
    %341 = vector.load %arg17[%c24_299, %c0_300] : memref<216x400xf32, #tpu.memory_space<vmem>>, vector<24x100xf32>
    tpu.vector_store %arg17[%c24_299, %c0_300], %340 {strides = array<i32>} : memref<216x400xf32, #tpu.memory_space<vmem>>, vector<24x100xf32>,
    %c9_i32_301 = arith.constant 9 : i32
    %342 = tpu.dynamic_rotate %331 by %c9_i32_301 dim 1 : vector<24x100xf32>, i32 -> vector<24x100xf32>
    %c2_302 = arith.constant 2 : index
    %c0_303 = arith.constant 0 : index
    %343 = vector.load %arg11[%c2_302, %c0_303] : memref<9x100xf32, #tpu.memory_space<vmem>>, vector<1x100xf32>
    %344 = vector.broadcast %343 : vector<1x100xf32> to vector<24x100xf32>
    %345 = arith.mulf %342, %344 : vector<24x100xf32>
    %c48_304 = arith.constant 48 : index
    %c0_305 = arith.constant 0 : index
    %346 = vector.load %arg17[%c48_304, %c0_305] : memref<216x400xf32, #tpu.memory_space<vmem>>, vector<24x100xf32>
    tpu.vector_store %arg17[%c48_304, %c0_305], %345 {strides = array<i32>} : memref<216x400xf32, #tpu.memory_space<vmem>>, vector<24x100xf32>,
    %c1_i32_306 = arith.constant 1 : i32
    %347 = tpu.dynamic_rotate %331 by %c1_i32_306 dim 1 : vector<24x100xf32>, i32 -> vector<24x100xf32>
    %c3_307 = arith.constant 3 : index
    %c0_308 = arith.constant 0 : index
    %348 = vector.load %arg11[%c3_307, %c0_308] : memref<9x100xf32, #tpu.memory_space<vmem>>, vector<1x100xf32>
    %349 = vector.broadcast %348 : vector<1x100xf32> to vector<24x100xf32>
    %350 = arith.mulf %347, %349 : vector<24x100xf32>
    %c72_309 = arith.constant 72 : index
    %c0_310 = arith.constant 0 : index
    %351 = vector.load %arg17[%c72_309, %c0_310] : memref<216x400xf32, #tpu.memory_space<vmem>>, vector<24x100xf32>
    tpu.vector_store %arg17[%c72_309, %c0_310], %350 {strides = array<i32>} : memref<216x400xf32, #tpu.memory_space<vmem>>, vector<24x100xf32>,
    %c96_311 = arith.constant 96 : index
    %c0_312 = arith.constant 0 : index
    %352 = vector.load %arg17[%c96_311, %c0_312] : memref<216x400xf32, #tpu.memory_space<vmem>>, vector<24x100xf32>
    tpu.vector_store %arg17[%c96_311, %c0_312], %331 {strides = array<i32>} : memref<216x400xf32, #tpu.memory_space<vmem>>, vector<24x100xf32>,
    %c99_i32_313 = arith.constant 99 : i32
    %353 = tpu.dynamic_rotate %331 by %c99_i32_313 dim 1 : vector<24x100xf32>, i32 -> vector<24x100xf32>
    %c5_314 = arith.constant 5 : index
    %c0_315 = arith.constant 0 : index
    %354 = vector.load %arg11[%c5_314, %c0_315] : memref<9x100xf32, #tpu.memory_space<vmem>>, vector<1x100xf32>
    %355 = vector.broadcast %354 : vector<1x100xf32> to vector<24x100xf32>
    %356 = arith.mulf %353, %355 : vector<24x100xf32>
    %c120_316 = arith.constant 120 : index
    %c0_317 = arith.constant 0 : index
    %357 = vector.load %arg17[%c120_316, %c0_317] : memref<216x400xf32, #tpu.memory_space<vmem>>, vector<24x100xf32>
    tpu.vector_store %arg17[%c120_316, %c0_317], %356 {strides = array<i32>} : memref<216x400xf32, #tpu.memory_space<vmem>>, vector<24x100xf32>,
    %c91_i32_318 = arith.constant 91 : i32
    %358 = tpu.dynamic_rotate %331 by %c91_i32_318 dim 1 : vector<24x100xf32>, i32 -> vector<24x100xf32>
    %c6_319 = arith.constant 6 : index
    %c0_320 = arith.constant 0 : index
    %359 = vector.load %arg11[%c6_319, %c0_320] : memref<9x100xf32, #tpu.memory_space<vmem>>, vector<1x100xf32>
    %360 = vector.broadcast %359 : vector<1x100xf32> to vector<24x100xf32>
    %361 = arith.mulf %358, %360 : vector<24x100xf32>
    %c144_321 = arith.constant 144 : index
    %c0_322 = arith.constant 0 : index
    %362 = vector.load %arg17[%c144_321, %c0_322] : memref<216x400xf32, #tpu.memory_space<vmem>>, vector<24x100xf32>
    tpu.vector_store %arg17[%c144_321, %c0_322], %361 {strides = array<i32>} : memref<216x400xf32, #tpu.memory_space<vmem>>, vector<24x100xf32>,
    %c90_i32_323 = arith.constant 90 : i32
    %363 = tpu.dynamic_rotate %331 by %c90_i32_323 dim 1 : vector<24x100xf32>, i32 -> vector<24x100xf32>
    %c7_324 = arith.constant 7 : index
    %c0_325 = arith.constant 0 : index
    %364 = vector.load %arg11[%c7_324, %c0_325] : memref<9x100xf32, #tpu.memory_space<vmem>>, vector<1x100xf32>
    %365 = vector.broadcast %364 : vector<1x100xf32> to vector<24x100xf32>
    %366 = arith.mulf %363, %365 : vector<24x100xf32>
    %c168_326 = arith.constant 168 : index
    %c0_327 = arith.constant 0 : index
    %367 = vector.load %arg17[%c168_326, %c0_327] : memref<216x400xf32, #tpu.memory_space<vmem>>, vector<24x100xf32>
    tpu.vector_store %arg17[%c168_326, %c0_327], %366 {strides = array<i32>} : memref<216x400xf32, #tpu.memory_space<vmem>>, vector<24x100xf32>,
    %c89_i32_328 = arith.constant 89 : i32
    %368 = tpu.dynamic_rotate %331 by %c89_i32_328 dim 1 : vector<24x100xf32>, i32 -> vector<24x100xf32>
    %c8_329 = arith.constant 8 : index
    %c0_330 = arith.constant 0 : index
    %369 = vector.load %arg11[%c8_329, %c0_330] : memref<9x100xf32, #tpu.memory_space<vmem>>, vector<1x100xf32>
    %370 = vector.broadcast %369 : vector<1x100xf32> to vector<24x100xf32>
    %371 = arith.mulf %368, %370 : vector<24x100xf32>
    %c192_331 = arith.constant 192 : index
    %c0_332 = arith.constant 0 : index
    %372 = vector.load %arg17[%c192_331, %c0_332] : memref<216x400xf32, #tpu.memory_space<vmem>>, vector<24x100xf32>
    tpu.vector_store %arg17[%c192_331, %c0_332], %371 {strides = array<i32>} : memref<216x400xf32, #tpu.memory_space<vmem>>, vector<24x100xf32>,
    %c0_333 = arith.constant 0 : index
    %c0_334 = arith.constant 0 : index
    %373 = vector.load %arg6[%c0_333, %c0_334] : memref<24x216xf32, #tpu.memory_space<vmem>>, vector<24x216xf32>
    %c0_335 = arith.constant 0 : index
    %c0_336 = arith.constant 0 : index
    %374 = vector.load %arg17[%c0_335, %c0_336] : memref<216x400xf32, #tpu.memory_space<vmem>>, vector<216x100xf32>
    %cst_337 = arith.constant dense<0.000000e+00> : vector<24x100xf32>
    %375 = tpu.matmul %373, %374, %cst_337 {dimension_numbers = #tpu.dot_dimension_numbers<[1], [0], [0], [1], [0, 0, 1, 1], [], []>} : vector<24x216xf32>, vector<216x100xf32>, vector<24x100xf32> -> vector<24x100xf32>
    %c0_338 = arith.constant 0 : index
    %c0_339 = arith.constant 0 : index
    %376 = vector.load %arg7[%c0_338, %c0_339] : memref<24x1xf32, #tpu.memory_space<vmem>>, vector<24x1xf32>
    %377 = vector.broadcast %376 : vector<24x1xf32> to vector<24x100xf32>
    %378 = arith.addf %375, %377 : vector<24x100xf32>
    %cst_340 = arith.constant 0.000000e+00 : f32
    %379 = vector.broadcast %cst_340 : f32 to vector<24x100xf32>
    %380 = arith.maximumf %378, %379 : vector<24x100xf32>
    %c11_i32_341 = arith.constant 11 : i32
    %381 = tpu.dynamic_rotate %380 by %c11_i32_341 dim 1 : vector<24x100xf32>, i32 -> vector<24x100xf32>
    %c0_342 = arith.constant 0 : index
    %c0_343 = arith.constant 0 : index
    %382 = vector.load %arg11[%c0_342, %c0_343] : memref<9x100xf32, #tpu.memory_space<vmem>>, vector<1x100xf32>
    %383 = vector.broadcast %382 : vector<1x100xf32> to vector<24x100xf32>
    %384 = arith.mulf %381, %383 : vector<24x100xf32>
    %c0_344 = arith.constant 0 : index
    %c0_345 = arith.constant 0 : index
    %385 = vector.load %arg17[%c0_344, %c0_345] : memref<216x400xf32, #tpu.memory_space<vmem>>, vector<24x100xf32>
    tpu.vector_store %arg17[%c0_344, %c0_345], %384 {strides = array<i32>} : memref<216x400xf32, #tpu.memory_space<vmem>>, vector<24x100xf32>,
    %c10_i32_346 = arith.constant 10 : i32
    %386 = tpu.dynamic_rotate %380 by %c10_i32_346 dim 1 : vector<24x100xf32>, i32 -> vector<24x100xf32>
    %c1_347 = arith.constant 1 : index
    %c0_348 = arith.constant 0 : index
    %387 = vector.load %arg11[%c1_347, %c0_348] : memref<9x100xf32, #tpu.memory_space<vmem>>, vector<1x100xf32>
    %388 = vector.broadcast %387 : vector<1x100xf32> to vector<24x100xf32>
    %389 = arith.mulf %386, %388 : vector<24x100xf32>
    %c24_349 = arith.constant 24 : index
    %c0_350 = arith.constant 0 : index
    %390 = vector.load %arg17[%c24_349, %c0_350] : memref<216x400xf32, #tpu.memory_space<vmem>>, vector<24x100xf32>
    tpu.vector_store %arg17[%c24_349, %c0_350], %389 {strides = array<i32>} : memref<216x400xf32, #tpu.memory_space<vmem>>, vector<24x100xf32>,
    %c9_i32_351 = arith.constant 9 : i32
    %391 = tpu.dynamic_rotate %380 by %c9_i32_351 dim 1 : vector<24x100xf32>, i32 -> vector<24x100xf32>
    %c2_352 = arith.constant 2 : index
    %c0_353 = arith.constant 0 : index
    %392 = vector.load %arg11[%c2_352, %c0_353] : memref<9x100xf32, #tpu.memory_space<vmem>>, vector<1x100xf32>
    %393 = vector.broadcast %392 : vector<1x100xf32> to vector<24x100xf32>
    %394 = arith.mulf %391, %393 : vector<24x100xf32>
    %c48_354 = arith.constant 48 : index
    %c0_355 = arith.constant 0 : index
    %395 = vector.load %arg17[%c48_354, %c0_355] : memref<216x400xf32, #tpu.memory_space<vmem>>, vector<24x100xf32>
    tpu.vector_store %arg17[%c48_354, %c0_355], %394 {strides = array<i32>} : memref<216x400xf32, #tpu.memory_space<vmem>>, vector<24x100xf32>,
    %c1_i32_356 = arith.constant 1 : i32
    %396 = tpu.dynamic_rotate %380 by %c1_i32_356 dim 1 : vector<24x100xf32>, i32 -> vector<24x100xf32>
    %c3_357 = arith.constant 3 : index
    %c0_358 = arith.constant 0 : index
    %397 = vector.load %arg11[%c3_357, %c0_358] : memref<9x100xf32, #tpu.memory_space<vmem>>, vector<1x100xf32>
    %398 = vector.broadcast %397 : vector<1x100xf32> to vector<24x100xf32>
    %399 = arith.mulf %396, %398 : vector<24x100xf32>
    %c72_359 = arith.constant 72 : index
    %c0_360 = arith.constant 0 : index
    %400 = vector.load %arg17[%c72_359, %c0_360] : memref<216x400xf32, #tpu.memory_space<vmem>>, vector<24x100xf32>
    tpu.vector_store %arg17[%c72_359, %c0_360], %399 {strides = array<i32>} : memref<216x400xf32, #tpu.memory_space<vmem>>, vector<24x100xf32>,
    %c96_361 = arith.constant 96 : index
    %c0_362 = arith.constant 0 : index
    %401 = vector.load %arg17[%c96_361, %c0_362] : memref<216x400xf32, #tpu.memory_space<vmem>>, vector<24x100xf32>
    tpu.vector_store %arg17[%c96_361, %c0_362], %380 {strides = array<i32>} : memref<216x400xf32, #tpu.memory_space<vmem>>, vector<24x100xf32>,
    %c99_i32_363 = arith.constant 99 : i32
    %402 = tpu.dynamic_rotate %380 by %c99_i32_363 dim 1 : vector<24x100xf32>, i32 -> vector<24x100xf32>
    %c5_364 = arith.constant 5 : index
    %c0_365 = arith.constant 0 : index
    %403 = vector.load %arg11[%c5_364, %c0_365] : memref<9x100xf32, #tpu.memory_space<vmem>>, vector<1x100xf32>
    %404 = vector.broadcast %403 : vector<1x100xf32> to vector<24x100xf32>
    %405 = arith.mulf %402, %404 : vector<24x100xf32>
    %c120_366 = arith.constant 120 : index
    %c0_367 = arith.constant 0 : index
    %406 = vector.load %arg17[%c120_366, %c0_367] : memref<216x400xf32, #tpu.memory_space<vmem>>, vector<24x100xf32>
    tpu.vector_store %arg17[%c120_366, %c0_367], %405 {strides = array<i32>} : memref<216x400xf32, #tpu.memory_space<vmem>>, vector<24x100xf32>,
    %c91_i32_368 = arith.constant 91 : i32
    %407 = tpu.dynamic_rotate %380 by %c91_i32_368 dim 1 : vector<24x100xf32>, i32 -> vector<24x100xf32>
    %c6_369 = arith.constant 6 : index
    %c0_370 = arith.constant 0 : index
    %408 = vector.load %arg11[%c6_369, %c0_370] : memref<9x100xf32, #tpu.memory_space<vmem>>, vector<1x100xf32>
    %409 = vector.broadcast %408 : vector<1x100xf32> to vector<24x100xf32>
    %410 = arith.mulf %407, %409 : vector<24x100xf32>
    %c144_371 = arith.constant 144 : index
    %c0_372 = arith.constant 0 : index
    %411 = vector.load %arg17[%c144_371, %c0_372] : memref<216x400xf32, #tpu.memory_space<vmem>>, vector<24x100xf32>
    tpu.vector_store %arg17[%c144_371, %c0_372], %410 {strides = array<i32>} : memref<216x400xf32, #tpu.memory_space<vmem>>, vector<24x100xf32>,
    %c90_i32_373 = arith.constant 90 : i32
    %412 = tpu.dynamic_rotate %380 by %c90_i32_373 dim 1 : vector<24x100xf32>, i32 -> vector<24x100xf32>
    %c7_374 = arith.constant 7 : index
    %c0_375 = arith.constant 0 : index
    %413 = vector.load %arg11[%c7_374, %c0_375] : memref<9x100xf32, #tpu.memory_space<vmem>>, vector<1x100xf32>
    %414 = vector.broadcast %413 : vector<1x100xf32> to vector<24x100xf32>
    %415 = arith.mulf %412, %414 : vector<24x100xf32>
    %c168_376 = arith.constant 168 : index
    %c0_377 = arith.constant 0 : index
    %416 = vector.load %arg17[%c168_376, %c0_377] : memref<216x400xf32, #tpu.memory_space<vmem>>, vector<24x100xf32>
    tpu.vector_store %arg17[%c168_376, %c0_377], %415 {strides = array<i32>} : memref<216x400xf32, #tpu.memory_space<vmem>>, vector<24x100xf32>,
    %c89_i32_378 = arith.constant 89 : i32
    %417 = tpu.dynamic_rotate %380 by %c89_i32_378 dim 1 : vector<24x100xf32>, i32 -> vector<24x100xf32>
    %c8_379 = arith.constant 8 : index
    %c0_380 = arith.constant 0 : index
    %418 = vector.load %arg11[%c8_379, %c0_380] : memref<9x100xf32, #tpu.memory_space<vmem>>, vector<1x100xf32>
    %419 = vector.broadcast %418 : vector<1x100xf32> to vector<24x100xf32>
    %420 = arith.mulf %417, %419 : vector<24x100xf32>
    %c192_381 = arith.constant 192 : index
    %c0_382 = arith.constant 0 : index
    %421 = vector.load %arg17[%c192_381, %c0_382] : memref<216x400xf32, #tpu.memory_space<vmem>>, vector<24x100xf32>
    tpu.vector_store %arg17[%c192_381, %c0_382], %420 {strides = array<i32>} : memref<216x400xf32, #tpu.memory_space<vmem>>, vector<24x100xf32>,
    %c0_383 = arith.constant 0 : index
    %c0_384 = arith.constant 0 : index
    %422 = vector.load %arg8[%c0_383, %c0_384] : memref<24x216xf32, #tpu.memory_space<vmem>>, vector<24x216xf32>
    %c0_385 = arith.constant 0 : index
    %c0_386 = arith.constant 0 : index
    %423 = vector.load %arg17[%c0_385, %c0_386] : memref<216x400xf32, #tpu.memory_space<vmem>>, vector<216x100xf32>
    %cst_387 = arith.constant dense<0.000000e+00> : vector<24x100xf32>
    %424 = tpu.matmul %422, %423, %cst_387 {dimension_numbers = #tpu.dot_dimension_numbers<[1], [0], [0], [1], [0, 0, 1, 1], [], []>} : vector<24x216xf32>, vector<216x100xf32>, vector<24x100xf32> -> vector<24x100xf32>
    %c0_388 = arith.constant 0 : index
    %c0_389 = arith.constant 0 : index
    %425 = vector.load %arg9[%c0_388, %c0_389] : memref<24x1xf32, #tpu.memory_space<vmem>>, vector<24x1xf32>
    %426 = vector.broadcast %425 : vector<24x1xf32> to vector<24x100xf32>
    %427 = arith.addf %424, %426 : vector<24x100xf32>
    %cst_390 = arith.constant 0.000000e+00 : f32
    %428 = vector.broadcast %cst_390 : f32 to vector<24x100xf32>
    %429 = arith.maximumf %427, %428 : vector<24x100xf32>
    %c99_i32_391 = arith.constant 99 : i32
    %430 = tpu.dynamic_rotate %429 by %c99_i32_391 dim 1 : vector<24x100xf32>, i32 -> vector<24x100xf32>
    %431 = arith.maximumf %429, %430 : vector<24x100xf32>
    %c90_i32_392 = arith.constant 90 : i32
    %432 = tpu.dynamic_rotate %431 by %c90_i32_392 dim 1 : vector<24x100xf32>, i32 -> vector<24x100xf32>
    %433 = arith.maximumf %431, %432 : vector<24x100xf32>
    %c0_393 = arith.constant 0 : index
    %c0_394 = arith.constant 0 : index
    %434 = vector.load %arg13[%c0_393, %c0_394] : memref<100x25xf32, #tpu.memory_space<vmem>>, vector<100x25xf32>
    %cst_395 = arith.constant dense<0.000000e+00> : vector<24x25xf32>
    %435 = tpu.matmul %433, %434, %cst_395 {dimension_numbers = #tpu.dot_dimension_numbers<[1], [0], [0], [1], [0, 0, 1, 1], [], []>} : vector<24x100xf32>, vector<100x25xf32>, vector<24x25xf32> -> vector<24x25xf32>
    %c0_396 = arith.constant 0 : index
    %c0_397 = arith.constant 0 : index
    %436 = vector.load %arg14[%c0_396, %c0_397] : memref<24x25xf32, #tpu.memory_space<vmem>>, vector<24x25xf32>
    %437 = arith.mulf %435, %436 : vector<24x25xf32>
    %cst_398 = arith.constant dense<0.000000e+00> : vector<24xf32>
    %438 = vector.multi_reduction <add>, %437, %cst_398 [1] : vector<24x25xf32> to vector<24xf32>
    %439 = vector.shape_cast %438 : vector<24xf32> to vector<24x1xf32>
    %cst_399 = arith.constant dense<0.000000e+00> : vector<1xf32>
    %440 = vector.multi_reduction <add>, %439, %cst_399 [0] : vector<24x1xf32> to vector<1xf32>
    %441 = vector.shape_cast %440 : vector<1xf32> to vector<1x1xf32>
    %c0_400 = arith.constant 0 : index
    %c0_401 = arith.constant 0 : index
    %442 = vector.load %arg15[%c0_400, %c0_401] : memref<1x1xf32, #tpu.memory_space<vmem>>, vector<1x1xf32>
    %443 = arith.addf %441, %442 : vector<1x1xf32>
    %c1_i32_402 = arith.constant 1 : i32
    %444 = vector.broadcast %c1_i32_402 : i32 to vector<1x1x2xi32>
    %445 = arith.cmpi eq, %0, %444 : vector<1x1x2xi32>
    %446 = vector.shape_cast %443 : vector<1x1xf32> to vector<1x1x1xf32>
    %447 = vector.shape_cast %446 : vector<1x1x1xf32> to vector<1x1x1xf32>
    %448 = vector.broadcast %447 : vector<1x1x1xf32> to vector<1x1x2xf32>
    %449 = arith.select %445, %448, %225 : vector<1x1x2xi1>, vector<1x1x2xf32>
    %c0_403 = arith.constant 0 : index
    %c0_404 = arith.constant 0 : index
    %c0_405 = arith.constant 0 : index
    %450 = vector.load %arg16[%c0_403, %c0_404, %c0_405] : memref<1x1x2xf32, #tpu.memory_space<vmem>>, vector<1x1x2xf32>
    tpu.vector_store %arg16[%c0_403, %c0_404, %c0_405], %449 {strides = array<i32>} : memref<1x1x2xf32, #tpu.memory_space<vmem>>, vector<1x1x2xf32>,
    return
  }
  func.func @transform_0(%arg0: i32) -> (i32, i32, i32) {
    %c0_i32 = arith.constant 0 : i32
    %c0_i32_0 = arith.constant 0 : i32
    %c0_i32_1 = arith.constant 0 : i32
    return %arg0, %c0_i32, %c0_i32_0 : i32, i32, i32
  }
  func.func @transform_1(%arg0: i32) -> (i32, i32) {
    %c0_i32 = arith.constant 0 : i32
    %c0_i32_0 = arith.constant 0 : i32
    %c0_i32_1 = arith.constant 0 : i32
    return %c0_i32, %c0_i32_0 : i32, i32
  }
  func.func @transform_2(%arg0: i32) -> (i32, i32) {
    %c0_i32 = arith.constant 0 : i32
    %c0_i32_0 = arith.constant 0 : i32
    %c0_i32_1 = arith.constant 0 : i32
    return %c0_i32, %c0_i32_0 : i32, i32
  }
  func.func @transform_3(%arg0: i32) -> (i32, i32) {
    %c0_i32 = arith.constant 0 : i32
    %c0_i32_0 = arith.constant 0 : i32
    %c0_i32_1 = arith.constant 0 : i32
    return %c0_i32, %c0_i32_0 : i32, i32
  }
  func.func @transform_4(%arg0: i32) -> (i32, i32) {
    %c0_i32 = arith.constant 0 : i32
    %c0_i32_0 = arith.constant 0 : i32
    %c0_i32_1 = arith.constant 0 : i32
    return %c0_i32, %c0_i32_0 : i32, i32
  }
  func.func @transform_5(%arg0: i32) -> (i32, i32) {
    %c0_i32 = arith.constant 0 : i32
    %c0_i32_0 = arith.constant 0 : i32
    %c0_i32_1 = arith.constant 0 : i32
    return %c0_i32, %c0_i32_0 : i32, i32
  }
  func.func @transform_6(%arg0: i32) -> (i32, i32) {
    %c0_i32 = arith.constant 0 : i32
    %c0_i32_0 = arith.constant 0 : i32
    %c0_i32_1 = arith.constant 0 : i32
    return %c0_i32, %c0_i32_0 : i32, i32
  }
  func.func @transform_7(%arg0: i32) -> (i32, i32) {
    %c0_i32 = arith.constant 0 : i32
    %c0_i32_0 = arith.constant 0 : i32
    %c0_i32_1 = arith.constant 0 : i32
    return %c0_i32, %c0_i32_0 : i32, i32
  }
  func.func @transform_8(%arg0: i32) -> (i32, i32) {
    %c0_i32 = arith.constant 0 : i32
    %c0_i32_0 = arith.constant 0 : i32
    %c0_i32_1 = arith.constant 0 : i32
    return %c0_i32, %c0_i32_0 : i32, i32
  }
  func.func @transform_9(%arg0: i32) -> (i32, i32) {
    %c0_i32 = arith.constant 0 : i32
    %c0_i32_0 = arith.constant 0 : i32
    %c0_i32_1 = arith.constant 0 : i32
    return %c0_i32, %c0_i32_0 : i32, i32
  }
  func.func @transform_10(%arg0: i32) -> (i32, i32) {
    %c0_i32 = arith.constant 0 : i32
    %c0_i32_0 = arith.constant 0 : i32
    %c0_i32_1 = arith.constant 0 : i32
    return %c0_i32, %c0_i32_0 : i32, i32
  }
  func.func @transform_11(%arg0: i32) -> (i32, i32) {
    %c0_i32 = arith.constant 0 : i32
    %c0_i32_0 = arith.constant 0 : i32
    %c0_i32_1 = arith.constant 0 : i32
    return %c0_i32, %c0_i32_0 : i32, i32
  }
  func.func @transform_12(%arg0: i32) -> (i32, i32) {
    %c0_i32 = arith.constant 0 : i32
    %c0_i32_0 = arith.constant 0 : i32
    %c0_i32_1 = arith.constant 0 : i32
    return %c0_i32, %c0_i32_0 : i32, i32
  }
  func.func @transform_13(%arg0: i32) -> (i32, i32) {
    %c0_i32 = arith.constant 0 : i32
    %c0_i32_0 = arith.constant 0 : i32
    %c0_i32_1 = arith.constant 0 : i32
    return %c0_i32, %c0_i32_0 : i32, i32
  }
  func.func @transform_14(%arg0: i32) -> (i32, i32) {
    %c0_i32 = arith.constant 0 : i32
    %c0_i32_0 = arith.constant 0 : i32
    %c0_i32_1 = arith.constant 0 : i32
    return %c0_i32, %c0_i32_0 : i32, i32
  }
  func.func @transform_15(%arg0: i32) -> (i32, i32, i32) {
    %c0_i32 = arith.constant 0 : i32
    %c0_i32_0 = arith.constant 0 : i32
    %c0_i32_1 = arith.constant 0 : i32
    return %arg0, %c0_i32, %c0_i32_0 : i32, i32, i32
  }
}

</mosaic_0001>

<bundles_post_ra>
// kernel: _forward.1
= control target key start
LH: loop header
LB: loop body
LE: loop exit
PB: predicated region body
PF: predicated region fallthrough
CT: control target
= control target key end

     0   :  { %s8220_s20 = smov 0   ;;  %s13071_s0 = inlined_call_operand.vmem [shape: f32[4,8,400], index: 0, kind: input, shape index: {}]   ;;  %s13072_s1 = inlined_call_operand.vmem [shape: f32[24,72], index: 1, kind: input, shape index: {}]   ;;  %s13073_s2 = inlined_call_operand.vmem [shape: f32[24,1], index: 2, kind: input, shape index: {}]   ;;  %s13074_s3 = inlined_call_operand.vmem [shape: f32[24,216], index: 3, kind: input, shape index: {}]   ;;  %s13075_s4 = inlined_call_operand.vmem [shape: f32[24,1], index: 4, kind: input, shape index: {}]   ;;  %s13076_s5 = inlined_call_operand.vmem [shape: f32[24,216], index: 5, kind: input, shape index: {}]   ;;  %s13077_s6 = inlined_call_operand.vmem [shape: f32[24,1], index: 6, kind: input, shape index: {}]   ;;  %s13078_s7 = inlined_call_operand.vmem [shape: f32[24,216], index: 7, kind: input, shape index: {}]   ;;  %s13079_s8 = inlined_call_operand.vmem [shape: f32[24,1], index: 8, kind: input, shape index: {}]   ;;  %s13080_s9 = inlined_call_operand.vmem [shape: f32[9,400], index: 9, kind: input, shape index: {}]   ;;  %s13081_s10 = inlined_call_operand.vmem [shape: f32[9,100], index: 10, kind: input, shape index: {}]   ;;  %s13082_s11 = inlined_call_operand.vmem [shape: f32[400,100], index: 11, kind: input, shape index: {}]   ;;  %s13083_s12 = inlined_call_operand.vmem [shape: f32[100,25], index: 12, kind: input, shape index: {}]   ;;  %s13084_s13 = inlined_call_operand.vmem [shape: f32[24,25], index: 13, kind: input, shape index: {}]   ;;  %s13085_s14 = inlined_call_operand.<no memory space> [shape: f32[1,1], index: 14, kind: input, shape index: {}]   ;;  %s13086_s15 = inlined_call_operand.vmem [shape: f32[2,1,2], index: 15, kind: output, shape index: {}]  }
   0x1   :  { %13226 = sst [smem:[#allocation33_spill]] %s13071_s0  ;;  %v20_v0 = vstv %s13085_s14 }
   0x2   :  { %13227 = sst [smem:[#allocation34_spill]] %s13072_s1  ;;  %21 = vst [vmem:[#allocation3] sm:$0x1] %v20_v0 }
   0x3   :  { %13228 = sst [smem:[#allocation35_spill]] %s13073_s2 }
   0x4   :  { %13229 = sst [smem:[#allocation36_spill]] %s13074_s3 }
   0x5   :  { %13230 = sst [smem:[#allocation37_spill]] %s13075_s4 }
   0x6   :  { %13231 = sst [smem:[#allocation38_spill]] %s13076_s5 }
   0x7   :  { %13232 = sst [smem:[#allocation39_spill]] %s13077_s6 }
   0x8   :  { %13233 = sst [smem:[#allocation40_spill]] %s13078_s7 }
   0x9   :  { %13234 = sst [smem:[#allocation41_spill]] %s13079_s8 }
   0xa   :  { %13235 = sst [smem:[#allocation42_spill]] %s13083_s12 }
   0xb   :  { %13236 = sst [smem:[#allocation43_spill]] %s13084_s13 }
   0xc   :  { %13237 = sst [smem:[#allocation44_spill]] %s13086_s15 }
   0xd LB: > { %13238 = sst [smem:[#allocation4_spill]] %s8100_s20  ;;  %s8226_s21 = sadd.s32 4294967295, %s8100_s20   ;;  %s8100_s20 = sphi %s8220_s20, %s27_s20  }
   0xe   : > { %13239 = sst [smem:[#allocation5_spill]] %s8226_s21  ;;  %p7691_p0 = scmp.ge.s32.totalorder %s8100_s20, 1 }
   0xf   : > { %p441_p1 = scmp.lt.s32.totalorder %s8100_s20, 3 }
  0x11   : > { %p442_p2 = pnand %p7691_p0, %p441_p1 }
  0x13   : > { %445 = sbr.rel (%p442_p2) target bundleno = 6978 (0x1b42), region = 80 }
  0x18   : > { %v13120_v1 = vlaneseq  ;;  %s7692_s14 = sshll.u32 %s8226_s21, 1  ;;  %v7701_v3 = vld [vmem:[%s13080_s9 + $0x20] ss:$8 sm:$0xf]  ;;  %s13243_s0 = sld [smem:[#allocation33_spill]]  ;;  %vm13181_vm0 = vcmask 130048  }
  0x19   : > { %p489_p3 = scmp.lt.s32.totalorder %s7692_s14, 3  ;;  %s13105_s28 = smov 21   ;;  %v7700_v12 = vld [vmem:[%s13080_s9 + $0x7] ss:$8 sm:$0xf]  ;;  %vm504_vm1 = vcmask 1047680  }
  0x1a   : > { %v520_v2 = vshrl.u32 %v13120_v1, 7  ;;  %s13087_s29 = smov 16   ;;  %s13091_s17 = smov 20   ;;  %v7699_v18 = vld [vmem:[%s13080_s9 + $0x6] ss:$8 sm:$0xf] }
  0x1b   : > { %s13615_s14 = smov (!%p489_p3, %s7692_s14), 3  ;;  %v7698_v23 = vld [vmem:[%s13080_s9 + $0x5] ss:$8 sm:$0xf]  ;;  %s13118_s30 = smov 15   ;;  %vm1007_vm2 = vcmask 171008  }
  0x1c   : > { %v8235_v4 = vsub.s32 1, %v520_v2  ;;  %v8237_v5 = vsub.s32 0, %v520_v2  ;;  %v8239_v6 = vsub.s32 2, %v520_v2  ;;  %s7811_s24 = sshll.u32 %s13615_s14, 5  ;;  %v8267_v15 = vsub.s32 3, %v520_v2  ;;  %s13089_s14 = smov 19  }
  0x1d   : > { %v7697_v30 = vld [vmem:[%s13080_s9 + $0x3] ss:$8 sm:$0xf]  ;;  %v7696_v35 = vld [vmem:[%s13080_s9 + $0x2] ss:$8 sm:$0xf] }
  0x1e   : > { %13240 = vst [vmem:[#allocation6_spill] sm:$0xff] %v8235_v4  ;;  %13241 = vst [vmem:[#allocation7_spill] sm:$0xff] %v8237_v5  ;;  %v990_v7 = vrot.slane %v7701_v3, %v8235_v4  ;;  %s8245_s27 = scalar_lea.vmem %s13243_s0, %s7811_s24  ;;  %v994_v9 = vrot.slane %v7701_v3, %v8239_v6  ;;  %v986_v10 = vrot.slane %v7701_v3, %v8237_v5  ;;  %s13139_s24 = smov 1   ;;  %v7695_v38 = vld [vmem:[%s13080_s9 + $0x1] ss:$8 sm:$0xf] }
  0x1f   : > { %13242 = vst [vmem:[#allocation8_spill] sm:$0xff] %v8239_v6  ;;  %v8248_v8 = vld [vmem:[%s8245_s27] sm:$0xff]  ;;  %v8256_v11 = vld [vmem:[%s8245_s27 + $0x18] sm:$0xff]  ;;  %v927_v13 = vrot.slane %v7700_v12, %v8235_v4  ;;  %v923_v14 = vrot.slane %v7700_v12, %v8237_v5  ;;  %13244 = vst [vmem:[#allocation9_spill] sm:$0xff] %v8267_v15  ;;  %v998_v16 = vrot.slane %v7701_v3, %v8267_v15  ;;  %s13116_s23 = smov 125   ;;  %s13114_s25 = smov 124  }
  0x20   : > { %1001 = vrot.lane.b32.xlu1 %v990_v7, %s13105_s28  ;;  %505 = vrot.lane.b32.xlu0 %v8248_v8, %s13087_s29  ;;  %790 = vst.msk [vmem:[#allocation2 + $0x98] sm:$0xff] %vm13181_vm0, %v8256_v11  ;;  %v931_v17 = vrot.slane %v7700_v12, %v8239_v6  ;;  %v864_v19 = vrot.slane %v7699_v18, %v8235_v4  ;;  %v8299_v29 = vld [vmem:[%s8245_s27 + $0x8] sm:$0xff]  ;;  %v8309_v32 = vld [vmem:[%s8245_s27 + $0x10] sm:$0xff]  ;;  %s13109_s18 = smov 123   ;;  %s13097_s19 = smov 107   ;;  %vm944_vm3 = vcmask 162816  }
  0x21   : > { %v860_v20 = vrot.slane %v7699_v18, %v8237_v5  ;;  %v935_v21 = vrot.slane %v7700_v12, %v8267_v15  ;;  %v868_v22 = vrot.slane %v7699_v18, %v8239_v6  ;;  %v801_v24 = vrot.slane %v7698_v23, %v8235_v4  ;;  %v517_v43 = vld [vmem:[%s13080_s9] ss:$8 sm:$0xf]  ;;  %s13093_s22 = smov 108   ;;  %s13095_s26 = smov 109  }
  0x22   : > { %v797_v25 = vrot.slane %v7698_v23, %v8237_v5  ;;  %v872_v26 = vrot.slane %v7699_v18, %v8267_v15  ;;  %v805_v27 = vrot.slane %v7698_v23, %v8239_v6  ;;  %v809_v28 = vrot.slane %v7698_v23, %v8267_v15  ;;  %s13103_s16 = smov 127   ;;  %s13245_s2 = sld [smem:[#allocation35_spill]] }
  0x23   : > { %v730_v31 = vrot.slane %v7697_v30, %v8237_v5  ;;  %v738_v33 = vrot.slane %v7697_v30, %v8239_v6  ;;  %v734_v34 = vrot.slane %v7697_v30, %v8235_v4  ;;  %v665_v36 = vrot.slane %v7696_v35, %v8235_v4  ;;  %s13250_s1 = sld [smem:[#allocation34_spill]]  ;;  %s13269_s0 = smov 5  }
  0x24   : > { %1003 = vrot.lane.b32.xlu1 %v994_v9, %s13105_s28  ;;  %999 = vrot.lane.b32.xlu0 %v986_v10, %s13105_s28  ;;  %v661_v37 = vrot.slane %v7696_v35, %v8237_v5  ;;  %v592_v39 = vrot.slane %v7695_v38, %v8237_v5  ;;  %v669_v40 = vrot.slane %v7696_v35, %v8239_v6  ;;  %vm13112_vm4 = vcmask 154624   ;;  %s13268_s3 = sld [smem:[#allocation36_spill]]  ;;  %s13186_s20 = smov 100  }
  0x25   : > { %v600_v41 = vrot.slane %v7695_v38, %v8239_v6  ;;  %v742_v42 = vrot.slane %v7697_v30, %v8267_v15  ;;  %v522_v44 = vrot.slane %v517_v43, %v8237_v5  ;;  %v596_v45 = vrot.slane %v7695_v38, %v8235_v4  ;;  %s13271_s4 = sld [smem:[#allocation37_spill]]  ;;  %s13161_s21 = smov 91  }
  0x26   : > { %v530_v46 = vrot.slane %v517_v43, %v8239_v6  ;;  %v673_v47 = vrot.slane %v7696_v35, %v8267_v15  ;;  %v534_v48 = vrot.slane %v517_v43, %v8267_v15  ;;  %v526_v49 = vrot.slane %v517_v43, %v8235_v4  ;;  %s13157_s15 = smov 10   ;;  %s13184_s13 = smov 90  }
  0x27   : > { %v604_v50 = vrot.slane %v7695_v38, %v8267_v15  ;;  %vm818_vm5 = vcmask 7168   ;;  %vm751_vm6 = vcmask 121856   ;;  %vm13146_vm7 = vcmask 1022976   ;;  %s13169_s12 = smov 117   ;;  %s13304_s5 = sld [smem:[#allocation38_spill]] }
  0x28   : > { %938 = vrot.lane.b32.xlu1 %v927_v13, %s13091_s17  ;;  %936 = vrot.lane.b32.xlu0 %v923_v14, %s13091_s17  ;;  %vm13145_vm8 = vcmask 1014784   ;;  %vm13143_vm9 = vcmask 1006592   ;;  %vm1031_vm10 = vcmask 875520   ;;  %vm13113_vm11 = vcmask 883712   ;;  %s13305_s6 = sld [smem:[#allocation39_spill]] }
  0x29   : > { %vm13111_vm12 = vcmask 891904   ;;  %vm842_vm13 = vcmask 1039360   ;;  %vm775_vm14 = vcmask 924672   ;;  %vm711_vm15 = vcmask 23552   ;;  %s13319_s7 = sld [smem:[#allocation40_spill]] }
  0x2a   : > { %s13329_s8 = sld [smem:[#allocation41_spill]] }
  0x2c   : > { %1005 = vrot.lane.b32.xlu1 %v998_v16, %s13105_s28  ;;  %940 = vrot.lane.b32.xlu0 %v931_v17, %s13091_s17  ;;  %s13246_s28 = smov 123  }
  0x30   : > { %875 = vrot.lane.b32.xlu1 %v864_v19, %s13089_s14  ;;  %873 = vrot.lane.b32.xlu0 %v860_v20, %s13089_s14 }
  0x34   : > { %942 = vrot.lane.b32.xlu1 %v935_v21, %s13091_s17  ;;  %877 = vrot.lane.b32.xlu0 %v868_v22, %s13089_s14  ;;  %s13099_s17 = smov 4  }
  0x38   : > { %812 = vrot.lane.b32.xlu1 %v801_v24, %s13139_s24  ;;  %810 = vrot.lane.b32.xlu0 %v797_v25, %s13139_s24 }
  0x3c   : > { %879 = vrot.lane.b32.xlu1 %v872_v26, %s13089_s14  ;;  %814 = vrot.lane.b32.xlu0 %v805_v27, %s13139_s24  ;;  %s13107_s14 = smov 3  }
  0x40   : > { %508 = vrot.lane.b32.xlu1 %v8299_v29, %s13087_s29  ;;  %816 = vrot.lane.b32.xlu0 %v809_v28, %s13139_s24 }
  0x44   : > { %743 = vrot.lane.b32.xlu1 %v730_v31, %s13118_s30  ;;  %510 = vrot.lane.b32.xlu0 %v8309_v32, %s13087_s29 }
  0x48   : > { %747 = vrot.lane.b32.xlu1 %v738_v33, %s13118_s30  ;;  %745 = vrot.lane.b32.xlu0 %v734_v34, %s13118_s30 }
  0x4c   : > { %676 = vrot.lane.b32.xlu1 %v665_v36, %s13116_s23  ;;  %674 = vrot.lane.b32.xlu0 %v661_v37, %s13116_s23 }
  0x50   : > { %605 = vrot.lane.b32.xlu1 %v592_v39, %s13114_s25  ;;  %678 = vrot.lane.b32.xlu0 %v669_v40, %s13116_s23 }
  0x54   : > { %609 = vrot.lane.b32.xlu1 %v600_v41, %s13114_s25  ;;  %749 = vrot.lane.b32.xlu0 %v742_v42, %s13118_s30 }
  0x58   : > { %535 = vrot.lane.b32.xlu1 %v522_v44, %s13109_s18  ;;  %607 = vrot.lane.b32.xlu0 %v596_v45, %s13114_s25 }
  0x5c   : > { %539 = vrot.lane.b32.xlu1 %v530_v46, %s13109_s18  ;;  %680 = vrot.lane.b32.xlu0 %v673_v47, %s13116_s23 }
  0x60   : > { %541 = vrot.lane.b32.xlu1 %v534_v48, %s13109_s18  ;;  %537 = vrot.lane.b32.xlu0 %v526_v49, %s13109_s18  ;;  %s13255_s18 = smov 3  }
  0x64   : > { %611 = vrot.lane.b32.xlu0 %v604_v50, %s13114_s25 }
  0x92   : > { %v8353_v51 = vpop.permute.xlu1 %1001  ;;  %v506_v52 = vpop.permute.xlu0 %505 }
  0x93   : > { %v8357_v53 = vsel %vm504_vm1, %v506_v52, %v8256_v11 }
  0x94   : > { %512 = vrot.lane.b32.xlu1 %v8357_v53, %s13087_s29  ;;  %s13101_s29 = smov 113  }
  0x96   : > { %v8361_v54 = vpop.permute.xlu1 %1003  ;;  %v1000_v55 = vpop.permute.xlu0 %999 }
  0x97   : > { %v1008_v56 = vsel %vm1007_vm2, %v1000_v55, %v8353_v51  ;;  %v1015_v57 = vmul.f32 %v1000_v55, %v8248_v8  ;;  %v1009_v47 = vsel %vm1007_vm2, %v8353_v51, %v8361_v54 }
  0x98   : > { %v1016_v58 = vmul.f32 %v1008_v56, %v8299_v29  ;;  %v1017_v50 = vmul.f32 %v1009_v47, %v8309_v32 }
  0x99   : > { %1023 = vrot.lane.b32.xlu0 %v1015_v57, %s13097_s19 }
  0x9a   : > { %v8368_v59 = vpop.permute.xlu1 %938  ;;  %v8370_v60 = vpop.permute.xlu0 %936 }
  0x9b   : > { %v952_v61 = vmul.f32 %v8370_v60, %v8248_v8 }
  0x9d   : > { %1025 = vrot.lane.b32.xlu0 %v1016_v58, %s13097_s19  ;;  %960 = vrot.lane.b32.xlu1 %v952_v61, %s13093_s22 }
  0x9e   : > { %v1006_v62 = vpop.permute.xlu1 %1005  ;;  %v941_v63 = vpop.permute.xlu0 %940 }
  0x9f   : > { %v946_v0 = vsel %vm944_vm3, %v8368_v59, %v941_v63  ;;  %v1010_v3 = vsel %vm1007_vm2, %v8361_v54, %v1006_v62 }
  0xa0   : > { %v954_v2 = vmul.f32 %v946_v0, %v8309_v32  ;;  %v1018_v11 = vmul.f32 %v1010_v3, %v8357_v53 }
  0xa2   : > { %v8381_v7 = vpop.permute.xlu1 %875  ;;  %964 = vrot.lane.b32.xlu0 %v954_v2, %s13093_s22  ;;  %v8384_v9 = vpop.permute.xlu0 %873 }
  0xa3   : > { %v889_v10 = vmul.f32 %v8384_v9, %v8248_v8  ;;  %v882_v57 = vsel %vm13112_vm4, %v8384_v9, %v8381_v7 }
  0xa5   : > { %897 = vrot.lane.b32.xlu1 %v889_v10, %s13095_s26 }
  0xa6   : > { %v943_v12 = vpop.permute.xlu1 %942  ;;  %1029 = vrot.lane.b32.xlu0 %v1018_v11, %s13097_s19  ;;  %v878_v13 = vpop.permute.xlu0 %877 }
  0xa7   : > { %v883_v14 = vsel %vm13112_vm4, %v8381_v7, %v878_v13  ;;  %v947_v17 = vsel %vm944_vm3, %v941_v63, %v943_v12 }
  0xa8   : > { %v891_v16 = vmul.f32 %v883_v14, %v8309_v32  ;;  %v955_v21 = vmul.f32 %v947_v17, %v8357_v53 }
  0xaa   : > { %v813_v18 = vpop.permute.xlu1 %812  ;;  %901 = vrot.lane.b32.xlu0 %v891_v16, %s13095_s26  ;;  %v811_v19 = vpop.permute.xlu0 %810 }
  0xab   : > { %v826_v20 = vmul.f32 %v811_v19, %v8248_v8  ;;  %v819_v61 = vsel %vm818_vm5, %v811_v19, %v813_v18 }
  0xac   : > { %v827_v2 = vmul.f32 %v819_v61, %v8299_v29 }
  0xad   : > { %834 = vrot.lane.b32.xlu1 %v826_v20, %s13103_s16 }
  0xae   : > { %v880_v22 = vpop.permute.xlu1 %879  ;;  %966 = vrot.lane.b32.xlu0 %v955_v21, %s13093_s22  ;;  %v815_v23 = vpop.permute.xlu0 %814  ;;  %v13121_v21 = vmov 0.0  }
  0xaf   : > { %v820_v24 = vsel %vm818_vm5, %v813_v18, %v815_v23  ;;  %v884_v26 = vsel %vm13112_vm4, %v878_v13, %v880_v22  ;;  %1174 = vmatprep.mubr.f32.mxu0 %v13121_v21  ;;  %1257 = vmatprep.mubr.f32.mxu1 %v13121_v21  ;;  %vm13149_vm4 = vcmask 39936  }
  0xb0   : > { %v828_v25 = vmul.f32 %v820_v24, %v8309_v32  ;;  %v892_v30 = vmul.f32 %v884_v26, %v8357_v53 }
  0xb2   : > { %v509_v27 = vpop.permute.xlu1 %508  ;;  %838 = vrot.lane.b32.xlu0 %v828_v25, %s13103_s16  ;;  %v817_v28 = vpop.permute.xlu0 %816 }
  0xb3   : > { %v8411_v36 = vsel %vm504_vm1, %v509_v27, %v506_v52  ;;  %v945_v52 = vsel %vm944_vm3, %v8370_v60, %v8368_v59  ;;  %v890_v60 = vmul.f32 %v882_v57, %v8299_v29  ;;  %v821_v3 = vsel %vm818_vm5, %v815_v23, %v817_v28  ;;  %v8531_v57 = vld [vmem:[%s13080_s9 + $0x2] ss:$8 sm:$0xf] }
  0xb4   : > { %v953_v54 = vmul.f32 %v945_v52, %v8299_v29  ;;  %v829_v10 = vmul.f32 %v821_v3, %v8357_v53  ;;  %v1593_v61 = vrot.slane %v8531_v57, %v8235_v4 }
  0xb6   : > { %v744_v31 = vpop.permute.xlu1 %743  ;;  %903 = vrot.lane.b32.xlu0 %v892_v30, %s13095_s26  ;;  %v8406_v33 = vpop.permute.xlu0 %510 }
  0xb7   : > { %v759_v42 = vmul.f32 %v744_v31, %v8357_v53  ;;  %v515_v11 = vsel %vm504_vm1, %v8406_v33, %v509_v27  ;;  %v8120_v27 = vmov 0  }
  0xb8   : > { %8040 = vset.pattern.permute.xlu0 %v8120_v27  ;;  %8039 = vset.pattern.permute.xlu1 %v8120_v27 }
  0xba   : > { %v8408_v34 = vpop.permute.xlu1 %747  ;;  %v746_v35 = vpop.permute.xlu0 %745 }
  0xbb   : > { %v752_v37 = vsel %vm751_vm6, %v744_v31, %v746_v35  ;;  %v753_v13 = vsel %vm751_vm6, %v746_v35, %v8408_v34 }
  0xbc   : > { %v760_v38 = vmul.f32 %v752_v37, %v8411_v36  ;;  %v761_v17 = vmul.f32 %v753_v13, %v515_v11 }
  0xbe   : > { %v677_v39 = vpop.permute.xlu1 %676  ;;  %769 = vrot.lane.b32.xlu0 %v760_v38, %s13101_s29  ;;  %v675_v40 = vpop.permute.xlu0 %674 }
  0xbf   : > { %v691_v41 = vmul.f32 %v675_v40, %v8309_v32  ;;  %v683_v18 = vsel %vm13146_vm7, %v675_v40, %v677_v39 }
  0xc0   : > { %v692_v19 = vmul.f32 %v683_v18, %v8357_v53 }
  0xc1   : > { %701 = vrot.lane.b32.xlu1 %v691_v41, %s13107_s14 }
  0xc2   : > { %v606_v43 = vpop.permute.xlu1 %605  ;;  %767 = vrot.lane.b32.xlu0 %v759_v42, %s13101_s29  ;;  %v679_v44 = vpop.permute.xlu0 %678 }
  0xc3   : > { %v622_v45 = vmul.f32 %v606_v43, %v8309_v32  ;;  %v684_v46 = vsel %vm13146_vm7, %v677_v39, %v679_v44 }
  0xc4   : > { %v693_v48 = vmul.f32 %v684_v46, %v8411_v36 }
  0xc5   : > { %632 = vrot.lane.b32.xlu1 %v622_v45, %s13099_s17  ;;  %v1082_v45 = vld [vmem:[%s13245_s2] sm:$0xff] }
  0xc6   : > { %705 = vrot.lane.b32.xlu0 %v693_v48, %s13107_s14  ;;  %v750_v49 = vpop.permute.xlu0 %749  ;;  %v610_v55 = vpop.permute.xlu1 %609 }
  0xc9   : > { %1027 = vrot.lane.b32.xlu1 %v1017_v50, %s13097_s19  ;;  %s13252_s19 = smov 127  }
  0xca   : > { %v608_v56 = vpop.permute.xlu0 %607  ;;  %v536_v62 = vpop.permute.xlu1 %535 }
  0xcb   : > { %v615_v51 = vsel %vm13145_vm8, %v608_v56, %v610_v55  ;;  %v552_v16 = vmul.f32 %v536_v62, %v8309_v32  ;;  %v614_v20 = vsel %vm13145_vm8, %v606_v43, %v608_v56  ;;  %v1083_v43 = vld [vmem:[%s13245_s2 + $0x8] sm:$0xff] }
  0xcc   : > { %v624_v58 = vmul.f32 %v615_v51, %v8411_v36  ;;  %v623_v22 = vmul.f32 %v614_v20, %v8357_v53 }
  0xcd   : > { %962 = vrot.lane.b32.xlu1 %v953_v54, %s13093_s22  ;;  %s13141_s22 = smov 5  }
  0xce   : > { %636 = vrot.lane.b32.xlu0 %v624_v58, %s13099_s17  ;;  %v681_v59 = vpop.permute.xlu0 %680  ;;  %v540_v24 = vpop.permute.xlu1 %539 }
  0xcf   : > { %v685_v23 = vsel %vm13146_vm7, %v679_v44, %v681_v59  ;;  %v8497_v44 = vld [vmem:[%s13080_s9 + $0x5] ss:$8 sm:$0xf] }
  0xd0   : > { %v694_v25 = vmul.f32 %v685_v23, %v515_v11  ;;  %v1849_v47 = vrot.slane %v8497_v44, %v8235_v4  ;;  %v1845_v48 = vrot.slane %v8497_v44, %v8237_v5 }
  0xd1   : > { %899 = vrot.lane.b32.xlu1 %v890_v60, %s13095_s26  ;;  %v1589_v60 = vrot.slane %v8531_v57, %v8237_v5  ;;  %s13253_s26 = smov 107  }
  0xd2   : > { %v538_v63 = vpop.permute.xlu0 %537  ;;  %v542_v30 = vpop.permute.xlu1 %541 }
  0xd3   : > { %v544_v0 = vsel %vm13143_vm9, %v536_v62, %v538_v63  ;;  %v545_v26 = vsel %vm13143_vm9, %v538_v63, %v540_v24  ;;  %v546_v39 = vsel %vm13143_vm9, %v540_v24, %v542_v30  ;;  %v8545_v63 = vld [vmem:[%s13080_s9 + $0x1] ss:$8 sm:$0xf] }
  0xd4   : > { %v553_v7 = vmul.f32 %v544_v0, %v8357_v53  ;;  %v554_v28 = vmul.f32 %v545_v26, %v8411_v36  ;;  %v754_v53 = vsel %vm751_vm6, %v8408_v34, %v750_v49  ;;  %v555_v36 = vmul.f32 %v546_v39, %v515_v11  ;;  %v8511_v49 = vld [vmem:[%s13080_s9 + $0x3] ss:$8 sm:$0xf]  ;;  %v8614_v39 = vld [vmem:[%s13080_s9 + $0x6] ss:$8 sm:$0xf] }
  0xd5   : > { %836 = vrot.lane.b32.xlu1 %v827_v2, %s13103_s16  ;;  %v1719_v52 = vrot.slane %v8511_v49, %v8237_v5  ;;  %v1727_v51 = vrot.slane %v8511_v49, %v8239_v6  ;;  %v1723_v54 = vrot.slane %v8511_v49, %v8235_v4  ;;  %v1597_v0 = vrot.slane %v8531_v57, %v8239_v6 }
  0xd6   : > { %564 = vrot.lane.b32.xlu0 %v553_v7, %s13141_s22  ;;  %v612_v9 = vpop.permute.xlu0 %611  ;;  %v1459_v2 = vrot.slane %v8545_v63, %v8237_v5 }
  0xd7   : > { %v616_v12 = vsel %vm13145_vm8, %v610_v55, %v612_v9  ;;  %v1853_v55 = vrot.slane %v8497_v44, %v8239_v6 }
  0xd8   : > { %v625_v14 = vmul.f32 %v616_v12, %v515_v11  ;;  %v8563_v12 = vld [vmem:[%s13080_s9] ss:$8 sm:$0xf] }
  0xd9   : > { %840 = vrot.lane.b32.xlu1 %v829_v10, %s13103_s16  ;;  %v1467_v10 = vrot.slane %v8545_v63, %v8239_v6  ;;  %v1329_v13 = vrot.slane %v8563_v12, %v8237_v5  ;;  %v1337_v18 = vrot.slane %v8563_v12, %v8239_v6  ;;  %s13254_s16 = smov 108  }
  0xda   : > { %638 = vrot.lane.b32.xlu0 %v625_v14, %s13099_s17  ;;  %v1333_v14 = vrot.slane %v8563_v12, %v8235_v4 }
  0xdd   : > { %771 = vrot.lane.b32.xlu1 %v761_v17, %s13101_s29  ;;  %v8574_v17 = vld [vmem:[%s13080_s9 + $0x20] ss:$8 sm:$0xf] }
  0xde   : > { %562 = vrot.lane.b32.xlu0 %v552_v16, %s13141_s22  ;;  %v2195_v23 = vrot.slane %v8574_v17, %v8239_v6 }
  0xe1   : > { %703 = vrot.lane.b32.xlu1 %v692_v19, %s13107_s14  ;;  %v2187_v19 = vrot.slane %v8574_v17, %v8237_v5 }
  0xe5   : > { %634 = vrot.lane.b32.xlu1 %v623_v22, %s13099_s17  ;;  %v2191_v22 = vrot.slane %v8574_v17, %v8235_v4 }
  0xe9   : > { %707 = vrot.lane.b32.xlu1 %v694_v25, %s13107_s14  ;;  %v8595_v25 = vld [vmem:[%s13080_s9 + $0x7] ss:$8 sm:$0xf] }
  0xea   : > { %v2073_v27 = vrot.slane %v8595_v25, %v8237_v5 }
  0xed   : > { %566 = vrot.lane.b32.xlu1 %v554_v28, %s13141_s22 }
 0x106   : > { %v513_v31 = vpop.permute.xlu1 %512 }
 0x107   : > { %v516_v35 = vsel %vm504_vm1, %v513_v31, %v8406_v33  ;;  %v1084_v33 = vld [vmem:[%s13245_s2 + $0x10] sm:$0xff]  ;;  %v2077_v31 = vrot.slane %v8595_v25, %v8235_v4  ;;  %s13167_s2 = smov 39  }
 0x108   : > { %v626_v37 = vmul.f32 %v612_v9, %v516_v35  ;;  %v762_v38 = vmul.f32 %v754_v53, %v516_v35  ;;  %v695_v41 = vmul.f32 %v681_v59, %v516_v35  ;;  %v556_v42 = vmul.f32 %v542_v30, %v516_v35 }
 0x109   : > { %v1463_v9 = vrot.slane %v8545_v63, %v8235_v4 }
 0x10a   : > { %640 = vrot.lane.b32.xlu1 %v626_v37, %s13099_s17  ;;  %773 = vrot.lane.b32.xlu0 %v762_v38, %s13101_s29  ;;  %s13248_s29 = smov 20   ;;  %s13249_s17 = smov 19  }
 0x10b   : > { %v8481_v40 = vpop.permute.xlu0 %1023 }
 0x10e   : > { %568 = vrot.lane.b32.xlu1 %v555_v36, %s13141_s22  ;;  %709 = vrot.lane.b32.xlu0 %v695_v41, %s13107_s14  ;;  %s13247_s14 = smov 21  }
 0x10f   : > { %v8485_v34 = vpop.permute.xlu0 %1025  ;;  %v961_v3 = vpop.permute.xlu1 %960 }
 0x110   : > { %v1032_v53 = vsel %vm1031_vm10, %v8481_v40, %v8485_v34  ;;  %v2081_v40 = vrot.slane %v8595_v25, %v8239_v6 }
 0x112   : > { %570 = vrot.lane.b32.xlu0 %v556_v42, %s13141_s22  ;;  %1097 = vperm.xlu1 %8039, %v1084_v33  }
 0x114   : > { %v8502_v46 = vpop.permute.xlu0 %964 }
 0x116   : > { %1092 = vperm.xlu0 %8040, %v1083_v43   ;;  %1087 = vperm.xlu1 %8039, %v1082_v45  }
 0x117   : > { %v898_v11 = vpop.permute.xlu1 %897 }
 0x118   : > { %v1030_v50 = vpop.permute.xlu0 %1029 }
 0x119   : > { %1042 = vst.msk [vmem:[#allocation2 + $0x118] sm:$0xff] %vm13181_vm0, %v1030_v50 }
 0x11a   : > { %1860 = vrot.lane.b32.xlu0 %v1849_v47, %s13139_s24  ;;  %1858 = vrot.lane.b32.xlu1 %v1845_v48, %s13139_s24  ;;  %v1963_v47 = vrot.slane %v8614_v39, %v8235_v4 }
 0x11c   : > { %v8520_v56 = vpop.permute.xlu0 %901 }
 0x11e   : > { %1732 = vrot.lane.b32.xlu0 %v1719_v52, %s13118_s30  ;;  %1862 = vrot.lane.b32.xlu1 %v1853_v55, %s13139_s24 }
 0x11f   : > { %v835_v16 = vpop.permute.xlu1 %834 }
 0x120   : > { %v967_v58 = vpop.permute.xlu0 %966  ;;  %v1081_v59 = vld [vmem:[#allocation2 + $0x118] sm:$0xff] }
 0x121   : > { %979 = vst.msk [vmem:[#allocation2 + $0xf8] sm:$0xff] %vm13181_vm0, %v967_v58  ;;  %1207 = vmatprep.subr.mxu1 %v1081_v59  ;;  %v971_v37 = vsel %vm13113_vm11, %v8502_v46, %v967_v58 }
 0x122   : > { %1736 = vrot.lane.b32.xlu0 %v1727_v51, %s13118_s30  ;;  %1734 = vrot.lane.b32.xlu1 %v1723_v54, %s13118_s30  ;;  %v1857_v51 = vrot.slane %v8497_v44, %v8267_v15  ;;  %v1601_v44 = vrot.slane %v8531_v57, %v8267_v15 }
 0x124   : > { %v8540_v62 = vpop.permute.xlu0 %838 }
 0x126   : > { %1602 = vrot.lane.b32.xlu0 %v1589_v60, %s13116_s23  ;;  %1604 = vrot.lane.b32.xlu1 %v1593_v61, %s13116_s23 }
 0x128   : > { %v904_v7 = vpop.permute.xlu0 %903  ;;  %v1077_v35 = vld [vmem:[#allocation2 + $0xf8] sm:$0xff] }
 0x129   : > { %916 = vst.msk [vmem:[#allocation2 + $0xd8] sm:$0xff] %vm13181_vm0, %v904_v7  ;;  %v908_v33 = vsel %vm13111_vm12, %v8520_v56, %v904_v7 }
 0x12a   : > { %1606 = vrot.lane.b32.xlu0 %v1597_v0, %s13116_s23  ;;  %1472 = vrot.lane.b32.xlu1 %v1459_v2, %s13114_s25 }
 0x12e   : > { %1474 = vrot.lane.b32.xlu0 %v1463_v9, %s13114_s25  ;;  %1476 = vrot.lane.b32.xlu1 %v1467_v10, %s13114_s25  ;;  %v1065_v10 = vld [vmem:[#allocation2 + $0x98] sm:$0xff] }
 0x130   : > { %v770_v38 = vpop.permute.xlu0 %769  ;;  %v1073_v41 = vld [vmem:[#allocation2 + $0xd8] sm:$0xff] }
 0x132   : > { %1342 = vrot.lane.b32.xlu0 %v1329_v13, %s13246_s28  ;;  %1344 = vrot.lane.b32.xlu1 %v1333_v14, %s13246_s28 }
 0x133   : > { %v8582_v20 = vpop.permute.xlu1 %701 }
 0x134   : > { %v768_v48 = vpop.permute.xlu0 %767 }
 0x135   : > { %v776_v2 = vsel %vm775_vm14, %v768_v48, %v770_v38 }
 0x136   : > { %1346 = vrot.lane.b32.xlu0 %v1337_v18, %s13246_s28  ;;  %2200 = vrot.lane.b32.xlu1 %v2187_v19, %s13247_s14 }
 0x137   : > { %v8590_v24 = vpop.permute.xlu1 %632 }
 0x138   : > { %v8645_v59 = vpop.permute.xlu0 %705 }
 0x13a   : > { %2202 = vrot.lane.b32.xlu0 %v2191_v22, %s13247_s14  ;;  %2204 = vrot.lane.b32.xlu1 %v2195_v23, %s13247_s14 }
 0x13b   : > { %v1028_v26 = vpop.permute.xlu1 %1027 }
 0x13c   : > { %v1033_v28 = vsel %vm1031_vm10, %v8485_v34, %v1028_v26  ;;  %v1034_v30 = vsel %vm1031_vm10, %v1028_v26, %v1030_v50  ;;  %v1959_v34 = vrot.slane %v8614_v39, %v8237_v5  ;;  %v1045_v26 = vld [vmem:[%s13250_s1 + $0x10] sm:$0xff] }
 0x13d   : > { %1124 = vmatprep.subr.mxu0 %v1033_v28  ;;  %1208 = vmatpush1.msra.mxu1 %v1034_v30 }
 0x13e   : > { %1125 = vmatpush1.msra.mxu0 %v1032_v53  ;;  %1209 = vmatprep.subr.mxu1 %v1077_v35 }
 0x13f   : > { %v963_v36 = vpop.permute.xlu1 %962  ;;  %1210 = vmatpush1.msra.mxu1 %v971_v37  ;;  %2086 = vrot.lane.b32.xlu0 %v2073_v27, %s13248_s29 }
 0x140   : > { %v969_v42 = vsel %vm13113_vm11, %v961_v3, %v963_v36  ;;  %v970_v43 = vsel %vm13113_vm11, %v963_v36, %v8502_v46  ;;  %1211 = vmatprep.subr.mxu1 %v1073_v41  ;;  %2088 = vrot.lane.b32.xlu1 %v2077_v31, %s13248_s29  ;;  %v1967_v46 = vrot.slane %v8614_v39, %v8239_v6  ;;  %v8656_v61 = vpop.permute.xlu0 %636  ;;  %vm13133_vm11 = vcmask 588800  }
 0x141   : > { %1126 = vmatprep.subr.mxu0 %v970_v43  ;;  %1212 = vmatpush1.msra.mxu1 %v908_v33 }
 0x142   : > { %1127 = vmatpush1.msra.mxu0 %v969_v42 }
 0x143   : > { %v900_v45 = vpop.permute.xlu1 %899  ;;  %2090 = vrot.lane.b32.xlu0 %v2081_v40, %s13248_s29 }
 0x144   : > { %v906_v50 = vsel %vm13111_vm12, %v898_v11, %v900_v45  ;;  %v907_v52 = vsel %vm13111_vm12, %v900_v45, %v8520_v56  ;;  %1972 = vrot.lane.b32.xlu1 %v1959_v34, %s13249_s17  ;;  %v1731_v56 = vrot.slane %v8511_v49, %v8267_v15  ;;  %v2199_v49 = vrot.slane %v8574_v17, %v8267_v15 }
 0x145   : > { %1128 = vmatprep.subr.mxu0 %v907_v52  ;;  %v1971_v11 = vrot.slane %v8614_v39, %v8267_v15  ;;  %vm13156_vm12 = vcmask 31744  }
 0x146   : > { %1129 = vmatpush1.msra.mxu0 %v906_v50 }
 0x147   : > { %v837_v55 = vpop.permute.xlu1 %836  ;;  %1974 = vrot.lane.b32.xlu0 %v1963_v47, %s13249_s17 }
 0x148   : > { %v843_v54 = vsel %vm842_vm13, %v835_v16, %v837_v55  ;;  %v844_v58 = vsel %vm842_vm13, %v837_v55, %v8540_v62  ;;  %1976 = vrot.lane.b32.xlu1 %v1967_v46, %s13249_s17  ;;  %v565_v3 = vpop.permute.xlu0 %564 }
 0x149   : > { %1130 = vmatprep.subr.mxu0 %v844_v58 }
 0x14a   : > { %1131 = vmatpush1.msra.mxu0 %v843_v54 }
 0x14b   : > { %v841_v60 = vpop.permute.xlu1 %840  ;;  %1132 = vmatprep.subr.mxu0 %v8299_v29  ;;  %1864 = vrot.lane.b32.xlu0 %v1857_v51, %s13139_s24  ;;  %v1471_v29 = vrot.slane %v8545_v63, %v8267_v15  ;;  %v1341_v63 = vrot.slane %v8563_v12, %v8267_v15  ;;  %s13267_s24 = smov 109  }
 0x14c   : > { %853 = vst.msk [vmem:[#allocation2 + $0xb8] sm:$0xff] %vm13181_vm0, %v841_v60  ;;  %1133 = vmatpush1.msra.mxu0 %v8248_v8  ;;  %1738 = vrot.lane.b32.xlu1 %v1731_v56, %s13118_s30  ;;  %v2085_v8 = vrot.slane %v8595_v25, %v8267_v15  ;;  %v845_v13 = vsel %vm842_vm13, %v8540_v62, %v841_v60  ;;  %v639_v62 = vpop.permute.xlu0 %638  ;;  %v1044_v25 = vld [vmem:[%s13250_s1 + $0x8] sm:$0xff]  ;;  %s13257_s30 = smov 113  }
 0x14d   : > { %v645_v33 = vsel %vm13156_vm12, %v8656_v61, %v639_v62 }
 0x14f   : > { %v8658_v0 = vpop.permute.xlu1 %771  ;;  %1608 = vrot.lane.b32.xlu0 %v1601_v44, %s13116_s23  ;;  %s13256_s23 = smov 4  }
 0x150   : > { %v777_v57 = vsel %vm775_vm14, %v770_v38, %v8658_v0  ;;  %2206 = vrot.lane.b32.xlu1 %v2199_v49, %s13247_s14 }
 0x151   : > { %1134 = vmatprep.subr.mxu0 %v777_v57 }
 0x152   : > { %1135 = vmatpush1.msra.mxu0 %v776_v2 }
 0x153   : > { %v704_v7 = vpop.permute.xlu1 %703  ;;  %v1069_v9 = vld [vmem:[#allocation2 + $0xb8] sm:$0xff]  ;;  %1478 = vrot.lane.b32.xlu0 %v1471_v29, %s13114_s25  ;;  %s13251_s25 = smov 16  }
 0x154   : > { %v712_v14 = vsel %vm711_vm15, %v8582_v20, %v704_v7  ;;  %v713_v16 = vsel %vm711_vm15, %v704_v7, %v8645_v59  ;;  %1213 = vmatprep.subr.mxu1 %v1069_v9  ;;  %2092 = vrot.lane.b32.xlu1 %v2085_v8, %s13248_s29  ;;  %v563_v20 = vpop.permute.xlu0 %562 }
 0x155   : > { %1214 = vmatpush1.msra.mxu1 %v845_v13  ;;  %1136 = vmatprep.subr.mxu0 %v713_v16 }
 0x156   : > { %1137 = vmatpush1.msra.mxu0 %v712_v14  ;;  %1215 = vmatprep.subr.mxu1 %v1065_v10 }
 0x157   : > { %v635_v12 = vpop.permute.xlu1 %634  ;;  %1216 = vmatpush1.msra.mxu1 %v8309_v32  ;;  %1348 = vrot.lane.b32.xlu0 %v1341_v63, %s13246_s28  ;;  %v1043_v32 = vld [vmem:[%s13250_s1] sm:$0xff]  ;;  %s13177_s1 = smov 9  }
 0x158   : > { %v643_v17 = vsel %vm13156_vm12, %v8590_v24, %v635_v12  ;;  %v644_v18 = vsel %vm13156_vm12, %v635_v12, %v8656_v61  ;;  %1978 = vrot.lane.b32.xlu1 %v1971_v11, %s13249_s17  ;;  %v573_v24 = vsel %vm13149_vm4, %v563_v20, %v565_v3 }
 0x159   : > { %1138 = vmatprep.subr.mxu0 %v644_v18 }
 0x15a   : > { %1139 = vmatpush1.msra.mxu0 %v643_v17 }
 0x15b   : > { %v708_v19 = vpop.permute.xlu1 %707 }
 0x15c   : > { %v714_v40 = vsel %vm711_vm15, %v8645_v59, %v708_v19 }
 0x15f   : > { %v567_v22 = vpop.permute.xlu1 %566 }
 0x160   : > { %v574_v23 = vsel %vm13149_vm4, %v565_v3, %v567_v22 }
 0x161   : > { %1140 = vmatprep.subr.mxu0 %v574_v23 }
 0x162   : > { %1141 = vmatpush1.msra.mxu0 %v573_v24 }
 0x163   : > { %7702 = vmatmul.mubr.msk.f32.vlgmr.msra.gmra.mxu0 %vm13133_vm11, %v1043_v32 }
 0x164   : > { %1180 = vmatprep.mubr.f32.mxu0 %v13121_v21 }
 0x167   : > { %7703 = vmatmul.mubr.msk.f32.gmra.mxu0 %vm13133_vm11, %v1044_v25 }
 0x168   : > { %1186 = vmatprep.mubr.f32.mxu0 %v13121_v21 }
 0x16b   : > { %7704 = vmatmul.mubr.msk.f32.gmra.mxu0 %vm13133_vm11, %v1045_v26 }
 0x17c   : > { %v641_v27 = vpop.permute.xlu1 %640  ;;  %v774_v28 = vpop.permute.xlu0 %773 }
 0x17d   : > { %v646_v30 = vsel %vm13156_vm12, %v639_v62, %v641_v27  ;;  %786 = vst.msk [vmem:[#allocation2 + $0x78] sm:$0xff] %vm13181_vm0, %v774_v28  ;;  %v778_v39 = vsel %vm775_vm14, %v8658_v0, %v774_v28 }
 0x17e   : > { %654 = vst.msk [vmem:[#allocation2 + $0x38] sm:$0xff] %vm13181_vm0, %v646_v30 }
 0x180   : > { %v710_v31 = vpop.permute.xlu0 %709  ;;  %v569_v35 = vpop.permute.xlu1 %568 }
 0x181   : > { %v715_v53 = vsel %vm711_vm15, %v708_v19, %v710_v31  ;;  %v575_v43 = vsel %vm13149_vm4, %v567_v22, %v569_v35 }
 0x182   : > { %723 = vst.msk [vmem:[#allocation2 + $0x58] sm:$0xff] %vm13181_vm0, %v715_v53 }
 0x184   : > { %v571_v37 = vpop.permute.xlu0 %570  ;;  %v1061_v38 = vld [vmem:[#allocation2 + $0x78] sm:$0xff] }
 0x185   : > { %v576_v36 = vsel %vm13149_vm4, %v569_v35, %v571_v37  ;;  %1217 = vmatprep.subr.mxu1 %v1061_v38  ;;  %v1053_v34 = vld [vmem:[#allocation2 + $0x38] sm:$0xff] }
 0x186   : > { %585 = vst.msk [vmem:[#allocation2 + $0x18] sm:$0xff] %vm13181_vm0, %v576_v36  ;;  %1218 = vmatpush1.msra.mxu1 %v778_v39 }
 0x189   : > { %v1057_v41 = vld [vmem:[#allocation2 + $0x58] sm:$0xff] }
 0x18a   : > { %1219 = vmatprep.subr.mxu1 %v1057_v41 }
 0x18b   : > { %1220 = vmatpush1.msra.mxu1 %v714_v40 }
 0x18c   : > { %1221 = vmatprep.subr.mxu1 %v1053_v34 }
 0x18d   : > { %1222 = vmatpush1.msra.mxu1 %v645_v33  ;;  %v1049_v42 = vld [vmem:[#allocation2 + $0x18] sm:$0xff]  ;;  %v8723_v45 = vpop.permute.xlu1 %1097 }
 0x18e   : > { %1223 = vmatprep.subr.mxu1 %v1049_v42 }
 0x18f   : > { %1224 = vmatpush1.msra.mxu1 %v575_v43 }
 0x190   : > { %7705 = vmatmul.mubr.msk.f32.vlgmr.msra.gmra.mxu1 %vm13133_vm11, %v1043_v32 }
 0x191   : > { %1263 = vmatprep.mubr.f32.mxu1 %v13121_v21  ;;  %v8725_v47 = vpop.permute.xlu0 %1092  ;;  %v8727_v48 = vpop.permute.xlu1 %1087 }
 0x194   : > { %7706 = vmatmul.mubr.msk.f32.gmra.mxu1 %vm13133_vm11, %v1044_v25 }
 0x195   : > { %1269 = vmatprep.mubr.f32.mxu1 %v13121_v21  ;;  %v8729_v50 = vpop.permute.xlu0 %1860  ;;  %v8731_v52 = vpop.permute.xlu1 %1858 }
 0x196   : > { %v8801_v25 = vsel %vm818_vm5, %v8731_v52, %v8729_v50 }
 0x198   : > { %7707 = vmatmul.mubr.msk.f32.gmra.mxu1 %vm13133_vm11, %v1045_v26  ;;  %vm13263_vm11 = vcmask 883712  }
 0x199   : > { %v8733_v46 = vpop.permute.xlu0 %1732  ;;  %v8735_v55 = vpop.permute.xlu1 %1862 }
 0x19d   : > { %v8737_v51 = vpop.permute.xlu0 %1736  ;;  %v8739_v54 = vpop.permute.xlu1 %1734 }
 0x1a1   : > { %v8741_v58 = vpop.permute.xlu0 %1602  ;;  %v8743_v56 = vpop.permute.xlu1 %1604 }
 0x1a5   : > { %v8745_v59 = vpop.permute.xlu0 %1606  ;;  %v8747_v60 = vpop.permute.xlu1 %1472 }
 0x1a9   : > { %v8749_v44 = vpop.permute.xlu0 %1474  ;;  %v8751_v49 = vpop.permute.xlu1 %1476 }
 0x1ad   : > { %v8753_v61 = vpop.permute.xlu0 %1342  ;;  %v8756_v8 = vpop.permute.xlu1 %1344 }
 0x1b1   : > { %v8761_v7 = vpop.permute.xlu0 %1346  ;;  %v2201_v19 = vpop.permute.xlu1 %2200 }
 0x1b5   : > { %v8781_v18 = vpop.permute.xlu0 %2202  ;;  %v8808_v28 = vpop.permute.xlu1 %2204 }
 0x1b6   : > { %v2208_v27 = vsel %vm1007_vm2, %v2201_v19, %v8781_v18 }
 0x1b9   : > { %v8792_v32 = vpop.permute.xlu0 %2086  ;;  %v2089_v35 = vpop.permute.xlu1 %2088 }
 0x1ba   : > { %v8819_v37 = vsel %vm944_vm3, %v8792_v32, %v2089_v35 }
 0x1bd   : > { %v8836_v43 = vpop.permute.xlu0 %2090 }
 0x223   : > { %v1176_v0 = vpop.f32.mrf.mxu0 }
 0x224   : > { %v1177_v29 = vadd.f32 %v1176_v0, %v8727_v48 }
 0x225   : > { %v1178_v57 = vpop.f32.mrf.mxu0 }
 0x226   : > { %v8758_v2 = vmax.f32 %v1177_v29, 0.0  ;;  %v1179_v3 = vadd.f32 %v1178_v57, %v8727_v48  ;;  %v2095_v29 = vsel %vm944_vm3, %v2089_v35, %v8836_v43 }
 0x227   : > { %v1182_v9 = vpop.f32.mrf.mxu0 }
 0x228   : > { %1828 = vst [vmem:[#allocation2 + $0x180] sm:$0xff] %v8758_v2  ;;  %v8764_v10 = vmax.f32 %v1179_v3, 0.0  ;;  %v1183_v63 = vadd.f32 %v1182_v9, %v8725_v47  ;;  %1288 = vrot.lane.b32.xlu1 %v8758_v2, %s13251_s25  ;;  %v1873_v16 = vmul.f32 %v8731_v52, %v8758_v2  ;;  %v2215_v22 = vmul.f32 %v2201_v19, %v8758_v2 }
 0x229   : > { %v1184_v11 = vpop.f32.mrf.mxu0 }
 0x22a   : > { %v8769_v13 = vmax.f32 %v1183_v63, 0.0  ;;  %v1185_v14 = vadd.f32 %v1184_v11, %v8725_v47  ;;  %1297 = vrot.lane.b32.xlu0 %v8764_v10, %s13251_s25  ;;  %v1874_v26 = vmul.f32 %v8801_v25, %v8764_v10  ;;  %v2216_v30 = vmul.f32 %v2208_v27, %v8764_v10 }
 0x22b   : > { %v1188_v12 = vpop.f32.mrf.mxu0 }
 0x22c   : > { %1832 = vst [vmem:[#allocation2 + $0x1a0] sm:$0xff] %v8769_v13  ;;  %v8777_v62 = vmax.f32 %v1185_v14, 0.0  ;;  %v1189_v17 = vadd.f32 %v1188_v12, %v8723_v45  ;;  %1897 = vrot.lane.b32.xlu1 %v1873_v16, %s13252_s19  ;;  %v2219_v23 = vmul.f32 %v2201_v19, %v8769_v13  ;;  %v2105_v24 = vmul.f32 %v8792_v32, %v8769_v13 }
 0x22d   : > { %v1190_v53 = vpop.f32.mrf.mxu0 }
 0x22e   : > { %v8783_v20 = vmax.f32 %v1189_v17, 0.0  ;;  %1299 = vrot.lane.b32.xlu0 %v8777_v62, %s13251_s25  ;;  %v2220_v31 = vmul.f32 %v2208_v27, %v8777_v62  ;;  %v1191_v38 = vadd.f32 %v1190_v53, %v8723_v45  ;;  %v2106_v39 = vmul.f32 %v8819_v37, %v8777_v62 }
 0x230   : > { %1836 = vst [vmem:[#allocation2 + $0x1c0] sm:$0xff] %v8783_v20  ;;  %2239 = vrot.lane.b32.xlu1 %v2215_v22, %s13253_s26  ;;  %v8825_v36 = vmax.f32 %v1191_v38, 0.0  ;;  %v2223_v41 = vmul.f32 %v2201_v19, %v8783_v20  ;;  %v2109_v40 = vmul.f32 %v8792_v32, %v8783_v20 }
 0x232   : > { %2247 = vrot.lane.b32.xlu0 %v2219_v23, %s13253_s26  ;;  %v2224_v33 = vmul.f32 %v2208_v27, %v8825_v36  ;;  %v2110_v63 = vmul.f32 %v8819_v37, %v8825_v36  ;;  %v2209_v27 = vsel %vm1007_vm2, %v8781_v18, %v8808_v28 }
 0x234   : > { %1291 = vrot.lane.b32.xlu1 %v8769_v13, %s13251_s25 }
 0x236   : > { %2133 = vrot.lane.b32.xlu0 %v2105_v24, %s13254_s16 }
 0x238   : > { %1899 = vrot.lane.b32.xlu1 %v1874_v26, %s13252_s19 }
 0x23a   : > { %1294 = vrot.lane.b32.xlu0 %v8783_v20, %s13251_s25 }
 0x23c   : > { %2241 = vrot.lane.b32.xlu1 %v2216_v30, %s13253_s26 }
 0x23e   : > { %2249 = vrot.lane.b32.xlu0 %v2220_v31, %s13253_s26 }
 0x242   : > { %2135 = vrot.lane.b32.xlu0 %v2106_v39, %s13254_s16 }
 0x246   : > { %1301 = vrot.lane.b32.xlu0 %v8825_v36, %s13251_s25 }
 0x24a   : > { %2255 = vrot.lane.b32.xlu0 %v2223_v41, %s13253_s26 }
 0x24e   : > { %2141 = vrot.lane.b32.xlu0 %v2109_v40, %s13254_s16 }
 0x250   : > { %v1259_v34 = vpop.f32.mrf.mxu1 }
 0x251   : > { %v1260_v42 = vadd.f32 %v1259_v34, %v8727_v48 }
 0x252   : > { %v1261_v0 = vpop.f32.mrf.mxu1  ;;  %2257 = vrot.lane.b32.xlu0 %v2224_v33, %s13253_s26 }
 0x253   : > { %v8841_v57 = vmax.f32 %v1260_v42, 0.0  ;;  %v8844_v3 = vadd.f32 %v1261_v0, %v8727_v48  ;;  %v1867_v48 = vsel %vm818_vm5, %v8729_v50, %v8735_v55 }
 0x254   : > { %v1265_v9 = vpop.f32.mrf.mxu1 }
 0x255   : > { %1830 = vst [vmem:[#allocation2 + $0x190] sm:$0xff] %v8841_v57  ;;  %v1279_v11 = vmax.f32 %v8844_v3, 0.0  ;;  %v1266_v14 = vadd.f32 %v1265_v9, %v8725_v47  ;;  %1303 = vrot.lane.b32.xlu1 %v8841_v57, %s13251_s25  ;;  %v8855_v12 = vmul.f32 %v2095_v29, %v8841_v57  ;;  %v1618_v22 = vmul.f32 %v8741_v58, %v8841_v57 }
 0x256   : > { %v1267_v16 = vpop.f32.mrf.mxu1  ;;  %2143 = vrot.lane.b32.xlu0 %v2110_v63, %s13254_s16  ;;  %v1875_v24 = vmul.f32 %v1867_v48, %v8841_v57  ;;  %v1488_v53 = vmul.f32 %v8747_v60, %v8841_v57  ;;  %v2217_v18 = vmul.f32 %v2209_v27, %v8841_v57  ;;  %v8973_v3 = vsel %vm13146_vm7, %v8741_v58, %v8743_v56 }
 0x257   : > { %1831 = vst.msk [vmem:[#allocation2 + $0x198] sm:$0xff] %vm13181_vm0, %v1279_v11  ;;  %v8863_v17 = vmax.f32 %v1266_v14, 0.0  ;;  %v8866_v19 = vadd.f32 %v1267_v16, %v8725_v47 }
 0x258   : > { %v1271_v23 = vpop.f32.mrf.mxu1 }
 0x259   : > { %1834 = vst [vmem:[#allocation2 + $0x1b0] sm:$0xff] %v8863_v17  ;;  %v1283_v26 = vmax.f32 %v8866_v19, 0.0  ;;  %v1272_v50 = vadd.f32 %v1271_v23, %v8723_v45  ;;  %1648 = vrot.lane.b32.xlu1 %v1618_v22, %s13255_s18  ;;  %v8890_v35 = vmul.f32 %v1867_v48, %v8863_v17  ;;  %v1623_v41 = vmul.f32 %v8741_v58, %v8863_v17  ;;  %v8938_v22 = vpop.permute.xlu0 %1974 }
 0x25a   : > { %v1273_v47 = vpop.f32.mrf.mxu1  ;;  %1901 = vrot.lane.b32.xlu0 %v1875_v24, %s13252_s19  ;;  %v1493_v40 = vmul.f32 %v8747_v60, %v8863_v17  ;;  %v2221_v34 = vmul.f32 %v2209_v27, %v8863_v17  ;;  %v1363_v33 = vmul.f32 %v8753_v61, %v8863_v17  ;;  %v2107_v42 = vmul.f32 %v2095_v29, %v8863_v17 }
 0x25b   : > { %1835 = vst.msk [vmem:[#allocation2 + $0x1b8] sm:$0xff] %vm13181_vm0, %v1283_v26  ;;  %v8882_v30 = vmax.f32 %v1272_v50, 0.0  ;;  %v8885_v31 = vadd.f32 %v1273_v47, %v8723_v45  ;;  %v1358_v45 = vmul.f32 %v8753_v61, %v8841_v57 }
 0x25d   : > { %1838 = vst [vmem:[#allocation2 + $0x1d0] sm:$0xff] %v8882_v30  ;;  %v13123_v38 = vmax.f32 %v8885_v31, 0.0  ;;  %1518 = vrot.lane.b32.xlu1 %v1488_v53, %s13256_s23  ;;  %v8898_v39 = vmul.f32 %v1867_v48, %v8882_v30  ;;  %v1368_v0 = vmul.f32 %v8753_v61, %v8882_v30  ;;  %v1628_v9 = vmul.f32 %v8741_v58, %v8882_v30  ;;  %v8935_v48 = vpop.permute.xlu1 %1972  ;;  %v1865_v24 = vpop.permute.xlu0 %1864 }
 0x25e   : > { %2243 = vrot.lane.b32.xlu0 %v2217_v18, %s13253_s26  ;;  %v1498_v63 = vmul.f32 %v8747_v60, %v8882_v30  ;;  %v2225_v14 = vmul.f32 %v2209_v27, %v8882_v30  ;;  %v2111_v16 = vmul.f32 %v2095_v29, %v8882_v30  ;;  %v9005_v19 = vsel %vm818_vm5, %v8735_v55, %v1865_v24 }
 0x25f   : > { %1839 = vst.msk [vmem:[#allocation2 + $0x1d8] sm:$0xff] %vm13181_vm0, %v13123_v38  ;;  %v9025_v55 = vsel %vm751_vm6, %v8733_v46, %v8739_v54  ;;  %v1481_v24 = vsel %vm13145_vm8, %v8749_v44, %v8751_v49  ;;  %v13258_v15 = vmax.f32 %v8885_v31, 0.0 }
 0x261   : > { %1388 = vrot.lane.b32.xlu1 %v1358_v45, %s13141_s22  ;;  %v8940_v23 = vpop.permute.xlu1 %1976  ;;  %v8944_v47 = vpop.permute.xlu0 %1608 }
 0x262   : > { %1658 = vrot.lane.b32.xlu0 %v1623_v41, %s13255_s18 }
 0x265   : > { %1305 = vrot.lane.b32.xlu1 %v8863_v17, %s13251_s25  ;;  %v8942_v50 = vpop.permute.xlu1 %1738  ;;  %v8950_v18 = vpop.permute.xlu0 %1478 }
 0x266   : > { %1528 = vrot.lane.b32.xlu0 %v1493_v40, %s13256_s23 }
 0x269   : > { %2251 = vrot.lane.b32.xlu1 %v2221_v34, %s13253_s26  ;;  %v8946_v53 = vpop.permute.xlu1 %2206  ;;  %v8954_v45 = vpop.permute.xlu0 %1348 }
 0x26a   : > { %1398 = vrot.lane.b32.xlu0 %v1363_v33, %s13141_s22 }
 0x26d   : > { %2137 = vrot.lane.b32.xlu1 %v2107_v42, %s13254_s16  ;;  %v8948_v27 = vpop.permute.xlu1 %2092 }
 0x26e   : > { %1408 = vrot.lane.b32.xlu0 %v1368_v0, %s13141_s22 }
 0x271   : > { %1307 = vrot.lane.b32.xlu1 %v8882_v30, %s13251_s25  ;;  %v8952_v29 = vpop.permute.xlu1 %1978 }
 0x275   : > { %1668 = vrot.lane.b32.xlu1 %v1628_v9, %s13255_s18 }
 0x279   : > { %1538 = vrot.lane.b32.xlu1 %v1498_v63, %s13256_s23 }
 0x27d   : > { %2259 = vrot.lane.b32.xlu1 %v2225_v14, %s13253_s26  ;;  %v8981_v14 = vsel %vm13145_vm8, %v8747_v60, %v8749_v44  ;;  %v1611_v60 = vsel %vm13146_vm7, %v8743_v56, %v8745_v59  ;;  %v1351_v44 = vsel %vm13143_vm9, %v8756_v8, %v8761_v7 }
 0x281   : > { %2145 = vrot.lane.b32.xlu1 %v2111_v16, %s13254_s16 }
 0x29a   : > { %v1289_v41 = vpop.permute.xlu1 %1288 }
 0x29b   : > { %v8959_v40 = vsel %vm504_vm1, %v1289_v41, %v1279_v11 }
 0x29c   : > { %v8961_v34 = vpop.permute.xlu0 %1297  ;;  %1309 = vrot.lane.b32.xlu1 %v8959_v40, %s13251_s25  ;;  %v1747_v42 = vmul.f32 %v8733_v46, %v8959_v40  ;;  %v1619_v9 = vmul.f32 %v8973_v3, %v8959_v40 }
 0x29d   : > { %v1315_v58 = vsel %vm504_vm1, %v8961_v34, %v1289_v41 }
 0x29e   : > { %v1898_v33 = vpop.permute.xlu1 %1897  ;;  %v1490_v5 = vmul.f32 %v1481_v24, %v1315_v58 }
 0x2a0   : > { %v8967_v0 = vpop.permute.xlu0 %1299  ;;  %1771 = vrot.lane.b32.xlu1 %v1747_v42, %s13257_s30  ;;  %v1489_v42 = vmul.f32 %v8981_v14, %v8959_v40 }
 0x2a2   : > { %v2240_v11 = vpop.permute.xlu1 %2239 }
 0x2a4   : > { %v2248_v63 = vpop.permute.xlu0 %2247  ;;  %1650 = vrot.lane.b32.xlu1 %v1619_v9, %s13255_s18  ;;  %v9001_v9 = vsel %vm13143_vm9, %v8753_v61, %v8756_v8 }
 0x2a5   : > { %v1359_v41 = vmul.f32 %v9001_v9, %v8959_v40 }
 0x2a6   : > { %v1292_v16 = vpop.permute.xlu1 %1291 }
 0x2a7   : > { %v8990_v1 = vsel %vm504_vm1, %v1292_v16, %v1283_v26 }
 0x2a8   : > { %v2134_v21 = vpop.permute.xlu0 %2133  ;;  %1520 = vrot.lane.b32.xlu1 %v1489_v42, %s13256_s23  ;;  %1311 = vrot.lane.b32.xlu0 %v8990_v1, %s13251_s25  ;;  %v1620_v42 = vmul.f32 %v1611_v60, %v1315_v58  ;;  %v9013_v38 = vmul.f32 %v9005_v19, %v8990_v1 }
 0x2aa   : > { %v9007_v26 = vpop.permute.xlu1 %1899 }
 0x2ab   : > { %v9017_v56 = vsel %vm842_vm13, %v1898_v33, %v9007_v26 }
 0x2ac   : > { %1942 = vst [vmem:[#allocation2 + $0x1e0] sm:$0xff] %v9017_v56  ;;  %v1295_v61 = vpop.permute.xlu0 %1294  ;;  %1390 = vrot.lane.b32.xlu1 %v1359_v41, %s13141_s22  ;;  %1652 = vrot.lane.b32.xlu0 %v1620_v42, %s13255_s18  ;;  %v1748_v41 = vmul.f32 %v9025_v55, %v1315_v58 }
 0x2ad   : > { %v9033_v33 = vsel %vm504_vm1, %v1295_v61, %v13258_v15 }
 0x2ae   : > { %v9035_v6 = vpop.permute.xlu1 %2241  ;;  %v9049_v15 = vmul.f32 %v9005_v19, %v9033_v33 }
 0x2af   : > { %13259 = vst [vmem:[#allocation10_spill] sm:$0xff] %v9035_v6  ;;  %v9040_v42 = vsel %vm1031_vm10, %v2240_v11, %v9035_v6  ;;  %v1360_v11 = vmul.f32 %v1351_v44, %v1315_v58 }
 0x2b0   : > { %13260 = vst [vmem:[#allocation11_spill] sm:$0xff] %v9040_v42  ;;  %2284 = vst [vmem:[#allocation2 + $0x300] sm:$0xff] %v9040_v42  ;;  %v9043_v4 = vpop.permute.xlu0 %2249  ;;  %1773 = vrot.lane.b32.xlu1 %v1748_v41, %s13257_s30  ;;  %1522 = vrot.lane.b32.xlu0 %v1490_v5, %s13256_s23  ;;  %v1364_v41 = vmul.f32 %v9001_v9, %v8990_v1  ;;  %v1316_v5 = vsel %vm504_vm1, %v8967_v0, %v1292_v16 }
 0x2b1   : > { %v9056_v31 = vsel %vm1031_vm10, %v2248_v63, %v9043_v4  ;;  %v1751_v63 = vmul.f32 %v8733_v46, %v8990_v1  ;;  %v1625_v58 = vmul.f32 %v1611_v60, %v1316_v5  ;;  %v1624_v16 = vmul.f32 %v8973_v3, %v8990_v1 }
 0x2b2   : > { %13261 = vst [vmem:[#allocation12_spill] sm:$0xff] %v9056_v31  ;;  %2288 = vst [vmem:[#allocation2 + $0x320] sm:$0xff] %v9056_v31 }
 0x2b4   : > { %v9063_v42 = vpop.permute.xlu0 %2135  ;;  %1392 = vrot.lane.b32.xlu0 %v1360_v11, %s13141_s22  ;;  %1400 = vrot.lane.b32.xlu1 %v1364_v41, %s13141_s22  ;;  %v1495_v11 = vmul.f32 %v1481_v24, %v1316_v5 }
 0x2b5   : > { %13262 = vst [vmem:[#allocation13_spill] sm:$0xff] %v9063_v42  ;;  %v9069_v8 = vsel %vm13263_vm11, %v2134_v21, %v9063_v42  ;;  %v1494_v21 = vmul.f32 %v8981_v14, %v8990_v1 }
 0x2b6   : > { %13264 = vst [vmem:[#allocation14_spill] sm:$0xff] %v9069_v8  ;;  %2174 = vst [vmem:[#allocation2 + $0x2c0] sm:$0xff] %v9069_v8  ;;  %v1755_v8 = vmul.f32 %v8733_v46, %v9033_v33  ;;  %v1752_v46 = vmul.f32 %v9025_v55, %v1316_v5 }
 0x2b8   : > { %v9074_v31 = vpop.permute.xlu0 %1301  ;;  %1779 = vrot.lane.b32.xlu0 %v1751_v63, %s13257_s30  ;;  %1662 = vrot.lane.b32.xlu1 %v1625_v58, %s13255_s18 }
 0x2b9   : > { %v1317_v63 = vsel %vm504_vm1, %v9074_v31, %v1295_v61 }
 0x2ba   : > { %v1630_v58 = vmul.f32 %v1611_v60, %v1317_v63  ;;  %v1500_v61 = vmul.f32 %v1481_v24, %v1317_v63 }
 0x2bc   : > { %v2256_v41 = vpop.permute.xlu0 %2255  ;;  %1660 = vrot.lane.b32.xlu0 %v1624_v16, %s13255_s18  ;;  %1532 = vrot.lane.b32.xlu1 %v1495_v11, %s13256_s23 }
 0x2c0   : > { %v2142_v42 = vpop.permute.xlu0 %2141  ;;  %1530 = vrot.lane.b32.xlu0 %v1494_v21, %s13256_s23  ;;  %1787 = vrot.lane.b32.xlu1 %v1755_v8, %s13257_s30  ;;  %v1370_v21 = vmul.f32 %v1351_v44, %v1317_v63 }
 0x2c4   : > { %v9090_v6 = vpop.permute.xlu0 %2257  ;;  %1313 = vrot.lane.b32.xlu0 %v9033_v33, %s13251_s25  ;;  %1672 = vrot.lane.b32.xlu1 %v1630_v58, %s13255_s18 }
 0x2c5   : > { %v9097_v16 = vsel %vm1031_vm10, %v2256_v41, %v9090_v6  ;;  %v1365_v41 = vmul.f32 %v1351_v44, %v1316_v5  ;;  %v1499_v44 = vmul.f32 %v8981_v14, %v9033_v33  ;;  %v1741_v14 = vsel %vm751_vm6, %v8739_v54, %v8737_v51 }
 0x2c6   : > { %13265 = vst [vmem:[#allocation15_spill] sm:$0xff] %v9097_v16  ;;  %2292 = vst [vmem:[#allocation2 + $0x340] sm:$0xff] %v9097_v16 }
 0x2c7   : > { %v9101_v11 = vpop.permute.xlu1 %1303 }
 0x2c8   : > { %v9103_v8 = vpop.permute.xlu0 %2143  ;;  %1781 = vrot.lane.b32.xlu0 %v1752_v46, %s13257_s30  ;;  %1542 = vrot.lane.b32.xlu1 %v1500_v61, %s13256_s23 }
 0x2c9   : > { %v9109_v60 = vsel %vm13263_vm11, %v2142_v42, %v9103_v8  ;;  %v1629_v42 = vmul.f32 %v8973_v3, %v9033_v33  ;;  %v1369_v3 = vmul.f32 %v9001_v9, %v9033_v33  ;;  %v9156_v9 = vsel %vm504_vm1, %v9101_v11, %v8961_v34 }
 0x2ca   : > { %2178 = vst [vmem:[#allocation2 + $0x2e0] sm:$0xff] %v9109_v60  ;;  %v1749_v54 = vmul.f32 %v1741_v14, %v9156_v9  ;;  %vm13266_vm11 = vcmask 154624  }
 0x2cb   : > { %v9112_v58 = vpop.permute.xlu1 %1648  ;;  %v1980_v34 = vsel %vm13266_vm11, %v8935_v48, %v8938_v22 }
 0x2cc   : > { %v9114_v16 = vpop.permute.xlu0 %1901  ;;  %1402 = vrot.lane.b32.xlu0 %v1365_v41, %s13141_s22  ;;  %1412 = vrot.lane.b32.xlu1 %v1370_v21, %s13141_s22  ;;  %v1756_v41 = vmul.f32 %v9025_v55, %v1317_v63 }
 0x2cd   : > { %v1922_v24 = vsel %vm842_vm13, %v9007_v26, %v9114_v16 }
 0x2ce   : > { %2438 = vmatprep.subr.mxu0 %v1922_v24 }
 0x2cf   : > { %v9123_v46 = vpop.permute.xlu1 %1518  ;;  %2439 = vmatpush1.msra.mxu0 %v9017_v56 }
 0x2d0   : > { %1670 = vrot.lane.b32.xlu0 %v1629_v42, %s13255_s18  ;;  %2440 = vmatprep.subr.mxu0 %v8825_v36  ;;  %v1996_v42 = vmul.f32 %v1980_v34, %v8825_v36 }
 0x2d1   : > { %2441 = vmatpush1.msra.mxu0 %v8783_v20 }
 0x2d2   : > { %2442 = vmatprep.subr.mxu0 %v8777_v62 }
 0x2d3   : > { %v9132_v26 = vpop.permute.xlu1 %1388  ;;  %2443 = vmatpush1.msra.mxu0 %v8769_v13 }
 0x2d4   : > { %1540 = vrot.lane.b32.xlu0 %v1499_v44, %s13256_s23  ;;  %2444 = vmatprep.subr.mxu0 %v8764_v10  ;;  %v1995_v44 = vmul.f32 %v8935_v48, %v8783_v20 }
 0x2d5   : > { %2445 = vmatpush1.msra.mxu0 %v8758_v2 }
 0x2d7   : > { %v9140_v56 = vpop.permute.xlu1 %1305 }
 0x2d8   : > { %v9148_v5 = vsel %vm504_vm1, %v9140_v56, %v8967_v0  ;;  %1410 = vrot.lane.b32.xlu0 %v1369_v3, %s13141_s22  ;;  %v2101_v3 = vmul.f32 %v8792_v32, %v8758_v2  ;;  %v1987_v32 = vmul.f32 %v8935_v48, %v8758_v2  ;;  %v1878_v2 = vmul.f32 %v8801_v25, %v8777_v62  ;;  %s13303_s22 = smov 1  }
 0x2d9   : > { %v1753_v61 = vmul.f32 %v1741_v14, %v9148_v5 }
 0x2db   : > { %1783 = vrot.lane.b32.xlu1 %v1753_v61, %s13257_s30  ;;  %v9159_v21 = vpop.permute.xlu1 %2251  ;;  %v1988_v61 = vmul.f32 %v1980_v34, %v8764_v10 }
 0x2dc   : > { %1789 = vrot.lane.b32.xlu0 %v1756_v41, %s13257_s30  ;;  %v7751_v41 = vld [vmem:[%s8245_s27 + $0x28] sm:$0xff] }
 0x2dd   : > { %4362 = vst [vmem:[#allocation2 + $0x88] sm:$0xff] %v7751_v41 }
 0x2df   : > { %v9163_v0 = vpop.permute.xlu1 %2137 }
 0x2e0   : > { %1775 = vrot.lane.b32.xlu0 %v1749_v54, %s13257_s30  ;;  %v9214_v54 = vpop.permute.xlu0 %2243 }
 0x2e3   : > { %v9166_v24 = vpop.permute.xlu1 %1307 }
 0x2e4   : > { %v9171_v55 = vsel %vm504_vm1, %v9166_v24, %v9074_v31  ;;  %2129 = vrot.lane.b32.xlu0 %v8855_v12, %s13254_s16  ;;  %v2102_v31 = vmul.f32 %v8819_v37, %v8764_v10  ;;  %v1981_v12 = vsel %vm13266_vm11, %v8938_v22, %v8940_v23  ;;  %v1992_v22 = vmul.f32 %v1980_v34, %v8777_v62 }
 0x2e5   : > { %v1757_v63 = vmul.f32 %v1741_v14, %v9171_v55  ;;  %v1993_v14 = vmul.f32 %v1981_v12, %v8863_v17  ;;  %v1997_v37 = vmul.f32 %v1981_v12, %v8882_v30  ;;  %v1991_v10 = vmul.f32 %v8935_v48, %v8769_v13 }
 0x2e6   : > { %v1989_v30 = vmul.f32 %v1981_v12, %v8841_v57  ;;  %v1882_v48 = vmul.f32 %v8801_v25, %v8825_v36  ;;  %v9227_v57 = vpop.permute.xlu0 %1658  ;;  %v1881_v62 = vmul.f32 %v8731_v52, %v8783_v20  ;;  %vm2428_vm11 = vcmask 719872  }
 0x2e7   : > { %1791 = vrot.lane.b32.xlu1 %v1757_v63, %s13257_s30  ;;  %v9205_v17 = vpop.permute.xlu1 %1668  ;;  %v1877_v63 = vmul.f32 %v8731_v52, %v8769_v13  ;;  %v2297_v13 = vld [vmem:[%s13268_s3 + $0x8] sm:$0xff]  ;;  %v1876_v52 = vmul.f32 %v9005_v19, %v8959_v40  ;;  %v9251_v25 = vsel %vm751_vm6, %v8737_v51, %v8942_v50 }
 0x2e8   : > { %2029 = vrot.lane.b32.xlu0 %v1996_v42, %s13267_s24  ;;  %7715 = vmatprep.mubr.msk.f32.mxu0 %vm2428_vm11, %v2297_v13 }
 0x2e9   : > { %7718 = vmatprep.mubr.msk.f32.mxu1 %vm2428_vm11, %v2297_v13 }
 0x2ea   : > { %v9235_v42 = vpop.permute.xlu0 %1528 }
 0x2eb   : > { %2127 = vrot.lane.b32.xlu1 %v2102_v31, %s13254_s16  ;;  %v9216_v34 = vpop.permute.xlu1 %1538 }
 0x2ec   : > { %2027 = vrot.lane.b32.xlu0 %v1995_v44, %s13267_s24 }
 0x2ee   : > { %v1399_v44 = vpop.permute.xlu0 %1398 }
 0x2ef   : > { %2125 = vrot.lane.b32.xlu1 %v2101_v3, %s13254_s16 }
 0x2f0   : > { %2023 = vrot.lane.b32.xlu0 %v1993_v14, %s13267_s24 }
 0x2f2   : > { %v9269_v3 = vpop.permute.xlu0 %1408 }
 0x2f3   : > { %2031 = vrot.lane.b32.xlu1 %v1997_v37, %s13267_s24 }
 0x2f4   : > { %2013 = vrot.lane.b32.xlu0 %v1988_v61, %s13267_s24 }
 0x2f7   : > { %2021 = vrot.lane.b32.xlu1 %v1992_v22, %s13267_s24 }
 0x2f8   : > { %2011 = vrot.lane.b32.xlu0 %v1987_v32, %s13267_s24 }
 0x2fb   : > { %2019 = vrot.lane.b32.xlu1 %v1991_v10, %s13267_s24 }
 0x2fc   : > { %1917 = vrot.lane.b32.xlu0 %v8898_v39, %s13252_s19  ;;  %v9229_v39 = vpop.permute.xlu1 %2259 }
 0x2ff   : > { %2015 = vrot.lane.b32.xlu1 %v1989_v30, %s13267_s24 }
 0x300   : > { %1907 = vrot.lane.b32.xlu0 %v1878_v2, %s13252_s19  ;;  %v9237_v31 = vpop.permute.xlu1 %2145 }
 0x303   : > { %1915 = vrot.lane.b32.xlu1 %v1882_v48, %s13252_s19 }
 0x304   : > { %1905 = vrot.lane.b32.xlu0 %v1877_v63, %s13252_s19 }
 0x307   : > { %1913 = vrot.lane.b32.xlu1 %v1881_v62, %s13252_s19 }
 0x30b   : > { %1909 = vrot.lane.b32.xlu1 %v8890_v35, %s13252_s19  ;;  %v1612_v35 = vsel %vm13146_vm7, %v8745_v59, %v8944_v47 }
 0x30c   : > { %v1626_v12 = vmul.f32 %v1612_v35, %v9148_v5  ;;  %v1631_v37 = vmul.f32 %v1612_v35, %v9171_v55 }
 0x30e   : > { %v1310_v20 = vpop.permute.xlu1 %1309 }
 0x30f   : > { %1903 = vrot.lane.b32.xlu1 %v1876_v52, %s13252_s19  ;;  %v9256_v36 = vsel %vm504_vm1, %v1310_v20, %v9101_v11  ;;  %v1621_v11 = vmul.f32 %v1612_v35, %v9156_v9 }
 0x310   : > { %v1750_v19 = vmul.f32 %v9251_v25, %v9256_v36  ;;  %v1622_v50 = vmul.f32 %v8944_v47, %v9256_v36 }
 0x312   : > { %1777 = vrot.lane.b32.xlu0 %v1750_v19, %s13257_s30  ;;  %v1772_v51 = vpop.permute.xlu1 %1771 }
 0x313   : > { %1664 = vrot.lane.b32.xlu1 %v1626_v12, %s13255_s18 }
 0x316   : > { %1656 = vrot.lane.b32.xlu0 %v1622_v50, %s13255_s18  ;;  %v9272_v59 = vpop.permute.xlu1 %1650 }
 0x317   : > { %1654 = vrot.lane.b32.xlu1 %v1621_v11, %s13255_s18  ;;  %v9278_v14 = vsel %vm711_vm15, %v9112_v58, %v9272_v59  ;;  %v1482_v58 = vsel %vm13145_vm8, %v8751_v49, %v8950_v18  ;;  %vm13273_vm8 = vcmask 883712  }
 0x318   : > { %1702 = vst [vmem:[#allocation2 + $0xc0] sm:$0xff] %v9278_v14  ;;  %v1501_v30 = vmul.f32 %v1482_v58, %v9171_v55  ;;  %v1496_v13 = vmul.f32 %v1482_v58, %v9148_v5  ;;  %v1491_v19 = vmul.f32 %v1482_v58, %v9156_v9 }
 0x31a   : > { %v1312_v61 = vpop.permute.xlu0 %1311  ;;  %v9282_v41 = vpop.permute.xlu1 %1520 }
 0x31b   : > { %1674 = vrot.lane.b32.xlu1 %v1631_v37, %s13255_s18  ;;  %v9287_v22 = vsel %vm504_vm1, %v1312_v61, %v9140_v56  ;;  %v9292_v32 = vsel %vm13156_vm12, %v9123_v46, %v9282_v41 }
 0x31c   : > { %v1627_v10 = vmul.f32 %v8944_v47, %v9287_v22  ;;  %1572 = vst [vmem:[#allocation2 + $0x60] sm:$0xff] %v9292_v32  ;;  %v1497_v49 = vmul.f32 %v8950_v18, %v9287_v22  ;;  %v1754_v48 = vmul.f32 %v9251_v25, %v9287_v22 }
 0x31e   : > { %v9301_v2 = vpop.permute.xlu0 %1652  ;;  %1666 = vrot.lane.b32.xlu0 %v1627_v10, %s13255_s18  ;;  %v9304_v56 = vpop.permute.xlu1 %1390  ;;  %v2210_v10 = vsel %vm1007_vm2, %v8808_v28, %v8946_v53 }
 0x31f   : > { %1544 = vrot.lane.b32.xlu1 %v1501_v30, %s13256_s23  ;;  %v9310_v46 = vsel %vm13149_vm4, %v9132_v26, %v9304_v56  ;;  %v2218_v28 = vmul.f32 %v2210_v10, %v8959_v40 }
 0x320   : > { %1442 = vst [vmem:[#allocation2] sm:$0xff] %v9310_v46 }
 0x322   : > { %v9317_v63 = vpop.permute.xlu0 %1522  ;;  %1536 = vrot.lane.b32.xlu0 %v1497_v49, %s13256_s23  ;;  %v9320_v62 = vpop.permute.xlu1 %1773 }
 0x323   : > { %1785 = vrot.lane.b32.xlu1 %v1754_v48, %s13257_s30  ;;  %v9325_v26 = vsel %vm775_vm14, %v1772_v51, %v9320_v62  ;;  %v1352_v51 = vsel %vm13143_vm9, %v8761_v7, %v8954_v45  ;;  %vm13270_vm9 = vcmask 154624  }
 0x324   : > { %1816 = vst [vmem:[#allocation2 + $0x120] sm:$0xff] %v9325_v26  ;;  %v1371_v50 = vmul.f32 %v1352_v51, %v9171_v55  ;;  %v1366_v37 = vmul.f32 %v1352_v51, %v9148_v5  ;;  %v1361_v55 = vmul.f32 %v1352_v51, %v9156_v9 }
 0x326   : > { %v9329_v52 = vpop.permute.xlu0 %1392  ;;  %v9331_v20 = vpop.permute.xlu1 %1400 }
 0x327   : > { %1534 = vrot.lane.b32.xlu1 %v1496_v13, %s13256_s23  ;;  %v9336_v35 = vsel %vm13149_vm4, %v1399_v44, %v9331_v20  ;;  %v2096_v13 = vsel %vm944_vm3, %v8836_v43, %v8948_v27 }
 0x328   : > { %1446 = vst [vmem:[#allocation2 + $0x20] sm:$0xff] %v9336_v35 }
 0x32a   : > { %v1780_v12 = vpop.permute.xlu0 %1779  ;;  %v9357_v58 = vpop.permute.xlu1 %1662 }
 0x32b   : > { %1524 = vrot.lane.b32.xlu1 %v1491_v19, %s13256_s23 }
 0x32e   : > { %v9345_v11 = vpop.permute.xlu0 %1660  ;;  %v9374_v49 = vpop.permute.xlu1 %1532 }
 0x32f   : > { %1414 = vrot.lane.b32.xlu1 %v1371_v50, %s13269_s0  ;;  %v9351_v44 = vsel %vm711_vm15, %v9227_v57, %v9345_v11 }
 0x330   : > { %1706 = vst [vmem:[#allocation2 + $0xe0] sm:$0xff] %v9351_v44 }
 0x332   : > { %v9355_v61 = vpop.permute.xlu0 %1530 }
 0x333   : > { %1404 = vrot.lane.b32.xlu1 %v1366_v37, %s13269_s0  ;;  %v9363_v7 = vsel %vm13156_vm12, %v9235_v42, %v9355_v61  ;;  %v2226_v42 = vmul.f32 %v2210_v10, %v9033_v33  ;;  %v1982_v37 = vsel %vm13270_vm9, %v8940_v23, %v8952_v29  ;;  %v7752_v23 = vld [vmem:[%s8245_s27 + $0x30] sm:$0xff]  ;;  %vm13272_vm9 = vcmask 891904  }
 0x334   : > { %1576 = vst [vmem:[#allocation2 + $0x80] sm:$0xff] %v9363_v7  ;;  %v1998_v27 = vmul.f32 %v1982_v37, %v9033_v33  ;;  %4363 = vst [vmem:[#allocation2 + $0x90] sm:$0xff] %v7752_v23  ;;  %v1990_v29 = vmul.f32 %v1982_v37, %v8959_v40  ;;  %v2104_v23 = vmul.f32 %v2096_v13, %v8959_v40 }
 0x336   : > { %v1314_v57 = vpop.permute.xlu0 %1313 }
 0x337   : > { %1394 = vrot.lane.b32.xlu1 %v1361_v55, %s13269_s0  ;;  %v1323_v5 = vsel %vm504_vm1, %v1314_v57, %v9166_v24  ;;  %v1492_v24 = vmul.f32 %v8950_v18, %v9256_v36 }
 0x338   : > { %v1758_v30 = vmul.f32 %v9251_v25, %v1323_v5  ;;  %v1788_v25 = vpop.permute.xlu1 %1787  ;;  %v1632_v19 = vmul.f32 %v8944_v47, %v1323_v5  ;;  %v1502_v43 = vmul.f32 %v8950_v18, %v1323_v5  ;;  %v1367_v18 = vmul.f32 %v8954_v45, %v9287_v22 }
 0x339   : > { %v1372_v22 = vmul.f32 %v8954_v45, %v1323_v5 }
 0x33a   : > { %v1782_v48 = vpop.permute.xlu0 %1781  ;;  %1793 = vrot.lane.b32.xlu0 %v1758_v30, %s13257_s30 }
 0x33b   : > { %2261 = vrot.lane.b32.xlu1 %v2226_v42, %s13253_s26  ;;  %v9380_v9 = vsel %vm775_vm14, %v1780_v12, %v1782_v48  ;;  %v2108_v12 = vmul.f32 %v2096_v13, %v8990_v1 }
 0x33c   : > { %1820 = vst [vmem:[#allocation2 + $0x140] sm:$0xff] %v9380_v9  ;;  %v9406_v47 = vpop.permute.xlu1 %1672 }
 0x33e   : > { %v9386_v53 = vpop.permute.xlu0 %1402  ;;  %1526 = vrot.lane.b32.xlu0 %v1492_v24, %s13256_s23 }
 0x33f   : > { %2245 = vrot.lane.b32.xlu1 %v2218_v28, %s13253_s26  ;;  %v1362_v28 = vmul.f32 %v8954_v45, %v9256_v36  ;;  %v2112_v45 = vmul.f32 %v2096_v13, %v9033_v33 }
 0x340   : > { %v9426_v30 = vpop.permute.xlu1 %1542 }
 0x342   : > { %v1671_v51 = vpop.permute.xlu0 %1670  ;;  %1676 = vrot.lane.b32.xlu0 %v1632_v19, %s13255_s18 }
 0x343   : > { %2139 = vrot.lane.b32.xlu1 %v2108_v12, %s13254_s16  ;;  %v9399_v50 = vsel %vm711_vm15, %v9205_v17, %v1671_v51  ;;  %v2222_v12 = vmul.f32 %v2210_v10, %v8990_v1  ;;  %v1687_v40 = vsel %vm711_vm15, %v1671_v51, %v9406_v47 }
 0x344   : > { %1710 = vst [vmem:[#allocation2 + $0x100] sm:$0xff] %v9399_v50  ;;  %v9445_v19 = vpop.permute.xlu1 %1412 }
 0x346   : > { %v9409_v55 = vpop.permute.xlu0 %1540  ;;  %1546 = vrot.lane.b32.xlu0 %v1502_v43, %s13256_s23 }
 0x347   : > { %2033 = vrot.lane.b32.xlu1 %v1998_v27, %s13267_s24  ;;  %v9416_v17 = vsel %vm13156_vm12, %v9216_v34, %v9409_v55 }
 0x348   : > { %1580 = vst [vmem:[#allocation2 + $0xa0] sm:$0xff] %v9416_v17 }
 0x34a   : > { %v9423_v57 = vpop.permute.xlu0 %1410  ;;  %1406 = vrot.lane.b32.xlu0 %v1367_v18, %s13269_s0 }
 0x34b   : > { %2017 = vrot.lane.b32.xlu1 %v1990_v29, %s13267_s24  ;;  %v9432_v34 = vsel %vm13149_vm4, %v9269_v3, %v9423_v57  ;;  %v2411_v3 = vld [vmem:[%s13271_s4 + $0x8] sm:$0xff] }
 0x34c   : > { %1450 = vst [vmem:[#allocation2 + $0x40] sm:$0xff] %v9432_v34 }
 0x34e   : > { %v1790_v42 = vpop.permute.xlu0 %1789  ;;  %1416 = vrot.lane.b32.xlu0 %v1372_v22, %s13269_s0 }
 0x34f   : > { %1911 = vrot.lane.b32.xlu1 %v9013_v38, %s13252_s19  ;;  %v1801_v24 = vsel %vm775_vm14, %v1788_v25, %v1790_v42  ;;  %v9451_v38 = vpop.permute.xlu1 %1783 }
 0x350   : > { %1824 = vst [vmem:[#allocation2 + $0x160] sm:$0xff] %v1801_v24  ;;  %v1799_v10 = vsel %vm775_vm14, %v1782_v48, %v9451_v38  ;;  %v1994_v48 = vmul.f32 %v1982_v37, %v8990_v1  ;;  %v1679_v1 = vsel %vm711_vm15, %v9272_v59, %v9301_v2  ;;  %v2410_v59 = vld [vmem:[%s13271_s4] sm:$0xff]  ;;  %v1549_v37 = vsel %vm13156_vm12, %v9282_v41, %v9317_v63 }
 0x352   : > { %v9447_v5 = vpop.permute.xlu0 %1775  ;;  %1396 = vrot.lane.b32.xlu0 %v1362_v28, %s13269_s0 }
 0x353   : > { %2420 = vperm.xlu1 %8039, %v2411_v3   ;;  %v1796_v33 = vsel %vm775_vm14, %v9320_v62, %v9447_v5  ;;  %v13276_v3 = vld [vmem:[#allocation15_spill] sm:$0xff] }
 0x356   : > { %v9453_v25 = vpop.permute.xlu0 %2129  ;;  %2253 = vrot.lane.b32.xlu0 %v2222_v12, %s13253_s26 }
 0x359   : > { %v9457_v36 = vpop.permute.xlu1 %1791 }
 0x35a   : > { %v1802_v43 = vsel %vm775_vm14, %v1790_v42, %v9457_v36  ;;  %v9461_v27 = vpop.permute.xlu0 %2029  ;;  %2147 = vrot.lane.b32.xlu0 %v2112_v45, %s13254_s16 }
 0x35b   : > { %2446 = vmatprep.subr.mxu0 %v1802_v43  ;;  %v13278_v43 = vld [vmem:[#allocation12_spill] sm:$0xff] }
 0x35c   : > { %2447 = vmatpush1.msra.mxu0 %v1801_v24 }
 0x35d   : > { %v9467_v18 = vpop.permute.xlu1 %2127  ;;  %2448 = vmatprep.subr.mxu0 %v1799_v10 }
 0x35e   : > { %v2028_v29 = vpop.permute.xlu0 %2027  ;;  %2131 = vrot.lane.b32.xlu0 %v2104_v23, %s13254_s16  ;;  %2449 = vmatpush1.msra.mxu0 %v9380_v9  ;;  %v1683_v9 = vsel %vm711_vm15, %v9345_v11, %v9357_v58  ;;  %v1557_v11 = vsel %vm13156_vm12, %v9409_v55, %v9426_v30  ;;  %v1427_v55 = vsel %vm13149_vm4, %v9423_v57, %v9445_v19  ;;  %v13281_v23 = vld [vmem:[#allocation13_spill] sm:$0xff] }
 0x35f   : > { %v9476_v22 = vsel %vm13272_vm9, %v2028_v29, %v9461_v27  ;;  %2450 = vmatprep.subr.mxu0 %v1796_v33  ;;  %v1419_v57 = vsel %vm13149_vm4, %v9304_v56, %v9329_v52 }
 0x360   : > { %2064 = vst [vmem:[#allocation2 + $0x280] sm:$0xff] %v9476_v22  ;;  %2451 = vmatpush1.msra.mxu0 %v9325_v26 }
 0x361   : > { %v2126_v62 = vpop.permute.xlu1 %2125  ;;  %2452 = vmatprep.subr.mxu0 %v1687_v40 }
 0x362   : > { %v9488_v13 = vsel %vm13273_vm8, %v2126_v62, %v9467_v18  ;;  %v9490_v42 = vpop.permute.xlu0 %2023  ;;  %2025 = vrot.lane.b32.xlu0 %v1994_v48, %s13267_s24  ;;  %2453 = vmatpush1.msra.mxu0 %v9399_v50  ;;  %vm13274_vm8 = vmmov %vm13272_vm9 }
 0x363   : > { %2170 = vst [vmem:[#allocation2 + $0x2a0] sm:$0xff] %v9488_v13  ;;  %2454 = vmatprep.subr.mxu0 %v1683_v9  ;;  %vm13275_vm9 = vmmov %vm13274_vm8 }
 0x364   : > { %2455 = vmatpush1.msra.mxu0 %v9351_v44  ;;  %v1553_v44 = vsel %vm13156_vm12, %v9355_v61, %v9374_v49  ;;  %v2412_v61 = vld [vmem:[%s13271_s4 + $0x10] sm:$0xff]  ;;  %s13159_s4 = smov 89  }
 0x365   : > { %v9499_v26 = vpop.permute.xlu1 %2031  ;;  %2456 = vmatprep.subr.mxu0 %v1679_v1 }
 0x366   : > { %v9504_v51 = vpop.permute.xlu0 %2013  ;;  %1919 = vrot.lane.b32.xlu0 %v9049_v15, %s13252_s19  ;;  %2457 = vmatpush1.msra.mxu0 %v9278_v14 }
 0x367   : > { %2458 = vmatprep.subr.mxu0 %v1557_v11  ;;  %v9594_v11 = vld [vmem:[%s13268_s3] sm:$0xff] }
 0x368   : > { %2459 = vmatpush1.msra.mxu0 %v9416_v17 }
 0x369   : > { %v2022_v50 = vpop.permute.xlu1 %2021  ;;  %2460 = vmatprep.subr.mxu0 %v1553_v44 }
 0x36a   : > { %v2012_v15 = vpop.permute.xlu0 %2011  ;;  %2415 = vperm.xlu0 %8040, %v2410_v59   ;;  %2461 = vmatpush1.msra.mxu0 %v9363_v7  ;;  %v1423_v7 = vsel %vm13149_vm4, %v9331_v20, %v9386_v53  ;;  %v2270_v20 = vsel %vm1031_vm10, %v9090_v6, %v9229_v39 }
 0x36b   : > { %v2035_v14 = vsel %vm13274_vm8, %v2012_v15, %v9504_v51  ;;  %2462 = vmatprep.subr.mxu0 %v1549_v37  ;;  %vm13279_vm8 = vcmask 883712  }
 0x36c   : > { %2056 = vst [vmem:[#allocation2 + $0x240] sm:$0xff] %v2035_v14  ;;  %2463 = vmatpush1.msra.mxu0 %v9292_v32  ;;  %vm13283_vm7 = vmmov %vm13279_vm8 }
 0x36d   : > { %v2020_v41 = vpop.permute.xlu1 %2019  ;;  %2464 = vmatprep.subr.mxu0 %v1427_v55  ;;  %v2150_v40 = vsel %vm13283_vm7, %v9467_v18, %v9453_v25  ;;  %v2360_v55 = vld [vmem:[#allocation2 + $0x1d0] sm:$0xff] }
 0x36e   : > { %v2038_v17 = vsel %vm13275_vm9, %v2020_v41, %v2022_v50  ;;  %v9533_v24 = vpop.permute.xlu0 %1917  ;;  %2425 = vperm.xlu0 %8040, %v2412_v61   ;;  %2465 = vmatpush1.msra.mxu0 %v9432_v34  ;;  %v2267_v34 = vsel %vm1031_vm10, %v9043_v4, %v9159_v21  ;;  %v13280_v4 = vld [vmem:[#allocation11_spill] sm:$0xff]  ;;  %vm13282_vm9 = vmmov %vm13279_vm8  ;;  %v2361_v61 = vld [vmem:[#allocation2 + $0x1d8] sm:$0xff] }
 0x36f   : > { %2060 = vst [vmem:[#allocation2 + $0x260] sm:$0xff] %v2038_v17  ;;  %2466 = vmatprep.subr.mxu0 %v1423_v7  ;;  %v2153_v33 = vsel %vm13282_vm9, %v13281_v23, %v9163_v0  ;;  %v2357_v7 = vld [vmem:[#allocation2 + $0x1b8] sm:$0xff] }
 0x370   : > { %2467 = vmatpush1.msra.mxu0 %v9336_v35  ;;  %v13277_v35 = vld [vmem:[#allocation10_spill] sm:$0xff] }
 0x371   : > { %v9540_v32 = vpop.permute.xlu1 %2015  ;;  %2468 = vmatprep.subr.mxu0 %v1419_v57  ;;  %v2264_v12 = vsel %vm1031_vm10, %v13277_v35, %v9214_v54  ;;  %v9629_v57 = vld [vmem:[%s13268_s3 + $0x20] sm:$0xff] }
 0x372   : > { %v1908_v28 = vpop.permute.xlu0 %1907  ;;  %2469 = vmatpush1.msra.mxu0 %v9310_v46  ;;  %v2156_v46 = vsel %vm13279_vm8, %v9103_v8, %v9237_v31  ;;  %v13284_v8 = vld [vmem:[#allocation14_spill] sm:$0xff]  ;;  %vm13285_vm8 = vcmask 891904  }
 0x373   : > { %2480 = vmatprep.subr.mxu0 %v2270_v20  ;;  %v2042_v62 = vsel %vm13285_vm8, %v9461_v27, %v9499_v26  ;;  %vm13286_vm9 = vmmov %vm13285_vm8  ;;  %v2353_v20 = vld [vmem:[#allocation2 + $0x198] sm:$0xff] }
 0x374   : > { %2481 = vmatpush2.msra.mxu0 %v13276_v3  ;;  %vm13287_vm7 = vmmov %vm13285_vm8  ;;  %vm13288_vm8 = vcmask 883712  }
 0x375   : > { %v1916_v56 = vpop.permute.xlu1 %1915  ;;  %2482 = vmatprep.subr.mxu0 %v2267_v34  ;;  %v2036_v18 = vsel %vm13287_vm7, %v9504_v51, %v9540_v32  ;;  %v9599_v51 = vld [vmem:[%s13268_s3 + $0x18] sm:$0xff]  ;;  %vm13290_vm7 = vmmov %vm13288_vm8 }
 0x376   : > { %v1906_v45 = vpop.permute.xlu0 %1905  ;;  %2483 = vmatpush2.msra.mxu0 %v13278_v43  ;;  %v1928_v27 = vsel %vm842_vm13, %v1916_v56, %v9533_v24 }
 0x377   : > { %v1924_v6 = vsel %vm842_vm13, %v1906_v45, %v1908_v28  ;;  %2484 = vmatprep.subr.mxu0 %v2264_v12 }
 0x378   : > { %1946 = vst [vmem:[#allocation2 + $0x200] sm:$0xff] %v1924_v6  ;;  %2485 = vmatpush2.msra.mxu0 %v13280_v4 }
 0x379   : > { %v1914_v10 = vpop.permute.xlu1 %1913  ;;  %2486 = vmatprep.subr.mxu0 %v2156_v46 }
 0x37a   : > { %v1927_v29 = vsel %vm842_vm13, %v1914_v10, %v1916_v56  ;;  %2487 = vmatpush2.msra.mxu0 %v9109_v60  ;;  %v2039_v60 = vsel %vm13286_vm9, %v2022_v50, %v9490_v42  ;;  %v9650_v10 = vld [vmem:[%s8245_s27 + $0x38] sm:$0xff]  ;;  %vm13289_vm9 = vmmov %vm13288_vm8 }
 0x37b   : > { %1950 = vst [vmem:[#allocation2 + $0x220] sm:$0xff] %v1927_v29  ;;  %2488 = vmatprep.subr.mxu0 %v2153_v33 }
 0x37c   : > { %2489 = vmatpush2.msra.mxu0 %v13284_v8 }
 0x37d   : > { %v9568_v48 = vpop.permute.xlu1 %1909  ;;  %2490 = vmatprep.subr.mxu0 %v2150_v40 }
 0x37e   : > { %2491 = vmatpush2.msra.mxu0 %v9488_v13 }
 0x37f   : > { %2492 = vmatprep.subr.mxu0 %v2042_v62 }
 0x380   : > { %2493 = vmatpush2.msra.mxu0 %v9476_v22  ;;  %v1925_v22 = vsel %vm842_vm13, %v1908_v28, %v9568_v48  ;;  %v2352_v28 = vld [vmem:[#allocation2 + $0x190] sm:$0xff] }
 0x381   : > { %v1904_v9 = vpop.permute.xlu1 %1903  ;;  %2494 = vmatprep.subr.mxu0 %v2039_v60 }
 0x382   : > { %1945 = vst.msk [vmem:[#allocation2 + $0x1f8] sm:$0xff] %vm13181_vm0, %v1904_v9  ;;  %2495 = vmatpush2.msra.mxu0 %v2038_v17  ;;  %v1923_v37 = vsel %vm842_vm13, %v9114_v16, %v1904_v9  ;;  %v9619_v16 = vld [vmem:[%s13268_s3 + $0x28] sm:$0xff]  ;;  %v2356_v17 = vld [vmem:[#allocation2 + $0x1b0] sm:$0xff] }
 0x383   : > { %2496 = vmatprep.subr.mxu0 %v2036_v18 }
 0x384   : > { %v9583_v13 = vpop.permute.xlu0 %1777  ;;  %2497 = vmatpush2.msra.mxu0 %v2035_v14  ;;  %v9613_v14 = vld [vmem:[%s13268_s3 + $0x10] sm:$0xff]  ;;  %s13163_s3 = smov 99  }
 0x385   : > { %v9585_v1 = vpop.permute.xlu1 %1664  ;;  %1819 = vst.msk [vmem:[#allocation2 + $0x138] sm:$0xff] %vm13181_vm0, %v9583_v13  ;;  %2498 = vmatprep.subr.mxu0 %v1928_v27 }
 0x386   : > { %2499 = vmatpush2.msra.mxu0 %v1927_v29 }
 0x387   : > { %2500 = vmatprep.subr.mxu0 %v1925_v22 }
 0x388   : > { %v1657_v59 = vpop.permute.xlu0 %1656  ;;  %2501 = vmatpush2.msra.mxu0 %v1924_v6 }
 0x389   : > { %v9601_v44 = vpop.permute.xlu1 %1654  ;;  %v2365_v50 = vld [vmem:[#allocation2 + $0x1f8] sm:$0xff]  ;;  %2503 = vmatmul.mubr.f32.vlgmr.msra.gmra.mxu0 %v9594_v11 }
 0x38a   : > { %2521 = vmatprep.subr.mxu1 %v2365_v50  ;;  %v1681_v15 = vsel %vm711_vm15, %v9601_v44, %v1657_v59  ;;  %7716 = vmatprep.mubr.msk.f32.mxu0 %vm2428_vm11, %v9599_v51 }
 0x38b   : > { %2522 = vmatpush1.msra.mxu1 %v1923_v37  ;;  %1705 = vst.msk [vmem:[#allocation2 + $0xd8] sm:$0xff] %vm13181_vm0, %v1681_v15 }
 0x38c   : > { %2523 = vmatprep.subr.mxu1 %v2361_v61  ;;  %v1797_v61 = vsel %vm775_vm14, %v9447_v5, %v9583_v13 }
 0x38d   : > { %2524 = vmatpush1.msra.mxu1 %v2360_v55  ;;  %v9621_v41 = vpop.permute.xlu1 %1674  ;;  %2509 = vmatmul.mubr.f32.gmra.mxu0 %v9613_v14 }
 0x38e   : > { %2525 = vmatprep.subr.mxu1 %v2357_v7  ;;  %7717 = vmatprep.mubr.msk.f32.mxu0 %vm2428_vm11, %v9619_v16  ;;  %v1688_v5 = vsel %vm711_vm15, %v9406_v47, %v9621_v41 }
 0x38f   : > { %2526 = vmatpush1.msra.mxu1 %v2356_v17 }
 0x390   : > { %2527 = vmatprep.subr.mxu1 %v2353_v20  ;;  %v1667_v34 = vpop.permute.xlu0 %1666 }
 0x391   : > { %2528 = vmatpush1.msra.mxu1 %v2352_v28  ;;  %v9631_v3 = vpop.permute.xlu1 %1544  ;;  %v1685_v56 = vsel %vm711_vm15, %v9585_v1, %v1667_v34  ;;  %2515 = vmatmul.mubr.f32.gmra.mxu0 %v9629_v57  ;;  %v1684_v34 = vsel %vm711_vm15, %v9357_v58, %v9585_v1 }
 0x392   : > { %1709 = vst.msk [vmem:[#allocation2 + $0xf8] sm:$0xff] %vm13181_vm0, %v1685_v56  ;;  %v2329_v47 = vld [vmem:[#allocation2 + $0xd8] sm:$0xff]  ;;  %v1558_v1 = vsel %vm13156_vm12, %v9426_v30, %v9631_v3 }
 0x394   : > { %v1537_v12 = vpop.permute.xlu0 %1536 }
 0x395   : > { %v1786_v35 = vpop.permute.xlu1 %1785 }
 0x396   : > { %1823 = vst.msk [vmem:[#allocation2 + $0x158] sm:$0xff] %vm13181_vm0, %v1786_v35  ;;  %v1800_v37 = vsel %vm775_vm14, %v9451_v38, %v1786_v35 }
 0x399   : > { %v9638_v45 = vpop.permute.xlu1 %1534  ;;  %v2333_v13 = vld [vmem:[#allocation2 + $0xf8] sm:$0xff] }
 0x39a   : > { %v1555_v43 = vsel %vm13156_vm12, %v9638_v45, %v1537_v12 }
 0x39b   : > { %1579 = vst.msk [vmem:[#allocation2 + $0x98] sm:$0xff] %vm13181_vm0, %v1555_v43 }
 0x39d   : > { %v9643_v6 = vpop.permute.xlu1 %1524  ;;  %v2345_v50 = vld [vmem:[#allocation2 + $0x158] sm:$0xff] }
 0x39e   : > { %v1550_v30 = vsel %vm13156_vm12, %v9317_v63, %v9643_v6 }
 0x3a1   : > { %v9645_v46 = vpop.permute.xlu1 %1414 }
 0x3a2   : > { %v9647_v4 = vld [vmem:[#allocation2 + $0x98] sm:$0xff] }
 0x3a3   : > { %4364 = vst.msk [vmem:[#allocation2 + $0x98] sm:$0xff] %vm13181_vm0, %v9650_v10 }
 0x3a5   : > { %v9654_v23 = vpop.permute.xlu1 %1404 }
 0x3a9   : > { %v9656_v33 = vpop.permute.xlu1 %1394 }
 0x3ac   : > { %v1794_v29 = vpop.permute.xlu0 %1793 }
 0x3ad   : > { %v9658_v40 = vpop.permute.xlu1 %2261  ;;  %1827 = vst.msk [vmem:[#allocation2 + $0x178] sm:$0xff] %vm13181_vm0, %v1794_v29  ;;  %v1803_v27 = vsel %vm775_vm14, %v9457_v36, %v1794_v29  ;;  %v2341_v36 = vld [vmem:[#allocation2 + $0x138] sm:$0xff] }
 0x3ae   : > { %2295 = vst.msk [vmem:[#allocation2 + $0x358] sm:$0xff] %vm13181_vm0, %v9658_v40 }
 0x3b0   : > { %v1527_v8 = vpop.permute.xlu0 %1526 }
 0x3b1   : > { %v9663_v62 = vpop.permute.xlu1 %2245  ;;  %v1551_v60 = vsel %vm13156_vm12, %v9643_v6, %v1527_v8  ;;  %v1420_v6 = vsel %vm13149_vm4, %v9329_v52, %v9656_v33 }
 0x3b2   : > { %2287 = vst.msk [vmem:[#allocation2 + $0x318] sm:$0xff] %vm13181_vm0, %v9663_v62  ;;  %1575 = vst.msk [vmem:[#allocation2 + $0x78] sm:$0xff] %vm13181_vm0, %v1551_v60  ;;  %v2265_v52 = vsel %vm1031_vm10, %v9214_v54, %v9663_v62 }
 0x3b4   : > { %v1677_v9 = vpop.permute.xlu0 %1676  ;;  %v2349_v18 = vld [vmem:[#allocation2 + $0x178] sm:$0xff] }
 0x3b5   : > { %v9672_v22 = vpop.permute.xlu1 %2139  ;;  %v1689_v59 = vsel %vm711_vm15, %v9621_v41, %v1677_v9  ;;  %2529 = vmatprep.subr.mxu1 %v2349_v18  ;;  %v1680_v41 = vsel %vm711_vm15, %v9301_v2, %v9601_v44  ;;  %v1554_v2 = vsel %vm13156_vm12, %v9374_v49, %v9638_v45  ;;  %v1428_v49 = vsel %vm13149_vm4, %v9445_v19, %v9645_v46  ;;  %v2409_v19 = vld [vmem:[#allocation2 + $0x358] sm:$0xff] }
 0x3b6   : > { %2177 = vst.msk [vmem:[#allocation2 + $0x2d8] sm:$0xff] %vm13181_vm0, %v9672_v22  ;;  %1713 = vst.msk [vmem:[#allocation2 + $0x118] sm:$0xff] %vm13181_vm0, %v1689_v59  ;;  %2530 = vmatpush1.msra.mxu1 %v1803_v27 }
 0x3b7   : > { %2531 = vmatprep.subr.mxu1 %v2345_v50 }
 0x3b8   : > { %v1547_v15 = vpop.permute.xlu0 %1546  ;;  %2532 = vmatpush1.msra.mxu1 %v1800_v37 }
 0x3b9   : > { %v9684_v55 = vpop.permute.xlu1 %2033  ;;  %v1559_v7 = vsel %vm13156_vm12, %v9631_v3, %v1547_v15  ;;  %2533 = vmatprep.subr.mxu1 %v2341_v36  ;;  %v2317_v44 = vld [vmem:[#allocation2 + $0x78] sm:$0xff] }
 0x3ba   : > { %2067 = vst.msk [vmem:[#allocation2 + $0x298] sm:$0xff] %vm13181_vm0, %v9684_v55  ;;  %1583 = vst.msk [vmem:[#allocation2 + $0xb8] sm:$0xff] %vm13181_vm0, %v1559_v7  ;;  %2534 = vmatpush1.msra.mxu1 %v1797_v61  ;;  %v2401_v18 = vld [vmem:[#allocation2 + $0x318] sm:$0xff]  ;;  %v13294_v61 = vmov 0.0  }
 0x3bc   : > { %v1407_v38 = vpop.permute.xlu0 %1406 }
 0x3bd   : > { %v9691_v17 = vpop.permute.xlu1 %2017  ;;  %v1425_v20 = vsel %vm13149_vm4, %v9654_v23, %v1407_v38  ;;  %v2337_v28 = vld [vmem:[#allocation2 + $0x118] sm:$0xff] }
 0x3be   : > { %2059 = vst.msk [vmem:[#allocation2 + $0x258] sm:$0xff] %vm13181_vm0, %v9691_v17  ;;  %1449 = vst.msk [vmem:[#allocation2 + $0x38] sm:$0xff] %vm13181_vm0, %v1425_v20  ;;  %2535 = vmatprep.subr.mxu1 %v2337_v28 }
 0x3bf   : > { %2536 = vmatpush1.msra.mxu1 %v1688_v5 }
 0x3c0   : > { %v1417_v56 = vpop.permute.xlu0 %1416  ;;  %2537 = vmatprep.subr.mxu1 %v2333_v13 }
 0x3c1   : > { %v9704_v35 = vpop.permute.xlu1 %1911  ;;  %v1429_v12 = vsel %vm13149_vm4, %v9645_v46, %v1417_v56  ;;  %2538 = vmatpush1.msra.mxu1 %v1684_v34  ;;  %v2325_v58 = vld [vmem:[#allocation2 + $0xb8] sm:$0xff]  ;;  %v2271_v46 = vsel %vm1031_vm10, %v9229_v39, %v9658_v40 }
 0x3c2   : > { %1949 = vst.msk [vmem:[#allocation2 + $0x218] sm:$0xff] %vm13181_vm0, %v9704_v35  ;;  %1453 = vst.msk [vmem:[#allocation2 + $0x58] sm:$0xff] %vm13181_vm0, %v1429_v12  ;;  %2539 = vmatprep.subr.mxu1 %v2329_v47  ;;  %v2393_v40 = vld [vmem:[#allocation2 + $0x2d8] sm:$0xff] }
 0x3c3   : > { %2540 = vmatpush1.msra.mxu1 %v1680_v41  ;;  %v2385_v62 = vld [vmem:[#allocation2 + $0x298] sm:$0xff] }
 0x3c4   : > { %v1397_v43 = vpop.permute.xlu0 %1396  ;;  %2541 = vmatprep.subr.mxu1 %v2325_v58 }
 0x3c5   : > { %v1421_v29 = vsel %vm13149_vm4, %v9656_v33, %v1397_v43  ;;  %2542 = vmatpush1.msra.mxu1 %v1558_v1  ;;  %v2309_v45 = vld [vmem:[#allocation2 + $0x38] sm:$0xff] }
 0x3c6   : > { %1445 = vst.msk [vmem:[#allocation2 + $0x18] sm:$0xff] %vm13181_vm0, %v1421_v29  ;;  %2543 = vmatprep.subr.mxu1 %v9647_v4  ;;  %v1424_v4 = vsel %vm13149_vm4, %v9386_v53, %v9654_v23 }
 0x3c7   : > { %2544 = vmatpush1.msra.mxu1 %v1554_v2 }
 0x3c8   : > { %v2254_v3 = vpop.permute.xlu0 %2253  ;;  %2545 = vmatprep.subr.mxu1 %v2317_v44 }
 0x3c9   : > { %2291 = vst.msk [vmem:[#allocation2 + $0x338] sm:$0xff] %vm13181_vm0, %v2254_v3  ;;  %2546 = vmatpush1.msra.mxu1 %v1550_v30  ;;  %v2313_v8 = vld [vmem:[#allocation2 + $0x58] sm:$0xff]  ;;  %v2268_v23 = vsel %vm1031_vm10, %v9159_v21, %v2254_v3  ;;  %v2154_v21 = vsel %vm13289_vm9, %v9163_v0, %v9672_v22 }
 0x3ca   : > { %2547 = vmatprep.subr.mxu1 %v2313_v8  ;;  %v2377_v22 = vld [vmem:[#allocation2 + $0x258] sm:$0xff] }
 0x3cb   : > { %2548 = vmatpush1.msra.mxu1 %v1428_v49 }
 0x3cc   : > { %v2148_v60 = vpop.permute.xlu0 %2147  ;;  %2549 = vmatprep.subr.mxu1 %v2309_v45 }
 0x3cd   : > { %2181 = vst.msk [vmem:[#allocation2 + $0x2f8] sm:$0xff] %vm13181_vm0, %v2148_v60  ;;  %2550 = vmatpush1.msra.mxu1 %v1424_v4  ;;  %v2305_v63 = vld [vmem:[#allocation2 + $0x18] sm:$0xff]  ;;  %v2157_v39 = vsel %vm13288_vm8, %v9237_v31, %v2148_v60  ;;  %vm13291_vm8 = vcmask 891904  }
 0x3ce   : > { %2551 = vmatprep.subr.mxu1 %v2305_v63  ;;  %v2043_v31 = vsel %vm13291_vm8, %v9499_v26, %v9684_v55  ;;  %vm13292_vm9 = vmmov %vm13291_vm8  ;;  %v2369_v26 = vld [vmem:[#allocation2 + $0x218] sm:$0xff]  ;;  %v2421_v38 = vpop.permute.xlu1 %2420 }
 0x3cf   : > { %2552 = vmatpush1.msra.mxu1 %v1420_v6  ;;  %vm13293_vm4 = vmmov %vm13291_vm8 }
 0x3d0   : > { %v2132_v9 = vpop.permute.xlu0 %2131  ;;  %2563 = vmatprep.subr.mxu1 %v2409_v19  ;;  %v2405_v53 = vld [vmem:[#allocation2 + $0x338] sm:$0xff] }
 0x3d1   : > { %2173 = vst.msk [vmem:[#allocation2 + $0x2b8] sm:$0xff] %vm13181_vm0, %v2132_v9  ;;  %2564 = vmatpush2.msra.mxu1 %v2271_v46  ;;  %v2151_v54 = vsel %vm13290_vm7, %v9453_v25, %v2132_v9  ;;  %v2037_v25 = vsel %vm13293_vm4, %v9540_v32, %v9691_v17  ;;  %vm13295_vm4 = vmmov %vm13290_vm7 }
 0x3d2   : > { %2565 = vmatprep.subr.mxu1 %v2405_v53  ;;  %vm13296_vm7 = vmmov %vm13295_vm4 }
 0x3d3   : > { %2566 = vmatpush2.msra.mxu1 %v2268_v23  ;;  %vm13297_vm8 = vmmov %vm13295_vm4 }
 0x3d4   : > { %v2026_v33 = vpop.permute.xlu0 %2025  ;;  %2567 = vmatprep.subr.mxu1 %v2401_v18  ;;  %v2397_v27 = vld [vmem:[#allocation2 + $0x2f8] sm:$0xff]  ;;  %vm13299_vm12 = vmmov %vm13295_vm4 }
 0x3d5   : > { %2063 = vst.msk [vmem:[#allocation2 + $0x278] sm:$0xff] %vm13181_vm0, %v2026_v33  ;;  %2568 = vmatpush2.msra.mxu1 %v2265_v52  ;;  %v2040_v0 = vsel %vm13292_vm9, %v9490_v42, %v2026_v33  ;;  %v1926_v42 = vsel %vm842_vm13, %v9568_v48, %v9704_v35  ;;  %vm13298_vm9 = vmmov %vm13295_vm4 }
 0x3d6   : > { %2569 = vmatprep.subr.mxu1 %v2397_v27 }
 0x3d7   : > { %2570 = vmatpush2.msra.mxu1 %v2157_v39 }
 0x3d8   : > { %v1920_v59 = vpop.permute.xlu0 %1919  ;;  %2571 = vmatprep.subr.mxu1 %v2393_v40  ;;  %v2389_v50 = vld [vmem:[#allocation2 + $0x2b8] sm:$0xff] }
 0x3d9   : > { %1953 = vst.msk [vmem:[#allocation2 + $0x238] sm:$0xff] %vm13181_vm0, %v1920_v59  ;;  %2572 = vmatpush2.msra.mxu1 %v2154_v21  ;;  %v1929_v36 = vsel %vm842_vm13, %v9533_v24, %v1920_v59 }
 0x3da   : > { %2573 = vmatprep.subr.mxu1 %v2389_v50  ;;  %v2803_v50 = vld [vmem:[%s13082_s11 + $0xf8] sm:$0xff] }
 0x3db   : > { %2574 = vmatpush2.msra.mxu1 %v2151_v54  ;;  %v2819_v54 = vld [vmem:[%s13082_s11 + $0x178] sm:$0xff]  ;;  %7812 = vmatprep.subr.mxu0 %v2803_v50 }
 0x3dc   : > { %2575 = vmatprep.subr.mxu1 %v2385_v62  ;;  %v2381_v37 = vld [vmem:[#allocation2 + $0x278] sm:$0xff] }
 0x3dd   : > { %2576 = vmatpush2.msra.mxu1 %v2043_v31  ;;  %v2787_v62 = vld [vmem:[%s13082_s11 + $0x78] sm:$0xff] }
 0x3de   : > { %2577 = vmatprep.subr.mxu1 %v2381_v37  ;;  %7813 = vmatpush3.msra.mxu0 %v2787_v62  ;;  %v2808_v62 = vld [vmem:[%s13082_s11 + $0x120] sm:$0xff] }
 0x3df   : > { %2578 = vmatpush2.msra.mxu1 %v2040_v0  ;;  %v2802_v0 = vld [vmem:[%s13082_s11 + $0xf0] sm:$0xff] }
 0x3e0   : > { %2579 = vmatprep.subr.mxu1 %v2377_v22  ;;  %v2373_v15 = vld [vmem:[#allocation2 + $0x238] sm:$0xff]  ;;  %v2818_v22 = vld [vmem:[%s13082_s11 + $0x170] sm:$0xff]  ;;  %7814 = vmatprep.subr.mxu0 %v2802_v0  ;;  %v2776_v0 = vld [vmem:[%s13082_s11 + $0x20] sm:$0xff] }
 0x3e1   : > { %2580 = vmatpush2.msra.mxu1 %v2037_v25 }
 0x3e2   : > { %2581 = vmatprep.subr.mxu1 %v2373_v15  ;;  %v2786_v15 = vld [vmem:[%s13082_s11 + $0x70] sm:$0xff] }
 0x3e3   : > { %2582 = vmatpush2.msra.mxu1 %v1929_v36  ;;  %7815 = vmatpush3.msra.mxu0 %v2786_v15  ;;  %v2775_v15 = vld [vmem:[%s13082_s11 + $0x18] sm:$0xff] }
 0x3e4   : > { %2583 = vmatprep.subr.mxu1 %v2369_v26  ;;  %v2801_v26 = vld [vmem:[%s13082_s11 + $0xe8] sm:$0xff] }
 0x3e5   : > { %2584 = vmatpush2.msra.mxu1 %v1926_v42  ;;  %v2416_v24 = vpop.permute.xlu0 %2415  ;;  %v2817_v42 = vld [vmem:[%s13082_s11 + $0x168] sm:$0xff]  ;;  %7816 = vmatprep.subr.mxu0 %v2801_v26  ;;  %v2790_v26 = vld [vmem:[%s13082_s11 + $0x90] sm:$0xff] }
 0x3e6   : > { %2586 = vmatmul.mubr.f32.vlgmr.msra.gmra.mxu1 %v9594_v11  ;;  %2911 = vmatprep.subr.mxu1 %v13294_v61 }
 0x3e7   : > { %7719 = vmatprep.mubr.msk.f32.mxu1 %vm2428_vm11, %v9599_v51  ;;  %2912 = vmatpush1.msra.mxu1 %v2819_v54  ;;  %v2777_v54 = vld [vmem:[%s13082_s11 + $0x28] sm:$0xff] }
 0x3e8   : > { %2913 = vmatprep.subr.mxu1 %v13294_v61 }
 0x3e9   : > { %2914 = vmatpush1.msra.mxu1 %v2818_v22 }
 0x3ea   : > { %2592 = vmatmul.mubr.f32.gmra.mxu1 %v9613_v14  ;;  %v2426_v14 = vpop.permute.xlu0 %2425  ;;  %2915 = vmatprep.subr.mxu1 %v13294_v61 }
 0x3eb   : > { %7720 = vmatprep.mubr.msk.f32.mxu1 %vm2428_vm11, %v9619_v16  ;;  %2916 = vmatpush1.msra.mxu1 %v2817_v42  ;;  %v2806_v42 = vld [vmem:[%s13082_s11 + $0x110] sm:$0xff] }
 0x3ec   : > { %2917 = vmatprep.subr.mxu1 %v13294_v61 }
 0x3ee   : > { %2598 = vmatmul.mubr.f32.gmra.mxu1 %v9629_v57 }
 0x449   : > { %v2504_v32 = vpop.f32.mrf.mxu0 }
 0x44a   : > { %v2505_v55 = vadd.f32 %v2504_v32, %v2416_v24 }
 0x44b   : > { %v2506_v48 = vpop.f32.mrf.mxu0 }
 0x44c   : > { %v2604_v7 = vmax.f32 %v2505_v55, 0.0  ;;  %v9778_v28 = vadd.f32 %v2506_v48, %v2416_v24  ;;  %v2785_v55 = vld [vmem:[%s13082_s11 + $0x68] sm:$0xff] }
 0x44d   : > { %v2510_v17 = vpop.f32.mrf.mxu0  ;;  %7817 = vmatpush3.msra.mxu0 %v2785_v55  ;;  %v2789_v55 = vld [vmem:[%s13082_s11 + $0x88] sm:$0xff] }
 0x44e   : > { %v2511_v11 = vadd.f32 %v2510_v17, %v2421_v38  ;;  %2616 = vrot.lane.b32.xlu1 %v2604_v7, %s13251_s25  ;;  %v2605_v16 = vmax.f32 %v9778_v28, 0.0  ;;  %v2816_v17 = vld [vmem:[%s13082_s11 + $0x160] sm:$0xff] }
 0x44f   : > { %v2512_v20 = vpop.f32.mrf.mxu0  ;;  %2918 = vmatpush1.msra.mxu1 %v2816_v17  ;;  %v2788_v17 = vld [vmem:[%s13082_s11 + $0x80] sm:$0xff] }
 0x450   : > { %v2608_v51 = vmax.f32 %v2511_v11, 0.0  ;;  %v9783_v57 = vadd.f32 %v2512_v20, %v2421_v38  ;;  %v2784_v11 = vld [vmem:[%s13082_s11 + $0x60] sm:$0xff]  ;;  %v2799_v20 = vld [vmem:[%s13082_s11 + $0xd8] sm:$0xff]  ;;  %2919 = vmatprep.subr.mxu1 %v13294_v61 }
 0x451   : > { %v2516_v5 = vpop.f32.mrf.mxu0 }
 0x452   : > { %v2517_v13 = vadd.f32 %v2516_v5, %v2426_v14  ;;  %2618 = vrot.lane.b32.xlu0 %v2608_v51, %s13251_s25  ;;  %2637 = vrot.lane.b32.xlu1 %v2604_v7, %s13252_s19  ;;  %v2609_v35 = vmax.f32 %v9783_v57, 0.0  ;;  %v2798_v5 = vld [vmem:[%s13082_s11 + $0xd0] sm:$0xff]  ;;  %v2791_v57 = vld [vmem:[%s13082_s11 + $0x98] sm:$0xff] }
 0x453   : > { %v2518_v56 = vpop.f32.mrf.mxu0 }
 0x454   : > { %v9785_v34 = vmax.f32 %v2517_v13, 0.0  ;;  %v9793_v12 = vadd.f32 %v2518_v56, %v2426_v14  ;;  %v2814_v13 = vld [vmem:[%s13082_s11 + $0x150] sm:$0xff]  ;;  %v2797_v56 = vld [vmem:[%s13082_s11 + $0xc8] sm:$0xff] }
 0x456   : > { %2639 = vrot.lane.b32.xlu0 %v2605_v16, %s13252_s19  ;;  %2620 = vrot.lane.b32.xlu1 %v9785_v34, %s13251_s25  ;;  %v2613_v47 = vmax.f32 %v9793_v12, 0.0 }
 0x45a   : > { %2645 = vrot.lane.b32.xlu0 %v2608_v51, %s13252_s19  ;;  %2647 = vrot.lane.b32.xlu1 %v2609_v35, %s13252_s19 }
 0x45e   : > { %2653 = vrot.lane.b32.xlu0 %v9785_v34, %s13252_s19  ;;  %2655 = vrot.lane.b32.xlu1 %v2613_v47, %s13252_s19 }
 0x4a6   : > { %v2587_v41 = vpop.f32.mrf.mxu1 }
 0x4a7   : > { %v9805_v1 = vadd.f32 %v2587_v41, %v2416_v24  ;;  %v2813_v41 = vld [vmem:[%s13082_s11 + $0x148] sm:$0xff] }
 0x4a8   : > { %v2589_v58 = vpop.f32.mrf.mxu1 }
 0x4a9   : > { %v2606_v2 = vmax.f32 %v9805_v1, 0.0  ;;  %v9816_v3 = vadd.f32 %v2589_v58, %v2416_v24  ;;  %v2781_v58 = vld [vmem:[%s13082_s11 + $0x48] sm:$0xff] }
 0x4aa   : > { %v2593_v43 = vpop.f32.mrf.mxu1 }
 0x4ab   : > { %v9807_v29 = vadd.f32 %v2593_v43, %v2421_v38  ;;  %v2607_v49 = vmax.f32 %v9816_v3, 0.0  ;;  %v2796_v43 = vld [vmem:[%s13082_s11 + $0xc0] sm:$0xff] }
 0x4ac   : > { %v2595_v8 = vpop.f32.mrf.mxu1 }
 0x4ad   : > { %v2610_v44 = vmax.f32 %v9807_v29, 0.0  ;;  %v9819_v45 = vadd.f32 %v2595_v8, %v2421_v38  ;;  %v2780_v8 = vld [vmem:[%s13082_s11 + $0x40] sm:$0xff] }
 0x4ae   : > { %v2599_v60 = vpop.f32.mrf.mxu1 }
 0x4af   : > { %v8041_v30 = vpack.i.bf16 %v2610_v44, %v2606_v2  ;;  %v2611_v6 = vmax.f32 %v9819_v45, 0.0  ;;  %v9826_v19 = vadd.f32 %v2599_v60, %v2426_v14  ;;  %v2795_v60 = vld [vmem:[%s13082_s11 + $0xb8] sm:$0xff] }
 0x4b0   : > { %v2601_v23 = vpop.f32.mrf.mxu1 }
 0x4b1   : > { %8042 = vrot.lane.b32.xlu0 %v8041_v30, %s13252_s19  ;;  %v2614_v18 = vmax.f32 %v9826_v19, 0.0  ;;  %v9835_v27 = vadd.f32 %v2601_v23, %v2426_v14  ;;  %v2783_v14 = vld [vmem:[%s13082_s11 + $0x58] sm:$0xff]  ;;  %v2812_v30 = vld [vmem:[%s13082_s11 + $0x140] sm:$0xff] }
 0x4b3   : > { %v2615_v31 = vmax.f32 %v9835_v27, 0.0 }
 0x4c0   : > { %v2617_v4 = vpop.permute.xlu1 %2616 }
 0x4c1   : > { %v2622_v63 = vsel %vm504_vm1, %v2617_v4, %v2607_v49  ;;  %v2811_v4 = vld [vmem:[%s13082_s11 + $0x138] sm:$0xff] }
 0x4c2   : > { %2643 = vrot.lane.b32.xlu1 %v2622_v63, %s13252_s19  ;;  %v2779_v63 = vld [vmem:[%s13082_s11 + $0x38] sm:$0xff] }
 0x4c4   : > { %v2619_v46 = vpop.permute.xlu0 %2618  ;;  %v2638_v9 = vpop.permute.xlu1 %2637 }
 0x4c5   : > { %v2623_v53 = vsel %vm504_vm1, %v2619_v46, %v2611_v6  ;;  %v2810_v46 = vld [vmem:[%s13082_s11 + $0x130] sm:$0xff] }
 0x4c6   : > { %2651 = vrot.lane.b32.xlu0 %v2623_v53, %s13252_s19  ;;  %v2794_v53 = vld [vmem:[%s13082_s11 + $0xb0] sm:$0xff] }
 0x4c8   : > { %v9833_v52 = vpop.permute.xlu0 %2639  ;;  %v2621_v33 = vpop.permute.xlu1 %2620 }
 0x4c9   : > { %v2661_v39 = vsel %vm842_vm13, %v2638_v9, %v9833_v52  ;;  %v2624_v36 = vsel %vm504_vm1, %v2621_v33, %v2615_v31  ;;  %v2778_v33 = vld [vmem:[%s13082_s11 + $0x30] sm:$0xff] }
 0x4ca   : > { %v9839_v40 = vmax.f32 %v2604_v7, %v2661_v39  ;;  %2657 = vrot.lane.b32.xlu0 %v2614_v18, %s13252_s19  ;;  %v2800_v7 = vld [vmem:[%s13082_s11 + $0xe0] sm:$0xff]  ;;  %v2809_v39 = vld [vmem:[%s13082_s11 + $0x128] sm:$0xff] }
 0x4cb   : > { %7818 = vmatprep.subr.mxu0 %v2800_v7  ;;  %v2773_v7 = vld [vmem:[%s13082_s11 + $0x8] sm:$0xff] }
 0x4cc   : > { %v2646_v21 = vpop.permute.xlu0 %2645  ;;  %2694 = vrot.lane.b32.xlu1 %v9839_v40, %s13251_s25  ;;  %v9846_v59 = vpop.permute.xlu1 %2647  ;;  %7819 = vmatpush3.msra.mxu0 %v2784_v11  ;;  %v2804_v11 = vld [vmem:[%s13082_s11 + $0x100] sm:$0xff] }
 0x4cd   : > { %v2664_v37 = vsel %vm842_vm13, %v2646_v21, %v9846_v59  ;;  %7820 = vmatprep.subr.mxu0 %v2799_v20  ;;  %v2793_v21 = vld [vmem:[%s13082_s11 + $0xa8] sm:$0xff]  ;;  %v2772_v20 = vld [vmem:[%s13082_s11] sm:$0xff] }
 0x4ce   : > { %v9866_v25 = vmax.f32 %v2608_v51, %v2664_v37  ;;  %v2815_v51 = vld [vmem:[%s13082_s11 + $0x158] sm:$0xff]  ;;  %7821 = vmatpush3.msra.mxu0 %v2783_v14 }
 0x4cf   : > { %2920 = vmatpush1.msra.mxu1 %v2815_v51  ;;  %7822 = vmatprep.subr.mxu0 %v2798_v5  ;;  %v2821_v5 = vld [vmem:[%s13082_s11 + $0x188] sm:$0xff] }
 0x4d0   : > { %v2654_v24 = vpop.permute.xlu0 %2653  ;;  %2659 = vrot.lane.b32.xlu1 %v2624_v36, %s13252_s19  ;;  %2696 = vrot.lane.b32.xlu0 %v9866_v25, %s13251_s25  ;;  %v9884_v32 = vpop.permute.xlu1 %2655 }
 0x4d1   : > { %v2667_v48 = vsel %vm842_vm13, %v2654_v24, %v9884_v32  ;;  %2921 = vmatprep.subr.mxu1 %v13294_v61  ;;  %v2774_v24 = vld [vmem:[%s13082_s11 + $0x10] sm:$0xff] }
 0x4d2   : > { %v9896_v38 = vmax.f32 %v9785_v34, %v2667_v48  ;;  %2922 = vmatpush1.msra.mxu1 %v2814_v13  ;;  %v2782_v34 = vld [vmem:[%s13082_s11 + $0x50] sm:$0xff]  ;;  %v2805_v48 = vld [vmem:[%s13082_s11 + $0x108] sm:$0xff] }
 0x4d3   : > { %2923 = vmatprep.subr.mxu1 %v13294_v61  ;;  %7823 = vmatpush3.msra.mxu0 %v2782_v34  ;;  %v2820_v34 = vld [vmem:[%s13082_s11 + $0x180] sm:$0xff] }
 0x4d4   : > { %2698 = vrot.lane.b32.xlu1 %v9896_v38, %s13251_s25  ;;  %2924 = vmatpush1.msra.mxu1 %v2813_v41 }
 0x4d5   : > { %7824 = vmatprep.subr.mxu0 %v2797_v56  ;;  %2925 = vmatprep.subr.mxu1 %v13294_v61 }
 0x4d6   : > { %7825 = vmatpush3.msra.mxu0 %v2781_v58  ;;  %2926 = vmatpush1.msra.mxu1 %v2812_v30 }
 0x4d7   : > { %7826 = vmatprep.subr.mxu0 %v2796_v43  ;;  %2927 = vmatprep.subr.mxu1 %v13294_v61 }
 0x4d8   : > { %7827 = vmatpush3.msra.mxu0 %v2780_v8  ;;  %2928 = vmatpush1.msra.mxu1 %v2811_v4 }
 0x4d9   : > { %7828 = vmatprep.subr.mxu0 %v2795_v60  ;;  %2929 = vmatprep.subr.mxu1 %v13294_v61 }
 0x4da   : > { %7829 = vmatpush3.msra.mxu0 %v2779_v63  ;;  %2930 = vmatpush1.msra.mxu1 %v2810_v46 }
 0x4db   : > { %7830 = vmatprep.subr.mxu0 %v2794_v53  ;;  %2931 = vmatprep.subr.mxu1 %v13294_v61 }
 0x4dc   : > { %7831 = vmatpush3.msra.mxu0 %v2778_v33  ;;  %2932 = vmatpush1.msra.mxu1 %v2809_v39 }
 0x4dd   : > { %7832 = vmatprep.subr.mxu0 %v2793_v21  ;;  %2933 = vmatprep.subr.mxu1 %v13294_v61 }
 0x4de   : > { %7833 = vmatpush3.msra.mxu0 %v2777_v54  ;;  %2934 = vmatpush1.msra.mxu1 %v2808_v62 }
 0x4df   : > { %2935 = vmatprep.subr.mxu1 %v13294_v61 }
 0x523   : > { %v9960_v9 = vpop.permute.xlu0 %8042 }
 0x524   : > { %v8045_v23 = vunpack.i.h.bf16 %v9960_v9  ;;  %v8044_v36 = vunpack.i.l.bf16 %v9960_v9 }
 0x526   : > { %v2665_v50 = vsel %vm842_vm13, %v9846_v59, %v8045_v23  ;;  %v2792_v59 = vld [vmem:[%s13082_s11 + $0xa0] sm:$0xff]  ;;  %v2662_v51 = vsel %vm842_vm13, %v9833_v52, %v8044_v36 }
 0x527   : > { %v9989_v37 = vmax.f32 %v2609_v35, %v2665_v50  ;;  %v2807_v35 = vld [vmem:[%s13082_s11 + $0x118] sm:$0xff]  ;;  %7834 = vmatprep.subr.mxu0 %v2792_v59  ;;  %v2683_v52 = vmax.f32 %v2605_v16, %v2662_v51 }
 0x528   : > { %7835 = vmatpush3.msra.mxu0 %v2776_v0  ;;  %2936 = vmatpush1.msra.mxu1 %v2807_v35 }
 0x529   : > { %v8046_v22 = vpack.i.bf16 %v9989_v37, %v9839_v40  ;;  %7836 = vmatprep.subr.mxu0 %v2791_v57  ;;  %2937 = vmatprep.subr.mxu1 %v13294_v61 }
 0x52a   : > { %7837 = vmatpush3.msra.mxu0 %v2775_v15  ;;  %2938 = vmatpush1.msra.mxu1 %v2806_v42 }
 0x52b   : > { %8047 = vrot.lane.b32.xlu1 %v8046_v22, %s13254_s16  ;;  %7838 = vmatprep.subr.mxu0 %v2790_v26 }
 0x52c   : > { %7839 = vmatpush3.msra.mxu0 %v2774_v24  ;;  %2939 = vmatprep.subr.mxu1 %v13294_v61 }
 0x52d   : > { %7840 = vmatprep.subr.mxu0 %v2789_v55  ;;  %2940 = vmatpush1.msra.mxu1 %v2805_v48 }
 0x52e   : > { %7841 = vmatpush3.msra.mxu0 %v2773_v7  ;;  %2941 = vmatprep.subr.mxu1 %v13294_v61 }
 0x52f   : > { %7842 = vmatprep.subr.mxu0 %v2788_v17  ;;  %2942 = vmatpush1.msra.mxu1 %v2804_v11 }
 0x530   : > { %7843 = vmatpush3.msra.mxu0 %v2772_v20  ;;  %2971 = vmatprep.subr.mxu1 %v13294_v61 }
 0x531   : > { %2972 = vmatpush2.msra.mxu1 %v2821_v5  ;;  %3354 = vmatprep.subr.mxu0 %v13294_v61 }
 0x532   : > { %2973 = vmatprep.subr.mxu1 %v13294_v61 }
 0x533   : > { %2974 = vmatpush2.msra.mxu1 %v2820_v34 }
 0x534   : > { %v2644_v14 = vpop.permute.xlu1 %2643  ;;  %3794 = vmatprep.subr.mxu1 %v13294_v61 }
 0x535   : > { %v2663_v13 = vsel %vm842_vm13, %v8044_v36, %v2644_v14  ;;  %v2685_v1 = vmax.f32 %v2607_v49, %v2644_v14 }
 0x536   : > { %v2684_v56 = vmax.f32 %v2606_v2, %v2663_v13 }
 0x538   : > { %v8051_v41 = vpack.i.bf16 %v2684_v56, %v2683_v52  ;;  %v2652_v58 = vpop.permute.xlu0 %2651 }
 0x539   : > { %v2666_v43 = vsel %vm842_vm13, %v8045_v23, %v2652_v58  ;;  %v2689_v4 = vmax.f32 %v2611_v6, %v2652_v58 }
 0x53a   : > { %v2688_v28 = vmax.f32 %v2610_v44, %v2666_v43  ;;  %8052 = vrot.lane.b32.xlu0 %v8051_v41, %s13254_s16 }
 0x53c   : > { %v8056_v16 = vpack.i.bf16 %v9866_v25, %v2688_v28  ;;  %v2658_v2 = vpop.permute.xlu0 %2657 }
 0x53d   : > { %v2668_v29 = vsel %vm842_vm13, %v9884_v32, %v2658_v2 }
 0x53e   : > { %8057 = vrot.lane.b32.xlu0 %v8056_v16, %s13254_s16  ;;  %v2695_v30 = vpop.permute.xlu1 %2694  ;;  %v2691_v49 = vmax.f32 %v2613_v47, %v2668_v29 }
 0x53f   : > { %v2700_v8 = vsel %vm504_vm1, %v2695_v30, %v2685_v1 }
 0x540   : > { %2721 = vrot.lane.b32.xlu1 %v2700_v8, %s13254_s16  ;;  %v10116_v8 = vld [vmem:[%s13081_s10 + $0x5] ss:$0 sm:$0xff] }
 0x542   : > { %v2697_v44 = vpop.permute.xlu0 %2696  ;;  %v2660_v60 = vpop.permute.xlu1 %2659 }
 0x543   : > { %v2701_v63 = vsel %vm504_vm1, %v2697_v44, %v2689_v4  ;;  %v2669_v3 = vsel %vm842_vm13, %v2658_v2, %v2660_v60  ;;  %v2693_v45 = vmax.f32 %v2615_v31, %v2660_v60  ;;  %v10123_v60 = vld [vmem:[%s13081_s10 + $0x3] ss:$0 sm:$0xff] }
 0x544   : > { %v2692_v46 = vmax.f32 %v2614_v18, %v2669_v3  ;;  %2729 = vrot.lane.b32.xlu1 %v2701_v63, %s13254_s16 }
 0x546   : > { %v8061_v6 = vpack.i.bf16 %v2692_v46, %v2691_v49  ;;  %v2699_v9 = vpop.permute.xlu1 %2698 }
 0x547   : > { %v2702_v32 = vsel %vm504_vm1, %v2699_v9, %v2693_v45 }
 0x548   : > { %8062 = vrot.lane.b32.xlu0 %v8061_v6, %s13254_s16  ;;  %2737 = vrot.lane.b32.xlu1 %v2702_v32, %s13254_s16  ;;  %v10150_v6 = vld [vmem:[%s13081_s10 + $0x7] ss:$0 sm:$0xff] }
 0x54c   : > { %2731 = vrot.lane.b32.xlu0 %v9896_v38, %s13254_s16 }
 0x59d   : > { %v8048_v12 = vpop.permute.xlu1 %8047 }
 0x59e   : > { %v8049_v19 = vunpack.i.l.bf16 %v8048_v12  ;;  %v8050_v21 = vunpack.i.h.bf16 %v8048_v12 }
 0x5ac   : > { %v8053_v47 = vpop.permute.xlu0 %8052 }
 0x5ad   : > { %v8055_v18 = vunpack.i.h.bf16 %v8053_v47  ;;  %v8054_v53 = vunpack.i.l.bf16 %v8053_v47 }
 0x5af   : > { %v2739_v23 = vsel %vm13295_vm4, %v8049_v19, %v8054_v53  ;;  %v2740_v27 = vsel %vm13296_vm7, %v8054_v53, %v8055_v18  ;;  %vm13301_vm7 = vmmov %vm13295_vm4  ;;  %v10165_v53 = vld [vmem:[%s13081_s10 + $0x1] ss:$0 sm:$0xff] }
 0x5b0   : > { %v2760_v31 = vmax.f32 %v9839_v40, %v2739_v23  ;;  %v8058_v33 = vpop.permute.xlu0 %8057  ;;  %v2761_v39 = vmax.f32 %v2683_v52, %v2740_v27  ;;  %v10172_v23 = vld [vmem:[%s13081_s10 + $0x8] ss:$0 sm:$0xff]  ;;  %v10179_v27 = vld [vmem:[%s13081_s10 + $0x6] ss:$0 sm:$0xff] }
 0x5b1   : > { %v8060_v50 = vunpack.i.h.bf16 %v8058_v33  ;;  %v8059_v54 = vunpack.i.l.bf16 %v8058_v33 }
 0x5b2   : > { %2895 = vmatprep.mubr.f32.mxu0 %v2761_v39  ;;  %v2722_v62 = vpop.permute.xlu1 %2721 }
 0x5b3   : > { %v2741_v59 = vsel %vm13297_vm8, %v8055_v18, %v2722_v62  ;;  %v2763_v0 = vmax.f32 %v2685_v1, %v2722_v62  ;;  %2896 = vmatmul.mubr.f32.vlgmr.msra.gmra.mxu0 %v2760_v31  ;;  %v2743_v22 = vsel %vm13298_vm9, %v8050_v21, %v8059_v54  ;;  %v2742_v57 = vsel %vm13299_vm12, %v8060_v50, %v8050_v21  ;;  %vm13300_vm12 = vmmov %vm13295_vm4 }
 0x5b4   : > { %v2762_v35 = vmax.f32 %v2684_v56, %v2741_v59  ;;  %v2765_v15 = vmax.f32 %v9989_v37, %v2743_v22  ;;  %v2764_v40 = vmax.f32 %v9866_v25, %v2742_v57  ;;  %vm13302_vm8 = vmmov %vm13295_vm4  ;;  %vm13200_vm9 = vcmask 818176  }
 0x5b5   : > { %7721 = vmatprep.mubr.msk.f32.mxu1 %vm13181_vm0, %v2763_v0 }
 0x5b6   : > { %2976 = vmatmul.mubr.f32.vlgmr.msra.gmra.mxu1 %v2762_v35  ;;  %v2730_v36 = vpop.permute.xlu1 %2729  ;;  %2900 = vmatprep.mubr.f32.mxu0 %v2765_v15 }
 0x5b7   : > { %v2744_v26 = vsel %vm13295_vm4, %v8059_v54, %v2730_v36  ;;  %v2767_v42 = vmax.f32 %v2689_v4, %v2730_v36  ;;  %2901 = vmatmul.mubr.f32.gmra.mxu0 %v2764_v40  ;;  %vm2991_vm4 = vcmask 1048352  }
 0x5b8   : > { %v2766_v24 = vmax.f32 %v2688_v28, %v2744_v26 }
 0x5b9   : > { %7722 = vmatprep.mubr.msk.f32.mxu1 %vm13181_vm0, %v2767_v42 }
 0x5ba   : > { %v8063_v55 = vpop.permute.xlu0 %8062  ;;  %2981 = vmatmul.mubr.f32.gmra.mxu1 %v2766_v24  ;;  %v2738_v48 = vpop.permute.xlu1 %2737 }
 0x5bb   : > { %v8065_v7 = vunpack.i.h.bf16 %v8063_v55  ;;  %v8064_v17 = vunpack.i.l.bf16 %v8063_v55  ;;  %v2771_v37 = vmax.f32 %v2693_v45, %v2738_v48  ;;  %v10143_v45 = vld [vmem:[%s13081_s10] ss:$0 sm:$0xff] }
 0x5bd   : > { %v2747_v25 = vsel %vm13300_vm12, %v8065_v7, %v2738_v48  ;;  %7723 = vmatprep.mubr.msk.f32.mxu1 %vm13181_vm0, %v2771_v37  ;;  %v2746_v11 = vsel %vm13301_vm7, %v8064_v17, %v8065_v7  ;;  %vm13199_vm12 = vcmask 236544   ;;  %vm13198_vm7 = vcmask 302080  }
 0x5be   : > { %v2732_v20 = vpop.permute.xlu0 %2731  ;;  %v2769_v51 = vmax.f32 %v2691_v49, %v2746_v11  ;;  %v2770_v14 = vmax.f32 %v2692_v46, %v2747_v25  ;;  %v10132_v46 = vld [vmem:[%s13081_s10 + $0x2] ss:$0 sm:$0xff]  ;;  %vm13196_vm0 = vcmask 318464  }
 0x5bf   : > { %v2745_v5 = vsel %vm13302_vm8, %v2732_v20, %v8064_v17  ;;  %vm13197_vm8 = vcmask 310272  }
 0x5c0   : > { %v2768_v13 = vmax.f32 %v9896_v38, %v2745_v5  ;;  %2905 = vmatprep.mubr.f32.mxu0 %v2769_v51  ;;  %2986 = vmatmul.mubr.f32.gmra.mxu1 %v2770_v14 }
 0x5c2   : > { %2906 = vmatmul.mubr.f32.gmra.mxu0 %v2768_v13 }
 0x673   : > { %v7844_v34 = vpop.f32.mrf.mxu0 }
 0x675   : > { %v7845_v52 = vpop.f32.mrf.mxu0 }
 0x676   : > { %v7846_v56 = vadd.f32 %v7845_v52, %v7844_v34  ;;  %v2977_v41 = vpop.f32.mrf.mxu1 }
 0x677   : > { %v7847_v58 = vpop.f32.mrf.mxu0 }
 0x678   : > { %v2978_v43 = vadd.f32 %v7846_v56, %v2977_v41  ;;  %v2979_v28 = vpop.f32.mrf.mxu1 }
 0x679   : > { %v7848_v16 = vpop.f32.mrf.mxu0 }
 0x67a   : > { %3183 = vst.msk [vmem:[#allocation2 + $0x180] sm:$0xff] %vm13200_vm9, %v2978_v43  ;;  %v7849_v1 = vadd.f32 %v7848_v16, %v7847_v58  ;;  %v2982_v2 = vpop.f32.mrf.mxu1  ;;  %2992 = vrot.lane.b32.xlu0 %v2978_v43, %s13186_s20 }
 0x67c   : > { %v10107_v38 = vadd.f32 %v7849_v1, %v2982_v2  ;;  %v2984_v30 = vpop.f32.mrf.mxu1 }
 0x67e   : > { %3184 = vst.msk [vmem:[#allocation2 + $0x1a0] sm:$0xff] %vm13200_vm9, %v10107_v38  ;;  %2995 = vrot.lane.b32.xlu0 %v10107_v38, %s13186_s20 }
 0x680   : > { %v2987_v4 = vpop.f32.mrf.mxu1 }
 0x682   : > { %v7850_v29 = vpop.f32.mrf.mxu0  ;;  %v2989_v44 = vpop.f32.mrf.mxu1  ;;  %3192 = vrot.lane.b32.xlu0 %v10116_v8, %s13303_s22 }
 0x684   : > { %v7851_v63 = vpop.f32.mrf.mxu0 }
 0x685   : > { %v7852_v3 = vadd.f32 %v7851_v63, %v7850_v29 }
 0x686   : > { %3146 = vrot.lane.b32.xlu0 %v10123_v60, %s13163_s3  ;;  %s13171_s3 = smov 37  }
 0x687   : > { %v10127_v49 = vadd.f32 %v7852_v3, %v2987_v4 }
 0x689   : > { %3185 = vst.msk [vmem:[#allocation2 + $0x1c0] sm:$0xff] %vm13200_vm9, %v10127_v49  ;;  %2998 = vrot.lane.b32.xlu1 %v10127_v49, %s13186_s20 }
 0x68a   : > { %3103 = vrot.lane.b32.xlu0 %v10132_v46, %s13161_s21  ;;  %s13165_s21 = smov 38  }
 0x68e   : > { %3016 = vrot.lane.b32.xlu0 %v10143_v45, %s13159_s4  ;;  %s13179_s4 = smov 11  }
 0x692   : > { %3246 = vrot.lane.b32.xlu0 %v10150_v6, %s13157_s15  ;;  %s13175_s15 = smov 29  }
 0x6ec   : > { %v2993_v9 = vpop.permute.xlu0 %2992 }
 0x6ed   : > { %v2994_v32 = vsel %vm2991_vm4, %v2993_v9, %v2978_v43 }
 0x6ee   : > { %3001 = vrot.lane.b32.xlu1 %v2994_v32, %s13186_s20  ;;  %v3295_v32 = vld [vmem:[%s13304_s5 + $0x8] sm:$0xff] }
 0x6ef   : > { %7732 = vmatprep.mubr.msk.f32.mxu0 %vm2428_vm11, %v3295_v32 }
 0x6f0   : > { %v2996_v19 = vpop.permute.xlu0 %2995 }
 0x6f1   : > { %v2997_v18 = vsel %vm2991_vm4, %v2996_v19, %v10107_v38  ;;  %v3328_v19 = vld [vmem:[%s13305_s6 + $0x8] sm:$0xff] }
 0x6f4   : > { %v10183_v31 = vpop.permute.xlu0 %3192 }
 0x6f8   : > { %v3147_v33 = vpop.permute.xlu0 %3146 }
 0x6fb   : > { %v2999_v12 = vpop.permute.xlu1 %2998 }
 0x6fc   : > { %v3000_v47 = vsel %vm2991_vm4, %v2999_v12, %v10127_v49  ;;  %v3104_v62 = vpop.permute.xlu0 %3103  ;;  %v3327_v12 = vld [vmem:[%s13305_s6] sm:$0xff] }
 0x6fd   : > { %3005 = vrot.lane.b32.xlu1 %v3000_v47, %s13186_s20 }
 0x700   : > { %v3017_v13 = vpop.permute.xlu0 %3016 }
 0x701   : > { %3003 = vrot.lane.b32.xlu1 %v2997_v18, %s13186_s20  ;;  %v3329_v18 = vld [vmem:[%s13305_s6 + $0x10] sm:$0xff]  ;;  %s13315_s6 = smov 39  }
 0x704   : > { %v3247_v2 = vpop.permute.xlu0 %3246 }
 0x705   : > { %3060 = vrot.lane.b32.xlu1 %v10165_v53, %s13184_s13 }
 0x709   : > { %3273 = vrot.lane.b32.xlu1 %v10172_v23, %s13179_s4  ;;  %s13310_s4 = smov 11  }
 0x70d   : > { %3219 = vrot.lane.b32.xlu1 %v10179_v27, %s13177_s1  ;;  %s13311_s1 = smov 9  }
 0x760   : > { %v3002_v39 = vpop.permute.xlu1 %3001 }
 0x761   : > { %v10186_v21 = vsel %vm2991_vm4, %v3002_v39, %v2978_v43  ;;  %v3150_v50 = vmul.f32 %v3147_v33, %v3002_v39  ;;  %v3107_v59 = vmul.f32 %v3104_v62, %v3002_v39  ;;  %v3020_v58 = vmul.f32 %v3017_v13, %v3002_v39 }
 0x762   : > { %v3149_v54 = vmul.f32 %v3147_v33, %v10186_v21  ;;  %v3106_v0 = vmul.f32 %v3104_v62, %v10186_v21  ;;  %v3195_v22 = vmul.f32 %v10183_v31, %v10186_v21  ;;  %v3019_v28 = vmul.f32 %v3017_v13, %v10186_v21 }
 0x763   : > { %3163 = vrot.lane.b32.xlu0 %v3150_v50, %s13175_s15  ;;  %v3249_v4 = vmul.f32 %v3247_v2, %v10186_v21 }
 0x764   : > { %3161 = vrot.lane.b32.xlu1 %v3149_v54, %s13175_s15 }
 0x767   : > { %3120 = vrot.lane.b32.xlu0 %v3107_v59, %s13171_s3 }
 0x768   : > { %3118 = vrot.lane.b32.xlu1 %v3106_v0, %s13171_s3  ;;  %v3314_v0 = vld [vmem:[#allocation2 + $0x1c0] sm:$0xff] }
 0x76b   : > { %3201 = vrot.lane.b32.xlu0 %v3195_v22, %s13252_s19 }
 0x76f   : > { %v3006_v57 = vpop.permute.xlu1 %3005 }
 0x770   : > { %v3009_v7 = vsel %vm2991_vm4, %v3006_v57, %v10127_v49  ;;  %v3154_v17 = vmul.f32 %v3147_v33, %v3006_v57  ;;  %v3111_v25 = vmul.f32 %v3104_v62, %v3006_v57  ;;  %v3024_v34 = vmul.f32 %v3017_v13, %v3006_v57 }
 0x771   : > { %v3153_v37 = vmul.f32 %v3147_v33, %v3009_v7  ;;  %v3110_v51 = vmul.f32 %v3104_v62, %v3009_v7  ;;  %v3023_v41 = vmul.f32 %v3017_v13, %v3009_v7  ;;  %v3197_v49 = vmul.f32 %v10183_v31, %v3009_v7 }
 0x773   : > { %v3004_v35 = vpop.permute.xlu1 %3003 }
 0x774   : > { %v10199_v15 = vsel %vm2991_vm4, %v3004_v35, %v10107_v38  ;;  %v3152_v40 = vmul.f32 %v3147_v33, %v3004_v35  ;;  %v3109_v26 = vmul.f32 %v3104_v62, %v3004_v35  ;;  %v3022_v56 = vmul.f32 %v3017_v13, %v3004_v35 }
 0x775   : > { %v3151_v36 = vmul.f32 %v3147_v33, %v10199_v15  ;;  %v3108_v24 = vmul.f32 %v3104_v62, %v10199_v15  ;;  %v3021_v52 = vmul.f32 %v3017_v13, %v10199_v15  ;;  %v3251_v38 = vmul.f32 %v3247_v2, %v3009_v7 }
 0x776   : > { %3167 = vrot.lane.b32.xlu0 %v3152_v40, %s13175_s15  ;;  %v3250_v44 = vmul.f32 %v3247_v2, %v10199_v15  ;;  %v3196_v47 = vmul.f32 %v10183_v31, %v10199_v15  ;;  %v3312_v40 = vld [vmem:[#allocation2 + $0x180] sm:$0xff] }
 0x777   : > { %3165 = vrot.lane.b32.xlu1 %v3151_v36, %s13175_s15  ;;  %v3061_v42 = vpop.permute.xlu1 %3060 }
 0x778   : > { %v3066_v55 = vmul.f32 %v3061_v42, %v3004_v35  ;;  %v3065_v48 = vmul.f32 %v3061_v42, %v10199_v15  ;;  %v3063_v11 = vmul.f32 %v3061_v42, %v10186_v21  ;;  %v3068_v20 = vmul.f32 %v3061_v42, %v3006_v57  ;;  %v3313_v35 = vld [vmem:[#allocation2 + $0x1a0] sm:$0xff] }
 0x779   : > { %v3064_v14 = vmul.f32 %v3061_v42, %v3002_v39  ;;  %v3067_v5 = vmul.f32 %v3061_v42, %v3009_v7 }
 0x77a   : > { %3124 = vrot.lane.b32.xlu0 %v3109_v26, %s13171_s3 }
 0x77b   : > { %3122 = vrot.lane.b32.xlu1 %v3108_v24, %s13171_s3  ;;  %v3274_v43 = vpop.permute.xlu1 %3273 }
 0x77c   : > { %v3277_v16 = vmul.f32 %v3274_v43, %v10199_v15  ;;  %v3278_v1 = vmul.f32 %v3274_v43, %v3009_v7  ;;  %v3276_v30 = vmul.f32 %v3274_v43, %v10186_v21 }
 0x77e   : > { %3081 = vrot.lane.b32.xlu0 %v3066_v55, %s13165_s21 }
 0x77f   : > { %3079 = vrot.lane.b32.xlu1 %v3065_v48, %s13165_s21  ;;  %v3220_v29 = vpop.permute.xlu1 %3219 }
 0x780   : > { %v3223_v63 = vmul.f32 %v3220_v29, %v10199_v15  ;;  %v3224_v3 = vmul.f32 %v3220_v29, %v3009_v7  ;;  %v3222_v9 = vmul.f32 %v3220_v29, %v10186_v21 }
 0x782   : > { %3171 = vrot.lane.b32.xlu0 %v3154_v17, %s13175_s15 }
 0x783   : > { %3169 = vrot.lane.b32.xlu1 %v3153_v37, %s13175_s15  ;;  %s13312_s15 = smov 29  }
 0x786   : > { %3128 = vrot.lane.b32.xlu0 %v3111_v25, %s13171_s3 }
 0x787   : > { %3075 = vrot.lane.b32.xlu1 %v3063_v11, %s13165_s21 }
 0x78a   : > { %3085 = vrot.lane.b32.xlu0 %v3068_v20, %s13165_s21 }
 0x78b   : > { %3126 = vrot.lane.b32.xlu1 %v3110_v51, %s13171_s3  ;;  %s13308_s3 = smov 89  }
 0x78e   : > { %3077 = vrot.lane.b32.xlu0 %v3064_v14, %s13165_s21 }
 0x78f   : > { %3083 = vrot.lane.b32.xlu1 %v3067_v5, %s13165_s21  ;;  %s13173_s21 = smov 118  }
 0x792   : > { %3041 = vrot.lane.b32.xlu0 %v3024_v34, %s13167_s2 }
 0x793   : > { %3035 = vrot.lane.b32.xlu1 %v3021_v52, %s13167_s2 }
 0x796   : > { %3037 = vrot.lane.b32.xlu0 %v3022_v56, %s13167_s2 }
 0x797   : > { %3039 = vrot.lane.b32.xlu1 %v3023_v41, %s13167_s2 }
 0x79a   : > { %3033 = vrot.lane.b32.xlu0 %v3020_v58, %s13167_s2 }
 0x79b   : > { %3031 = vrot.lane.b32.xlu1 %v3019_v28, %s13167_s2  ;;  %s13182_s2 = smov 119  }
 0x79e   : > { %3284 = vrot.lane.b32.xlu0 %v3277_v16, %s13169_s12 }
 0x79f   : > { %3286 = vrot.lane.b32.xlu1 %v3278_v1, %s13169_s12 }
 0x7a2   : > { %3259 = vrot.lane.b32.xlu0 %v3251_v38, %s13173_s21 }
 0x7a3   : > { %3282 = vrot.lane.b32.xlu1 %v3276_v30, %s13169_s12  ;;  %s13309_s12 = smov 10  }
 0x7a6   : > { %3255 = vrot.lane.b32.xlu0 %v3249_v4, %s13173_s21 }
 0x7a7   : > { %3257 = vrot.lane.b32.xlu1 %v3250_v44, %s13173_s21  ;;  %s13307_s21 = smov 91  }
 0x7aa   : > { %3230 = vrot.lane.b32.xlu0 %v3223_v63, %s13182_s2 }
 0x7ab   : > { %3232 = vrot.lane.b32.xlu1 %v3224_v3, %s13182_s2 }
 0x7ae   : > { %3205 = vrot.lane.b32.xlu0 %v3197_v49, %s13252_s19 }
 0x7af   : > { %3228 = vrot.lane.b32.xlu1 %v3222_v9, %s13182_s2  ;;  %s13306_s2 = smov 99  }
 0x7b2   : > { %3332 = vperm.xlu0 %8040, %v3327_v12  }
 0x7b3   : > { %3203 = vrot.lane.b32.xlu1 %v3196_v47, %s13252_s19 }
 0x7b6   : > { %3337 = vperm.xlu0 %8040, %v3328_v19  }
 0x7b7   : > { %3342 = vperm.xlu1 %8039, %v3329_v18  }
 0x7d5   : > { %v3164_v33 = vpop.permute.xlu0 %3163 }
 0x7d6   : > { %v3162_v39 = vpop.permute.xlu1 %3161 }
 0x7d7   : > { %v3174_v21 = vsel %vm13199_vm12, %v3162_v39, %v3164_v33 }
 0x7d8   : > { %3180 = vst.msk [vmem:[#allocation2 + $0x120] sm:$0xff] %vm13200_vm9, %v3174_v21 }
 0x7d9   : > { %v3121_v31 = vpop.permute.xlu0 %3120 }
 0x7da   : > { %v3119_v50 = vpop.permute.xlu1 %3118 }
 0x7db   : > { %v3131_v54 = vsel %vm13198_vm7, %v3119_v50, %v3121_v31 }
 0x7dc   : > { %3137 = vst.msk [vmem:[#allocation2 + $0xc0] sm:$0xff] %vm13200_vm9, %v3131_v54 }
 0x7dd   : > { %v3202_v62 = vpop.permute.xlu0 %3201 }
 0x7de   : > { %3210 = vst.msk [vmem:[#allocation2 + $0x1e0] sm:$0xff] %vm13200_vm9, %v3202_v62 }
 0x7df   : > { %v3309_v58 = vld [vmem:[#allocation2 + $0x120] sm:$0xff] }
 0x7e3   : > { %v3306_v29 = vld [vmem:[#allocation2 + $0xc0] sm:$0xff] }
 0x7e5   : > { %v3315_v59 = vld [vmem:[#allocation2 + $0x1e0] sm:$0xff] }
 0x7e6   : > { %3355 = vmatpush1.msra.mxu0 %v3315_v59 }
 0x7e7   : > { %3356 = vmatprep.subr.mxu0 %v13294_v61 }
 0x7e8   : > { %3357 = vmatpush1.msra.mxu0 %v3314_v0  ;;  %v3168_v22 = vpop.permute.xlu0 %3167 }
 0x7e9   : > { %v3166_v57 = vpop.permute.xlu1 %3165  ;;  %3358 = vmatprep.subr.mxu0 %v13294_v61 }
 0x7ea   : > { %v3175_v15 = vsel %vm13199_vm12, %v3166_v57, %v3168_v22  ;;  %3359 = vmatpush1.msra.mxu0 %v3313_v35 }
 0x7eb   : > { %3181 = vst.msk [vmem:[#allocation2 + $0x140] sm:$0xff] %vm13200_vm9, %v3175_v15  ;;  %3360 = vmatprep.subr.mxu0 %v13294_v61 }
 0x7ec   : > { %v3125_v36 = vpop.permute.xlu0 %3124  ;;  %3361 = vmatpush1.msra.mxu0 %v3312_v40 }
 0x7ed   : > { %v3123_v26 = vpop.permute.xlu1 %3122  ;;  %3362 = vmatprep.subr.mxu0 %v13294_v61 }
 0x7ee   : > { %v3132_v42 = vsel %vm13198_vm7, %v3123_v26, %v3125_v36 }
 0x7ef   : > { %3138 = vst.msk [vmem:[#allocation2 + $0xe0] sm:$0xff] %vm13200_vm9, %v3132_v42 }
 0x7f0   : > { %v3082_v24 = vpop.permute.xlu0 %3081 }
 0x7f1   : > { %v3080_v55 = vpop.permute.xlu1 %3079 }
 0x7f2   : > { %v3089_v48 = vsel %vm13197_vm8, %v3080_v55, %v3082_v24  ;;  %v3310_v34 = vld [vmem:[#allocation2 + $0x140] sm:$0xff] }
 0x7f3   : > { %3095 = vst.msk [vmem:[#allocation2 + $0x80] sm:$0xff] %vm13200_vm9, %v3089_v48 }
 0x7f4   : > { %v3172_v7 = vpop.permute.xlu0 %3171 }
 0x7f5   : > { %v3170_v17 = vpop.permute.xlu1 %3169 }
 0x7f6   : > { %v3176_v37 = vsel %vm13199_vm12, %v3170_v17, %v3172_v7  ;;  %v3307_v2 = vld [vmem:[#allocation2 + $0xe0] sm:$0xff] }
 0x7f7   : > { %3182 = vst.msk [vmem:[#allocation2 + $0x160] sm:$0xff] %vm13200_vm9, %v3176_v37  ;;  %v3294_v7 = vld [vmem:[%s13304_s5] sm:$0xff]  ;;  %v3297_v37 = vld [vmem:[%s13304_s5 + $0x18] sm:$0xff] }
 0x7f8   : > { %v3129_v25 = vpop.permute.xlu0 %3128 }
 0x7f9   : > { %v3076_v11 = vpop.permute.xlu1 %3075 }
 0x7fa   : > { %v3304_v9 = vld [vmem:[#allocation2 + $0x80] sm:$0xff] }
 0x7fc   : > { %v3086_v20 = vpop.permute.xlu0 %3085 }
 0x7fd   : > { %v3127_v51 = vpop.permute.xlu1 %3126 }
 0x7fe   : > { %v3133_v14 = vsel %vm13198_vm7, %v3127_v51, %v3129_v25  ;;  %v3311_v5 = vld [vmem:[#allocation2 + $0x160] sm:$0xff]  ;;  %v3296_v25 = vld [vmem:[%s13304_s5 + $0x10] sm:$0xff] }
 0x7ff   : > { %3139 = vst.msk [vmem:[#allocation2 + $0x100] sm:$0xff] %vm13200_vm9, %v3133_v14  ;;  %3363 = vmatpush1.msra.mxu0 %v3311_v5 }
 0x800   : > { %v3078_v13 = vpop.permute.xlu0 %3077  ;;  %3364 = vmatprep.subr.mxu0 %v13294_v61 }
 0x801   : > { %v3088_v52 = vsel %vm13197_vm8, %v3076_v11, %v3078_v13  ;;  %v3084_v56 = vpop.permute.xlu1 %3083  ;;  %3365 = vmatpush1.msra.mxu0 %v3310_v34  ;;  %v3299_v11 = vld [vmem:[%s13304_s5 + $0x28] sm:$0xff] }
 0x802   : > { %3094 = vst.msk [vmem:[#allocation2 + $0x60] sm:$0xff] %vm13200_vm9, %v3088_v52  ;;  %v3090_v41 = vsel %vm13197_vm8, %v3084_v56, %v3086_v20  ;;  %3366 = vmatprep.subr.mxu0 %v13294_v61  ;;  %v3298_v20 = vld [vmem:[%s13304_s5 + $0x20] sm:$0xff]  ;;  %s13316_s5 = smov 117  }
 0x803   : > { %3096 = vst.msk [vmem:[#allocation2 + $0xa0] sm:$0xff] %vm13200_vm9, %v3090_v41  ;;  %3367 = vmatpush1.msra.mxu0 %v3309_v58 }
 0x804   : > { %v3042_v43 = vpop.permute.xlu0 %3041  ;;  %3368 = vmatprep.subr.mxu0 %v13294_v61 }
 0x805   : > { %v3036_v28 = vpop.permute.xlu1 %3035 }
 0x806   : > { %v3308_v16 = vld [vmem:[#allocation2 + $0x100] sm:$0xff] }
 0x807   : > { %3369 = vmatpush1.msra.mxu0 %v3308_v16 }
 0x808   : > { %v3038_v1 = vpop.permute.xlu0 %3037  ;;  %3370 = vmatprep.subr.mxu0 %v13294_v61 }
 0x809   : > { %v3045_v38 = vsel %vm13196_vm0, %v3036_v28, %v3038_v1  ;;  %v3040_v30 = vpop.permute.xlu1 %3039  ;;  %3371 = vmatpush1.msra.mxu0 %v3307_v2  ;;  %v3303_v12 = vld [vmem:[#allocation2 + $0x60] sm:$0xff] }
 0x80a   : > { %3052 = vst.msk [vmem:[#allocation2 + $0x20] sm:$0xff] %vm13200_vm9, %v3045_v38  ;;  %v3046_v4 = vsel %vm13196_vm0, %v3040_v30, %v3042_v43  ;;  %3372 = vmatprep.subr.mxu0 %v13294_v61  ;;  %v3305_v63 = vld [vmem:[#allocation2 + $0xa0] sm:$0xff] }
 0x80b   : > { %3053 = vst.msk [vmem:[#allocation2 + $0x40] sm:$0xff] %vm13200_vm9, %v3046_v4  ;;  %3373 = vmatpush1.msra.mxu0 %v3306_v29 }
 0x80c   : > { %v3034_v44 = vpop.permute.xlu0 %3033  ;;  %3374 = vmatprep.subr.mxu0 %v13294_v61 }
 0x80d   : > { %v3032_v3 = vpop.permute.xlu1 %3031  ;;  %3375 = vmatpush1.msra.mxu0 %v3305_v63 }
 0x80e   : > { %v3044_v49 = vsel %vm13196_vm0, %v3032_v3, %v3034_v44  ;;  %3376 = vmatprep.subr.mxu0 %v13294_v61 }
 0x80f   : > { %3051 = vst.msk [vmem:[#allocation2] sm:$0xff] %vm13200_vm9, %v3044_v49  ;;  %3377 = vmatpush1.msra.mxu0 %v3304_v9 }
 0x810   : > { %v3285_v32 = vpop.permute.xlu0 %3284  ;;  %3378 = vmatprep.subr.mxu0 %v13294_v61 }
 0x811   : > { %3292 = vst.msk [vmem:[#allocation2 + $0x320] sm:$0xff] %vm13200_vm9, %v3285_v32  ;;  %v3287_v47 = vpop.permute.xlu1 %3286  ;;  %3379 = vmatpush1.msra.mxu0 %v3303_v12  ;;  %v3301_v33 = vld [vmem:[#allocation2 + $0x20] sm:$0xff] }
 0x812   : > { %3293 = vst.msk [vmem:[#allocation2 + $0x340] sm:$0xff] %vm13200_vm9, %v3287_v47  ;;  %3380 = vmatprep.subr.mxu0 %v13294_v61  ;;  %v3302_v19 = vld [vmem:[#allocation2 + $0x40] sm:$0xff] }
 0x813   : > { %3381 = vmatpush1.msra.mxu0 %v3302_v19 }
 0x814   : > { %v3260_v18 = vpop.permute.xlu0 %3259  ;;  %3382 = vmatprep.subr.mxu0 %v13294_v61 }
 0x815   : > { %3266 = vst.msk [vmem:[#allocation2 + $0x2e0] sm:$0xff] %vm13200_vm9, %v3260_v18  ;;  %v3283_v39 = vpop.permute.xlu1 %3282  ;;  %3383 = vmatpush1.msra.mxu0 %v3301_v33 }
 0x816   : > { %3291 = vst.msk [vmem:[#allocation2 + $0x300] sm:$0xff] %vm13200_vm9, %v3283_v39  ;;  %3384 = vmatprep.subr.mxu0 %v13294_v61  ;;  %v3300_v21 = vld [vmem:[#allocation2] sm:$0xff] }
 0x817   : > { %3385 = vmatpush1.msra.mxu0 %v3300_v21 }
 0x818   : > { %v3256_v31 = vpop.permute.xlu0 %3255  ;;  %3396 = vmatprep.subr.mxu0 %v13294_v61  ;;  %v3325_v62 = vld [vmem:[#allocation2 + $0x320] sm:$0xff] }
 0x819   : > { %3264 = vst.msk [vmem:[#allocation2 + $0x2a0] sm:$0xff] %vm13200_vm9, %v3256_v31  ;;  %v3258_v50 = vpop.permute.xlu1 %3257  ;;  %v3326_v54 = vld [vmem:[#allocation2 + $0x340] sm:$0xff] }
 0x81a   : > { %3265 = vst.msk [vmem:[#allocation2 + $0x2c0] sm:$0xff] %vm13200_vm9, %v3258_v50  ;;  %3397 = vmatpush2.msra.mxu0 %v3326_v54 }
 0x81b   : > { %3398 = vmatprep.subr.mxu0 %v13294_v61 }
 0x81c   : > { %v3231_v59 = vpop.permute.xlu0 %3230  ;;  %3399 = vmatpush2.msra.mxu0 %v3325_v62  ;;  %v3323_v57 = vld [vmem:[#allocation2 + $0x2e0] sm:$0xff] }
 0x81d   : > { %3238 = vst.msk [vmem:[#allocation2 + $0x260] sm:$0xff] %vm13200_vm9, %v3231_v59  ;;  %v3233_v0 = vpop.permute.xlu1 %3232  ;;  %3400 = vmatprep.subr.mxu0 %v13294_v61  ;;  %v3324_v22 = vld [vmem:[#allocation2 + $0x300] sm:$0xff] }
 0x81e   : > { %3239 = vst.msk [vmem:[#allocation2 + $0x280] sm:$0xff] %vm13200_vm9, %v3233_v0  ;;  %3401 = vmatpush2.msra.mxu0 %v3324_v22 }
 0x81f   : > { %3402 = vmatprep.subr.mxu0 %v13294_v61 }
 0x820   : > { %v3206_v35 = vpop.permute.xlu0 %3205  ;;  %3403 = vmatpush2.msra.mxu0 %v3323_v57  ;;  %v3321_v36 = vld [vmem:[#allocation2 + $0x2a0] sm:$0xff] }
 0x821   : > { %3212 = vst.msk [vmem:[#allocation2 + $0x220] sm:$0xff] %vm13200_vm9, %v3206_v35  ;;  %v3229_v15 = vpop.permute.xlu1 %3228  ;;  %3404 = vmatprep.subr.mxu0 %v13294_v61  ;;  %v3322_v40 = vld [vmem:[#allocation2 + $0x2c0] sm:$0xff] }
 0x822   : > { %3237 = vst.msk [vmem:[#allocation2 + $0x240] sm:$0xff] %vm13200_vm9, %v3229_v15  ;;  %3405 = vmatpush2.msra.mxu0 %v3322_v40 }
 0x823   : > { %3406 = vmatprep.subr.mxu0 %v13294_v61 }
 0x824   : > { %3407 = vmatpush2.msra.mxu0 %v3321_v36  ;;  %v3319_v24 = vld [vmem:[#allocation2 + $0x260] sm:$0xff] }
 0x825   : > { %v3204_v26 = vpop.permute.xlu1 %3203  ;;  %3408 = vmatprep.subr.mxu0 %v13294_v61  ;;  %v3320_v42 = vld [vmem:[#allocation2 + $0x280] sm:$0xff] }
 0x826   : > { %3211 = vst.msk [vmem:[#allocation2 + $0x200] sm:$0xff] %vm13200_vm9, %v3204_v26  ;;  %3409 = vmatpush2.msra.mxu0 %v3320_v42 }
 0x827   : > { %3410 = vmatprep.subr.mxu0 %v13294_v61 }
 0x828   : > { %3411 = vmatpush2.msra.mxu0 %v3319_v24  ;;  %v3317_v48 = vld [vmem:[#allocation2 + $0x220] sm:$0xff] }
 0x829   : > { %3412 = vmatprep.subr.mxu0 %v13294_v61  ;;  %v3318_v55 = vld [vmem:[#allocation2 + $0x240] sm:$0xff] }
 0x82a   : > { %3413 = vmatpush2.msra.mxu0 %v3318_v55 }
 0x82b   : > { %3414 = vmatprep.subr.mxu0 %v13294_v61 }
 0x82c   : > { %3415 = vmatpush2.msra.mxu0 %v3317_v48 }
 0x82d   : > { %3416 = vmatprep.subr.mxu0 %v13294_v61  ;;  %v3316_v17 = vld [vmem:[#allocation2 + $0x200] sm:$0xff]  ;;  %v3333_v51 = vpop.permute.xlu0 %3332 }
 0x82e   : > { %3417 = vmatpush2.msra.mxu0 %v3316_v17 }
 0x82f   : > { %3419 = vmatmul.mubr.f32.vlgmr.msra.gmra.mxu0 %v3294_v7  ;;  %7926 = vmatprep.subr.mxu0 %v13294_v61 }
 0x830   : > { %7733 = vmatprep.mubr.msk.f32.mxu0 %vm2428_vm11, %v3297_v37 }
 0x831   : > { %v3338_v52 = vpop.permute.xlu0 %3337 }
 0x832   : > { %v3343_v28 = vpop.permute.xlu1 %3342 }
 0x833   : > { %3424 = vmatmul.mubr.f32.gmra.mxu0 %v3296_v25 }
 0x834   : > { %7734 = vmatprep.mubr.msk.f32.mxu0 %vm2428_vm11, %v3299_v11 }
 0x837   : > { %3429 = vmatmul.mubr.f32.gmra.mxu0 %v3298_v20 }
 0x8ef   : > { %v3420_v14 = vpop.f32.mrf.mxu0 }
 0x8f0   : > { %v3421_v5 = vadd.f32 %v3420_v14, %v3333_v51 }
 0x8f1   : > { %v3422_v13 = vpop.f32.mrf.mxu0 }
 0x8f2   : > { %v3434_v34 = vmax.f32 %v3421_v5, 0.0 }
 0x8f3   : > { %v3425_v56 = vpop.f32.mrf.mxu0 }
 0x8f4   : > { %3623 = vst.msk [vmem:[#allocation2 + $0x180] sm:$0xff] %vm13200_vm9, %v3434_v34  ;;  %v3426_v41 = vadd.f32 %v3425_v56, %v3338_v52  ;;  %3437 = vrot.lane.b32.xlu1 %v3434_v34, %s13186_s20 }
 0x8f5   : > { %v3427_v58 = vpop.f32.mrf.mxu0 }
 0x8f6   : > { %v3435_v43 = vmax.f32 %v3426_v41, 0.0  ;;  %v10432_v58 = vld [vmem:[%s8245_s27 + $0x20] sm:$0xff]  ;;  %s13324_s27 = smov 125  }
 0x8f7   : > { %v3430_v16 = vpop.f32.mrf.mxu0 }
 0x8f8   : > { %3624 = vst.msk [vmem:[#allocation2 + $0x1a0] sm:$0xff] %vm13200_vm9, %v3435_v43  ;;  %v3431_v1 = vadd.f32 %v3430_v16, %v3343_v28  ;;  %3440 = vrot.lane.b32.xlu1 %v3435_v43, %s13186_s20  ;;  %v3735_v28 = vld [vmem:[%s13319_s7 + $0x8] sm:$0xff] }
 0x8f9   : > { %v3432_v2 = vpop.f32.mrf.mxu0  ;;  %7743 = vmatprep.mubr.msk.f32.mxu1 %vm2428_vm11, %v3735_v28 }
 0x8fa   : > { %v3436_v38 = vmax.f32 %v3431_v1, 0.0  ;;  %v13320_v1 = vld [vmem:[#allocation6_spill] sm:$0xff] }
 0x8fc   : > { %3625 = vst.msk [vmem:[#allocation2 + $0x1c0] sm:$0xff] %vm13200_vm9, %v3436_v38  ;;  %3443 = vrot.lane.b32.xlu0 %v3436_v38, %s13186_s20  ;;  %3632 = vrot.lane.b32.xlu1 %v10116_v8, %s13303_s22 }
 0x900   : > { %3587 = vrot.lane.b32.xlu1 %v10123_v60, %s13306_s2 }
 0x904   : > { %3545 = vrot.lane.b32.xlu1 %v10132_v46, %s13307_s21 }
 0x908   : > { %3461 = vrot.lane.b32.xlu1 %v10143_v45, %s13308_s3  ;;  %s13522_s3 = smov 11  }
 0x90c   : > { %3686 = vrot.lane.b32.xlu1 %v10150_v6, %s13309_s12  ;;  %s13605_s12 = sld [smem:[#allocation43_spill]] }
 0x966   : > { %v3438_v30 = vpop.permute.xlu1 %3437 }
 0x967   : > { %v3439_v4 = vsel %vm2991_vm4, %v3438_v30, %v3434_v34 }
 0x968   : > { %3446 = vrot.lane.b32.xlu0 %v3439_v4, %s13186_s20  ;;  %v10455_v4 = vld [vmem:[%s13080_s9 + $0x7] ss:$8 sm:$0xf] }
 0x96a   : > { %v3441_v44 = vpop.permute.xlu1 %3440 }
 0x96b   : > { %v3442_v60 = vsel %vm2991_vm4, %v3441_v44, %v3435_v43 }
 0x96e   : > { %v3444_v29 = vpop.permute.xlu0 %3443  ;;  %v10370_v46 = vpop.permute.xlu1 %3632 }
 0x96f   : > { %v3445_v8 = vsel %vm2991_vm4, %v3444_v29, %v3436_v38 }
 0x970   : > { %3450 = vrot.lane.b32.xlu0 %v3445_v8, %s13186_s20  ;;  %v13322_v8 = vld [vmem:[#allocation8_spill] sm:$0xff] }
 0x972   : > { %v3588_v45 = vpop.permute.xlu1 %3587 }
 0x974   : > { %3448 = vrot.lane.b32.xlu0 %v3442_v60, %s13186_s20  ;;  %s13314_s20 = smov 38   ;;  %v4498_v60 = vrot.slane %v10455_v4, %v13322_v8 }
 0x976   : > { %v3546_v9 = vpop.permute.xlu1 %3545 }
 0x978   : > { %3503 = vrot.lane.b32.xlu0 %v10165_v53, %s13184_s13  ;;  %s13313_s13 = smov 37  }
 0x97a   : > { %v3462_v36 = vpop.permute.xlu1 %3461 }
 0x97c   : > { %3713 = vrot.lane.b32.xlu0 %v10172_v23, %s13310_s4  ;;  %s13348_s4 = sld [smem:[#allocation34_spill]] }
 0x97e   : > { %v3687_v11 = vpop.permute.xlu1 %3686 }
 0x980   : > { %3659 = vrot.lane.b32.xlu0 %v10179_v27, %s13311_s1  ;;  %s13521_s1 = smov 90  }
 0x9da   : > { %v3447_v6 = vpop.permute.xlu0 %3446 }
 0x9db   : > { %v10373_v63 = vsel %vm2991_vm4, %v3447_v6, %v3434_v34  ;;  %v3591_v3 = vmul.f32 %v3588_v45, %v3447_v6  ;;  %v3549_v53 = vmul.f32 %v3546_v9, %v3447_v6  ;;  %v3465_v48 = vmul.f32 %v3462_v36, %v3447_v6 }
 0x9dc   : > { %v3590_v49 = vmul.f32 %v3588_v45, %v10373_v63  ;;  %v3548_v23 = vmul.f32 %v3546_v9, %v10373_v63  ;;  %v3635_v32 = vmul.f32 %v10370_v46, %v10373_v63  ;;  %v3464_v17 = vmul.f32 %v3462_v36, %v10373_v63 }
 0x9dd   : > { %3604 = vrot.lane.b32.xlu1 %v3591_v3, %s13312_s15  ;;  %v3689_v14 = vmul.f32 %v3687_v11, %v10373_v63  ;;  %v10483_v3 = vld [vmem:[%s13080_s9 + $0x5] ss:$8 sm:$0xf] }
 0x9de   : > { %3602 = vrot.lane.b32.xlu0 %v3590_v49, %s13312_s15 }
 0x9e1   : > { %3562 = vrot.lane.b32.xlu1 %v3549_v53, %s13313_s13  ;;  %v4378_v53 = vrot.slane %v10483_v3, %v13322_v8 }
 0x9e2   : > { %v3451_v27 = vpop.permute.xlu0 %3450  ;;  %3560 = vrot.lane.b32.xlu0 %v3548_v23, %s13313_s13  ;;  %v4374_v23 = vrot.slane %v10483_v3, %v13320_v1 }
 0x9e3   : > { %v3454_v54 = vsel %vm2991_vm4, %v3451_v27, %v3436_v38  ;;  %v3595_v62 = vmul.f32 %v3588_v45, %v3451_v27  ;;  %v3553_v0 = vmul.f32 %v3546_v9, %v3451_v27  ;;  %v3469_v26 = vmul.f32 %v3462_v36, %v3451_v27  ;;  %v13321_v38 = vld [vmem:[#allocation7_spill] sm:$0xff] }
 0x9e4   : > { %v3594_v59 = vmul.f32 %v3588_v45, %v3454_v54  ;;  %v3552_v35 = vmul.f32 %v3546_v9, %v3454_v54  ;;  %v3468_v55 = vmul.f32 %v3462_v36, %v3454_v54  ;;  %v3691_v20 = vmul.f32 %v3687_v11, %v3454_v54 }
 0x9e5   : > { %3641 = vrot.lane.b32.xlu1 %v3635_v32, %s13252_s19  ;;  %v3637_v56 = vmul.f32 %v10370_v46, %v3454_v54  ;;  %v4490_v29 = vrot.slane %v10455_v4, %v13321_v38  ;;  %v4370_v49 = vrot.slane %v10483_v3, %v13321_v38  ;;  %v10504_v32 = vld [vmem:[#allocation2 + $0x90] sm:$0xff] }
 0x9e6   : > { %v3449_v12 = vpop.permute.xlu0 %3448 }
 0x9e7   : > { %v10385_v47 = vsel %vm2991_vm4, %v3449_v12, %v3435_v43  ;;  %v3593_v19 = vmul.f32 %v3588_v45, %v3449_v12  ;;  %v3551_v33 = vmul.f32 %v3546_v9, %v3449_v12  ;;  %v3467_v24 = vmul.f32 %v3462_v36, %v3449_v12  ;;  %v10437_v43 = vld [vmem:[%s13080_s9 + $0x20] ss:$8 sm:$0xf] }
 0x9e8   : > { %v3592_v18 = vmul.f32 %v3588_v45, %v10385_v47  ;;  %v3550_v21 = vmul.f32 %v3546_v9, %v10385_v47  ;;  %v3466_v42 = vmul.f32 %v3462_v36, %v10385_v47  ;;  %v3690_v13 = vmul.f32 %v3687_v11, %v10385_v47  ;;  %v10472_v45 = vld [vmem:[%s13080_s9 + $0x6] ss:$8 sm:$0xf] }
 0x9e9   : > { %3608 = vrot.lane.b32.xlu1 %v3593_v19, %s13312_s15  ;;  %v3636_v16 = vmul.f32 %v10370_v46, %v10385_v47  ;;  %v4554_v2 = vrot.slane %v10437_v43, %v13320_v1  ;;  %v4550_v30 = vrot.slane %v10437_v43, %v13321_v38  ;;  %v4558_v44 = vrot.slane %v10437_v43, %v13322_v8 }
 0x9ea   : > { %3606 = vrot.lane.b32.xlu0 %v3592_v18, %s13312_s15  ;;  %v3504_v39 = vpop.permute.xlu0 %3503  ;;  %v4494_v46 = vrot.slane %v10455_v4, %v13320_v1  ;;  %v4438_v9 = vrot.slane %v10472_v45, %v13322_v8  ;;  %v10519_v18 = vld [vmem:[%s13080_s9 + $0x2] ss:$8 sm:$0xf] }
 0x9eb   : > { %v3509_v31 = vmul.f32 %v3504_v39, %v3449_v12  ;;  %v3508_v50 = vmul.f32 %v3504_v39, %v10385_v47  ;;  %v3506_v22 = vmul.f32 %v3504_v39, %v10373_v63  ;;  %v3511_v57 = vmul.f32 %v3504_v39, %v3451_v27  ;;  %v10502_v27 = vld [vmem:[%s13080_s9 + $0x3] ss:$8 sm:$0xf] }
 0x9ec   : > { %v3507_v15 = vmul.f32 %v3504_v39, %v3447_v6  ;;  %v3510_v40 = vmul.f32 %v3504_v39, %v3454_v54  ;;  %v4434_v6 = vrot.slane %v10472_v45, %v13320_v1  ;;  %v4310_v12 = vrot.slane %v10502_v27, %v13320_v1 }
 0x9ed   : > { %3566 = vrot.lane.b32.xlu1 %v3551_v33, %s13313_s13  ;;  %v4306_v19 = vrot.slane %v10502_v27, %v13321_v38  ;;  %v4240_v33 = vrot.slane %v10519_v18, %v13321_v38  ;;  %v4314_v39 = vrot.slane %v10502_v27, %v13322_v8 }
 0x9ee   : > { %3564 = vrot.lane.b32.xlu0 %v3550_v21, %s13313_s13  ;;  %v3714_v7 = vpop.permute.xlu0 %3713  ;;  %v4248_v21 = vrot.slane %v10519_v18, %v13322_v8 }
 0x9ef   : > { %v3717_v37 = vmul.f32 %v3714_v7, %v10385_v47  ;;  %v3718_v25 = vmul.f32 %v3714_v7, %v3454_v54  ;;  %v3716_v51 = vmul.f32 %v3714_v7, %v10373_v63 }
 0x9f1   : > { %3524 = vrot.lane.b32.xlu1 %v3509_v31, %s13314_s20  ;;  %v4244_v31 = vrot.slane %v10519_v18, %v13320_v1 }
 0x9f2   : > { %3522 = vrot.lane.b32.xlu0 %v3508_v50, %s13314_s20  ;;  %v3660_v5 = vpop.permute.xlu0 %3659  ;;  %v10536_v50 = vld [vmem:[%s13080_s9 + $0x1] ss:$8 sm:$0xf] }
 0x9f3   : > { %v3663_v34 = vmul.f32 %v3660_v5, %v10385_v47  ;;  %v3664_v52 = vmul.f32 %v3660_v5, %v3454_v54  ;;  %v3662_v41 = vmul.f32 %v3660_v5, %v10373_v63  ;;  %v4430_v63 = vrot.slane %v10472_v45, %v13321_v38  ;;  %v10510_v47 = vld [vmem:[#allocation2 + $0x88] sm:$0xff] }
 0x9f4   : > { %v4178_v54 = vrot.slane %v10536_v50, %v13320_v1 }
 0x9f5   : > { %3612 = vrot.lane.b32.xlu1 %v3595_v62, %s13312_s15  ;;  %v4174_v62 = vrot.slane %v10536_v50, %v13321_v38 }
 0x9f6   : > { %3610 = vrot.lane.b32.xlu0 %v3594_v59, %s13312_s15  ;;  %v10547_v59 = vld [vmem:[%s13080_s9] ss:$8 sm:$0xf] }
 0x9f9   : > { %3570 = vrot.lane.b32.xlu1 %v3553_v0, %s13313_s13 }
 0x9fa   : > { %3518 = vrot.lane.b32.xlu0 %v3506_v22, %s13314_s20 }
 0x9fd   : > { %3528 = vrot.lane.b32.xlu1 %v3511_v57, %s13314_s20 }
 0x9fe   : > { %3568 = vrot.lane.b32.xlu0 %v3552_v35, %s13313_s13  ;;  %s13325_s13 = smov 124   ;;  %v4108_v35 = vrot.slane %v10547_v59, %v13321_v38 }
 0xa01   : > { %3520 = vrot.lane.b32.xlu1 %v3507_v15, %s13314_s20  ;;  %v4182_v15 = vrot.slane %v10536_v50, %v13322_v8 }
 0xa02   : > { %3526 = vrot.lane.b32.xlu0 %v3510_v40, %s13314_s20  ;;  %s13317_s20 = smov 118  }
 0xa05   : > { %3486 = vrot.lane.b32.xlu1 %v3469_v26, %s13315_s6 }
 0xa06   : > { %3480 = vrot.lane.b32.xlu0 %v3466_v42, %s13315_s6  ;;  %v4116_v42 = vrot.slane %v10547_v59, %v13322_v8 }
 0xa09   : > { %3482 = vrot.lane.b32.xlu1 %v3467_v24, %s13315_s6  ;;  %v4112_v24 = vrot.slane %v10547_v59, %v13320_v1 }
 0xa0a   : > { %3484 = vrot.lane.b32.xlu0 %v3468_v55, %s13315_s6 }
 0xa0d   : > { %3478 = vrot.lane.b32.xlu1 %v3465_v48, %s13315_s6  ;;  %v13326_v48 = vld [vmem:[#allocation9_spill] sm:$0xff] }
 0xa0e   : > { %3476 = vrot.lane.b32.xlu0 %v3464_v17, %s13315_s6  ;;  %s13318_s6 = smov 119   ;;  %v4502_v7 = vrot.slane %v10455_v4, %v13326_v48  ;;  %v4562_v17 = vrot.slane %v10437_v43, %v13326_v48  ;;  %v3753_v43 = vld [vmem:[#allocation2 + $0x1a0] sm:$0xff] }
 0xa11   : > { %3724 = vrot.lane.b32.xlu1 %v3717_v37, %s13316_s5 }
 0xa12   : > { %3726 = vrot.lane.b32.xlu0 %v3718_v25, %s13316_s5 }
 0xa15   : > { %3699 = vrot.lane.b32.xlu1 %v3691_v20, %s13317_s20  ;;  %v4382_v20 = vrot.slane %v10483_v3, %v13326_v48 }
 0xa16   : > { %3722 = vrot.lane.b32.xlu0 %v3716_v51, %s13316_s5  ;;  %s13323_s5 = smov 15   ;;  %v4442_v51 = vrot.slane %v10472_v45, %v13326_v48 }
 0xa19   : > { %3695 = vrot.lane.b32.xlu1 %v3689_v14, %s13317_s20 }
 0xa1a   : > { %3697 = vrot.lane.b32.xlu0 %v3690_v13, %s13317_s20 }
 0xa1d   : > { %3670 = vrot.lane.b32.xlu1 %v3663_v34, %s13318_s6 }
 0xa1e   : > { %3672 = vrot.lane.b32.xlu0 %v3664_v52, %s13318_s6  ;;  %v3754_v52 = vld [vmem:[#allocation2 + $0x1c0] sm:$0xff] }
 0xa21   : > { %3645 = vrot.lane.b32.xlu1 %v3637_v56, %s13252_s19  ;;  %v4318_v56 = vrot.slane %v10502_v27, %v13326_v48 }
 0xa22   : > { %3668 = vrot.lane.b32.xlu0 %v3662_v41, %s13318_s6  ;;  %s13367_s6 = sld [smem:[#allocation35_spill]] }
 0xa25   : > { %4091 = vrot.lane.b32.xlu1 %v10432_v58, %s13251_s25 }
 0xa26   : > { %3643 = vrot.lane.b32.xlu0 %v3636_v16, %s13252_s19 }
 0xa29   : > { %4565 = vrot.lane.b32.xlu1 %v4554_v2, %s13247_s14  ;;  %v3752_v2 = vld [vmem:[#allocation2 + $0x180] sm:$0xff] }
 0xa2a   : > { %4563 = vrot.lane.b32.xlu0 %v4550_v30, %s13247_s14  ;;  %v4186_v30 = vrot.slane %v10536_v50, %v13326_v48 }
 0xa2d   : > { %4503 = vrot.lane.b32.xlu1 %v4490_v29, %s13248_s29 }
 0xa2e   : > { %4567 = vrot.lane.b32.xlu0 %v4558_v44, %s13247_s14 }
 0xa31   : > { %4507 = vrot.lane.b32.xlu1 %v4498_v60, %s13248_s29 }
 0xa32   : > { %4505 = vrot.lane.b32.xlu0 %v4494_v46, %s13248_s29 }
 0xa35   : > { %4445 = vrot.lane.b32.xlu1 %v4434_v6, %s13249_s17 }
 0xa36   : > { %4443 = vrot.lane.b32.xlu0 %v4430_v63, %s13249_s17 }
 0xa39   : > { %4383 = vrot.lane.b32.xlu1 %v4370_v49, %s13303_s22 }
 0xa3a   : > { %4447 = vrot.lane.b32.xlu0 %v4438_v9, %s13249_s17 }
 0xa3d   : > { %4387 = vrot.lane.b32.xlu1 %v4378_v53, %s13303_s22 }
 0xa3e   : > { %4385 = vrot.lane.b32.xlu0 %v4374_v23, %s13303_s22 }
 0xa41   : > { %4096 = vrot.lane.b32.xlu1 %v10504_v32, %s13251_s25 }
 0xa42   : > { %4094 = vrot.lane.b32.xlu0 %v10510_v47, %s13251_s25 }
 0xa45   : > { %4321 = vrot.lane.b32.xlu1 %v4310_v12, %s13323_s5 }
 0xa46   : > { %4319 = vrot.lane.b32.xlu0 %v4306_v19, %s13323_s5 }
 0xa49   : > { %4253 = vrot.lane.b32.xlu1 %v4240_v33, %s13324_s27 }
 0xa4a   : > { %4323 = vrot.lane.b32.xlu0 %v4314_v39, %s13323_s5 }
 0xa4d   : > { %4257 = vrot.lane.b32.xlu1 %v4248_v21, %s13324_s27 }
 0xa4e   : > { %4255 = vrot.lane.b32.xlu0 %v4244_v31, %s13324_s27 }
 0xa4f   : > { %v3605_v0 = vpop.permute.xlu1 %3604 }
 0xa50   : > { %v3603_v22 = vpop.permute.xlu0 %3602 }
 0xa51   : > { %v3614_v57 = vsel %vm13199_vm12, %v3603_v22, %v3605_v0  ;;  %4189 = vrot.lane.b32.xlu1 %v4178_v54, %s13325_s13 }
 0xa52   : > { %3620 = vst.msk [vmem:[#allocation2 + $0x120] sm:$0xff] %vm13200_vm9, %v3614_v57  ;;  %4187 = vrot.lane.b32.xlu0 %v4174_v62, %s13325_s13 }
 0xa53   : > { %v3563_v40 = vpop.permute.xlu1 %3562 }
 0xa54   : > { %v3561_v36 = vpop.permute.xlu0 %3560 }
 0xa55   : > { %v3572_v26 = vsel %vm13198_vm7, %v3561_v36, %v3563_v40  ;;  %4121 = vrot.lane.b32.xlu1 %v4108_v35, %s13246_s28 }
 0xa56   : > { %3578 = vst.msk [vmem:[#allocation2 + $0xc0] sm:$0xff] %vm13200_vm9, %v3572_v26  ;;  %4191 = vrot.lane.b32.xlu0 %v4182_v15, %s13325_s13 }
 0xa57   : > { %v3642_v55 = vpop.permute.xlu1 %3641 }
 0xa58   : > { %3650 = vst.msk [vmem:[#allocation2 + $0x1e0] sm:$0xff] %vm13200_vm9, %v3642_v55 }
 0xa59   : > { %4125 = vrot.lane.b32.xlu1 %v4116_v42, %s13246_s28  ;;  %v3749_v12 = vld [vmem:[#allocation2 + $0x120] sm:$0xff] }
 0xa5a   : > { %4123 = vrot.lane.b32.xlu0 %v4112_v24, %s13246_s28 }
 0xa5b   : > { %v3609_v37 = vpop.permute.xlu1 %3608 }
 0xa5c   : > { %v3607_v25 = vpop.permute.xlu0 %3606 }
 0xa5d   : > { %v3615_v11 = vsel %vm13199_vm12, %v3607_v25, %v3609_v37  ;;  %4509 = vrot.lane.b32.xlu1 %v4502_v7, %s13248_s29  ;;  %v3746_v0 = vld [vmem:[#allocation2 + $0xc0] sm:$0xff] }
 0xa5e   : > { %3621 = vst.msk [vmem:[#allocation2 + $0x140] sm:$0xff] %vm13200_vm9, %v3615_v11  ;;  %4569 = vrot.lane.b32.xlu0 %v4562_v17, %s13247_s14 }
 0xa5f   : > { %v3567_v14 = vpop.permute.xlu1 %3566  ;;  %v3755_v5 = vld [vmem:[#allocation2 + $0x1e0] sm:$0xff] }
 0xa60   : > { %v3565_v13 = vpop.permute.xlu0 %3564  ;;  %3795 = vmatpush1.msra.mxu1 %v3755_v5 }
 0xa61   : > { %v3573_v34 = vsel %vm13198_vm7, %v3565_v13, %v3567_v14  ;;  %4389 = vrot.lane.b32.xlu1 %v4382_v20, %s13303_s22  ;;  %3796 = vmatprep.subr.mxu1 %v13294_v61 }
 0xa62   : > { %3579 = vst.msk [vmem:[#allocation2 + $0xe0] sm:$0xff] %vm13200_vm9, %v3573_v34  ;;  %4449 = vrot.lane.b32.xlu0 %v4442_v51, %s13249_s17  ;;  %3797 = vmatpush1.msra.mxu1 %v3754_v52 }
 0xa63   : > { %3798 = vmatprep.subr.mxu1 %v13294_v61  ;;  %v3525_v41 = vpop.permute.xlu1 %3524 }
 0xa64   : > { %v3523_v28 = vpop.permute.xlu0 %3522  ;;  %3799 = vmatpush1.msra.mxu1 %v3753_v43 }
 0xa65   : > { %v3531_v16 = vsel %vm13197_vm8, %v3523_v28, %v3525_v41  ;;  %3800 = vmatprep.subr.mxu1 %v13294_v61  ;;  %4325 = vrot.lane.b32.xlu1 %v4318_v56, %s13323_s5  ;;  %v3750_v9 = vld [vmem:[#allocation2 + $0x140] sm:$0xff] }
 0xa66   : > { %3537 = vst.msk [vmem:[#allocation2 + $0x80] sm:$0xff] %vm13200_vm9, %v3531_v16  ;;  %3801 = vmatpush1.msra.mxu1 %v3752_v2 }
 0xa67   : > { %v3613_v4 = vpop.permute.xlu1 %3612  ;;  %3802 = vmatprep.subr.mxu1 %v13294_v61 }
 0xa68   : > { %v3611_v29 = vpop.permute.xlu0 %3610 }
 0xa69   : > { %v3616_v44 = vsel %vm13199_vm12, %v3611_v29, %v3613_v4  ;;  %4193 = vrot.lane.b32.xlu1 %v4186_v30, %s13325_s13  ;;  %v3747_v31 = vld [vmem:[#allocation2 + $0xe0] sm:$0xff]  ;;  %v4252_v4 = vrot.slane %v10519_v18, %v13326_v48 }
 0xa6a   : > { %3622 = vst.msk [vmem:[#allocation2 + $0x160] sm:$0xff] %vm13200_vm9, %v3616_v44 }
 0xa6b   : > { %v3571_v60 = vpop.permute.xlu1 %3570 }
 0xa6c   : > { %v3519_v46 = vpop.permute.xlu0 %3518 }
 0xa6d   : > { %v3744_v40 = vld [vmem:[#allocation2 + $0x80] sm:$0xff] }
 0xa6f   : > { %v3529_v45 = vpop.permute.xlu1 %3528 }
 0xa70   : > { %v3569_v6 = vpop.permute.xlu0 %3568 }
 0xa71   : > { %v3574_v63 = vsel %vm13198_vm7, %v3569_v6, %v3571_v60  ;;  %v3751_v3 = vld [vmem:[#allocation2 + $0x160] sm:$0xff]  ;;  %vm13332_vm7 = vcmask 1014784  }
 0xa72   : > { %3580 = vst.msk [vmem:[#allocation2 + $0x100] sm:$0xff] %vm13200_vm9, %v3574_v63  ;;  %3803 = vmatpush1.msra.mxu1 %v3751_v3  ;;  %v3734_v3 = vld [vmem:[%s13319_s7] sm:$0xff] }
 0xa73   : > { %v3521_v49 = vpop.permute.xlu1 %3520  ;;  %3804 = vmatprep.subr.mxu1 %v13294_v61 }
 0xa74   : > { %v3530_v53 = vsel %vm13197_vm8, %v3519_v46, %v3521_v49  ;;  %v3527_v23 = vpop.permute.xlu0 %3526  ;;  %3805 = vmatpush1.msra.mxu1 %v3750_v9 }
 0xa75   : > { %3536 = vst.msk [vmem:[#allocation2 + $0x60] sm:$0xff] %vm13200_vm9, %v3530_v53  ;;  %v3532_v27 = vsel %vm13197_vm8, %v3527_v23, %v3529_v45  ;;  %3806 = vmatprep.subr.mxu1 %v13294_v61  ;;  %v4120_v45 = vrot.slane %v10547_v59, %v13326_v48  ;;  %v3737_v59 = vld [vmem:[%s13319_s7 + $0x18] sm:$0xff] }
 0xa76   : > { %3538 = vst.msk [vmem:[#allocation2 + $0xa0] sm:$0xff] %vm13200_vm9, %v3532_v27  ;;  %3807 = vmatpush1.msra.mxu1 %v3749_v12 }
 0xa77   : > { %v3487_v19 = vpop.permute.xlu1 %3486  ;;  %3808 = vmatprep.subr.mxu1 %v13294_v61 }
 0xa78   : > { %v3481_v33 = vpop.permute.xlu0 %3480 }
 0xa79   : > { %v3748_v39 = vld [vmem:[#allocation2 + $0x100] sm:$0xff] }
 0xa7a   : > { %3809 = vmatpush1.msra.mxu1 %v3748_v39  ;;  %v3739_v39 = vld [vmem:[%s13319_s7 + $0x28] sm:$0xff] }
 0xa7b   : > { %v3483_v21 = vpop.permute.xlu1 %3482  ;;  %3810 = vmatprep.subr.mxu1 %v13294_v61 }
 0xa7c   : > { %v3489_v50 = vsel %vm13196_vm0, %v3481_v33, %v3483_v21  ;;  %v3485_v54 = vpop.permute.xlu0 %3484  ;;  %3811 = vmatpush1.msra.mxu1 %v3747_v31  ;;  %v3743_v26 = vld [vmem:[#allocation2 + $0x60] sm:$0xff] }
 0xa7d   : > { %3495 = vst.msk [vmem:[#allocation2 + $0x20] sm:$0xff] %vm13200_vm9, %v3489_v50  ;;  %v3490_v62 = vsel %vm13196_vm0, %v3485_v54, %v3487_v19  ;;  %3812 = vmatprep.subr.mxu1 %v13294_v61  ;;  %v3745_v57 = vld [vmem:[#allocation2 + $0xa0] sm:$0xff]  ;;  %v3736_v19 = vld [vmem:[%s13319_s7 + $0x10] sm:$0xff] }
 0xa7e   : > { %3496 = vst.msk [vmem:[#allocation2 + $0x40] sm:$0xff] %vm13200_vm9, %v3490_v62  ;;  %3813 = vmatpush1.msra.mxu1 %v3746_v0  ;;  %v3738_v0 = vld [vmem:[%s13319_s7 + $0x20] sm:$0xff] }
 0xa7f   : > { %v3479_v22 = vpop.permute.xlu1 %3478  ;;  %3814 = vmatprep.subr.mxu1 %v13294_v61 }
 0xa80   : > { %v3477_v35 = vpop.permute.xlu0 %3476  ;;  %3815 = vmatpush1.msra.mxu1 %v3745_v57 }
 0xa81   : > { %v3488_v15 = vsel %vm13196_vm0, %v3477_v35, %v3479_v22  ;;  %3816 = vmatprep.subr.mxu1 %v13294_v61  ;;  %vm13327_vm0 = vcmask 154624  }
 0xa82   : > { %3494 = vst.msk [vmem:[#allocation2] sm:$0xff] %vm13200_vm9, %v3488_v15  ;;  %3817 = vmatpush1.msra.mxu1 %v3744_v40  ;;  %vm13328_vm8 = vmmov %vm13327_vm0 }
 0xa83   : > { %v3725_v36 = vpop.permute.xlu1 %3724  ;;  %3818 = vmatprep.subr.mxu1 %v13294_v61 }
 0xa84   : > { %3732 = vst.msk [vmem:[#allocation2 + $0x320] sm:$0xff] %vm13200_vm9, %v3725_v36  ;;  %v3727_v42 = vpop.permute.xlu0 %3726  ;;  %3819 = vmatpush1.msra.mxu1 %v3743_v26  ;;  %v3741_v7 = vld [vmem:[#allocation2 + $0x20] sm:$0xff] }
 0xa85   : > { %3733 = vst.msk [vmem:[#allocation2 + $0x340] sm:$0xff] %vm13200_vm9, %v3727_v42  ;;  %3820 = vmatprep.subr.mxu1 %v13294_v61  ;;  %v3742_v24 = vld [vmem:[#allocation2 + $0x40] sm:$0xff] }
 0xa86   : > { %3821 = vmatpush1.msra.mxu1 %v3742_v24 }
 0xa87   : > { %v3700_v55 = vpop.permute.xlu1 %3699  ;;  %3822 = vmatprep.subr.mxu1 %v13294_v61 }
 0xa88   : > { %3706 = vst.msk [vmem:[#allocation2 + $0x2e0] sm:$0xff] %vm13200_vm9, %v3700_v55  ;;  %v3723_v17 = vpop.permute.xlu0 %3722  ;;  %3823 = vmatpush1.msra.mxu1 %v3741_v7 }
 0xa89   : > { %3731 = vst.msk [vmem:[#allocation2 + $0x300] sm:$0xff] %vm13200_vm9, %v3723_v17  ;;  %3824 = vmatprep.subr.mxu1 %v13294_v61  ;;  %v3740_v37 = vld [vmem:[#allocation2] sm:$0xff] }
 0xa8a   : > { %3825 = vmatpush1.msra.mxu1 %v3740_v37 }
 0xa8b   : > { %v3696_v25 = vpop.permute.xlu1 %3695  ;;  %3836 = vmatprep.subr.mxu1 %v13294_v61  ;;  %v3765_v51 = vld [vmem:[#allocation2 + $0x320] sm:$0xff] }
 0xa8c   : > { %3704 = vst.msk [vmem:[#allocation2 + $0x2a0] sm:$0xff] %vm13200_vm9, %v3696_v25  ;;  %v3698_v11 = vpop.permute.xlu0 %3697  ;;  %v3766_v20 = vld [vmem:[#allocation2 + $0x340] sm:$0xff] }
 0xa8d   : > { %3705 = vst.msk [vmem:[#allocation2 + $0x2c0] sm:$0xff] %vm13200_vm9, %v3698_v11  ;;  %3837 = vmatpush2.msra.mxu1 %v3766_v20  ;;  %v3767_v11 = vld [vmem:[%s13329_s8] sm:$0xff] }
 0xa8e   : > { %3838 = vmatprep.subr.mxu1 %v13294_v61 }
 0xa8f   : > { %v3671_v14 = vpop.permute.xlu1 %3670  ;;  %3839 = vmatpush2.msra.mxu1 %v3765_v51  ;;  %v3763_v34 = vld [vmem:[#allocation2 + $0x2e0] sm:$0xff] }
 0xa90   : > { %3678 = vst.msk [vmem:[#allocation2 + $0x260] sm:$0xff] %vm13200_vm9, %v3671_v14  ;;  %v3673_v5 = vpop.permute.xlu0 %3672  ;;  %3840 = vmatprep.subr.mxu1 %v13294_v61  ;;  %v3764_v13 = vld [vmem:[#allocation2 + $0x300] sm:$0xff] }
 0xa91   : > { %3679 = vst.msk [vmem:[#allocation2 + $0x280] sm:$0xff] %vm13200_vm9, %v3673_v5  ;;  %3841 = vmatpush2.msra.mxu1 %v3764_v13 }
 0xa92   : > { %3842 = vmatprep.subr.mxu1 %v13294_v61 }
 0xa93   : > { %v3646_v52 = vpop.permute.xlu1 %3645  ;;  %3843 = vmatpush2.msra.mxu1 %v3763_v34  ;;  %v3761_v43 = vld [vmem:[#allocation2 + $0x2a0] sm:$0xff] }
 0xa94   : > { %3652 = vst.msk [vmem:[#allocation2 + $0x220] sm:$0xff] %vm13200_vm9, %v3646_v52  ;;  %v3669_v56 = vpop.permute.xlu0 %3668  ;;  %3844 = vmatprep.subr.mxu1 %v13294_v61  ;;  %v3762_v41 = vld [vmem:[#allocation2 + $0x2c0] sm:$0xff] }
 0xa95   : > { %3677 = vst.msk [vmem:[#allocation2 + $0x240] sm:$0xff] %vm13200_vm9, %v3669_v56  ;;  %3845 = vmatpush2.msra.mxu1 %v3762_v41 }
 0xa96   : > { %3846 = vmatprep.subr.mxu1 %v13294_v61 }
 0xa97   : > { %v10637_v28 = vpop.permute.xlu1 %4091  ;;  %3847 = vmatpush2.msra.mxu1 %v3761_v43  ;;  %v3759_v29 = vld [vmem:[#allocation2 + $0x260] sm:$0xff] }
 0xa98   : > { %v10642_v16 = vsel %vm504_vm1, %v10637_v28, %v9650_v10  ;;  %v3644_v2 = vpop.permute.xlu0 %3643  ;;  %3848 = vmatprep.subr.mxu1 %v13294_v61  ;;  %v3760_v30 = vld [vmem:[#allocation2 + $0x280] sm:$0xff] }
 0xa99   : > { %3651 = vst.msk [vmem:[#allocation2 + $0x200] sm:$0xff] %vm13200_vm9, %v3644_v2  ;;  %4098 = vrot.lane.b32.xlu0 %v10642_v16, %s13251_s25  ;;  %3849 = vmatpush2.msra.mxu1 %v3760_v30 }
 0xa9a   : > { %3850 = vmatprep.subr.mxu1 %v13294_v61 }
 0xa9b   : > { %v4566_v44 = vpop.permute.xlu1 %4565  ;;  %3851 = vmatpush2.msra.mxu1 %v3759_v29  ;;  %v3757_v18 = vld [vmem:[#allocation2 + $0x220] sm:$0xff] }
 0xa9c   : > { %v4564_v10 = vpop.permute.xlu0 %4563  ;;  %3852 = vmatprep.subr.mxu1 %v13294_v61  ;;  %v3758_v60 = vld [vmem:[#allocation2 + $0x240] sm:$0xff] }
 0xa9d   : > { %v4571_v46 = vsel %vm1007_vm2, %v4564_v10, %v4566_v44  ;;  %4259 = vrot.lane.b32.xlu0 %v4252_v4, %s13324_s27  ;;  %3853 = vmatpush2.msra.mxu1 %v3758_v60  ;;  %v4578_v49 = vmul.f32 %v10432_v58, %v4564_v10 }
 0xa9e   : > { %v4579_v6 = vmul.f32 %v10510_v47, %v4571_v46  ;;  %3854 = vmatprep.subr.mxu1 %v13294_v61 }
 0xa9f   : > { %v4504_v63 = vpop.permute.xlu1 %4503  ;;  %3855 = vmatpush2.msra.mxu1 %v3757_v18 }
 0xaa0   : > { %v10662_v9 = vpop.permute.xlu0 %4567  ;;  %3856 = vmatprep.subr.mxu1 %v13294_v61  ;;  %v3756_v53 = vld [vmem:[#allocation2 + $0x200] sm:$0xff]  ;;  %4588 = vrot.lane.b32.xlu1 %v4579_v6, %s13253_s26  ;;  %v4518_v57 = vmul.f32 %v10432_v58, %v4504_v63 }
 0xaa1   : > { %v4572_v23 = vsel %vm1007_vm2, %v4566_v44, %v10662_v9  ;;  %4127 = vrot.lane.b32.xlu0 %v4120_v45, %s13246_s28  ;;  %3857 = vmatpush2.msra.mxu1 %v3756_v53 }
 0xaa2   : > { %v4580_v27 = vmul.f32 %v10504_v32, %v4572_v23  ;;  %3859 = vmatmul.mubr.f32.vlgmr.msra.gmra.mxu1 %v3734_v3 }
 0xaa3   : > { %v10673_v12 = vpop.permute.xlu1 %4507  ;;  %7744 = vmatprep.mubr.msk.f32.mxu1 %vm2428_vm11, %v3737_v59 }
 0xaa4   : > { %v4506_v33 = vpop.permute.xlu0 %4505  ;;  %4586 = vrot.lane.b32.xlu1 %v4578_v49, %s13253_s26 }
 0xaa5   : > { %v4511_v21 = vsel %vm944_vm3, %v4504_v63, %v4506_v33  ;;  %v4512_v31 = vsel %vm944_vm3, %v4506_v33, %v10673_v12  ;;  %4590 = vrot.lane.b32.xlu0 %v4580_v27, %s13253_s26 }
 0xaa6   : > { %v4519_v50 = vmul.f32 %v10510_v47, %v4511_v21  ;;  %v4520_v54 = vmul.f32 %v10504_v32, %v4512_v31  ;;  %3864 = vmatmul.mubr.f32.gmra.mxu1 %v3736_v19 }
 0xaa7   : > { %v4446_v62 = vpop.permute.xlu1 %4445  ;;  %7745 = vmatprep.mubr.msk.f32.mxu1 %vm2428_vm11, %v3739_v39 }
 0xaa8   : > { %v4444_v22 = vpop.permute.xlu0 %4443  ;;  %4530 = vrot.lane.b32.xlu1 %v4520_v54, %s13254_s16 }
 0xaa9   : > { %v4451_v35 = vsel %vm13327_vm0, %v4444_v22, %v4446_v62  ;;  %4528 = vrot.lane.b32.xlu0 %v4519_v50, %s13254_s16  ;;  %v4458_v36 = vmul.f32 %v10432_v58, %v4444_v22  ;;  %vm13330_vm0 = vcmask 1022976  }
 0xaaa   : > { %v4459_v15 = vmul.f32 %v10510_v47, %v4451_v35  ;;  %3869 = vmatmul.mubr.f32.gmra.mxu1 %v3738_v0 }
 0xaab   : > { %v4384_v40 = vpop.permute.xlu1 %4383  ;;  %4735 = vmatprep.mubr.f32.mxu1 %v13294_v61 }
 0xaac   : > { %v10700_v26 = vpop.permute.xlu0 %4447  ;;  %4468 = vrot.lane.b32.xlu1 %v4459_v15, %s13267_s24  ;;  %v4398_v51 = vmul.f32 %v10432_v58, %v4384_v40 }
 0xaad   : > { %v4452_v42 = vsel %vm13328_vm8, %v4446_v62, %v10700_v26  ;;  %4526 = vrot.lane.b32.xlu0 %v4518_v57, %s13254_s16  ;;  %vm13331_vm8 = vmmov %vm13330_vm0 }
 0xaae   : > { %v4460_v24 = vmul.f32 %v10504_v32, %v4452_v42 }
 0xaaf   : > { %v10707_v55 = vpop.permute.xlu1 %4387 }
 0xab0   : > { %v4386_v7 = vpop.permute.xlu0 %4385  ;;  %4466 = vrot.lane.b32.xlu1 %v4458_v36, %s13267_s24 }
 0xab1   : > { %v4391_v17 = vsel %vm818_vm5, %v4384_v40, %v4386_v7  ;;  %4470 = vrot.lane.b32.xlu0 %v4460_v24, %s13267_s24  ;;  %v4392_v37 = vsel %vm818_vm5, %v4386_v7, %v10707_v55 }
 0xab2   : > { %v4399_v25 = vmul.f32 %v10510_v47, %v4391_v17  ;;  %v4400_v5 = vmul.f32 %v10504_v32, %v4392_v37 }
 0xab3   : > { %v10718_v20 = vpop.permute.xlu1 %4096 }
 0xab4   : > { %v4095_v14 = vpop.permute.xlu0 %4094  ;;  %4408 = vrot.lane.b32.xlu1 %v4399_v25, %s13252_s19 }
 0xab5   : > { %3772 = vperm.xlu0 %8040, %v3767_v11   ;;  %v4100_v47 = vsel %vm504_vm1, %v4095_v14, %v10637_v28  ;;  %v10730_v41 = vsel %vm504_vm1, %v10718_v20, %v4095_v14 }
 0xab7   : > { %v4322_v13 = vpop.permute.xlu1 %4321 }
 0xab8   : > { %v4320_v34 = vpop.permute.xlu0 %4319  ;;  %4406 = vrot.lane.b32.xlu1 %v4398_v51, %s13252_s19 }
 0xab9   : > { %v4327_v52 = vsel %vm751_vm6, %v4320_v34, %v4322_v13  ;;  %4410 = vrot.lane.b32.xlu0 %v4400_v5, %s13252_s19  ;;  %v4334_v29 = vmul.f32 %v4320_v34, %v10642_v16 }
 0xaba   : > { %v4335_v56 = vmul.f32 %v4327_v52, %v4100_v47 }
 0xabb   : > { %v4254_v43 = vpop.permute.xlu1 %4253 }
 0xabc   : > { %v4324_v2 = vpop.permute.xlu0 %4323  ;;  %v4269_v18 = vmul.f32 %v10504_v32, %v4254_v43 }
 0xabd   : > { %v4328_v30 = vsel %vm751_vm6, %v4322_v13, %v4324_v2  ;;  %4344 = vrot.lane.b32.xlu0 %v4335_v56, %s13257_s30 }
 0xabe   : > { %v4336_v4 = vmul.f32 %v4328_v30, %v10730_v41 }
 0xabf   : > { %v4258_v28 = vpop.permute.xlu1 %4257 }
 0xac0   : > { %v4256_v44 = vpop.permute.xlu0 %4255  ;;  %4346 = vrot.lane.b32.xlu1 %v4336_v4, %s13257_s30 }
 0xac1   : > { %v4261_v10 = vsel %vm13330_vm0, %v4254_v43, %v4256_v44  ;;  %v4262_v60 = vsel %vm13331_vm8, %v4256_v44, %v4258_v28  ;;  %4342 = vrot.lane.b32.xlu0 %v4334_v29, %s13257_s30  ;;  %vm13333_vm0 = vmmov %vm13332_vm7 }
 0xac2   : > { %v4270_v46 = vmul.f32 %v4261_v10, %v10642_v16  ;;  %v4271_v45 = vmul.f32 %v4262_v60, %v4100_v47  ;;  %v3769_v10 = vld [vmem:[%s13329_s8 + $0x10] sm:$0xff]  ;;  %v3768_v60 = vld [vmem:[%s13329_s8 + $0x8] sm:$0xff]  ;;  %s13357_s8 = smov 100  }
 0xac3   : > { %v4190_v6 = vpop.permute.xlu1 %4189 }
 0xac4   : > { %v4188_v63 = vpop.permute.xlu0 %4187  ;;  %4281 = vrot.lane.b32.xlu1 %v4270_v46, %s13255_s18 }
 0xac5   : > { %v4195_v3 = vsel %vm13332_vm7, %v4188_v63, %v4190_v6  ;;  %4283 = vrot.lane.b32.xlu0 %v4271_v45, %s13255_s18  ;;  %v4203_v23 = vmul.f32 %v10504_v32, %v4188_v63  ;;  %vm13334_vm7 = vcmask 1006592  }
 0xac6   : > { %v4204_v49 = vmul.f32 %v4195_v3, %v10642_v16  ;;  %vm13335_vm8 = vmmov %vm13334_vm7 }
 0xac7   : > { %v4122_v53 = vpop.permute.xlu1 %4121 }
 0xac8   : > { %v4192_v59 = vpop.permute.xlu0 %4191  ;;  %4279 = vrot.lane.b32.xlu1 %v4269_v18, %s13255_s18  ;;  %v4137_v0 = vmul.f32 %v10504_v32, %v4122_v53 }
 0xac9   : > { %v4196_v27 = vsel %vm13333_vm0, %v4190_v6, %v4192_v59  ;;  %4215 = vrot.lane.b32.xlu0 %v4204_v49, %s13256_s23  ;;  %vm13336_vm0 = vcmask 154624  }
 0xaca   : > { %v4205_v19 = vmul.f32 %v4196_v27, %v4100_v47 }
 0xacb   : > { %v4126_v33 = vpop.permute.xlu1 %4125 }
 0xacc   : > { %v4124_v39 = vpop.permute.xlu0 %4123  ;;  %4217 = vrot.lane.b32.xlu1 %v4205_v19, %s13256_s23 }
 0xacd   : > { %v4129_v21 = vsel %vm13334_vm7, %v4122_v53, %v4124_v39  ;;  %v4130_v31 = vsel %vm13335_vm8, %v4124_v39, %v4126_v33  ;;  %4213 = vrot.lane.b32.xlu0 %v4203_v23, %s13256_s23  ;;  %vm13337_vm7 = vcmask 1022976   ;;  %vm13338_vm8 = vcmask 1014784  }
 0xace   : > { %v4138_v50 = vmul.f32 %v4129_v21, %v10642_v16  ;;  %v4139_v54 = vmul.f32 %v4130_v31, %v4100_v47  ;;  %v4625_v21 = vld [vmem:[#allocation2 + $0x88] sm:$0xff] }
 0xacf   : > { %v4510_v62 = vpop.permute.xlu1 %4509 }
 0xad0   : > { %v4570_v22 = vpop.permute.xlu0 %4569  ;;  %4149 = vrot.lane.b32.xlu1 %v4138_v50, %s13269_s0  ;;  %v4513_v15 = vsel %vm944_vm3, %v10673_v12, %v4510_v62 }
 0xad1   : > { %v4573_v57 = vsel %vm1007_vm2, %v10662_v9, %v4570_v22  ;;  %4151 = vrot.lane.b32.xlu0 %v4139_v54, %s13269_s0  ;;  %v4521_v42 = vmul.f32 %v4513_v15, %v10642_v16 }
 0xad2   : > { %v4581_v35 = vmul.f32 %v4573_v57, %v10642_v16 }
 0xad3   : > { %v4390_v40 = vpop.permute.xlu1 %4389 }
 0xad4   : > { %v4450_v36 = vpop.permute.xlu0 %4449  ;;  %4147 = vrot.lane.b32.xlu1 %v4137_v0, %s13269_s0  ;;  %v4393_v24 = vsel %vm818_vm5, %v10707_v55, %v4390_v40 }
 0xad5   : > { %v4453_v32 = vsel %vm13336_vm0, %v10700_v26, %v4450_v36  ;;  %4592 = vrot.lane.b32.xlu0 %v4581_v35, %s13253_s26  ;;  %v4401_v12 = vmul.f32 %v4393_v24, %v10642_v16  ;;  %vm13339_vm0 = vcmask 1006592  }
 0xad6   : > { %v4461_v9 = vmul.f32 %v4453_v32, %v10642_v16 }
 0xad7   : > { %v4326_v7 = vpop.permute.xlu1 %4325 }
 0xad8   : > { %4532 = vrot.lane.b32.xlu1 %v4521_v42, %s13254_s16  ;;  %v4329_v26 = vsel %vm751_vm6, %v4324_v2, %v4326_v7 }
 0xad9   : > { %4472 = vrot.lane.b32.xlu0 %v4461_v9, %s13267_s24 }
 0xadb   : > { %v4194_v11 = vpop.permute.xlu1 %4193 }
 0xadc   : > { %4412 = vrot.lane.b32.xlu1 %v4401_v12, %s13252_s19  ;;  %v4197_v16 = vsel %vm13338_vm8, %v4192_v59, %v4194_v11 }
 0xb0b   : > { %v4099_v17 = vpop.permute.xlu0 %4098 }
 0xb0c   : > { %v4102_v37 = vsel %vm504_vm1, %v4099_v17, %v10718_v20  ;;  %v4206_v20 = vmul.f32 %v4197_v16, %v10730_v41 }
 0xb0d   : > { %v4337_v25 = vmul.f32 %v4329_v26, %v4102_v37  ;;  %v4207_v47 = vmul.f32 %v4194_v11, %v4102_v37  ;;  %v10843_v26 = vld [vmem:[%s13348_s4] sm:$0xff] }
 0xb0f   : > { %v4260_v51 = vpop.permute.xlu0 %4259  ;;  %4348 = vrot.lane.b32.xlu0 %v4337_v25, %s13257_s30 }
 0xb10   : > { %v4263_v55 = vsel %vm13337_vm7, %v4258_v28, %v4260_v51  ;;  %v4273_v14 = vmul.f32 %v4260_v51, %v4102_v37  ;;  %vm13340_vm7 = vcmask 883712   ;;  %v10854_v51 = vld [vmem:[%s13348_s4 + $0x8] sm:$0xff] }
 0xb11   : > { %v4272_v5 = vmul.f32 %v4263_v55, %v10730_v41  ;;  %vm13341_vm8 = vmmov %vm13340_vm7 }
 0xb12   : > { %v4589_v13 = vpop.permute.xlu1 %4588 }
 0xb13   : > { %v4128_v34 = vpop.permute.xlu0 %4127  ;;  %4285 = vrot.lane.b32.xlu1 %v4272_v5, %s13255_s18  ;;  %4287 = vrot.lane.b32.xlu0 %v4273_v14, %s13255_s18  ;;  %v10863_v14 = vld [vmem:[%s13348_s4 + $0x10] sm:$0xff] }
 0xb14   : > { %v4131_v52 = vsel %vm13339_vm0, %v4126_v33, %v4128_v34  ;;  %v4141_v29 = vmul.f32 %v4128_v34, %v4102_v37  ;;  %vm13342_vm0 = vcmask 891904  }
 0xb15   : > { %v4140_v4 = vmul.f32 %v4131_v52, %v10730_v41  ;;  %vm13343_vm12 = vmmov %vm13342_vm0 }
 0xb16   : > { %v4587_v56 = vpop.permute.xlu1 %4586 }
 0xb17   : > { %4221 = vrot.lane.b32.xlu0 %v4207_v47, %s13256_s23  ;;  %4219 = vrot.lane.b32.xlu1 %v4206_v20, %s13256_s23  ;;  %v4594_v43 = vsel %vm1031_vm10, %v4587_v56, %v4589_v13  ;;  %v10789_v2 = vpop.permute.xlu0 %4590  ;;  %v4627_v56 = vld [vmem:[#allocation2 + $0x98] sm:$0xff] }
 0xb18   : > { %v4595_v30 = vsel %vm1031_vm10, %v4589_v13, %v10789_v2 }
 0xb19   : > { %4685 = vmatprep.subr.mxu1 %v4595_v30 }
 0xb1a   : > { %v10794_v28 = vpop.permute.xlu1 %4530  ;;  %4686 = vmatpush1.msra.mxu1 %v4594_v43 }
 0xb1b   : > { %4155 = vrot.lane.b32.xlu0 %v4141_v29, %s13269_s0  ;;  %4153 = vrot.lane.b32.xlu1 %v4140_v4, %s13269_s0  ;;  %v4529_v44 = vpop.permute.xlu0 %4528 }
 0xb1c   : > { %v4535_v41 = vsel %vm13340_vm7, %v4529_v44, %v10794_v28 }
 0xb1d   : > { %4687 = vmatprep.subr.mxu1 %v4535_v41 }
 0xb1e   : > { %v4469_v46 = vpop.permute.xlu1 %4468 }
 0xb1f   : > { %3782 = vperm.xlu0 %8040, %v3769_v10   ;;  %3777 = vperm.xlu1 %8039, %v3768_v60   ;;  %v4527_v45 = vpop.permute.xlu0 %4526 }
 0xb20   : > { %v4534_v6 = vsel %vm13341_vm8, %v4527_v45, %v4529_v44  ;;  %vm13346_vm8 = vcmask 130048  }
 0xb21   : > { %4688 = vmatpush1.msra.mxu1 %v4534_v6  ;;  %vm13350_vm9 = vmmov %vm13346_vm8 }
 0xb22   : > { %v4467_v18 = vpop.permute.xlu1 %4466 }
 0xb23   : > { %v4474_v63 = vsel %vm13342_vm0, %v4467_v18, %v4469_v46  ;;  %v10808_v3 = vpop.permute.xlu0 %4470  ;;  %vm13347_vm0 = vcmask 39936  }
 0xb24   : > { %v4475_v49 = vsel %vm13343_vm12, %v4469_v46, %v10808_v3  ;;  %vm13344_vm12 = vcmask 31744  }
 0xb25   : > { %4689 = vmatprep.subr.mxu1 %v4475_v49  ;;  %vm13345_vm7 = vmmov %vm13344_vm12 }
 0xb26   : > { %v4409_v53 = vpop.permute.xlu1 %4408  ;;  %4690 = vmatpush1.msra.mxu1 %v4474_v63 }
 0xb2a   : > { %v4407_v59 = vpop.permute.xlu1 %4406 }
 0xb2b   : > { %v4414_v19 = vsel %vm842_vm13, %v4407_v59, %v4409_v53 }
 0xb30   : > { %v10812_v23 = vpop.permute.xlu0 %3772 }
 0xb32   : > { %v10814_v27 = vpop.permute.xlu1 %4346 }
 0xb34   : > { %v10817_v33 = vpop.permute.xlu0 %4410 }
 0xb35   : > { %v4415_v39 = vsel %vm842_vm13, %v4409_v53, %v10817_v33 }
 0xb36   : > { %v4282_v31 = vpop.permute.xlu1 %4281  ;;  %4691 = vmatprep.subr.mxu1 %v4415_v39 }
 0xb37   : > { %4692 = vmatpush1.msra.mxu1 %v4414_v19 }
 0xb38   : > { %v4345_v50 = vpop.permute.xlu0 %4344  ;;  %4693 = vmatprep.subr.mxu1 %v4625_v21 }
 0xb39   : > { %v4351_v54 = vsel %vm775_vm14, %v4345_v50, %v10814_v27  ;;  %4694 = vmatpush1.msra.mxu1 %v10432_v58 }
 0xb3a   : > { %v4280_v62 = vpop.permute.xlu1 %4279  ;;  %4695 = vmatprep.subr.mxu1 %v4351_v54 }
 0xb3b   : > { %v4289_v40 = vsel %vm711_vm15, %v4280_v62, %v4282_v31 }
 0xb3c   : > { %v4343_v0 = vpop.permute.xlu0 %4342 }
 0xb3d   : > { %v4350_v22 = vsel %vm775_vm14, %v4343_v0, %v4345_v50 }
 0xb3e   : > { %v10825_v57 = vpop.permute.xlu1 %4217  ;;  %4696 = vmatpush1.msra.mxu1 %v4350_v22 }
 0xb40   : > { %v10827_v35 = vpop.permute.xlu0 %4283 }
 0xb41   : > { %v4290_v15 = vsel %vm711_vm15, %v4282_v31, %v10827_v35 }
 0xb42   : > { %v4150_v36 = vpop.permute.xlu1 %4149  ;;  %4697 = vmatprep.subr.mxu1 %v4290_v15 }
 0xb43   : > { %4698 = vmatpush1.msra.mxu1 %v4289_v40  ;;  %v4646_v40 = vld [vmem:[%s13367_s6 + $0x10] sm:$0xff] }
 0xb44   : > { %v4216_v32 = vpop.permute.xlu0 %4215 }
 0xb45   : > { %v4224_v58 = vsel %vm13344_vm12, %v4216_v32, %v10825_v57  ;;  %vm13349_vm12 = vmmov %vm13347_vm0 }
 0xb46   : > { %v4148_v42 = vpop.permute.xlu1 %4147  ;;  %4699 = vmatprep.subr.mxu1 %v4224_v58 }
 0xb47   : > { %v4157_v37 = vsel %vm13349_vm12, %v4148_v42, %v4150_v36  ;;  %vm13353_vm12 = vmmov %vm13346_vm8 }
 0xb48   : > { %v4214_v9 = vpop.permute.xlu0 %4213 }
 0xb49   : > { %v4223_v24 = vsel %vm13345_vm7, %v4214_v9, %v4216_v32  ;;  %vm13351_vm7 = vcmask 588800   ;;  %v10921_v32 = vld [vmem:[%s13080_s9 + $0x5] ss:$8 sm:$0xf] }
 0xb4a   : > { %v4533_v12 = vpop.permute.xlu1 %4532  ;;  %4700 = vmatpush1.msra.mxu1 %v4223_v24  ;;  %v5410_v58 = vrot.slane %v10921_v32, %v13320_v1  ;;  %v4644_v24 = vld [vmem:[%s13367_s6] sm:$0xff] }
 0xb4b   : > { %4544 = vst.msk [vmem:[#allocation2 + $0xf8] sm:$0xff] %vm13346_vm8, %v4533_v12 }
 0xb4c   : > { %v10836_v7 = vpop.permute.xlu0 %4151 }
 0xb4d   : > { %v4158_v17 = vsel %vm13347_vm0, %v4150_v36, %v10836_v7  ;;  %vm13352_vm0 = vmmov %vm13351_vm7  ;;  %v4645_v36 = vld [vmem:[%s13367_s6 + $0x8] sm:$0xff]  ;;  %s13372_s6 = sld [smem:[#allocation42_spill]] }
 0xb4e   : > { %v4413_v25 = vpop.permute.xlu1 %4412  ;;  %4701 = vmatprep.subr.mxu1 %v4158_v17 }
 0xb4f   : > { %4424 = vst.msk [vmem:[#allocation2 + $0xb8] sm:$0xff] %vm13350_vm9, %v4413_v25  ;;  %4702 = vmatpush1.msra.mxu1 %v4157_v37  ;;  %vm13354_vm9 = vmmov %vm13352_vm0  ;;  %v4416_v43 = vsel %vm842_vm13, %v10817_v33, %v4413_v25 }
 0xb50   : > { %v4593_v11 = vpop.permute.xlu0 %4592  ;;  %7761 = vmatmul.mubr.msk.f32.vlgmr.msra.gmra.mxu1 %vm13351_vm7, %v10843_v26  ;;  %vm13355_vm7 = vcmask 883712  }
 0xb51   : > { %4604 = vst.msk [vmem:[#allocation2 + $0x118] sm:$0xff] %vm13346_vm8, %v4593_v11  ;;  %4741 = vmatprep.mubr.f32.mxu1 %v13294_v61  ;;  %v4596_v16 = vsel %vm1031_vm10, %v10789_v2, %v4593_v11  ;;  %v4536_v34 = vsel %vm13355_vm7, %v10794_v28, %v4533_v12  ;;  %vm13356_vm8 = vcmask 891904   ;;  %v4626_v2 = vld [vmem:[#allocation2 + $0x90] sm:$0xff]  ;;  %v5406_v12 = vrot.slane %v10921_v32, %v13321_v38 }
 0xb52   : > { %v4639_v13 = vld [vmem:[#allocation2 + $0xf8] sm:$0xff] }
 0xb54   : > { %v4473_v55 = vpop.permute.xlu0 %4472  ;;  %7762 = vmatmul.mubr.msk.f32.gmra.mxu1 %vm13352_vm0, %v10854_v51  ;;  %vm13358_vm0 = vmmov %vm13353_vm12 }
 0xb55   : > { %4484 = vst.msk [vmem:[#allocation2 + $0xd8] sm:$0xff] %vm13353_vm12, %v4473_v55  ;;  %4747 = vmatprep.mubr.f32.mxu1 %v13294_v61  ;;  %v4476_v47 = vsel %vm13356_vm8, %v10808_v3, %v4473_v55  ;;  %vm13359_vm12 = vmmov %vm13358_vm0  ;;  %vm13362_vm8 = vcmask 39936  }
 0xb56   : > { %v4631_v52 = vld [vmem:[#allocation2 + $0xb8] sm:$0xff]  ;;  %vm13361_vm7 = vmmov %vm13358_vm0 }
 0xb58   : > { %v4643_v5 = vld [vmem:[#allocation2 + $0x118] sm:$0xff]  ;;  %7763 = vmatmul.mubr.msk.f32.gmra.mxu1 %vm13354_vm9, %v10863_v14  ;;  %vm13360_vm9 = vcmask 31744  }
 0xb59   : > { %4768 = vmatprep.subr.mxu1 %v4643_v5  ;;  %4818 = vmatprep.mubr.f32.mxu1 %v13294_v61 }
 0xb5a   : > { %4769 = vmatpush1.msra.mxu1 %v4596_v16 }
 0xb5b   : > { %4770 = vmatprep.subr.mxu1 %v4639_v13 }
 0xb5c   : > { %4771 = vmatpush1.msra.mxu1 %v4536_v34  ;;  %v4635_v20 = vld [vmem:[#allocation2 + $0xd8] sm:$0xff] }
 0xb5d   : > { %4772 = vmatprep.subr.mxu1 %v4635_v20 }
 0xb5e   : > { %4773 = vmatpush1.msra.mxu1 %v4476_v47 }
 0xb5f   : > { %4774 = vmatprep.subr.mxu1 %v4631_v52 }
 0xb60   : > { %4775 = vmatpush1.msra.mxu1 %v4416_v43 }
 0xb61   : > { %4776 = vmatprep.subr.mxu1 %v4627_v56  ;;  %v10951_v56 = vld [vmem:[%s13080_s9 + $0x3] ss:$8 sm:$0xf] }
 0xb62   : > { %v3860_v30 = vpop.f32.mrf.mxu1  ;;  %4777 = vmatpush1.msra.mxu1 %v4626_v2 }
 0xb63   : > { %v3861_v4 = vadd.f32 %v3860_v30, %v10812_v23  ;;  %v5280_v30 = vrot.slane %v10951_v56, %v13321_v38 }
 0xb64   : > { %v3862_v29 = vpop.f32.mrf.mxu1 }
 0xb65   : > { %v10877_v28 = vmax.f32 %v3861_v4, 0.0  ;;  %v5288_v4 = vrot.slane %v10951_v56, %v13322_v8 }
 0xb66   : > { %v3865_v44 = vpop.f32.mrf.mxu1 }
 0xb67   : > { %3877 = vrot.lane.b32.xlu1 %v10877_v28, %s13357_s8 }
 0xb68   : > { %v3867_v10 = vpop.f32.mrf.mxu1 }
 0xb6a   : > { %v3870_v60 = vpop.f32.mrf.mxu1 }
 0xb6c   : > { %v3872_v41 = vpop.f32.mrf.mxu1 }
 0xb81   : > { %v4349_v46 = vpop.permute.xlu0 %4348 }
 0xb82   : > { %4360 = vst.msk [vmem:[#allocation2 + $0x78] sm:$0xff] %vm13358_vm0, %v4349_v46  ;;  %v4352_v53 = vsel %vm775_vm14, %v10814_v27, %v4349_v46 }
 0xb85   : > { %v4288_v45 = vpop.permute.xlu0 %4287  ;;  %v4286_v6 = vpop.permute.xlu1 %4285 }
 0xb86   : > { %v4292_v18 = vsel %vm711_vm15, %v4286_v6, %v4288_v45  ;;  %v4291_v21 = vsel %vm711_vm15, %v10827_v35, %v4286_v6 }
 0xb87   : > { %4300 = vst.msk [vmem:[#allocation2 + $0x58] sm:$0xff] %vm13359_vm12, %v4292_v18  ;;  %vm13363_vm12 = vmmov %vm13360_vm9 }
 0xb89   : > { %v4222_v63 = vpop.permute.xlu0 %4221  ;;  %v4220_v3 = vpop.permute.xlu1 %4219  ;;  %v4623_v49 = vld [vmem:[#allocation2 + $0x78] sm:$0xff] }
 0xb8a   : > { %v4226_v59 = vsel %vm13360_vm9, %v4220_v3, %v4222_v63  ;;  %4778 = vmatprep.subr.mxu1 %v4623_v49  ;;  %v4225_v27 = vsel %vm13363_vm12, %v10825_v57, %v4220_v3  ;;  %vm13364_vm9 = vmmov %vm13362_vm8  ;;  %vm13369_vm12 = vcmask 130048  }
 0xb8b   : > { %4234 = vst.msk [vmem:[#allocation2 + $0x38] sm:$0xff] %vm13361_vm7, %v4226_v59  ;;  %4779 = vmatpush1.msra.mxu1 %v4352_v53  ;;  %vm13365_vm7 = vcmask 588800  }
 0xb8d   : > { %v4156_v23 = vpop.permute.xlu0 %4155  ;;  %v4154_v19 = vpop.permute.xlu1 %4153 }
 0xb8e   : > { %v4160_v33 = vsel %vm13362_vm8, %v4154_v19, %v4156_v23  ;;  %v4619_v39 = vld [vmem:[#allocation2 + $0x58] sm:$0xff]  ;;  %v4159_v54 = vsel %vm13364_vm9, %v10836_v7, %v4154_v19  ;;  %vm13366_vm8 = vmmov %vm13365_vm7  ;;  %v5414_v7 = vrot.slane %v10921_v32, %v13322_v8 }
 0xb8f   : > { %4168 = vst.msk [vmem:[#allocation2 + $0x18] sm:$0xff] %vm13358_vm0, %v4160_v33  ;;  %4780 = vmatprep.subr.mxu1 %v4619_v39  ;;  %vm13368_vm0 = vmmov %vm13365_vm7 }
 0xb90   : > { %4781 = vmatpush1.msra.mxu1 %v4291_v21  ;;  %vm13370_vm9 = vmmov %vm13369_vm12 }
 0xb92   : > { %v4615_v31 = vld [vmem:[#allocation2 + $0x38] sm:$0xff] }
 0xb93   : > { %4782 = vmatprep.subr.mxu1 %v4615_v31 }
 0xb94   : > { %4783 = vmatpush1.msra.mxu1 %v4225_v27 }
 0xb96   : > { %v4611_v50 = vld [vmem:[#allocation2 + $0x18] sm:$0xff] }
 0xb97   : > { %4784 = vmatprep.subr.mxu1 %v4611_v50 }
 0xb98   : > { %4785 = vmatpush1.msra.mxu1 %v4159_v54 }
 0xb99   : > { %7764 = vmatmul.mubr.msk.f32.vlgmr.msra.gmra.mxu1 %vm13365_vm7, %v10843_v26  ;;  %vm13371_vm7 = vmmov %vm13370_vm9 }
 0xb9a   : > { %v3783_v62 = vpop.permute.xlu0 %3782  ;;  %v3778_v0 = vpop.permute.xlu1 %3777  ;;  %4824 = vmatprep.mubr.f32.mxu1 %v13294_v61 }
 0xb9b   : > { %v3866_v22 = vadd.f32 %v3865_v44, %v3778_v0  ;;  %v3871_v35 = vadd.f32 %v3870_v60, %v3783_v62 }
 0xb9d   : > { %v10899_v15 = vmax.f32 %v3866_v22, 0.0  ;;  %v10901_v57 = vmax.f32 %v3871_v35, 0.0  ;;  %7765 = vmatmul.mubr.msk.f32.gmra.mxu1 %vm13366_vm8, %v10854_v51  ;;  %v5284_v35 = vrot.slane %v10951_v56, %v13320_v1  ;;  %vm3965_vm8 = vcmask 1043456  }
 0xb9e   : > { %4830 = vmatprep.mubr.f32.mxu1 %v13294_v61 }
 0xb9f   : > { %3880 = vrot.lane.b32.xlu0 %v10899_v15, %s13357_s8  ;;  %3883 = vrot.lane.b32.xlu1 %v10901_v57, %s13357_s8 }
 0xba1   : > { %7766 = vmatmul.mubr.msk.f32.gmra.mxu1 %vm13368_vm0, %v10863_v14  ;;  %vm13375_vm0 = vcmask 1022976  }
 0xba3   : > { %4659 = vperm.xlu1 %8039, %v4646_v40   ;;  %v11016_v40 = vld [vmem:[%s13080_s9 + $0x2] ss:$8 sm:$0xf] }
 0xba7   : > { %4654 = vperm.xlu1 %8039, %v4645_v36   ;;  %v5154_v36 = vrot.slane %v11016_v40, %v13320_v1 }
 0xbab   : > { %5421 = vrot.lane.b32.xlu1 %v5410_v58, %s13303_s22  ;;  %v11026_v58 = vld [vmem:[%s13080_s9 + $0x1] ss:$8 sm:$0xf] }
 0xbd9   : > { %v3878_v42 = vpop.permute.xlu1 %3877 }
 0xbda   : > { %v3879_v9 = vsel %vm2991_vm4, %v3878_v42, %v10877_v28  ;;  %v5020_v42 = vrot.slane %v11026_v58, %v13321_v38 }
 0xbdb   : > { %3886 = vrot.lane.b32.xlu0 %v3879_v9, %s13357_s8  ;;  %v5150_v9 = vrot.slane %v11016_v40, %v13321_v38 }
 0xbdf   : > { %4649 = vperm.xlu0 %8040, %v4644_v24  }
 0xbe3   : > { %5419 = vrot.lane.b32.xlu0 %v5406_v12, %s13303_s22  ;;  %v5028_v12 = vrot.slane %v11026_v58, %v13322_v8 }
 0xbe7   : > { %5423 = vrot.lane.b32.xlu0 %v5414_v7, %s13303_s22  ;;  %v11047_v7 = vld [vmem:[%s13080_s9] ss:$8 sm:$0xf] }
 0xc10   : > { %v4737_v17 = vpop.f32.mrf.mxu1 }
 0xc11   : > { %v10938_v51 = vpop.permute.xlu1 %3883  ;;  %v3881_v29 = vpop.permute.xlu0 %3880 }
 0xc12   : > { %v4739_v26 = vpop.f32.mrf.mxu1  ;;  %v3882_v0 = vsel %vm2991_vm4, %v3881_v29, %v10899_v15  ;;  %v4898_v29 = vrot.slane %v11047_v7, %v13322_v8 }
 0xc14   : > { %v4743_v37 = vpop.f32.mrf.mxu1 }
 0xc16   : > { %v4745_v25 = vpop.f32.mrf.mxu1 }
 0xc18   : > { %v4749_v11 = vpop.f32.mrf.mxu1 }
 0xc1a   : > { %v4751_v55 = vpop.f32.mrf.mxu1 }
 0xc1e   : > { %v4660_v14 = vpop.permute.xlu1 %4659 }
 0xc1f   : > { %v4750_v5 = vadd.f32 %v4749_v11, %v4660_v14  ;;  %v4752_v16 = vadd.f32 %v4751_v55, %v4660_v14  ;;  %v11064_v11 = vld [vmem:[%s13080_s9 + $0x20] ss:$8 sm:$0xf]  ;;  %v5024_v55 = vrot.slane %v11026_v58, %v13320_v1 }
 0xc21   : > { %v10940_v13 = vmax.f32 %v4750_v5, 0.0  ;;  %v10942_v34 = vmax.f32 %v4752_v16, 0.0  ;;  %v3953_v5 = vld [vmem:[%s13372_s6 + $0x50] sm:$0xff]  ;;  %v3952_v16 = vld [vmem:[%s13372_s6 + $0x48] sm:$0xff] }
 0xc22   : > { %v4655_v20 = vpop.permute.xlu1 %4654 }
 0xc23   : > { %5397 = vst [vmem:[#allocation2 + $0x1c0] sm:$0xff] %v10940_v13  ;;  %5398 = vst [vmem:[#allocation2 + $0x1c8] sm:$0xff] %v10942_v34  ;;  %v4744_v47 = vadd.f32 %v4743_v37, %v4655_v20  ;;  %v4746_v52 = vadd.f32 %v4745_v25, %v4655_v20  ;;  %4855 = vrot.lane.b32.xlu1 %v10940_v13, %s13251_s25  ;;  %v4894_v37 = vrot.slane %v11047_v7, %v13320_v1  ;;  %v3955_v25 = vld [vmem:[%s13372_s6 + $0x60] sm:$0xf] }
 0xc24   : > { %7927 = vmatpush3.msk.msra.mxu0 %vm3965_vm8, %v3955_v25 }
 0xc25   : > { %v10953_v43 = vmax.f32 %v4744_v47, 0.0  ;;  %v10955_v2 = vmax.f32 %v4746_v52, 0.0  ;;  %7928 = vmatprep.subr.mxu0 %v13294_v61  ;;  %v5756_v47 = vrot.slane %v11064_v11, %v13322_v8  ;;  %v3951_v52 = vld [vmem:[%s13372_s6 + $0x40] sm:$0xff] }
 0xc27   : > { %5393 = vst [vmem:[#allocation2 + $0x1a0] sm:$0xff] %v10953_v43  ;;  %5394 = vst [vmem:[#allocation2 + $0x1a8] sm:$0xff] %v10955_v2  ;;  %4852 = vrot.lane.b32.xlu0 %v10953_v43, %s13251_s25  ;;  %4862 = vrot.lane.b32.xlu1 %v10942_v34, %s13251_s25 }
 0xc2b   : > { %5293 = vrot.lane.b32.xlu1 %v5280_v30, %s13323_s5  ;;  %v11098_v30 = vld [vmem:[%s13080_s9 + $0x7] ss:$8 sm:$0xf] }
 0xc2f   : > { %5297 = vrot.lane.b32.xlu1 %v5288_v4, %s13323_s5  ;;  %v3950_v4 = vld [vmem:[%s13372_s6 + $0x38] sm:$0xff] }
 0xc4d   : > { %v3887_v44 = vpop.permute.xlu0 %3886 }
 0xc4e   : > { %v3892_v24 = vsel %vm2991_vm4, %v3887_v44, %v10877_v28  ;;  %v5638_v44 = vrot.slane %v11098_v30, %v13320_v1 }
 0xc59   : > { %v4820_v10 = vpop.f32.mrf.mxu1 }
 0xc5a   : > { %v4650_v60 = vpop.permute.xlu0 %4649 }
 0xc5b   : > { %v4738_v41 = vadd.f32 %v4737_v17, %v4650_v60  ;;  %v4740_v46 = vadd.f32 %v4739_v26, %v4650_v60  ;;  %v4821_v45 = vadd.f32 %v4820_v10, %v4650_v60  ;;  %v4822_v6 = vpop.f32.mrf.mxu1  ;;  %v3885_v17 = vsel %vm2991_vm4, %v10938_v51, %v10901_v57  ;;  %v3954_v51 = vld [vmem:[%s13372_s6 + $0x58] sm:$0xff]  ;;  %v3949_v10 = vld [vmem:[%s13372_s6 + $0x30] sm:$0xff] }
 0xc5c   : > { %v10969_v18 = vadd.f32 %v4822_v6, %v4650_v60  ;;  %v5158_v26 = vrot.slane %v11016_v40, %v13322_v8  ;;  %7929 = vmatpush3.msra.mxu0 %v3954_v51  ;;  %v11117_v60 = vld [vmem:[%s13080_s9 + $0x6] ss:$8 sm:$0xf] }
 0xc5d   : > { %v10971_v63 = vmax.f32 %v4738_v41, 0.0  ;;  %v10973_v3 = vmax.f32 %v4740_v46, 0.0  ;;  %v10975_v49 = vmax.f32 %v4821_v45, 0.0  ;;  %v4826_v53 = vpop.f32.mrf.mxu1  ;;  %7930 = vmatprep.subr.mxu0 %v13294_v61  ;;  %v3948_v41 = vld [vmem:[%s13372_s6 + $0x28] sm:$0xff]  ;;  %v5752_v46 = vrot.slane %v11064_v11, %v13320_v1  ;;  %v3947_v6 = vld [vmem:[%s13372_s6 + $0x20] sm:$0xff] }
 0xc5e   : > { %v4840_v59 = vmax.f32 %v10969_v18, 0.0  ;;  %v4827_v23 = vadd.f32 %v4826_v53, %v4655_v20  ;;  %7931 = vmatpush3.msra.mxu0 %v3953_v5  ;;  %v5520_v45 = vrot.slane %v11117_v60, %v13321_v38  ;;  %v3946_v53 = vld [vmem:[%s13372_s6 + $0x18] sm:$0xff] }
 0xc5f   : > { %5389 = vst [vmem:[#allocation2 + $0x180] sm:$0xff] %v10971_v63  ;;  %5390 = vst [vmem:[#allocation2 + $0x188] sm:$0xff] %v10973_v3  ;;  %v4828_v19 = vpop.f32.mrf.mxu1  ;;  %4849 = vrot.lane.b32.xlu1 %v10971_v63, %s13251_s25  ;;  %7932 = vmatprep.subr.mxu0 %v13294_v61 }
 0xc60   : > { %5391 = vst [vmem:[#allocation2 + $0x190] sm:$0xff] %v10975_v49  ;;  %5392 = vst.msk [vmem:[#allocation2 + $0x198] sm:$0xff] %vm13369_vm12, %v4840_v59  ;;  %v10986_v33 = vmax.f32 %v4827_v23, 0.0  ;;  %v10988_v39 = vadd.f32 %v4828_v19, %v4655_v20  ;;  %v4890_v20 = vrot.slane %v11047_v7, %v13321_v38  ;;  %7933 = vmatpush3.msra.mxu0 %v3952_v16  ;;  %vm13376_vm12 = vcmask 1014784  }
 0xc61   : > { %v4832_v21 = vpop.f32.mrf.mxu1  ;;  %7934 = vmatprep.subr.mxu0 %v13294_v61  ;;  %v5634_v23 = vrot.slane %v11098_v30, %v13321_v38  ;;  %v5528_v19 = vrot.slane %v11117_v60, %v13322_v8 }
 0xc62   : > { %5395 = vst [vmem:[#allocation2 + $0x1b0] sm:$0xff] %v10986_v33  ;;  %v4833_v31 = vadd.f32 %v4832_v21, %v4660_v14  ;;  %v4844_v27 = vmax.f32 %v10988_v39, 0.0  ;;  %7935 = vmatpush3.msra.mxu0 %v3951_v52  ;;  %v3945_v21 = vld [vmem:[%s13372_s6 + $0x10] sm:$0xff] }
 0xc63   : > { %v4834_v50 = vpop.f32.mrf.mxu1  ;;  %4866 = vrot.lane.b32.xlu1 %v10986_v33, %s13251_s25  ;;  %7936 = vmatprep.subr.mxu0 %v13294_v61 }
 0xc64   : > { %v10994_v54 = vmax.f32 %v4833_v31, 0.0  ;;  %v10996_v62 = vadd.f32 %v4834_v50, %v4660_v14  ;;  %5396 = vst.msk [vmem:[#allocation2 + $0x1b8] sm:$0xff] %vm13370_vm9, %v4844_v27  ;;  %v5748_v14 = vrot.slane %v11064_v11, %v13321_v38  ;;  %7937 = vmatpush3.msra.mxu0 %v3950_v4  ;;  %v11147_v31 = vpop.permute.xlu0 %5419  ;;  %v3944_v50 = vld [vmem:[%s13372_s6 + $0x8] sm:$0xff]  ;;  %vm13377_vm9 = vmmov %vm13375_vm0 }
 0xc65   : > { %7938 = vmatprep.subr.mxu0 %v13294_v61 }
 0xc66   : > { %5399 = vst [vmem:[#allocation2 + $0x1d0] sm:$0xff] %v10994_v54  ;;  %v4848_v22 = vmax.f32 %v10996_v62, 0.0  ;;  %4868 = vrot.lane.b32.xlu0 %v10994_v54, %s13251_s25  ;;  %7939 = vmatpush3.msra.mxu0 %v3949_v10 }
 0xc67   : > { %3888 = vrot.lane.b32.xlu1 %v3882_v0, %s13357_s8  ;;  %7940 = vmatprep.subr.mxu0 %v13294_v61  ;;  %v5642_v0 = vrot.slane %v11098_v30, %v13322_v8  ;;  %v5524_v8 = vrot.slane %v11117_v60, %v13320_v1 }
 0xc68   : > { %5400 = vst.msk [vmem:[#allocation2 + $0x1d8] sm:$0xff] %vm13371_vm7, %v4848_v22  ;;  %7941 = vmatpush3.msra.mxu0 %v3948_v41  ;;  %v5162_v41 = vrot.slane %v11016_v40, %v13326_v48  ;;  %vm13378_vm7 = vmmov %vm13376_vm12 }
 0xc69   : > { %7942 = vmatprep.subr.mxu0 %v13294_v61 }
 0xc6a   : > { %5295 = vrot.lane.b32.xlu0 %v5284_v35, %s13323_s5  ;;  %7943 = vmatpush3.msra.mxu0 %v3947_v6  ;;  %v5422_v35 = vpop.permute.xlu1 %5421 }
 0xc6b   : > { %4864 = vrot.lane.b32.xlu1 %v10975_v49, %s13251_s25  ;;  %7944 = vmatprep.subr.mxu0 %v13294_v61 }
 0xc6c   : > { %7945 = vmatpush3.msra.mxu0 %v3946_v53 }
 0xc6d   : > { %7946 = vmatprep.subr.mxu0 %v13294_v61 }
 0xc6e   : > { %4860 = vrot.lane.b32.xlu0 %v10955_v2, %s13251_s25  ;;  %7947 = vmatpush3.msra.mxu0 %v3945_v21 }
 0xc6f   : > { %5165 = vrot.lane.b32.xlu1 %v5154_v36, %s13324_s27  ;;  %7948 = vmatprep.subr.mxu0 %v13294_v61  ;;  %v5418_v36 = vrot.slane %v10921_v32, %v13326_v48 }
 0xc70   : > { %7949 = vmatpush3.msra.mxu0 %v3944_v50 }
 0xc71   : > { %7950 = vmatprep.subr.mxu0 %v13294_v61 }
 0xc72   : > { %4858 = vrot.lane.b32.xlu0 %v10973_v3, %s13251_s25 }
 0xc73   : > { %5033 = vrot.lane.b32.xlu1 %v5020_v42, %s13325_s13  ;;  %v3943_v42 = vld [vmem:[%s13372_s6] sm:$0xff] }
 0xc74   : > { %7951 = vmatpush3.msra.mxu0 %v3943_v42 }
 0xc76   : > { %5163 = vrot.lane.b32.xlu0 %v5150_v9, %s13324_s27  ;;  %v11165_v9 = vsel %vm818_vm5, %v11147_v31, %v5422_v35 }
 0xc77   : > { %3898 = vrot.lane.b32.xlu1 %v3892_v24, %s13252_s19  ;;  %v11167_v24 = vpop.permute.xlu0 %5423  ;;  %v5435_v32 = vmul.f32 %v11165_v9, %v10973_v3 }
 0xc7a   : > { %3890 = vrot.lane.b32.xlu0 %v3885_v17, %s13357_s8 }
 0xc7b   : > { %5037 = vrot.lane.b32.xlu1 %v5028_v12, %s13325_s13  ;;  %v11177_v12 = vsel %vm818_vm5, %v5422_v35, %v11167_v24 }
 0xc7c   : > { %v5436_v17 = vmul.f32 %v11177_v12, %v10975_v49 }
 0xc7e   : > { %5167 = vrot.lane.b32.xlu0 %v5158_v26, %s13324_s27  ;;  %v5434_v26 = vmul.f32 %v11147_v31, %v10971_v63 }
 0xc7f   : > { %4905 = vrot.lane.b32.xlu1 %v4894_v37, %s13246_s28  ;;  %v5292_v37 = vrot.slane %v10951_v56, %v13326_v48 }
 0xc82   : > { %5035 = vrot.lane.b32.xlu0 %v5024_v55, %s13325_s13 }
 0xc83   : > { %5761 = vrot.lane.b32.xlu1 %v5748_v14, %s13247_s14 }
 0xc86   : > { %4903 = vrot.lane.b32.xlu0 %v4890_v20, %s13246_s28 }
 0xc87   : > { %5765 = vrot.lane.b32.xlu1 %v5756_v47, %s13247_s14 }
 0xc8a   : > { %4907 = vrot.lane.b32.xlu0 %v4898_v29, %s13246_s28 }
 0xc8b   : > { %5649 = vrot.lane.b32.xlu1 %v5638_v44, %s13248_s29 }
 0xc8e   : > { %5763 = vrot.lane.b32.xlu0 %v5752_v46, %s13247_s14 }
 0xc8f   : > { %5533 = vrot.lane.b32.xlu1 %v5520_v45, %s13249_s17 }
 0xc92   : > { %5647 = vrot.lane.b32.xlu0 %v5634_v23, %s13248_s29 }
 0xc93   : > { %5537 = vrot.lane.b32.xlu1 %v5528_v19, %s13249_s17 }
 0xc95   : > { %v4856_v1 = vpop.permute.xlu1 %4855 }
 0xc96   : > { %5651 = vrot.lane.b32.xlu0 %v5642_v0, %s13248_s29  ;;  %v11192_v25 = vsel %vm504_vm1, %v4856_v1, %v4848_v22 }
 0xc97   : > { %5425 = vrot.lane.b32.xlu1 %v5418_v36, %s13303_s22 }
 0xc99   : > { %v4853_v51 = vpop.permute.xlu0 %4852  ;;  %v4863_v56 = vpop.permute.xlu1 %4862 }
 0xc9a   : > { %5535 = vrot.lane.b32.xlu0 %v5524_v8, %s13249_s17  ;;  %v11200_v55 = vsel %vm504_vm1, %v4853_v51, %v4844_v27  ;;  %v11220_v47 = vsel %vm504_vm1, %v4863_v56, %v4856_v1 }
 0xc9b   : > { %5460 = vrot.lane.b32.xlu1 %v5435_v32, %s13252_s19 }
 0xc9d   : > { %v11204_v14 = vpop.permute.xlu1 %5293 }
 0xc9e   : > { %5462 = vrot.lane.b32.xlu0 %v5436_v17, %s13252_s19  ;;  %v5312_v42 = vmul.f32 %v11204_v14, %v11200_v55  ;;  %v5316_v32 = vmul.f32 %v11204_v14, %v11192_v25 }
 0xc9f   : > { %5458 = vrot.lane.b32.xlu1 %v5434_v26, %s13252_s19 }
 0xca1   : > { %v11206_v62 = vpop.permute.xlu1 %5297 }
 0xca2   : > { %4874 = vrot.lane.b32.xlu0 %v11192_v25, %s13251_s25 }
 0xca3   : > { %5299 = vrot.lane.b32.xlu1 %v5292_v37, %s13323_s5  ;;  %s13427_s5 = sld [smem:[#allocation37_spill]] }
 0xca6   : > { %4872 = vrot.lane.b32.xlu0 %v11200_v55, %s13251_s25 }
 0xcd1   : > { %v4850_v22 = vpop.permute.xlu1 %4849 }
 0xcd2   : > { %v11211_v5 = vsel %vm504_vm1, %v4850_v22, %v4840_v59 }
 0xcd3   : > { %4870 = vrot.lane.b32.xlu0 %v11211_v5, %s13251_s25 }
 0xcd5   : > { %v11215_v39 = vpop.permute.xlu1 %4866 }
 0xcd8   : > { %v11217_v27 = vpop.permute.xlu0 %4868 }
 0xcd9   : > { %v3889_v16 = vpop.permute.xlu1 %3888  ;;  %v11224_v52 = vsel %vm504_vm1, %v11217_v27, %v4863_v56 }
 0xcda   : > { %v3893_v45 = vsel %vm2991_vm4, %v3889_v16, %v10899_v15 }
 0xcdc   : > { %v5296_v20 = vpop.permute.xlu0 %5295 }
 0xcdd   : > { %v5301_v18 = vsel %vm751_vm6, %v11204_v14, %v5296_v20  ;;  %v5302_v59 = vsel %vm751_vm6, %v5296_v20, %v11206_v62  ;;  %v11230_v4 = vpop.permute.xlu1 %4864 }
 0xcde   : > { %v5317_v29 = vmul.f32 %v5301_v18, %v11220_v47  ;;  %v5318_v44 = vmul.f32 %v5302_v59, %v11224_v52 }
 0xce0   : > { %v4861_v10 = vpop.permute.xlu0 %4860  ;;  %5350 = vrot.lane.b32.xlu1 %v5317_v29, %s13257_s30  ;;  %5352 = vrot.lane.b32.xlu0 %v5318_v44, %s13257_s30 }
 0xce1   : > { %v5166_v46 = vpop.permute.xlu1 %5165  ;;  %v11241_v6 = vsel %vm504_vm1, %v4861_v10, %v4853_v51  ;;  %v11274_v17 = vsel %vm504_vm1, %v11215_v39, %v4861_v10 }
 0xce2   : > { %v5313_v19 = vmul.f32 %v5301_v18, %v11241_v6  ;;  %v5314_v56 = vmul.f32 %v5302_v59, %v11274_v17 }
 0xce4   : > { %v4859_v53 = vpop.permute.xlu0 %4858  ;;  %5169 = vrot.lane.b32.xlu1 %v5162_v41, %s13324_s27  ;;  %3900 = vrot.lane.b32.xlu0 %v3893_v45, %s13252_s19 }
 0xce5   : > { %v11245_v23 = vpop.permute.xlu1 %5033  ;;  %v11265_v8 = vsel %vm504_vm1, %v11230_v4, %v4859_v53  ;;  %v11285_v16 = vsel %vm504_vm1, %v4859_v53, %v4850_v22  ;;  %v5032_v22 = vrot.slane %v11026_v58, %v13326_v48 }
 0xce6   : > { %13374 = vst [vmem:[#allocation10_spill] sm:$0xff] %v11265_v8  ;;  %v5310_v1 = vmul.f32 %v5302_v59, %v11265_v8  ;;  %v5309_v59 = vmul.f32 %v5301_v18, %v11285_v16 }
 0xce8   : > { %v11248_v21 = vpop.permute.xlu0 %5163  ;;  %5342 = vrot.lane.b32.xlu1 %v5313_v19, %s13257_s30  ;;  %v5308_v19 = vmul.f32 %v11204_v14, %v11211_v5 }
 0xce9   : > { %v3899_v40 = vpop.permute.xlu1 %3898  ;;  %v5171_v37 = vsel %vm13375_vm0, %v11248_v21, %v5166_v46  ;;  %v5184_v14 = vmul.f32 %v11248_v21, %v10986_v33  ;;  %vm13383_vm0 = vcmask 1006592  }
 0xcea   : > { %v11252_v50 = vmax.f32 %v10877_v28, %v3899_v40  ;;  %v5190_v10 = vmul.f32 %v5171_v37, %v11192_v25  ;;  %v5185_v58 = vmul.f32 %v5171_v37, %v11200_v55 }
 0xcec   : > { %v3891_v0 = vpop.permute.xlu0 %3890  ;;  %3910 = vrot.lane.b32.xlu1 %v11252_v50, %s13357_s8 }
 0xced   : > { %v3894_v35 = vsel %vm2991_vm4, %v3891_v0, %v10901_v57  ;;  %v11258_v36 = vpop.permute.xlu1 %5037 }
 0xcee   : > { %13373 = vst [vmem:[#allocation15_spill] sm:$0xff] %v11258_v36  ;;  %3902 = vrot.lane.b32.xlu0 %v3894_v35, %s13252_s19 }
 0xcf0   : > { %v11267_v28 = vpop.permute.xlu0 %5167  ;;  %5340 = vrot.lane.b32.xlu1 %v5312_v42, %s13257_s30 }
 0xcf1   : > { %v11276_v26 = vpop.permute.xlu1 %4905  ;;  %v5172_v40 = vsel %vm13377_vm9, %v5166_v46, %v11267_v28  ;;  %vm13397_vm9 = vcmask 31744  }
 0xcf2   : > { %5348 = vrot.lane.b32.xlu0 %v5316_v32, %s13257_s30  ;;  %v5191_v18 = vmul.f32 %v5172_v40, %v11220_v47  ;;  %v5189_v32 = vmul.f32 %v11248_v21, %v10994_v54 }
 0xcf4   : > { %v5036_v51 = vpop.permute.xlu0 %5035  ;;  %5336 = vrot.lane.b32.xlu1 %v5310_v1, %s13257_s30 }
 0xcf5   : > { %v5042_v20 = vsel %vm13376_vm12, %v5036_v51, %v11258_v36  ;;  %v11289_v29 = vpop.permute.xlu1 %5761  ;;  %vm13384_vm12 = vmmov %vm13383_vm0 }
 0xcf6   : > { %v11292_v44 = vmul.f32 %v5042_v20, %v11285_v16  ;;  %5344 = vrot.lane.b32.xlu0 %v5314_v56, %s13257_s30  ;;  %v5181_v56 = vmul.f32 %v5172_v40, %v11285_v16 }
 0xcf8   : > { %v11296_v41 = vpop.permute.xlu0 %4903  ;;  %5231 = vrot.lane.b32.xlu1 %v5190_v10, %s13255_s18  ;;  %v5041_v10 = vsel %vm13378_vm7, %v11245_v23, %v5036_v51  ;;  %v4902_v51 = vrot.slane %v11047_v7, %v13326_v48  ;;  %v5061_v7 = vmul.f32 %v5042_v20, %v11220_v47  ;;  %vm13398_vm7 = vmmov %vm13397_vm9 }
 0xcf9   : > { %v11302_v45 = vpop.permute.xlu1 %5765 }
 0xcfa   : > { %5334 = vrot.lane.b32.xlu0 %v5309_v59, %s13257_s30  ;;  %v5186_v59 = vmul.f32 %v5172_v40, %v11241_v6 }
 0xcfc   : > { %v11305_v53 = vpop.permute.xlu0 %4907  ;;  %5039 = vrot.lane.b32.xlu1 %v5032_v22, %s13325_s13  ;;  %s13531_s13 = sld [smem:[#allocation39_spill]] }
 0xcfd   : > { %v11312_v0 = vpop.permute.xlu1 %5649 }
 0xcfe   : > { %5332 = vrot.lane.b32.xlu0 %v5308_v19, %s13257_s30 }
 0xd00   : > { %v11317_v35 = vpop.permute.xlu0 %5763  ;;  %5221 = vrot.lane.b32.xlu1 %v5185_v58, %s13255_s18  ;;  %v5060_v58 = vmul.f32 %v5041_v10, %v11192_v25 }
 0xd01   : > { %v11320_v42 = vpop.permute.xlu1 %5533 }
 0xd02   : > { %5233 = vrot.lane.b32.xlu0 %v5191_v18, %s13255_s18 }
 0xd04   : > { %v11325_v46 = vpop.permute.xlu0 %5647  ;;  %5219 = vrot.lane.b32.xlu1 %v5184_v14, %s13255_s18  ;;  %v5180_v14 = vmul.f32 %v5171_v37, %v11211_v5 }
 0xd05   : > { %v11330_v1 = vpop.permute.xlu1 %5537 }
 0xd06   : > { %5229 = vrot.lane.b32.xlu0 %v5189_v32, %s13255_s18 }
 0xd08   : > { %v11337_v22 = vpop.permute.xlu0 %5651  ;;  %5213 = vrot.lane.b32.xlu1 %v5181_v56, %s13255_s18  ;;  %v5179_v56 = vmul.f32 %v11248_v21, %v10975_v49  ;;  %v5054_v21 = vmul.f32 %v11245_v23, %v10986_v33 }
 0xd09   : > { %v11340_v19 = vpop.permute.xlu1 %5425 }
 0xd0a   : > { %5223 = vrot.lane.b32.xlu0 %v5186_v59, %s13255_s18 }
 0xd0c   : > { %v11344_v18 = vpop.permute.xlu0 %5535  ;;  %5101 = vrot.lane.b32.xlu1 %v5060_v58, %s13256_s23  ;;  %v5055_v58 = vmul.f32 %v5041_v10, %v11200_v55 }
 0xd0d   : > { %v5461_v40 = vpop.permute.xlu1 %5460 }
 0xd0e   : > { %5211 = vrot.lane.b32.xlu0 %v5180_v14, %s13255_s18  ;;  %v5056_v14 = vmul.f32 %v5042_v20, %v11241_v6 }
 0xd10   : > { %v11351_v32 = vpop.permute.xlu0 %5462  ;;  %4909 = vrot.lane.b32.xlu1 %v4902_v51, %s13246_s28  ;;  %v5050_v51 = vmul.f32 %v5041_v10, %v11211_v5  ;;  %s13525_s28 = smov 37  }
 0xd11   : > { %13379 = vst [vmem:[#allocation12_spill] sm:$0xff] %v11351_v32  ;;  %v5483_v59 = vsel %vm842_vm13, %v5461_v40, %v11351_v32  ;;  %v5459_v38 = vpop.permute.xlu1 %5458  ;;  %v5049_v32 = vmul.f32 %v11245_v23, %v10975_v49 }
 0xd12   : > { %v11360_v37 = vsel %vm842_vm13, %v5459_v38, %v5461_v40  ;;  %5209 = vrot.lane.b32.xlu0 %v5179_v56, %s13255_s18  ;;  %5998 = vmatprep.subr.mxu0 %v5483_v59  ;;  %v5059_v38 = vmul.f32 %v11245_v23, %v10994_v54 }
 0xd13   : > { %13380 = vst [vmem:[#allocation11_spill] sm:$0xff] %v11360_v37  ;;  %5503 = vst [vmem:[#allocation2 + $0x1e0] sm:$0xff] %v11360_v37  ;;  %v4912_v37 = vsel %vm13383_vm0, %v11276_v26, %v11305_v53 }
 0xd14   : > { %5091 = vrot.lane.b32.xlu1 %v5055_v58, %s13256_s23  ;;  %v11377_v40 = vpop.permute.xlu0 %4874  ;;  %vm13399_vm0 = vmmov %vm13398_vm7 }
 0xd15   : > { %v11381_v59 = vpop.permute.xlu1 %5299 }
 0xd16   : > { %5103 = vrot.lane.b32.xlu0 %v5061_v7, %s13256_s23 }
 0xd18   : > { %5089 = vrot.lane.b32.xlu1 %v5054_v21, %s13256_s23  ;;  %v11379_v56 = vpop.permute.xlu0 %4872 }
 0xd1a   : > { %5099 = vrot.lane.b32.xlu0 %v5059_v38, %s13256_s23 }
 0xd1e   : > { %5093 = vrot.lane.b32.xlu0 %v5056_v14, %s13256_s23 }
 0xd22   : > { %5081 = vrot.lane.b32.xlu0 %v5050_v51, %s13256_s23 }
 0xd45   : > { %v11383_v58 = vpop.permute.xlu0 %4870 }
 0xd52   : > { %v11385_v7 = vpop.permute.xlu0 %5352  ;;  %v5351_v21 = vpop.permute.xlu1 %5350 }
 0xd53   : > { %13381 = vst [vmem:[#allocation13_spill] sm:$0xff] %v11385_v7  ;;  %v11389_v20 = vsel %vm775_vm14, %v5351_v21, %v11385_v7 }
 0xd54   : > { %13382 = vst [vmem:[#allocation14_spill] sm:$0xff] %v11389_v20  ;;  %v4931_v20 = vmul.f32 %v4912_v37, %v11220_v47 }
 0xd56   : > { %v3901_v38 = vpop.permute.xlu0 %3900  ;;  %v11391_v14 = vpop.permute.xlu1 %5169 }
 0xd57   : > { %v11394_v10 = vmax.f32 %v10899_v15, %v3901_v38  ;;  %v4911_v15 = vsel %vm13384_vm12, %v11296_v41, %v11276_v26  ;;  %vm13401_vm12 = vmmov %vm13399_vm0 }
 0xd59   : > { %3913 = vrot.lane.b32.xlu0 %v11394_v10, %s13357_s8 }
 0xd5a   : > { %v5343_v51 = vpop.permute.xlu1 %5342 }
 0xd5d   : > { %5079 = vrot.lane.b32.xlu0 %v5049_v32, %s13256_s23  ;;  %v4925_v32 = vmul.f32 %v4911_v15, %v11200_v55 }
 0xd5e   : > { %v3911_v7 = vpop.permute.xlu1 %3910 }
 0xd60   : > { %v3903_v38 = vpop.permute.xlu0 %3902 }
 0xd61   : > { %v11409_v36 = vmax.f32 %v10901_v57, %v3903_v38  ;;  %4973 = vrot.lane.b32.xlu0 %v4931_v20, %s13269_s0  ;;  %v3912_v20 = vsel %vm2991_vm4, %v3911_v7, %v11252_v50 }
 0xd62   : > { %v5341_v23 = vpop.permute.xlu1 %5340 }
 0xd63   : > { %v11413_v8 = vsel %vm775_vm14, %v5341_v23, %v5343_v51  ;;  %3916 = vrot.lane.b32.xlu1 %v11409_v36, %s13357_s8 }
 0xd64   : > { %13385 = vst [vmem:[#allocation6_spill] sm:$0xff] %v11413_v8  ;;  %5381 = vst [vmem:[#allocation2 + $0x140] sm:$0xff] %v11413_v8  ;;  %v5349_v47 = vpop.permute.xlu0 %5348  ;;  %v4926_v8 = vmul.f32 %v4912_v37, %v11241_v6 }
 0xd65   : > { %v11420_v26 = vsel %vm775_vm14, %v5349_v47, %v5351_v21  ;;  %4961 = vrot.lane.b32.xlu0 %v4925_v32, %s13269_s0  ;;  %v4930_v21 = vmul.f32 %v4911_v15, %v11192_v25  ;;  %v5760_v32 = vrot.slane %v11064_v11, %v13326_v48 }
 0xd66   : > { %5385 = vst [vmem:[#allocation2 + $0x160] sm:$0xff] %v11420_v26  ;;  %v11424_v57 = vpop.permute.xlu1 %5336 }
 0xd67   : > { %13386 = vst [vmem:[#allocation8_spill] sm:$0xff] %v11424_v57  ;;  %5083 = vrot.lane.b32.xlu1 %v11292_v44, %s13256_s23 }
 0xd68   : > { %v11430_v38 = vpop.permute.xlu0 %5344 }
 0xd69   : > { %13387 = vst [vmem:[#allocation9_spill] sm:$0xff] %v11430_v38  ;;  %v11434_v23 = vsel %vm775_vm14, %v5343_v51, %v11430_v38  ;;  %3919 = vrot.lane.b32.xlu0 %v3912_v20, %s13357_s8  ;;  %v4929_v51 = vmul.f32 %v11296_v41, %v10994_v54  ;;  %v4920_v20 = vmul.f32 %v4911_v15, %v11211_v5 }
 0xd6a   : > { %v5232_v47 = vpop.permute.xlu1 %5231  ;;  %v5770_v15 = vsel %vm1007_vm2, %v11317_v35, %v11302_v45 }
 0xd6b   : > { %4971 = vrot.lane.b32.xlu1 %v4930_v21, %s13269_s0 }
 0xd6c   : > { %v5335_v44 = vpop.permute.xlu0 %5334 }
 0xd6d   : > { %v11443_v7 = vsel %vm775_vm14, %v5335_v44, %v11424_v57  ;;  %5767 = vrot.lane.b32.xlu0 %v5760_v32, %s13247_s14  ;;  %v4919_v57 = vmul.f32 %v11296_v41, %v10975_v49  ;;  %s13426_s14 = sld [smem:[#allocation36_spill]] }
 0xd6e   : > { %13388 = vst [vmem:[#allocation16_spill] sm:$0xff] %v11443_v7  ;;  %v11448_v38 = vpop.permute.xlu1 %5039  ;;  %v4921_v7 = vmul.f32 %v4912_v37, %v11285_v16 }
 0xd6f   : > { %4969 = vrot.lane.b32.xlu1 %v4929_v51, %s13269_s0 }
 0xd70   : > { %v5333_v11 = vpop.permute.xlu0 %5332 }
 0xd71   : > { %v11454_v21 = vsel %vm775_vm14, %v5333_v11, %v5335_v44  ;;  %4951 = vrot.lane.b32.xlu0 %v4920_v20, %s13269_s0  ;;  %v4924_v44 = vmul.f32 %v11296_v41, %v10986_v33  ;;  %v5646_v41 = vrot.slane %v11098_v30, %v13326_v48 }
 0xd72   : > { %13389 = vst [vmem:[#allocation17_spill] sm:$0xff] %v11454_v21  ;;  %5377 = vst [vmem:[#allocation2 + $0x120] sm:$0xff] %v11454_v21  ;;  %v5222_v32 = vpop.permute.xlu1 %5221 }
 0xd73   : > { %4963 = vrot.lane.b32.xlu1 %v4926_v8, %s13269_s0  ;;  %v5786_v8 = vmul.f32 %v5770_v15, %v10994_v54 }
 0xd74   : > { %v11464_v51 = vpop.permute.xlu0 %5233 }
 0xd75   : > { %13390 = vst [vmem:[#allocation18_spill] sm:$0xff] %v11464_v51  ;;  %v11468_v6 = vsel %vm711_vm15, %v5232_v47, %v11464_v51  ;;  %4949 = vrot.lane.b32.xlu0 %v4919_v57, %s13269_s0  ;;  %v5769_v57 = vsel %vm1007_vm2, %v11289_v29, %v11317_v35 }
 0xd76   : > { %v5220_v20 = vpop.permute.xlu1 %5219  ;;  %v5785_v16 = vmul.f32 %v5769_v57, %v10942_v34 }
 0xd77   : > { %v11475_v11 = vsel %vm711_vm15, %v5220_v20, %v5222_v32  ;;  %4959 = vrot.lane.b32.xlu1 %v4924_v44, %s13269_s0 }
 0xd78   : > { %13391 = vst [vmem:[#allocation19_spill] sm:$0xff] %v11475_v11  ;;  %5267 = vst [vmem:[#allocation2 + $0xe0] sm:$0xff] %v11475_v11  ;;  %v5230_v21 = vpop.permute.xlu0 %5229  ;;  %v5778_v11 = vmul.f32 %v5770_v15, %v10975_v49 }
 0xd79   : > { %v11481_v51 = vsel %vm711_vm15, %v5230_v21, %v5232_v47  ;;  %5820 = vrot.lane.b32.xlu0 %v5786_v8, %s13253_s26  ;;  %v5782_v47 = vmul.f32 %v5770_v15, %v10986_v33 }
 0xd7a   : > { %5271 = vst [vmem:[#allocation2 + $0x100] sm:$0xff] %v11481_v51  ;;  %v11490_v44 = vpop.permute.xlu1 %5213 }
 0xd7b   : > { %13392 = vst [vmem:[#allocation20_spill] sm:$0xff] %v11490_v44  ;;  %4953 = vrot.lane.b32.xlu1 %v4921_v7, %s13269_s0  ;;  %v5784_v7 = vmul.f32 %v11289_v29, %v10940_v13 }
 0xd7c   : > { %v11493_v20 = vpop.permute.xlu0 %5223 }
 0xd7d   : > { %13393 = vst [vmem:[#allocation21_spill] sm:$0xff] %v11493_v20  ;;  %v11498_v37 = vsel %vm711_vm15, %v5222_v32, %v11493_v20  ;;  %5653 = vrot.lane.b32.xlu0 %v5646_v41, %s13248_s29  ;;  %v5777_v32 = vmul.f32 %v5769_v57, %v10973_v3  ;;  %v5781_v20 = vmul.f32 %v5769_v57, %v10955_v2  ;;  %s13527_s29 = smov 39  }
 0xd7e   : > { %v5102_v30 = vpop.permute.xlu1 %5101 }
 0xd7f   : > { %5818 = vrot.lane.b32.xlu1 %v5785_v16, %s13253_s26 }
 0xd80   : > { %v5212_v35 = vpop.permute.xlu0 %5211 }
 0xd81   : > { %v11505_v21 = vsel %vm711_vm15, %v5212_v35, %v11490_v44  ;;  %5812 = vrot.lane.b32.xlu0 %v5782_v47, %s13253_s26  ;;  %v5776_v44 = vmul.f32 %v11289_v29, %v10971_v63 }
 0xd82   : > { %13394 = vst [vmem:[#allocation22_spill] sm:$0xff] %v11505_v21  ;;  %v11510_v8 = vpop.permute.xlu1 %4909 }
 0xd83   : > { %5816 = vrot.lane.b32.xlu1 %v5784_v7, %s13253_s26  ;;  %v5656_v7 = vsel %vm944_vm3, %v11312_v0, %v11337_v22 }
 0xd84   : > { %v5210_v41 = vpop.permute.xlu0 %5209 }
 0xd85   : > { %v11516_v16 = vsel %vm711_vm15, %v5210_v41, %v5212_v35  ;;  %5802 = vrot.lane.b32.xlu0 %v5777_v32, %s13253_s26  ;;  %v5780_v35 = vmul.f32 %v11289_v29, %v10953_v43  ;;  %v5532_v29 = vrot.slane %v11117_v60, %v13326_v48  ;;  %v5670_v48 = vmul.f32 %v11325_v46, %v10940_v13 }
 0xd86   : > { %13395 = vst [vmem:[#allocation23_spill] sm:$0xff] %v11516_v16  ;;  %5263 = vst [vmem:[#allocation2 + $0xc0] sm:$0xff] %v11516_v16  ;;  %v5092_v47 = vpop.permute.xlu1 %5091 }
 0xd87   : > { %5810 = vrot.lane.b32.xlu1 %v5781_v20, %s13253_s26  ;;  %v5672_v20 = vmul.f32 %v5656_v7, %v10994_v54 }
 0xd88   : > { %v11526_v21 = vpop.permute.xlu0 %5103 }
 0xd89   : > { %13396 = vst [vmem:[#allocation24_spill] sm:$0xff] %v11526_v21  ;;  %v11530_v57 = vsel %vm13397_vm9, %v5102_v30, %v11526_v21  ;;  %5800 = vrot.lane.b32.xlu0 %v5776_v44, %s13253_s26  ;;  %v5655_v44 = vsel %vm944_vm3, %v11325_v46, %v11312_v0  ;;  %v5666_v0 = vmul.f32 %v11325_v46, %v10953_v43  ;;  %vm13402_vm9 = vmmov %vm13399_vm0 }
 0xd8a   : > { %v5090_v32 = vpop.permute.xlu1 %5089  ;;  %v5667_v60 = vmul.f32 %v5655_v44, %v10955_v2 }
 0xd8b   : > { %v11537_v41 = vsel %vm13398_vm7, %v5090_v32, %v5092_v47  ;;  %5808 = vrot.lane.b32.xlu1 %v5780_v35, %s13253_s26  ;;  %vm8136_vm7 = vmmov 0  }
 0xd8c   : > { %5137 = vst [vmem:[#allocation2 + $0x80] sm:$0xff] %v11537_v41  ;;  %v5100_v16 = vpop.permute.xlu0 %5099  ;;  %7952 = vmatprep.mubr.msk.f32.mxu0 %vm8136_vm7, %v13294_v61 }
 0xd8d   : > { %v11543_v21 = vsel %vm13399_vm0, %v5100_v16, %v5102_v30  ;;  %5706 = vrot.lane.b32.xlu0 %v5672_v20, %s13254_s16  ;;  %v5671_v30 = vmul.f32 %v5655_v44, %v10942_v34 }
 0xd8e   : > { %5141 = vst [vmem:[#allocation2 + $0xa0] sm:$0xff] %v11543_v21 }
 0xd8f   : > { %5804 = vrot.lane.b32.xlu1 %v5778_v11, %s13253_s26  ;;  %v5664_v11 = vmul.f32 %v5656_v7, %v10975_v49 }
 0xd90   : > { %v11553_v35 = vpop.permute.xlu0 %5093 }
 0xd91   : > { %13400 = vst [vmem:[#allocation25_spill] sm:$0xff] %v11553_v35  ;;  %v11557_v15 = vsel %vm13401_vm12, %v5092_v47, %v11553_v35  ;;  %5539 = vrot.lane.b32.xlu0 %v5532_v29, %s13249_s17  ;;  %vm13406_vm12 = vcmask 154624   ;;  %s13528_s17 = smov 117  }
 0xd92   : > { %5138 = vst [vmem:[#allocation2 + $0x88] sm:$0xff] %v11557_v15  ;;  %v5541_v35 = vsel %vm13406_vm12, %v11320_v42, %v11344_v18 }
 0xd93   : > { %5704 = vrot.lane.b32.xlu1 %v5671_v30, %s13254_s16 }
 0xd94   : > { %v5082_v16 = vpop.permute.xlu0 %5081 }
 0xd97   : > { %5702 = vrot.lane.b32.xlu1 %v5670_v48, %s13254_s16 }
 0xd9b   : > { %5696 = vrot.lane.b32.xlu1 %v5667_v60, %s13254_s16 }
 0xd9f   : > { %5694 = vrot.lane.b32.xlu1 %v5666_v0, %s13254_s16 }
 0xda3   : > { %5690 = vrot.lane.b32.xlu1 %v5664_v11, %s13254_s16  ;;  %v5668_v11 = vmul.f32 %v5656_v7, %v10986_v33  ;;  %v5663_v7 = vmul.f32 %v5655_v44, %v10973_v3 }
 0xdcb   : > { %v3914_v47 = vpop.permute.xlu0 %3913 }
 0xdcc   : > { %v3915_v32 = vsel %vm2991_vm4, %v3914_v47, %v11394_v10 }
 0xdcd   : > { %3921 = vrot.lane.b32.xlu0 %v3915_v32, %s13357_s8 }
 0xdcf   : > { %v5080_v20 = vpop.permute.xlu0 %5079 }
 0xdd0   : > { %v11577_v29 = vsel %vm13402_vm9, %v5080_v20, %v5082_v16  ;;  %vm13407_vm9 = vcmask 39936  }
 0xdd1   : > { %13403 = vst [vmem:[#allocation26_spill] sm:$0xff] %v11577_v29  ;;  %5133 = vst [vmem:[#allocation2 + $0x60] sm:$0xff] %v11577_v29 }
 0xdd3   : > { %v11582_v30 = vpop.permute.xlu0 %4973 }
 0xdd4   : > { %13404 = vst [vmem:[#allocation27_spill] sm:$0xff] %v11582_v30 }
 0xdd5   : > { %v3917_v48 = vpop.permute.xlu1 %3916 }
 0xdd6   : > { %v3918_v60 = vsel %vm2991_vm4, %v3917_v48, %v11409_v36 }
 0xdd7   : > { %v4962_v0 = vpop.permute.xlu0 %4961  ;;  %3923 = vrot.lane.b32.xlu0 %v3918_v60, %s13357_s8 }
 0xdd9   : > { %v11588_v47 = vpop.permute.xlu1 %5083 }
 0xdda   : > { %13405 = vst [vmem:[#allocation28_spill] sm:$0xff] %v11588_v47  ;;  %v11592_v32 = vsel %vm13399_vm0, %v5082_v16, %v11588_v47  ;;  %v5557_v16 = vmul.f32 %v5541_v35, %v10942_v34  ;;  %vm13409_vm0 = vmmov %vm13406_vm12 }
 0xddb   : > { %v3920_v20 = vpop.permute.xlu0 %3919  ;;  %5698 = vrot.lane.b32.xlu0 %v5668_v11, %s13254_s16  ;;  %v5542_v44 = vsel %vm13409_vm0, %v11344_v18, %v11330_v1  ;;  %vm13410_vm12 = vmmov %vm13407_vm9 }
 0xddc   : > { %v3925_v48 = vsel %vm2991_vm4, %v3920_v20, %v11252_v50  ;;  %v5662_v20 = vmul.f32 %v11325_v46, %v10971_v63  ;;  %vm13414_vm0 = vmmov %vm13407_vm9 }
 0xddd   : > { %3931 = vrot.lane.b32.xlu1 %v3925_v48, %s13317_s20  ;;  %v4972_v60 = vpop.permute.xlu1 %4971 }
 0xdde   : > { %v11604_v29 = vsel %vm13407_vm9, %v4972_v60, %v11582_v30 }
 0xddf   : > { %13408 = vst [vmem:[#allocation29_spill] sm:$0xff] %v11604_v29  ;;  %v11607_v47 = vpop.permute.xlu0 %5767  ;;  %5688 = vrot.lane.b32.xlu0 %v5663_v7, %s13254_s16  ;;  %v5556_v7 = vmul.f32 %v11320_v42, %v10940_v13 }
 0xde1   : > { %5590 = vrot.lane.b32.xlu1 %v5557_v16, %s13267_s24  ;;  %v4970_v11 = vpop.permute.xlu1 %4969  ;;  %v5558_v16 = vmul.f32 %v5542_v44, %v10994_v54 }
 0xde2   : > { %v11617_v48 = vsel %vm13410_vm12, %v4970_v11, %v4972_v60  ;;  %v5554_v60 = vmul.f32 %v5542_v44, %v10986_v33  ;;  %vm13415_vm12 = vmmov %vm13414_vm0 }
 0xde3   : > { %13411 = vst [vmem:[#allocation30_spill] sm:$0xff] %v11617_v48  ;;  %5011 = vst [vmem:[#allocation2 + $0x40] sm:$0xff] %v11617_v48  ;;  %v4952_v30 = vpop.permute.xlu0 %4951  ;;  %5686 = vrot.lane.b32.xlu0 %v5662_v20, %s13254_s16  ;;  %v5553_v48 = vmul.f32 %v5541_v35, %v10955_v2 }
 0xde5   : > { %5588 = vrot.lane.b32.xlu1 %v5556_v7, %s13267_s24  ;;  %v11625_v46 = vpop.permute.xlu1 %4963 }
 0xde6   : > { %13412 = vst [vmem:[#allocation31_spill] sm:$0xff] %v11625_v46  ;;  %v11629_v18 = vsel %vm13407_vm9, %v4962_v0, %v11625_v46  ;;  %v5549_v46 = vmul.f32 %v5541_v35, %v10973_v3  ;;  %vm13416_vm9 = vmmov %vm13414_vm0  ;;  %v5548_v3 = vmul.f32 %v11320_v42, %v10971_v63  ;;  %v5550_v35 = vmul.f32 %v5542_v44, %v10975_v49 }
 0xde7   : > { %13413 = vst [vmem:[#allocation32_spill] sm:$0xff] %v11629_v18  ;;  %v4950_v11 = vpop.permute.xlu0 %4949  ;;  %5592 = vrot.lane.b32.xlu0 %v5558_v16, %s13267_s24 }
 0xde8   : > { %v11634_v20 = vsel %vm13414_vm0, %v4950_v11, %v4952_v30  ;;  %v5552_v11 = vmul.f32 %v11320_v42, %v10953_v43  ;;  %v5444_v43 = vmul.f32 %v11177_v12, %v10994_v54  ;;  %v5439_v42 = vmul.f32 %v11165_v9, %v10955_v2 }
 0xde9   : > { %5003 = vst [vmem:[#allocation2] sm:$0xff] %v11634_v20  ;;  %5584 = vrot.lane.b32.xlu1 %v5554_v60, %s13267_s24  ;;  %v4960_v7 = vpop.permute.xlu1 %4959  ;;  %v11685_v54 = vsel %vm504_vm1, %v11377_v40, %v11217_v27  ;;  %v5442_v2 = vmul.f32 %v11147_v31, %v10940_v13  ;;  %v11702_v27 = vsel %vm504_vm1, %v11383_v58, %v11230_v4  ;;  %v8093_v58 = vld [vmem:[#allocation2 + $0x1a0] sm:$0xff] }
 0xdea   : > { %v11640_v29 = vsel %vm13415_vm12, %v4960_v7, %v4962_v0  ;;  %v5443_v7 = vmul.f32 %v11165_v9, %v10942_v34  ;;  %v5303_v34 = vsel %vm751_vm6, %v11206_v62, %v11381_v59  ;;  %v5440_v13 = vmul.f32 %v11177_v12, %v10986_v33 }
 0xdeb   : > { %5007 = vst [vmem:[#allocation2 + $0x20] sm:$0xff] %v11640_v29  ;;  %v11644_v18 = vpop.permute.xlu0 %5820  ;;  %5582 = vrot.lane.b32.xlu0 %v5553_v48, %s13267_s24  ;;  %v5438_v33 = vmul.f32 %v8093_v58, %v11147_v31  ;;  %v11724_v12 = vsel %vm818_vm5, %v11167_v24, %v11340_v19  ;;  %v11741_v24 = vsel %vm504_vm1, %v11379_v56, %v11215_v39  ;;  %vm13417_vm5 = vcmask 883712  }
 0xdec   : > { %vm13418_vm6 = vcmask 1022976   ;;  %vm13419_vm0 = vmmov %vm13417_vm5 }
 0xded   : > { %5574 = vrot.lane.b32.xlu1 %v5549_v46, %s13267_s24  ;;  %v11648_v16 = vpop.permute.xlu1 %4953  ;;  %vm13420_vm12 = vmmov %vm13419_vm0 }
 0xdee   : > { %v11654_v60 = vsel %vm13416_vm9, %v4952_v30, %v11648_v16  ;;  %vm13423_vm9 = vcmask 1014784  }
 0xdef   : > { %v11656_v0 = vpop.permute.xlu0 %5653  ;;  %5580 = vrot.lane.b32.xlu0 %v5552_v11, %s13267_s24 }
 0xdf1   : > { %5572 = vrot.lane.b32.xlu1 %v5548_v3, %s13267_s24  ;;  %v5819_v48 = vpop.permute.xlu1 %5818  ;;  %v5319_v3 = vmul.f32 %v5303_v34, %v11685_v54 }
 0xdf2   : > { %v11665_v46 = vsel %vm1031_vm10, %v5819_v48, %v11644_v18 }
 0xdf3   : > { %v11669_v30 = vpop.permute.xlu0 %5812  ;;  %5576 = vrot.lane.b32.xlu0 %v5550_v35, %s13267_s24 }
 0xdf5   : > { %5478 = vrot.lane.b32.xlu1 %v5444_v43, %s13252_s19  ;;  %v5817_v63 = vpop.permute.xlu1 %5816 }
 0xdf6   : > { %v11676_v49 = vsel %vm1031_vm10, %v5817_v63, %v5819_v48  ;;  %v5311_v48 = vmul.f32 %v5303_v34, %v11702_v27  ;;  %v5437_v63 = vmul.f32 %v11724_v12, %v11211_v5 }
 0xdf7   : > { %5853 = vst [vmem:[#allocation2 + $0x340] sm:$0xff] %v11676_v49  ;;  %v5803_v44 = vpop.permute.xlu0 %5802  ;;  %5476 = vrot.lane.b32.xlu0 %v5443_v7, %s13252_s19  ;;  %v5193_v7 = vmul.f32 %v11391_v14, %v11685_v54 }
 0xdf9   : > { %5468 = vrot.lane.b32.xlu1 %v5439_v42, %s13252_s19  ;;  %v5811_v11 = vpop.permute.xlu1 %5810 }
 0xdfa   : > { %v11695_v9 = vsel %vm1031_vm10, %v5811_v11, %v11669_v30 }
 0xdfb   : > { %v5801_v35 = vpop.permute.xlu0 %5800  ;;  %5474 = vrot.lane.b32.xlu0 %v5442_v2, %s13252_s19  ;;  %v5173_v2 = vsel %vm13418_vm6, %v11267_v28, %v11391_v14  ;;  %v13421_v28 = vld [vmem:[#allocation10_spill] sm:$0xff]  ;;  %vm13429_vm6 = vmmov %vm13419_vm0 }
 0xdfc   : > { %v11705_v62 = vsel %vm1031_vm10, %v5801_v35, %v5803_v44  ;;  %v5192_v56 = vmul.f32 %v5173_v2, %v11224_v52 }
 0xdfd   : > { %5845 = vst [vmem:[#allocation2 + $0x300] sm:$0xff] %v11705_v62  ;;  %5354 = vrot.lane.b32.xlu1 %v5319_v3, %s13257_s30  ;;  %v5809_v40 = vpop.permute.xlu1 %5808 }
 0xdfe   : > { %v11712_v59 = vsel %vm1031_vm10, %v5809_v40, %v5811_v11  ;;  %v5182_v40 = vmul.f32 %v5173_v2, %v13421_v28 }
 0xdff   : > { %5849 = vst [vmem:[#allocation2 + $0x320] sm:$0xff] %v11712_v59  ;;  %5470 = vrot.lane.b32.xlu0 %v5440_v13, %s13252_s19  ;;  %v11735_v42 = vpop.permute.xlu0 %5706 }
 0xe01   : > { %5338 = vrot.lane.b32.xlu1 %v5311_v48, %s13257_s30  ;;  %v11718_v4 = vpop.permute.xlu1 %5804  ;;  %v13422_v48 = vld [vmem:[#allocation15_spill] sm:$0xff] }
 0xe02   : > { %v11728_v43 = vsel %vm1031_vm10, %v5803_v44, %v11718_v4  ;;  %v5315_v44 = vmul.f32 %v5303_v34, %v11741_v24  ;;  %v5187_v34 = vmul.f32 %v5173_v2, %v11274_v17  ;;  %v5043_v58 = vsel %vm13423_vm9, %v13422_v48, %v11448_v38  ;;  %v5972_v48 = vld [vmem:[%s13427_s5 + $0x8] sm:$0xff] }
 0xe03   : > { %5466 = vrot.lane.b32.xlu0 %v5438_v33, %s13252_s19  ;;  %v5062_v33 = vmul.f32 %v5043_v58, %v11224_v52  ;;  %vm13433_vm9 = vcmask 891904  }
 0xe05   : > { %5237 = vrot.lane.b32.xlu1 %v5193_v7, %s13255_s18  ;;  %v5705_v31 = vpop.permute.xlu1 %5704  ;;  %v5057_v7 = vmul.f32 %v5043_v58, %v11274_v17 }
 0xe06   : > { %v11745_v19 = vsel %vm13417_vm5, %v5705_v31, %v11735_v42  ;;  %vm13424_vm5 = vcmask 1006592  }
 0xe07   : > { %5464 = vrot.lane.b32.xlu0 %v5437_v63, %s13252_s19  ;;  %v5052_v63 = vmul.f32 %v5043_v58, %v13421_v28 }
 0xe09   : > { %v5703_v11 = vpop.permute.xlu1 %5702 }
 0xe0a   : > { %v11753_v3 = vsel %vm13419_vm0, %v5703_v11, %v5705_v31  ;;  %v4913_v31 = vsel %vm13424_vm5, %v11305_v53, %v11510_v8  ;;  %vm13434_vm5 = vmmov %vm13433_vm9 }
 0xe0b   : > { %5739 = vst [vmem:[#allocation2 + $0x2e0] sm:$0xff] %v11753_v3  ;;  %5346 = vrot.lane.b32.xlu0 %v5315_v44, %s13257_s30  ;;  %v4932_v44 = vmul.f32 %v4913_v31, %v11224_v52  ;;  %v4927_v11 = vmul.f32 %v4913_v31, %v11274_v17  ;;  %v4922_v2 = vmul.f32 %v4913_v31, %v13421_v28  ;;  %s13523_s30 = smov 9  }
 0xe0c   : > { %v11798_v17 = vsel %vm944_vm3, %v11337_v22, %v11656_v0  ;;  %v5188_v31 = vmul.f32 %v11391_v14, %v11741_v24  ;;  %vm13428_vm3 = vmmov %vm13419_vm0  ;;  %vm13430_vm0 = vcmask 818176  }
 0xe0d   : > { %v5697_v39 = vpop.permute.xlu1 %5696 }
 0xe0f   : > { %5235 = vrot.lane.b32.xlu0 %v5192_v56, %s13255_s18  ;;  %v11787_v56 = vsel %vm1007_vm2, %v11302_v45, %v11607_v47  ;;  %v5669_v45 = vmul.f32 %v11798_v17, %v11200_v55  ;;  %vm13425_vm2 = vcmask 154624  }
 0xe10   : > { %v5787_v53 = vmul.f32 %v11787_v56, %v11192_v25  ;;  %v5779_v52 = vmul.f32 %v11787_v56, %v11211_v5 }
 0xe11   : > { %v5695_v35 = vpop.permute.xlu1 %5694 }
 0xe12   : > { %v11761_v13 = vsel %vm13420_vm12, %v5695_v35, %v5697_v39  ;;  %v5540_v35 = vpop.permute.xlu0 %5539  ;;  %vm13432_vm12 = vmmov %vm13428_vm3 }
 0xe13   : > { %5735 = vst [vmem:[#allocation2 + $0x2c0] sm:$0xff] %v11761_v13  ;;  %5225 = vrot.lane.b32.xlu0 %v5187_v34, %s13255_s18  ;;  %v11805_v47 = vsel %vm13425_vm2, %v11330_v1, %v5540_v35  ;;  %v11820_v1 = vld [vmem:[%s13426_s14 + $0x8] sm:$0xff]  ;;  %vm13437_vm2 = vmmov %vm13434_vm5 }
 0xe14   : > { %v5559_v34 = vmul.f32 %v11805_v47, %v11192_v25  ;;  %v5551_v0 = vmul.f32 %v11805_v47, %v11211_v5  ;;  %7777 = vmatprep.mubr.msk.f32.mxu1 %vm2428_vm11, %v11820_v1 }
 0xe17   : > { %5215 = vrot.lane.b32.xlu0 %v5182_v40, %s13255_s18  ;;  %v5441_v40 = vmul.f32 %v11724_v12, %v11200_v55 }
 0xe1b   : > { %5105 = vrot.lane.b32.xlu0 %v5062_v33, %s13256_s23 }
 0xe1f   : > { %5095 = vrot.lane.b32.xlu0 %v5057_v7, %s13256_s23  ;;  %v11832_v7 = vpop.permute.xlu1 %5690 }
 0xe23   : > { %5085 = vrot.lane.b32.xlu0 %v5052_v63, %s13256_s23 }
 0xe27   : > { %4975 = vrot.lane.b32.xlu0 %v4932_v44, %s13269_s0 }
 0xe2b   : > { %4965 = vrot.lane.b32.xlu0 %v4927_v11, %s13269_s0 }
 0xe2f   : > { %4955 = vrot.lane.b32.xlu0 %v4922_v2, %s13269_s0 }
 0xe33   : > { %5822 = vrot.lane.b32.xlu0 %v5787_v53, %s13253_s26 }
 0xe37   : > { %5806 = vrot.lane.b32.xlu0 %v5779_v52, %s13253_s26  ;;  %v5183_v52 = vmul.f32 %v11391_v14, %v11702_v27  ;;  %v5916_v14 = vld [vmem:[#allocation2 + $0x1a8] sm:$0xff] }
 0xe3b   : > { %5700 = vrot.lane.b32.xlu0 %v5669_v45, %s13254_s16  ;;  %v13431_v45 = vld [vmem:[#allocation11_spill] sm:$0xff] }
 0xe3f   : > { %v3922_v28 = vpop.permute.xlu0 %3921  ;;  %5594 = vrot.lane.b32.xlu0 %v5559_v34, %s13267_s24 }
 0xe40   : > { %v3926_v22 = vsel %vm2991_vm4, %v3922_v28, %v11394_v10  ;;  %v5919_v28 = vld [vmem:[#allocation2 + $0x1c0] sm:$0xff] }
 0xe41   : > { %3933 = vrot.lane.b32.xlu1 %v3926_v22, %s13317_s20  ;;  %v5063_v22 = vmul.f32 %v11448_v38, %v11685_v54 }
 0xe43   : > { %5578 = vrot.lane.b32.xlu0 %v5551_v0, %s13267_s24 }
 0xe47   : > { %5472 = vrot.lane.b32.xlu0 %v5441_v40, %s13252_s19  ;;  %v5915_v40 = vld [vmem:[#allocation2 + $0x1a0] sm:$0xff] }
 0xe49   : > { %v3924_v58 = vpop.permute.xlu0 %3923 }
 0xe4a   : > { %v3927_v33 = vsel %vm2991_vm4, %v3924_v58, %v11409_v36 }
 0xe4b   : > { %5981 = vperm.xlu0 %8040, %v5972_v48   ;;  %3935 = vrot.lane.b32.xlu1 %v3927_v33, %s13317_s20  ;;  %v5912_v48 = vld [vmem:[#allocation2 + $0x188] sm:$0xff] }
 0xe4d   : > { %v11835_v63 = vpop.permute.xlu0 %5698 }
 0xe4e   : > { %v11841_v44 = vsel %vm13428_vm3, %v5697_v39, %v11835_v63  ;;  %v5920_v39 = vld [vmem:[#allocation2 + $0x1c8] sm:$0xff]  ;;  %vm13440_vm3 = vmmov %vm13437_vm2 }
 0xe4f   : > { %5227 = vrot.lane.b32.xlu1 %v5188_v31, %s13255_s18  ;;  %v3932_v11 = vpop.permute.xlu1 %3931  ;;  %v5911_v31 = vld [vmem:[#allocation2 + $0x180] sm:$0xff] }
 0xe50   : > { %v3940_v2 = vmax.f32 %v11252_v50, %v3932_v11 }
 0xe51   : > { %v5689_v53 = vpop.permute.xlu0 %5688 }
 0xe52   : > { %v11849_v35 = vsel %vm13429_vm6, %v5689_v53, %v11832_v7  ;;  %7953 = vmatmul.mubr.msk.f32.vlgmr.msra.gmra.mxu0 %vm13430_vm0, %v3940_v2  ;;  %v5058_v2 = vmul.f32 %v11448_v38, %v11741_v24  ;;  %vm13443_vm6 = vmmov %vm13437_vm2 }
 0xe53   : > { %5999 = vmatpush1.msra.mxu0 %v13431_v45  ;;  %5217 = vrot.lane.b32.xlu1 %v5183_v52, %s13255_s18  ;;  %v5591_v34 = vpop.permute.xlu1 %5590  ;;  %v13435_v52 = vld [vmem:[#allocation14_spill] sm:$0xff]  ;;  %vm13445_vm0 = vmmov %vm13437_vm2  ;;  %s13530_s18 = sld [smem:[#allocation38_spill]] }
 0xe54   : > { %6000 = vmatprep.subr.mxu0 %v5920_v39  ;;  %7955 = vmatprep.mubr.msk.f32.mxu0 %vm8136_vm7, %v13294_v61  ;;  %v13436_v39 = vld [vmem:[#allocation6_spill] sm:$0xff] }
 0xe55   : > { %6001 = vmatpush1.msra.mxu0 %v5919_v28  ;;  %v5687_v50 = vpop.permute.xlu0 %5686 }
 0xe56   : > { %v11859_v0 = vsel %vm13432_vm12, %v5687_v50, %v5689_v53  ;;  %6002 = vmatprep.subr.mxu0 %v5916_v14  ;;  %v5053_v50 = vmul.f32 %v11448_v38, %v11702_v27  ;;  %v13438_v14 = vld [vmem:[#allocation16_spill] sm:$0xff]  ;;  %vm13451_vm12 = vcmask 130048  }
 0xe57   : > { %5731 = vst [vmem:[#allocation2 + $0x2a0] sm:$0xff] %v11859_v0  ;;  %6003 = vmatpush1.msra.mxu0 %v5915_v40  ;;  %5107 = vrot.lane.b32.xlu1 %v5063_v22, %s13256_s23  ;;  %v5589_v58 = vpop.permute.xlu1 %5588  ;;  %v13439_v22 = vld [vmem:[#allocation17_spill] sm:$0xff]  ;;  %v4933_v40 = vmul.f32 %v11510_v8, %v11685_v54 }
 0xe58   : > { %6004 = vmatprep.subr.mxu0 %v5912_v48  ;;  %v11864_v33 = vsel %vm13433_vm9, %v5589_v58, %v5591_v34  ;;  %v13441_v48 = vld [vmem:[#allocation19_spill] sm:$0xff]  ;;  %vm13453_vm9 = vmmov %vm13451_vm12 }
 0xe59   : > { %5625 = vst [vmem:[#allocation2 + $0x280] sm:$0xff] %v11864_v33  ;;  %6005 = vmatpush1.msra.mxu0 %v5911_v31  ;;  %v11867_v11 = vpop.permute.xlu0 %5592  ;;  %v13442_v31 = vld [vmem:[#allocation22_spill] sm:$0xff] }
 0xe5a   : > { %v11873_v53 = vsel %vm13434_vm5, %v5591_v34, %v11867_v11  ;;  %6006 = vmatprep.subr.mxu0 %v13435_v52  ;;  %vm13455_vm5 = vmmov %vm13453_vm9 }
 0xe5b   : > { %6007 = vmatpush1.msra.mxu0 %v11420_v26  ;;  %5097 = vrot.lane.b32.xlu1 %v5058_v2, %s13256_s23  ;;  %v11878_v45 = vpop.permute.xlu1 %5584 }
 0xe5c   : > { %6008 = vmatprep.subr.mxu0 %v11434_v23 }
 0xe5d   : > { %6009 = vmatpush1.msra.mxu0 %v13436_v39  ;;  %v5583_v28 = vpop.permute.xlu0 %5582 }
 0xe5e   : > { %v11886_v34 = vsel %vm13437_vm2, %v5583_v28, %v11878_v45  ;;  %6010 = vmatprep.subr.mxu0 %v13438_v14  ;;  %vm13457_vm2 = vmmov %vm13455_vm5 }
 0xe5f   : > { %6011 = vmatpush1.msra.mxu0 %v13439_v22  ;;  %5087 = vrot.lane.b32.xlu1 %v5053_v50, %s13256_s23  ;;  %v5575_v26 = vpop.permute.xlu1 %5574  ;;  %v13447_v50 = vld [vmem:[#allocation29_spill] sm:$0xff] }
 0xe60   : > { %6012 = vmatprep.subr.mxu0 %v11468_v6  ;;  %v13444_v6 = vld [vmem:[#allocation23_spill] sm:$0xff]  ;;  %v13450_v22 = vld [vmem:[#allocation13_spill] sm:$0xff] }
 0xe61   : > { %6013 = vmatpush1.msra.mxu0 %v11481_v51  ;;  %v5581_v23 = vpop.permute.xlu0 %5580 }
 0xe62   : > { %v11896_v38 = vsel %vm13440_vm3, %v5581_v23, %v5583_v28  ;;  %6014 = vmatprep.subr.mxu0 %v11498_v37  ;;  %v4928_v37 = vmul.f32 %v11510_v8, %v11741_v24  ;;  %v4923_v24 = vmul.f32 %v11510_v8, %v11702_v27  ;;  %v13449_v27 = vld [vmem:[#allocation32_spill] sm:$0xff]  ;;  %vm13463_vm3 = vcmask 31744  }
 0xe63   : > { %5621 = vst [vmem:[#allocation2 + $0x260] sm:$0xff] %v11896_v38  ;;  %6015 = vmatpush1.msra.mxu0 %v13441_v48  ;;  %4977 = vrot.lane.b32.xlu1 %v4933_v40, %s13269_s0  ;;  %v5573_v58 = vpop.permute.xlu1 %5572  ;;  %v13452_v40 = vld [vmem:[#allocation8_spill] sm:$0xff] }
 0xe64   : > { %6016 = vmatprep.subr.mxu0 %v13442_v31  ;;  %v11904_v51 = vsel %vm13443_vm6, %v5573_v58, %v5575_v26  ;;  %v5918_v31 = vld [vmem:[#allocation2 + $0x1b8] sm:$0xff]  ;;  %vm13465_vm6 = vmmov %vm13463_vm3 }
 0xe65   : > { %5617 = vst [vmem:[#allocation2 + $0x240] sm:$0xff] %v11904_v51  ;;  %6017 = vmatpush1.msra.mxu0 %v13444_v6  ;;  %v11908_v54 = vpop.permute.xlu0 %5576  ;;  %v5914_v6 = vld [vmem:[#allocation2 + $0x198] sm:$0xff] }
 0xe66   : > { %v11914_v2 = vsel %vm13445_vm0, %v5575_v26, %v11908_v54  ;;  %6018 = vmatprep.subr.mxu0 %v11530_v57  ;;  %v13446_v57 = vld [vmem:[#allocation26_spill] sm:$0xff]  ;;  %vm13467_vm0 = vmmov %vm13463_vm3 }
 0xe67   : > { %6019 = vmatpush1.msra.mxu0 %v11543_v21  ;;  %4967 = vrot.lane.b32.xlu1 %v4928_v37, %s13269_s0  ;;  %v11919_v52 = vpop.permute.xlu1 %5478  ;;  %v5913_v37 = vld [vmem:[#allocation2 + $0x190] sm:$0xff] }
 0xe68   : > { %6020 = vmatprep.subr.mxu0 %v11557_v15  ;;  %v13448_v15 = vld [vmem:[#allocation30_spill] sm:$0xff] }
 0xe69   : > { %6021 = vmatpush1.msra.mxu0 %v11537_v41  ;;  %v5477_v39 = vpop.permute.xlu0 %5476  ;;  %v5783_v41 = vmul.f32 %v11787_v56, %v11200_v55  ;;  %v5673_v56 = vmul.f32 %v11798_v17, %v11192_v25 }
 0xe6a   : > { %v11927_v28 = vsel %vm842_vm13, %v5477_v39, %v11919_v52  ;;  %6022 = vmatprep.subr.mxu0 %v11592_v32 }
 0xe6b   : > { %6023 = vmatpush1.msra.mxu0 %v13446_v57  ;;  %4957 = vrot.lane.b32.xlu1 %v4923_v24, %s13269_s0  ;;  %v5469_v21 = vpop.permute.xlu1 %5468  ;;  %s13520_s0 = smov 10  }
 0xe6c   : > { %6024 = vmatprep.subr.mxu0 %v13447_v50  ;;  %v13462_v50 = vld [vmem:[#allocation24_spill] sm:$0xff] }
 0xe6d   : > { %6025 = vmatpush1.msra.mxu0 %v13448_v15  ;;  %v5475_v14 = vpop.permute.xlu0 %5474 }
 0xe6e   : > { %v5488_v8 = vsel %vm842_vm13, %v5475_v14, %v5477_v39  ;;  %6026 = vmatprep.subr.mxu0 %v13449_v27  ;;  %v13461_v39 = vld [vmem:[#allocation20_spill] sm:$0xff]  ;;  %v13464_v27 = vld [vmem:[#allocation25_spill] sm:$0xff] }
 0xe6f   : > { %5511 = vst [vmem:[#allocation2 + $0x220] sm:$0xff] %v5488_v8  ;;  %6027 = vmatpush1.msra.mxu0 %v11640_v29  ;;  %5814 = vrot.lane.b32.xlu1 %v5783_v41, %s13253_s26  ;;  %v5355_v32 = vpop.permute.xlu1 %5354  ;;  %s13519_s26 = smov 89  }
 0xe70   : > { %6028 = vmatprep.subr.mxu0 %v11654_v60  ;;  %v11943_v26 = vsel %vm775_vm14, %v13450_v22, %v5355_v32  ;;  %5388 = vst.msk [vmem:[#allocation2 + $0x178] sm:$0xff] %vm13451_vm12, %v5355_v32  ;;  %vm13469_vm12 = vcmask 39936  }
 0xe71   : > { %6029 = vmatpush1.msra.mxu0 %v11634_v20  ;;  %v11949_v23 = vpop.permute.xlu0 %5470  ;;  %v5665_v20 = vmul.f32 %v11798_v17, %v11211_v5  ;;  %v13458_v17 = vld [vmem:[#allocation18_spill] sm:$0xff] }
 0xe72   : > { %v5486_v29 = vsel %vm842_vm13, %v5469_v21, %v11949_v23  ;;  %6040 = vmatprep.subr.mxu0 %v11665_v46 }
 0xe73   : > { %6041 = vmatpush2.msra.mxu0 %v11676_v49  ;;  %5708 = vrot.lane.b32.xlu1 %v5673_v56, %s13254_s16  ;;  %v5339_v60 = vpop.permute.xlu1 %5338  ;;  %v5555_v49 = vmul.f32 %v11805_v47, %v11200_v55 }
 0xe74   : > { %6042 = vmatprep.subr.mxu0 %v11695_v9  ;;  %v11959_v48 = vsel %vm775_vm14, %v13452_v40, %v5339_v60  ;;  %5380 = vst.msk [vmem:[#allocation2 + $0x138] sm:$0xff] %vm13453_vm9, %v5339_v60  ;;  %v13454_v9 = vld [vmem:[#allocation12_spill] sm:$0xff]  ;;  %v13468_v60 = vld [vmem:[#allocation27_spill] sm:$0xff]  ;;  %vm13471_vm9 = vmmov %vm13469_vm12 }
 0xe75   : > { %6043 = vmatpush2.msra.mxu0 %v11712_v59  ;;  %v5467_v58 = vpop.permute.xlu0 %5466 }
 0xe76   : > { %v5485_v46 = vsel %vm842_vm13, %v5467_v58, %v5469_v21  ;;  %6044 = vmatprep.subr.mxu0 %v11728_v43  ;;  %v13456_v43 = vld [vmem:[#allocation9_spill] sm:$0xff] }
 0xe77   : > { %5507 = vst [vmem:[#allocation2 + $0x200] sm:$0xff] %v5485_v46  ;;  %6045 = vmatpush2.msra.mxu0 %v11705_v62  ;;  %5692 = vrot.lane.b32.xlu1 %v5665_v20, %s13254_s16  ;;  %v5445_v62 = vmul.f32 %v11724_v12, %v11192_v25  ;;  %v5971_v25 = vld [vmem:[%s13427_s5] sm:$0xff]  ;;  %v5238_v12 = vpop.permute.xlu1 %5237  ;;  %v13470_v20 = vld [vmem:[#allocation31_spill] sm:$0xff] }
 0xe78   : > { %6046 = vmatprep.subr.mxu0 %v11745_v19 }
 0xe79   : > { %6047 = vmatpush2.msra.mxu0 %v11753_v3  ;;  %v5465_v5 = vpop.permute.xlu0 %5464 }
 0xe7a   : > { %v5484_v59 = vsel %vm842_vm13, %v13454_v9, %v5465_v5  ;;  %5506 = vst.msk [vmem:[#allocation2 + $0x1f8] sm:$0xff] %vm13455_vm5, %v5465_v5  ;;  %6048 = vmatprep.subr.mxu0 %v11841_v44  ;;  %vm13472_vm5 = vmmov %vm13471_vm9 }
 0xe7b   : > { %6049 = vmatpush2.msra.mxu0 %v11761_v13  ;;  %5586 = vrot.lane.b32.xlu1 %v5555_v49, %s13267_s24  ;;  %v5902_v15 = vld [vmem:[#allocation2 + $0x138] sm:$0xff] }
 0xe7c   : > { %6050 = vmatprep.subr.mxu0 %v11849_v35  ;;  %v5922_v35 = vld [vmem:[#allocation2 + $0x1d8] sm:$0xff] }
 0xe7d   : > { %6051 = vmatpush2.msra.mxu0 %v11859_v0  ;;  %v5347_v55 = vpop.permute.xlu0 %5346  ;;  %v5921_v0 = vld [vmem:[#allocation2 + $0x1d0] sm:$0xff] }
 0xe7e   : > { %v5361_v19 = vsel %vm775_vm14, %v13456_v43, %v5347_v55  ;;  %5384 = vst.msk [vmem:[#allocation2 + $0x158] sm:$0xff] %vm13457_vm2, %v5347_v55  ;;  %6052 = vmatprep.subr.mxu0 %v11873_v53  ;;  %vm13459_vm14 = vmmov %vm13457_vm2  ;;  %v5973_v53 = vld [vmem:[%s13427_s5 + $0x10] sm:$0xff]  ;;  %s13529_s5 = smov 119  }
 0xe7f   : > { %6053 = vmatpush2.msra.mxu0 %v11864_v33  ;;  %5480 = vrot.lane.b32.xlu1 %v5445_v62, %s13252_s19 }
 0xe80   : > { %6054 = vmatprep.subr.mxu0 %v11886_v34  ;;  %v13460_v34 = vld [vmem:[#allocation21_spill] sm:$0xff] }
 0xe81   : > { %6055 = vmatpush2.msra.mxu0 %v11896_v38  ;;  %v5236_v3 = vpop.permute.xlu0 %5235  ;;  %v5926_v13 = vld [vmem:[#allocation2 + $0x1f8] sm:$0xff] }
 0xe82   : > { %v5249_v47 = vsel %vm711_vm15, %v13458_v17, %v5236_v3  ;;  %v5250_v44 = vsel %vm711_vm15, %v5236_v3, %v5238_v12  ;;  %6056 = vmatprep.subr.mxu0 %v11914_v2  ;;  %6081 = vmatprep.subr.mxu1 %v5926_v13  ;;  %v12101_v13 = vld [vmem:[%s13426_s14] sm:$0xff]  ;;  %v12108_v17 = vld [vmem:[%s13426_s14 + $0x18] sm:$0xff] }
 0xe83   : > { %5274 = vst.msk [vmem:[#allocation2 + $0x118] sm:$0xff] %vm13459_vm14, %v5250_v44  ;;  %6057 = vmatpush2.msra.mxu0 %v11904_v51  ;;  %5976 = vperm.xlu1 %8039, %v5971_v25   ;;  %v5917_v51 = vld [vmem:[#allocation2 + $0x1b0] sm:$0xff]  ;;  %vm13473_vm14 = vmmov %vm13457_vm2  ;;  %v12124_v44 = vld [vmem:[%s13426_s14 + $0x28] sm:$0xff] }
 0xe84   : > { %6058 = vmatprep.subr.mxu0 %v11927_v28  ;;  %6082 = vmatpush1.msra.mxu1 %v5484_v59  ;;  %v5910_v28 = vld [vmem:[#allocation2 + $0x178] sm:$0xff] }
 0xe85   : > { %6059 = vmatpush2.msra.mxu0 %v5488_v8  ;;  %6083 = vmatprep.subr.mxu1 %v5922_v35  ;;  %v12001_v33 = vpop.permute.xlu0 %5225  ;;  %v5906_v57 = vld [vmem:[#allocation2 + $0x158] sm:$0xff] }
 0xe86   : > { %6084 = vmatpush1.msra.mxu1 %v5921_v0  ;;  %v12009_v38 = vsel %vm711_vm15, %v13460_v34, %v12001_v33  ;;  %6060 = vmatprep.subr.mxu0 %v5486_v29  ;;  %v12133_v0 = vld [vmem:[%s13426_s14 + $0x20] sm:$0xff] }
 0xe87   : > { %6061 = vmatpush2.msra.mxu0 %v5485_v46  ;;  %6085 = vmatprep.subr.mxu1 %v5918_v31 }
 0xe88   : > { %5986 = vperm.xlu1 %8039, %v5973_v53   ;;  %6086 = vmatpush1.msra.mxu1 %v5917_v51 }
 0xe89   : > { %6087 = vmatprep.subr.mxu1 %v5914_v6  ;;  %v12011_v2 = vpop.permute.xlu0 %5215 }
 0xe8a   : > { %6088 = vmatpush1.msra.mxu1 %v5913_v37  ;;  %v12016_v24 = vsel %vm711_vm15, %v13461_v39, %v12011_v2  ;;  %v5898_v14 = vld [vmem:[#allocation2 + $0x118] sm:$0xff] }
 0xe8b   : > { %6089 = vmatprep.subr.mxu1 %v5910_v28 }
 0xe8c   : > { %6090 = vmatpush1.msra.mxu1 %v11943_v26  ;;  %v13466_v26 = vld [vmem:[#allocation28_spill] sm:$0xff] }
 0xe8d   : > { %6091 = vmatprep.subr.mxu1 %v5906_v57  ;;  %v12019_v21 = vpop.permute.xlu0 %5105 }
 0xe8e   : > { %v12024_v41 = vsel %vm13463_vm3, %v13462_v50, %v12019_v21  ;;  %6092 = vmatpush1.msra.mxu1 %v5361_v19  ;;  %vm13474_vm3 = vcmask 883712  }
 0xe8f   : > { %6093 = vmatprep.subr.mxu1 %v5902_v15 }
 0xe90   : > { %6094 = vmatpush1.msra.mxu1 %v11959_v48 }
 0xe91   : > { %6095 = vmatprep.subr.mxu1 %v5898_v14  ;;  %v5096_v8 = vpop.permute.xlu0 %5095 }
 0xe92   : > { %v12029_v32 = vsel %vm13465_vm6, %v13464_v27, %v5096_v8  ;;  %6096 = vmatpush1.msra.mxu1 %v5249_v47  ;;  %vm13475_vm6 = vmmov %vm13457_vm2 }
 0xe93   : > { %5139 = vst [vmem:[#allocation2 + $0x90] sm:$0xff] %v12029_v32 }
 0xe95   : > { %v12032_v22 = vpop.permute.xlu0 %5085 }
 0xe96   : > { %v12037_v56 = vsel %vm13467_vm0, %v13466_v26, %v12032_v22  ;;  %vm13476_vm0 = vcmask 891904  }
 0xe99   : > { %v12039_v29 = vpop.permute.xlu0 %4975 }
 0xe9a   : > { %v12044_v40 = vsel %vm13469_vm12, %v13468_v60, %v12039_v29  ;;  %vm13477_vm12 = vmmov %vm13457_vm2 }
 0xe9d   : > { %v12046_v48 = vpop.permute.xlu0 %4965 }
 0xe9e   : > { %v12051_v58 = vsel %vm13471_vm9, %v13470_v20, %v12046_v48  ;;  %vm13478_vm9 = vmmov %vm13476_vm0 }
 0xea1   : > { %v12053_v46 = vpop.permute.xlu0 %4955 }
 0xea2   : > { %v12058_v49 = vsel %vm13472_vm5, %v11648_v16, %v12053_v46  ;;  %vm13479_vm5 = vmmov %vm13457_vm2 }
 0xea5   : > { %v5823_v5 = vpop.permute.xlu0 %5822 }
 0xea6   : > { %v12062_v9 = vsel %vm1031_vm10, %v11644_v18, %v5823_v5  ;;  %5856 = vst.msk [vmem:[#allocation2 + $0x358] sm:$0xff] %vm13457_vm2, %v5823_v5  ;;  %vm13480_vm2 = vcmask 818176  }
 0xea9   : > { %v5807_v59 = vpop.permute.xlu0 %5806 }
 0xeaa   : > { %v12067_v62 = vsel %vm1031_vm10, %v11718_v4, %v5807_v59  ;;  %5848 = vst.msk [vmem:[#allocation2 + $0x318] sm:$0xff] %vm13473_vm14, %v5807_v59  ;;  %vm13481_vm14 = vmmov %vm13479_vm5 }
 0xead   : > { %v5701_v55 = vpop.permute.xlu0 %5700 }
 0xeae   : > { %v12072_v43 = vsel %vm13474_vm3, %v11835_v63, %v5701_v55  ;;  %5738 = vst.msk [vmem:[#allocation2 + $0x2d8] sm:$0xff] %vm13475_vm6, %v5701_v55  ;;  %vm13482_vm3 = vmmov %vm13480_vm2 }
 0xeaf   : > { %vm13483_vm6 = vmmov %vm13479_vm5 }
 0xeb1   : > { %v5595_v16 = vpop.permute.xlu0 %5594 }
 0xeb2   : > { %v12077_v18 = vsel %vm13476_vm0, %v11867_v11, %v5595_v16  ;;  %5628 = vst.msk [vmem:[#allocation2 + $0x298] sm:$0xff] %vm13477_vm12, %v5595_v16  ;;  %vm13484_vm0 = vmmov %vm13479_vm5 }
 0xeb3   : > { %v3934_v19 = vpop.permute.xlu1 %3933  ;;  %vm13486_vm12 = vmmov %vm13484_vm0 }
 0xeb4   : > { %v3941_v4 = vmax.f32 %v11394_v10, %v3934_v19 }
 0xeb5   : > { %v5579_v25 = vpop.permute.xlu0 %5578 }
 0xeb6   : > { %v12083_v12 = vsel %vm13478_vm9, %v11908_v54, %v5579_v25  ;;  %5620 = vst.msk [vmem:[#allocation2 + $0x258] sm:$0xff] %vm13479_vm5, %v5579_v25  ;;  %7956 = vmatmul.mubr.msk.f32.gmra.mxu0 %vm13480_vm2, %v3941_v4  ;;  %vm13488_vm5 = vmmov %vm13484_vm0 }
 0xeb7   : > { %7958 = vmatprep.mubr.msk.f32.mxu0 %vm8136_vm7, %v13294_v61 }
 0xeb9   : > { %v5473_v63 = vpop.permute.xlu0 %5472 }
 0xeba   : > { %v12091_v11 = vsel %vm842_vm13, %v11949_v23, %v5473_v63  ;;  %5510 = vst.msk [vmem:[#allocation2 + $0x218] sm:$0xff] %vm13481_vm14, %v5473_v63  ;;  %vm13490_vm14 = vmmov %vm13484_vm0 }
 0xebd   : > { %v3936_v10 = vpop.permute.xlu1 %3935 }
 0xebe   : > { %v3942_v3 = vmax.f32 %v11409_v36, %v3936_v10 }
 0xec0   : > { %7959 = vmatmul.mubr.msk.f32.gmra.mxu0 %vm13482_vm3, %v3942_v3  ;;  %vm13491_vm3 = vcmask 39936  }
 0xec1   : > { %v5228_v54 = vpop.permute.xlu1 %5227  ;;  %7774 = vmatprep.mubr.msk.f32.mxu0 %vm2428_vm11, %v11820_v1  ;;  %v12117_v1 = vld [vmem:[%s13426_s14 + $0x10] sm:$0xff]  ;;  %s13526_s14 = smov 38  }
 0xec2   : > { %v5246_v23 = vsel %vm711_vm15, %v12001_v33, %v5228_v54 }
 0xec3   : > { %5270 = vst.msk [vmem:[#allocation2 + $0xf8] sm:$0xff] %vm13483_vm6, %v5246_v23  ;;  %vm13492_vm6 = vmmov %vm13484_vm0 }
 0xec4   : > { %6063 = vmatmul.mubr.f32.vlgmr.msra.gmra.mxu0 %v12101_v13 }
 0xec5   : > { %v5218_v36 = vpop.permute.xlu1 %5217  ;;  %7775 = vmatprep.mubr.msk.f32.mxu0 %vm2428_vm11, %v12108_v17 }
 0xec6   : > { %v5242_v47 = vsel %vm711_vm15, %v12011_v2, %v5218_v36  ;;  %vm13485_vm15 = vcmask 31744   ;;  %v5982_v10 = vpop.permute.xlu0 %5981 }
 0xec7   : > { %5266 = vst.msk [vmem:[#allocation2 + $0xd8] sm:$0xff] %vm13484_vm0, %v5242_v47  ;;  %vm13487_vm9 = vmmov %vm13485_vm15 }
 0xec8   : > { %6069 = vmatmul.mubr.f32.gmra.mxu0 %v12117_v1  ;;  %vm13489_vm2 = vmmov %vm13487_vm9 }
 0xec9   : > { %v5108_v35 = vpop.permute.xlu1 %5107  ;;  %7776 = vmatprep.mubr.msk.f32.mxu0 %vm2428_vm11, %v12124_v44  ;;  %vm13493_vm0 = vmmov %vm13491_vm3 }
 0xeca   : > { %v5120_v33 = vsel %vm13485_vm15, %v12019_v21, %v5108_v35  ;;  %v5894_v53 = vld [vmem:[#allocation2 + $0xf8] sm:$0xff]  ;;  %vm13494_vm15 = vmmov %vm13488_vm5 }
 0xecb   : > { %5144 = vst.msk [vmem:[#allocation2 + $0xb8] sm:$0xff] %vm13486_vm12, %v5120_v33  ;;  %6097 = vmatprep.subr.mxu1 %v5894_v53  ;;  %vm13495_vm12 = vmmov %vm13493_vm0 }
 0xecc   : > { %6075 = vmatmul.mubr.f32.gmra.mxu0 %v12133_v0  ;;  %6098 = vmatpush1.msra.mxu1 %v12009_v38 }
 0xecd   : > { %v5098_v34 = vpop.permute.xlu1 %5097 }
 0xece   : > { %v5116_v31 = vsel %vm13487_vm9, %v5096_v8, %v5098_v34  ;;  %v5890_v51 = vld [vmem:[#allocation2 + $0xd8] sm:$0xff]  ;;  %vm13496_vm9 = vmmov %vm13488_vm5 }
 0xecf   : > { %5140 = vst.msk [vmem:[#allocation2 + $0x98] sm:$0xff] %vm13488_vm5, %v5116_v31  ;;  %6099 = vmatprep.subr.mxu1 %v5890_v51 }
 0xed0   : > { %6100 = vmatpush1.msra.mxu1 %v12016_v24 }
 0xed1   : > { %v5088_v6 = vpop.permute.xlu1 %5087 }
 0xed2   : > { %v5112_v37 = vsel %vm13489_vm2, %v12032_v22, %v5088_v6  ;;  %v5886_v2 = vld [vmem:[#allocation2 + $0xb8] sm:$0xff]  ;;  %vm13497_vm2 = vcmask 883712  }
 0xed3   : > { %5136 = vst.msk [vmem:[#allocation2 + $0x78] sm:$0xff] %vm13490_vm14, %v5112_v37  ;;  %6101 = vmatprep.subr.mxu1 %v5886_v2  ;;  %vm13498_vm14 = vmmov %vm13488_vm5 }
 0xed4   : > { %6102 = vmatpush1.msra.mxu1 %v12024_v41 }
 0xed5   : > { %v4978_v38 = vpop.permute.xlu1 %4977 }
 0xed6   : > { %v4990_v39 = vsel %vm13491_vm3, %v12039_v29, %v4978_v38  ;;  %v5882_v28 = vld [vmem:[#allocation2 + $0x98] sm:$0xff]  ;;  %vm13500_vm3 = vmmov %vm13488_vm5 }
 0xed7   : > { %5014 = vst.msk [vmem:[#allocation2 + $0x58] sm:$0xff] %vm13492_vm6, %v4990_v39  ;;  %6103 = vmatprep.subr.mxu1 %v5882_v28  ;;  %vm13501_vm6 = vcmask 891904  }
 0xed8   : > { %6104 = vmatpush1.msra.mxu1 %v12029_v32 }
 0xed9   : > { %v4968_v24 = vpop.permute.xlu1 %4967 }
 0xeda   : > { %v4986_v57 = vsel %vm13493_vm0, %v12046_v48, %v4968_v24  ;;  %v5878_v21 = vld [vmem:[#allocation2 + $0x78] sm:$0xff]  ;;  %vm13502_vm0 = vmmov %vm13500_vm3 }
 0xedb   : > { %5010 = vst.msk [vmem:[#allocation2 + $0x38] sm:$0xff] %vm13494_vm15, %v4986_v57  ;;  %6105 = vmatprep.subr.mxu1 %v5878_v21  ;;  %vm13503_vm15 = vmmov %vm13502_vm0 }
 0xedc   : > { %6106 = vmatpush1.msra.mxu1 %v12037_v56  ;;  %v5970_v56 = vld [vmem:[#allocation2 + $0x358] sm:$0xff] }
 0xedd   : > { %v4958_v50 = vpop.permute.xlu1 %4957 }
 0xede   : > { %v4982_v41 = vsel %vm13495_vm12, %v12053_v46, %v4958_v50  ;;  %v5874_v15 = vld [vmem:[#allocation2 + $0x58] sm:$0xff]  ;;  %vm13505_vm12 = vmmov %vm13497_vm2 }
 0xedf   : > { %5006 = vst.msk [vmem:[#allocation2 + $0x18] sm:$0xff] %vm13496_vm9, %v4982_v41  ;;  %6107 = vmatprep.subr.mxu1 %v5874_v15 }
 0xee0   : > { %6108 = vmatpush1.msra.mxu1 %v12044_v40 }
 0xee1   : > { %v5815_v14 = vpop.permute.xlu1 %5814 }
 0xee2   : > { %v5829_v8 = vsel %vm1031_vm10, %v11669_v30, %v5815_v14  ;;  %5852 = vst.msk [vmem:[#allocation2 + $0x338] sm:$0xff] %vm13488_vm5, %v5815_v14  ;;  %v5870_v27 = vld [vmem:[#allocation2 + $0x38] sm:$0xff]  ;;  %vm13499_vm10 = vmmov %vm13497_vm2 }
 0xee3   : > { %6109 = vmatprep.subr.mxu1 %v5870_v27 }
 0xee4   : > { %6110 = vmatpush1.msra.mxu1 %v12051_v58 }
 0xee5   : > { %v5709_v32 = vpop.permute.xlu1 %5708 }
 0xee6   : > { %v5718_v22 = vsel %vm13497_vm2, %v11735_v42, %v5709_v32  ;;  %5742 = vst.msk [vmem:[#allocation2 + $0x2f8] sm:$0xff] %vm13498_vm14, %v5709_v32  ;;  %v5866_v26 = vld [vmem:[#allocation2 + $0x18] sm:$0xff] }
 0xee7   : > { %6111 = vmatprep.subr.mxu1 %v5866_v26  ;;  %v5962_v42 = vld [vmem:[#allocation2 + $0x318] sm:$0xff] }
 0xee8   : > { %6112 = vmatpush1.msra.mxu1 %v12058_v49 }
 0xee9   : > { %6123 = vmatprep.subr.mxu1 %v5970_v56  ;;  %v5693_v29 = vpop.permute.xlu1 %5692  ;;  %v5966_v30 = vld [vmem:[#allocation2 + $0x338] sm:$0xff] }
 0xeea   : > { %v5712_v60 = vsel %vm13499_vm10, %v11832_v7, %v5693_v29  ;;  %5734 = vst.msk [vmem:[#allocation2 + $0x2b8] sm:$0xff] %vm13500_vm3, %v5693_v29  ;;  %6124 = vmatpush2.msra.mxu1 %v12062_v9  ;;  %v5954_v7 = vld [vmem:[#allocation2 + $0x2d8] sm:$0xff]  ;;  %vm13511_vm10 = vmmov %vm13502_vm0 }
 0xeeb   : > { %6125 = vmatprep.subr.mxu1 %v5966_v30  ;;  %v5938_v9 = vld [vmem:[#allocation2 + $0x258] sm:$0xff]  ;;  %vm13512_vm3 = vmmov %vm13502_vm0 }
 0xeec   : > { %6126 = vmatpush2.msra.mxu1 %v5829_v8 }
 0xeed   : > { %6127 = vmatprep.subr.mxu1 %v5962_v42  ;;  %v5587_v40 = vpop.permute.xlu1 %5586  ;;  %v5958_v48 = vld [vmem:[#allocation2 + $0x2f8] sm:$0xff] }
 0xeee   : > { %v5601_v20 = vsel %vm13501_vm6, %v11878_v45, %v5587_v40  ;;  %5624 = vst.msk [vmem:[#allocation2 + $0x278] sm:$0xff] %vm13502_vm0, %v5587_v40  ;;  %6128 = vmatpush2.msra.mxu1 %v12067_v62  ;;  %v5946_v45 = vld [vmem:[#allocation2 + $0x298] sm:$0xff] }
 0xeef   : > { %6129 = vmatprep.subr.mxu1 %v5958_v48 }
 0xef0   : > { %6130 = vmatpush2.msra.mxu1 %v5718_v22 }
 0xef1   : > { %6131 = vmatprep.subr.mxu1 %v5954_v7  ;;  %v5481_v58 = vpop.permute.xlu1 %5480  ;;  %v5950_v46 = vld [vmem:[#allocation2 + $0x2b8] sm:$0xff] }
 0xef2   : > { %v5490_v49 = vsel %vm842_vm13, %v11919_v52, %v5481_v58  ;;  %5514 = vst.msk [vmem:[#allocation2 + $0x238] sm:$0xff] %vm13503_vm15, %v5481_v58  ;;  %6132 = vmatpush2.msra.mxu1 %v12072_v43  ;;  %v5930_v52 = vld [vmem:[#allocation2 + $0x218] sm:$0xff] }
 0xef3   : > { %6133 = vmatprep.subr.mxu1 %v5950_v46 }
 0xef4   : > { %6134 = vmatpush2.msra.mxu1 %v5712_v60 }
 0xef5   : > { %6135 = vmatprep.subr.mxu1 %v5946_v45  ;;  %v5942_v5 = vld [vmem:[#allocation2 + $0x278] sm:$0xff] }
 0xef6   : > { %6136 = vmatpush2.msra.mxu1 %v12077_v18 }
 0xef7   : > { %6137 = vmatprep.subr.mxu1 %v5942_v5 }
 0xef8   : > { %6138 = vmatpush2.msra.mxu1 %v5601_v20 }
 0xef9   : > { %6139 = vmatprep.subr.mxu1 %v5938_v9  ;;  %v5934_v59 = vld [vmem:[#allocation2 + $0x238] sm:$0xff] }
 0xefa   : > { %6140 = vmatpush2.msra.mxu1 %v12083_v12 }
 0xefb   : > { %6141 = vmatprep.subr.mxu1 %v5934_v59 }
 0xefc   : > { %6142 = vmatpush2.msra.mxu1 %v5490_v49 }
 0xefd   : > { %6143 = vmatprep.subr.mxu1 %v5930_v52 }
 0xefe   : > { %6144 = vmatpush2.msra.mxu1 %v12091_v11  ;;  %v5977_v4 = vpop.permute.xlu1 %5976 }
 0xeff   : > { %6146 = vmatmul.mubr.f32.vlgmr.msra.gmra.mxu1 %v12101_v13  ;;  %6471 = vmatprep.subr.mxu1 %v13294_v61 }
 0xf00   : > { %7778 = vmatprep.mubr.msk.f32.mxu1 %vm2428_vm11, %v12108_v17 }
 0xf03   : > { %6152 = vmatmul.mubr.f32.gmra.mxu1 %v12117_v1  ;;  %v5987_v36 = vpop.permute.xlu1 %5986 }
 0xf04   : > { %7779 = vmatprep.mubr.msk.f32.mxu1 %vm2428_vm11, %v12124_v44 }
 0xf07   : > { %6158 = vmatmul.mubr.f32.gmra.mxu1 %v12133_v0 }
 0xf12   : > { %v12190_v62 = vpop.f32.mrf.mxu0 }
 0xf14   : > { %v7954_v55 = vpop.f32.mrf.mxu0 }
 0xf76   : > { %v12192_v43 = vpop.f32.mrf.mxu0 }
 0xf78   : > { %v7957_v16 = vpop.f32.mrf.mxu0 }
 0xf79   : > { %v6363_v16 = vld [vmem:[%s13082_s11 + $0xf8] sm:$0xff] }
 0xf7a   : > { %7869 = vmatprep.subr.mxu0 %v6363_v16  ;;  %v6368_v16 = vld [vmem:[%s13082_s11 + $0x120] sm:$0xff] }
 0xf80   : > { %v12194_v18 = vpop.f32.mrf.mxu0 }
 0xf82   : > { %v7960_v19 = vpop.f32.mrf.mxu0 }
 0xf83   : > { %v6379_v19 = vld [vmem:[%s13082_s11 + $0x178] sm:$0xff] }
 0xf84   : > { %v6064_v25 = vpop.f32.mrf.mxu0  ;;  %6472 = vmatpush1.msra.mxu1 %v6379_v19  ;;  %v6336_v19 = vld [vmem:[%s13082_s11 + $0x20] sm:$0xff] }
 0xf85   : > { %v6065_v12 = vadd.f32 %v6064_v25, %v5977_v4  ;;  %v6362_v25 = vld [vmem:[%s13082_s11 + $0xf0] sm:$0xff]  ;;  %6473 = vmatprep.subr.mxu1 %v13294_v61 }
 0xf86   : > { %v6066_v63 = vpop.f32.mrf.mxu0 }
 0xf87   : > { %v6164_v11 = vmax.f32 %v6065_v12, 0.0  ;;  %v12197_v23 = vadd.f32 %v6066_v63, %v5977_v4  ;;  %v6378_v12 = vld [vmem:[%s13082_s11 + $0x170] sm:$0xff] }
 0xf88   : > { %v6070_v3 = vpop.f32.mrf.mxu0  ;;  %v6346_v63 = vld [vmem:[%s13082_s11 + $0x70] sm:$0xff]  ;;  %6474 = vmatpush1.msra.mxu1 %v6378_v12  ;;  %v6335_v12 = vld [vmem:[%s13082_s11 + $0x18] sm:$0xff] }
 0xf89   : > { %v6071_v54 = vadd.f32 %v6070_v3, %v5982_v10  ;;  %6176 = vrot.lane.b32.xlu0 %v6164_v11, %s13251_s25  ;;  %v6165_v44 = vmax.f32 %v12197_v23, 0.0  ;;  %v6345_v3 = vld [vmem:[%s13082_s11 + $0x68] sm:$0xff]  ;;  %6475 = vmatprep.subr.mxu1 %v13294_v61 }
 0xf8a   : > { %v6072_v13 = vpop.f32.mrf.mxu0 }
 0xf8b   : > { %v6168_v17 = vmax.f32 %v6071_v54, 0.0  ;;  %v12202_v35 = vadd.f32 %v6072_v13, %v5982_v10  ;;  %v6360_v54 = vld [vmem:[%s13082_s11 + $0xe0] sm:$0xff] }
 0xf8c   : > { %v6076_v1 = vpop.f32.mrf.mxu0  ;;  %v6376_v13 = vld [vmem:[%s13082_s11 + $0x160] sm:$0xff] }
 0xf8d   : > { %v6077_v47 = vadd.f32 %v6076_v1, %v5987_v36  ;;  %6178 = vrot.lane.b32.xlu1 %v6168_v17, %s13251_s25  ;;  %6197 = vrot.lane.b32.xlu0 %v6164_v11, %s13252_s19  ;;  %v6169_v53 = vmax.f32 %v12202_v35, 0.0  ;;  %v6373_v35 = vld [vmem:[%s13082_s11 + $0x148] sm:$0xff] }
 0xf8e   : > { %v6078_v33 = vpop.f32.mrf.mxu0 }
 0xf8f   : > { %v6172_v0 = vmax.f32 %v6077_v47, 0.0  ;;  %v12209_v34 = vadd.f32 %v6078_v33, %v5987_v36  ;;  %v6359_v47 = vld [vmem:[%s13082_s11 + $0xd8] sm:$0xff] }
 0xf90   : > { %v6343_v33 = vld [vmem:[%s13082_s11 + $0x58] sm:$0xff] }
 0xf91   : > { %6199 = vrot.lane.b32.xlu1 %v6165_v44, %s13252_s19  ;;  %6180 = vrot.lane.b32.xlu0 %v6172_v0, %s13251_s25  ;;  %v6173_v31 = vmax.f32 %v12209_v34, 0.0 }
 0xf95   : > { %6205 = vrot.lane.b32.xlu1 %v6168_v17, %s13252_s19  ;;  %6207 = vrot.lane.b32.xlu0 %v6169_v53, %s13252_s19 }
 0xf99   : > { %6213 = vrot.lane.b32.xlu1 %v6172_v0, %s13252_s19  ;;  %6215 = vrot.lane.b32.xlu0 %v6173_v31, %s13252_s19 }
 0xfbf   : > { %v6147_v51 = vpop.f32.mrf.mxu1 }
 0xfc0   : > { %v12220_v37 = vadd.f32 %v6147_v51, %v5977_v4 }
 0xfc1   : > { %v6149_v6 = vpop.f32.mrf.mxu1 }
 0xfc2   : > { %v6166_v39 = vmax.f32 %v12220_v37, 0.0  ;;  %v12231_v57 = vadd.f32 %v6149_v6, %v5977_v4  ;;  %v6347_v4 = vld [vmem:[%s13082_s11 + $0x78] sm:$0xff]  ;;  %v6358_v6 = vld [vmem:[%s13082_s11 + $0xd0] sm:$0xff] }
 0xfc3   : > { %v6153_v2 = vpop.f32.mrf.mxu1  ;;  %7870 = vmatpush3.msra.mxu0 %v6347_v4  ;;  %v6351_v4 = vld [vmem:[%s13082_s11 + $0x98] sm:$0xff] }
 0xfc4   : > { %v12222_v38 = vadd.f32 %v6153_v2, %v5982_v10  ;;  %v6167_v50 = vmax.f32 %v12231_v57, 0.0  ;;  %7871 = vmatprep.subr.mxu0 %v6362_v25  ;;  %v6374_v2 = vld [vmem:[%s13082_s11 + $0x150] sm:$0xff]  ;;  %v6367_v25 = vld [vmem:[%s13082_s11 + $0x118] sm:$0xff] }
 0xfc5   : > { %v6155_v21 = vpop.f32.mrf.mxu1  ;;  %7872 = vmatpush3.msra.mxu0 %v6346_v63 }
 0xfc6   : > { %v6170_v28 = vmax.f32 %v12222_v38, 0.0  ;;  %v12234_v41 = vadd.f32 %v6155_v21, %v5982_v10  ;;  %v6377_v10 = vld [vmem:[%s13082_s11 + $0x168] sm:$0xff]  ;;  %v6342_v21 = vld [vmem:[%s13082_s11 + $0x50] sm:$0xff] }
 0xfc7   : > { %v6159_v14 = vpop.f32.mrf.mxu1  ;;  %6476 = vmatpush1.msra.mxu1 %v6377_v10  ;;  %v6366_v10 = vld [vmem:[%s13082_s11 + $0x110] sm:$0xff] }
 0xfc8   : > { %v8066_v24 = vpack.i.bf16 %v6170_v28, %v6166_v39  ;;  %v6171_v27 = vmax.f32 %v12234_v41, 0.0  ;;  %v12241_v32 = vadd.f32 %v6159_v14, %v5987_v36  ;;  %6477 = vmatprep.subr.mxu1 %v13294_v61 }
 0xfc9   : > { %v6161_v29 = vpop.f32.mrf.mxu1  ;;  %6478 = vmatpush1.msra.mxu1 %v6376_v13  ;;  %v6365_v13 = vld [vmem:[%s13082_s11 + $0x108] sm:$0xff] }
 0xfca   : > { %8067 = vrot.lane.b32.xlu1 %v8066_v24, %s13252_s19  ;;  %v6174_v30 = vmax.f32 %v12241_v32, 0.0  ;;  %v12250_v40 = vadd.f32 %v6161_v29, %v5987_v36  ;;  %v6344_v36 = vld [vmem:[%s13082_s11 + $0x60] sm:$0xff]  ;;  %6479 = vmatprep.subr.mxu1 %v13294_v61  ;;  %v6371_v29 = vld [vmem:[%s13082_s11 + $0x138] sm:$0xff] }
 0xfcc   : > { %v6175_v46 = vmax.f32 %v12250_v40, 0.0 }
 0xffb   : > { %v6177_v15 = vpop.permute.xlu0 %6176 }
 0xffc   : > { %v6182_v8 = vsel %vm504_vm1, %v6177_v15, %v6167_v50  ;;  %v6357_v15 = vld [vmem:[%s13082_s11 + $0xc8] sm:$0xff] }
 0xffd   : > { %6203 = vrot.lane.b32.xlu0 %v6182_v8, %s13252_s19  ;;  %v6356_v8 = vld [vmem:[%s13082_s11 + $0xc0] sm:$0xff] }
 0xfff   : > { %v6198_v22 = vpop.permute.xlu0 %6197  ;;  %v6179_v26 = vpop.permute.xlu1 %6178 }
0x1000   : > { %v6183_v56 = vsel %vm504_vm1, %v6179_v26, %v6171_v27  ;;  %v6340_v26 = vld [vmem:[%s13082_s11 + $0x40] sm:$0xff] }
0x1001   : > { %6211 = vrot.lane.b32.xlu1 %v6183_v56, %s13252_s19  ;;  %v6355_v56 = vld [vmem:[%s13082_s11 + $0xb8] sm:$0xff] }
0x1003   : > { %v6181_v60 = vpop.permute.xlu0 %6180  ;;  %v12248_v42 = vpop.permute.xlu1 %6199 }
0x1004   : > { %v6221_v48 = vsel %vm842_vm13, %v6198_v22, %v12248_v42  ;;  %v6184_v5 = vsel %vm504_vm1, %v6181_v60, %v6175_v46  ;;  %v6372_v22 = vld [vmem:[%s13082_s11 + $0x140] sm:$0xff]  ;;  %v6339_v60 = vld [vmem:[%s13082_s11 + $0x38] sm:$0xff] }
0x1005   : > { %v12254_v20 = vmax.f32 %v6164_v11, %v6221_v48  ;;  %6217 = vrot.lane.b32.xlu1 %v6174_v30, %s13252_s19  ;;  %v6361_v11 = vld [vmem:[%s13082_s11 + $0xe8] sm:$0xff]  ;;  %v6354_v48 = vld [vmem:[%s13082_s11 + $0xb0] sm:$0xff] }
0x1006   : > { %7873 = vmatprep.subr.mxu0 %v6361_v11  ;;  %v6350_v11 = vld [vmem:[%s13082_s11 + $0x90] sm:$0xff] }
0x1007   : > { %v6208_v7 = vpop.permute.xlu0 %6207  ;;  %6254 = vrot.lane.b32.xlu0 %v12254_v20, %s13251_s25  ;;  %v6206_v58 = vpop.permute.xlu1 %6205  ;;  %7874 = vmatpush3.msra.mxu0 %v6345_v3  ;;  %v6334_v3 = vld [vmem:[%s13082_s11 + $0x10] sm:$0xff] }
0x1008   : > { %v6224_v49 = vsel %vm842_vm13, %v6206_v58, %v6208_v7  ;;  %7875 = vmatprep.subr.mxu0 %v6360_v54  ;;  %v6338_v58 = vld [vmem:[%s13082_s11 + $0x30] sm:$0xff]  ;;  %v6349_v54 = vld [vmem:[%s13082_s11 + $0x88] sm:$0xff] }
0x1009   : > { %v12263_v45 = vmax.f32 %v6168_v17, %v6224_v49  ;;  %7876 = vmatpush3.msra.mxu0 %v6344_v36  ;;  %v6353_v49 = vld [vmem:[%s13082_s11 + $0xa8] sm:$0xff] }
0x100a   : > { %7877 = vmatprep.subr.mxu0 %v6359_v47  ;;  %v6333_v36 = vld [vmem:[%s13082_s11 + $0x8] sm:$0xff]  ;;  %v6348_v47 = vld [vmem:[%s13082_s11 + $0x80] sm:$0xff] }
0x100b   : > { %v12268_v9 = vpop.permute.xlu0 %6215  ;;  %6219 = vrot.lane.b32.xlu0 %v6184_v5, %s13252_s19  ;;  %6256 = vrot.lane.b32.xlu1 %v12263_v45, %s13251_s25  ;;  %v6214_v59 = vpop.permute.xlu1 %6213  ;;  %v6369_v5 = vld [vmem:[%s13082_s11 + $0x128] sm:$0xff] }
0x100c   : > { %v6227_v52 = vsel %vm842_vm13, %v6214_v59, %v12268_v9  ;;  %7878 = vmatpush3.msra.mxu0 %v6343_v33  ;;  %v6337_v59 = vld [vmem:[%s13082_s11 + $0x28] sm:$0xff]  ;;  %v6332_v33 = vld [vmem:[%s13082_s11] sm:$0xff] }
0x100d   : > { %v12275_v55 = vmax.f32 %v6172_v0, %v6227_v52  ;;  %v6375_v0 = vld [vmem:[%s13082_s11 + $0x158] sm:$0xff]  ;;  %7879 = vmatprep.subr.mxu0 %v6358_v6  ;;  %v6352_v52 = vld [vmem:[%s13082_s11 + $0xa0] sm:$0xff] }
0x100e   : > { %6480 = vmatpush1.msra.mxu1 %v6375_v0  ;;  %7880 = vmatpush3.msra.mxu0 %v6342_v21  ;;  %v6364_v0 = vld [vmem:[%s13082_s11 + $0x100] sm:$0xff] }
0x100f   : > { %6258 = vrot.lane.b32.xlu0 %v12275_v55, %s13251_s25  ;;  %6481 = vmatprep.subr.mxu1 %v13294_v61 }
0x1010   : > { %6482 = vmatpush1.msra.mxu1 %v6374_v2  ;;  %7881 = vmatprep.subr.mxu0 %v6357_v15  ;;  %v6381_v2 = vld [vmem:[%s13082_s11 + $0x188] sm:$0xff]  ;;  %v6380_v15 = vld [vmem:[%s13082_s11 + $0x180] sm:$0xff] }
0x1011   : > { %6483 = vmatprep.subr.mxu1 %v13294_v61 }
0x1012   : > { %6484 = vmatpush1.msra.mxu1 %v6373_v35 }
0x1013   : > { %6485 = vmatprep.subr.mxu1 %v13294_v61 }
0x1014   : > { %6486 = vmatpush1.msra.mxu1 %v6372_v22 }
0x1015   : > { %6487 = vmatprep.subr.mxu1 %v13294_v61 }
0x1016   : > { %6488 = vmatpush1.msra.mxu1 %v6371_v29 }
0x1017   : > { %6489 = vmatprep.subr.mxu1 %v13294_v61 }
0x103c   : > { %v12314_v17 = vpop.permute.xlu1 %8067 }
0x103d   : > { %v8070_v1 = vunpack.i.h.bf16 %v12314_v17  ;;  %v8069_v63 = vunpack.i.l.bf16 %v12314_v17 }
0x103f   : > { %v6225_v51 = vsel %vm842_vm13, %v6208_v7, %v8070_v1  ;;  %v6370_v7 = vld [vmem:[%s13082_s11 + $0x130] sm:$0xff] }
0x1040   : > { %v12342_v24 = vmax.f32 %v6169_v53, %v6225_v51  ;;  %v6341_v53 = vld [vmem:[%s13082_s11 + $0x48] sm:$0xff]  ;;  %6490 = vmatpush1.msra.mxu1 %v6370_v7  ;;  %v6222_v51 = vsel %vm842_vm13, %v12248_v42, %v8069_v63 }
0x1041   : > { %7882 = vmatpush3.msra.mxu0 %v6341_v53  ;;  %6491 = vmatprep.subr.mxu1 %v13294_v61  ;;  %v6243_v42 = vmax.f32 %v6165_v44, %v6222_v51 }
0x1042   : > { %v8071_v14 = vpack.i.bf16 %v12342_v24, %v12254_v20  ;;  %7883 = vmatprep.subr.mxu0 %v6356_v8  ;;  %6492 = vmatpush1.msra.mxu1 %v6369_v5 }
0x1043   : > { %7884 = vmatpush3.msra.mxu0 %v6340_v26  ;;  %6493 = vmatprep.subr.mxu1 %v13294_v61 }
0x1044   : > { %8072 = vrot.lane.b32.xlu0 %v8071_v14, %s13254_s16  ;;  %7885 = vmatprep.subr.mxu0 %v6355_v56 }
0x1045   : > { %7886 = vmatpush3.msra.mxu0 %v6339_v60  ;;  %6494 = vmatpush1.msra.mxu1 %v6368_v16 }
0x1046   : > { %7887 = vmatprep.subr.mxu0 %v6354_v48  ;;  %6495 = vmatprep.subr.mxu1 %v13294_v61 }
0x1047   : > { %7888 = vmatpush3.msra.mxu0 %v6338_v58  ;;  %6496 = vmatpush1.msra.mxu1 %v6367_v25 }
0x1048   : > { %7889 = vmatprep.subr.mxu0 %v6353_v49  ;;  %6497 = vmatprep.subr.mxu1 %v13294_v61 }
0x1049   : > { %7890 = vmatpush3.msra.mxu0 %v6337_v59  ;;  %6498 = vmatpush1.msra.mxu1 %v6366_v10 }
0x104a   : > { %7891 = vmatprep.subr.mxu0 %v6352_v52  ;;  %6499 = vmatprep.subr.mxu1 %v13294_v61 }
0x104b   : > { %7892 = vmatpush3.msra.mxu0 %v6336_v19  ;;  %6500 = vmatpush1.msra.mxu1 %v6365_v13 }
0x104c   : > { %7893 = vmatprep.subr.mxu0 %v6351_v4  ;;  %6501 = vmatprep.subr.mxu1 %v13294_v61 }
0x104d   : > { %7894 = vmatpush3.msra.mxu0 %v6335_v12  ;;  %6502 = vmatpush1.msra.mxu1 %v6364_v0 }
0x104e   : > { %7895 = vmatprep.subr.mxu0 %v6350_v11  ;;  %6531 = vmatprep.subr.mxu1 %v13294_v61 }
0x104f   : > { %7896 = vmatpush3.msra.mxu0 %v6334_v3  ;;  %6532 = vmatpush2.msra.mxu1 %v6381_v2 }
0x1050   : > { %7897 = vmatprep.subr.mxu0 %v6349_v54  ;;  %6533 = vmatprep.subr.mxu1 %v13294_v61 }
0x1051   : > { %7898 = vmatpush3.msra.mxu0 %v6333_v36  ;;  %6534 = vmatpush2.msra.mxu1 %v6380_v15 }
0x1052   : > { %7899 = vmatprep.subr.mxu0 %v6348_v47  ;;  %7348 = vmatprep.subr.mxu1 %v13294_v61 }
0x1053   : > { %7900 = vmatpush3.msra.mxu0 %v6332_v33 }
0x1054   : > { %6908 = vmatprep.subr.mxu0 %v13294_v61 }
0x106f   : > { %v6204_v6 = vpop.permute.xlu0 %6203 }
0x1070   : > { %v6223_v21 = vsel %vm842_vm13, %v8069_v63, %v6204_v6  ;;  %v6245_v37 = vmax.f32 %v6167_v50, %v6204_v6 }
0x1071   : > { %v6244_v14 = vmax.f32 %v6166_v39, %v6223_v21 }
0x1073   : > { %v8076_v35 = vpack.i.bf16 %v6244_v14, %v6243_v42  ;;  %v6212_v53 = vpop.permute.xlu1 %6211 }
0x1074   : > { %v6226_v8 = vsel %vm842_vm13, %v8070_v1, %v6212_v53  ;;  %v6249_v1 = vmax.f32 %v6171_v27, %v6212_v53 }
0x1075   : > { %v6248_v23 = vmax.f32 %v6170_v28, %v6226_v8  ;;  %8077 = vrot.lane.b32.xlu1 %v8076_v35, %s13254_s16 }
0x1077   : > { %v8081_v44 = vpack.i.bf16 %v12263_v45, %v6248_v23  ;;  %v6218_v39 = vpop.permute.xlu1 %6217 }
0x1078   : > { %v6228_v38 = vsel %vm842_vm13, %v12268_v9, %v6218_v39 }
0x1079   : > { %v6255_v22 = vpop.permute.xlu0 %6254  ;;  %8082 = vrot.lane.b32.xlu1 %v8081_v44, %s13254_s16  ;;  %v6251_v50 = vmax.f32 %v6173_v31, %v6228_v38 }
0x107a   : > { %v6260_v17 = vsel %vm504_vm1, %v6255_v22, %v6245_v37 }
0x107b   : > { %6281 = vrot.lane.b32.xlu0 %v6260_v17, %s13254_s16 }
0x107d   : > { %v6220_v28 = vpop.permute.xlu0 %6219  ;;  %v6257_v26 = vpop.permute.xlu1 %6256 }
0x107e   : > { %v6229_v56 = vsel %vm842_vm13, %v6218_v39, %v6220_v28  ;;  %v6261_v57 = vsel %vm504_vm1, %v6257_v26, %v6249_v1  ;;  %v6253_v41 = vmax.f32 %v6175_v46, %v6220_v28  ;;  %vm13504_vm13 = vmmov %vm13497_vm2 }
0x107f   : > { %v6252_v29 = vmax.f32 %v6174_v30, %v6229_v56  ;;  %6289 = vrot.lane.b32.xlu0 %v6261_v57, %s13254_s16  ;;  %v12529_v57 = vld [vmem:[%s13081_s10 + $0x3] ss:$0 sm:$0xff] }
0x1081   : > { %v8086_v27 = vpack.i.bf16 %v6252_v29, %v6251_v50  ;;  %v6259_v60 = vpop.permute.xlu0 %6258 }
0x1082   : > { %v6262_v9 = vsel %vm504_vm1, %v6259_v60, %v6253_v41  ;;  %vm13506_vm1 = vmmov %vm13497_vm2  ;;  %v12545_v60 = vld [vmem:[%s13081_s10] ss:$0 sm:$0xff] }
0x1083   : > { %6297 = vrot.lane.b32.xlu0 %v6262_v9, %s13254_s16  ;;  %8087 = vrot.lane.b32.xlu1 %v8086_v27, %s13254_s16  ;;  %vm13507_vm9 = vmmov %vm13506_vm1  ;;  %v12536_v27 = vld [vmem:[%s13081_s10 + $0x2] ss:$0 sm:$0xff]  ;;  %v12552_v9 = vld [vmem:[%s13081_s10 + $0x7] ss:$0 sm:$0xff] }
0x1084   : > { %vm13508_vm5 = vmmov %vm13506_vm1 }
0x1085   : > { %vm13509_vm2 = vmmov %vm13502_vm0 }
0x1086   : > { %vm13510_vm14 = vmmov %vm13506_vm1 }
0x1087   : > { %6291 = vrot.lane.b32.xlu1 %v12275_v55, %s13254_s16  ;;  %vm13513_vm6 = vmmov %vm13506_vm1  ;;  %s13524_s16 = smov 29  }
0x1088   : > { %vm13514_vm0 = vmmov %vm13506_vm1 }
0x1089   : > { %vm13515_vm15 = vmmov %vm13514_vm0 }
0x10b6   : > { %v8073_v34 = vpop.permute.xlu0 %8072 }
0x10b7   : > { %v8074_v32 = vunpack.i.l.bf16 %v8073_v34  ;;  %v8075_v5 = vunpack.i.h.bf16 %v8073_v34 }
0x10e7   : > { %v8078_v31 = vpop.permute.xlu1 %8077 }
0x10e8   : > { %v8080_v30 = vunpack.i.h.bf16 %v8078_v31  ;;  %v8079_v48 = vunpack.i.l.bf16 %v8078_v31 }
0x10ea   : > { %v6299_v7 = vsel %vm13504_vm13, %v8074_v32, %v8079_v48  ;;  %v6300_v40 = vsel %vm13505_vm12, %v8079_v48, %v8080_v30  ;;  %vm13516_vm13 = vcmask 818176  }
0x10eb   : > { %v6320_v46 = vmax.f32 %v12254_v20, %v6299_v7  ;;  %v8083_v58 = vpop.permute.xlu1 %8082  ;;  %v6321_v49 = vmax.f32 %v6243_v42, %v6300_v40  ;;  %vm13517_vm12 = vmmov %vm13516_vm13  ;;  %v12565_v40 = vld [vmem:[%s13081_s10 + $0x1] ss:$0 sm:$0xff] }
0x10ec   : > { %v8085_v59 = vunpack.i.h.bf16 %v8083_v58  ;;  %v8084_v52 = vunpack.i.l.bf16 %v8083_v58  ;;  %v12579_v58 = vld [vmem:[%s13081_s10 + $0x6] ss:$0 sm:$0xff] }
0x10ed   : > { %v6282_v16 = vpop.permute.xlu0 %6281  ;;  %6455 = vmatprep.mubr.f32.mxu0 %v6321_v49 }
0x10ee   : > { %v6301_v19 = vsel %vm13506_vm1, %v8080_v30, %v6282_v16  ;;  %v6323_v4 = vmax.f32 %v6245_v37, %v6282_v16  ;;  %6456 = vmatmul.mubr.f32.vlgmr.msra.gmra.mxu0 %v6320_v46  ;;  %v6303_v25 = vsel %vm13507_vm9, %v8075_v5, %v8084_v52  ;;  %v6302_v12 = vsel %vm13508_vm5, %v8085_v59, %v8075_v5  ;;  %vm13518_vm1 = vmmov %vm13517_vm12  ;;  %v12572_v46 = vld [vmem:[%s13081_s10 + $0x8] ss:$0 sm:$0xff] }
0x10ef   : > { %v6322_v63 = vmax.f32 %v6244_v14, %v6301_v19  ;;  %v6325_v11 = vmax.f32 %v12342_v24, %v6303_v25  ;;  %v6324_v20 = vmax.f32 %v12263_v45, %v6302_v12  ;;  %vm13532_vm9 = vcmask 236544   ;;  %vm13533_vm5 = vmmov %vm13518_vm1 }
0x10f0   : > { %7780 = vmatprep.mubr.msk.f32.mxu1 %vm13509_vm2, %v6323_v4  ;;  %vm13534_vm2 = vcmask 302080  }
0x10f1   : > { %v6290_v10 = vpop.permute.xlu0 %6289  ;;  %6460 = vmatprep.mubr.f32.mxu0 %v6325_v11  ;;  %6536 = vmatmul.mubr.f32.vlgmr.msra.gmra.mxu1 %v6322_v63 }
0x10f2   : > { %v6304_v3 = vsel %vm13510_vm14, %v8084_v52, %v6290_v10  ;;  %v6327_v54 = vmax.f32 %v6249_v1, %v6290_v10  ;;  %6461 = vmatmul.mubr.f32.gmra.mxu0 %v6324_v20  ;;  %vm13535_vm14 = vmmov %vm13518_vm1 }
0x10f3   : > { %v6326_v13 = vmax.f32 %v6248_v23, %v6304_v3 }
0x10f4   : > { %7781 = vmatprep.mubr.msk.f32.mxu1 %vm13511_vm10, %v6327_v54  ;;  %vm13536_vm10 = vmmov %vm13518_vm1 }
0x10f5   : > { %v6298_v36 = vpop.permute.xlu0 %6297  ;;  %v8088_v47 = vpop.permute.xlu1 %8087  ;;  %6541 = vmatmul.mubr.f32.gmra.mxu1 %v6326_v13 }
0x10f6   : > { %v6331_v0 = vmax.f32 %v6253_v41, %v6298_v36  ;;  %v8090_v33 = vunpack.i.h.bf16 %v8088_v47  ;;  %v8089_v24 = vunpack.i.l.bf16 %v8088_v47 }
0x10f8   : > { %7782 = vmatprep.mubr.msk.f32.mxu1 %vm13512_vm3, %v6331_v0  ;;  %v6306_v45 = vsel %vm13513_vm6, %v8089_v24, %v8090_v33  ;;  %v6307_v51 = vsel %vm13514_vm0, %v8090_v33, %v6298_v36  ;;  %vm13537_vm3 = vmmov %vm13532_vm9 }
0x10f9   : > { %v6292_v6 = vpop.permute.xlu1 %6291  ;;  %v6329_v2 = vmax.f32 %v6251_v50, %v6306_v45  ;;  %v6330_v21 = vmax.f32 %v6252_v29, %v6307_v51  ;;  %vm13538_vm6 = vmmov %vm13518_vm1 }
0x10fa   : > { %v6305_v15 = vsel %vm13515_vm15, %v6292_v6, %v8089_v24  ;;  %vm13539_vm0 = vmmov %vm13534_vm2 }
0x10fb   : > { %v6328_v42 = vmax.f32 %v12275_v55, %v6305_v15  ;;  %6465 = vmatprep.mubr.f32.mxu0 %v6329_v2  ;;  %6546 = vmatmul.mubr.f32.gmra.mxu1 %v6330_v21  ;;  %v12522_v55 = vld [vmem:[%s13081_s10 + $0x5] ss:$0 sm:$0xff]  ;;  %vm13540_vm15 = vmmov %vm13518_vm1 }
0x10fd   : > { %6466 = vmatmul.mubr.f32.gmra.mxu0 %v6328_v42 }
0x11ae   : > { %v7901_v14 = vpop.f32.mrf.mxu0 }
0x11b0   : > { %v7902_v35 = vpop.f32.mrf.mxu0 }
0x11b1   : > { %v7903_v53 = vadd.f32 %v7902_v35, %v7901_v14  ;;  %v6537_v8 = vpop.f32.mrf.mxu1 }
0x11b2   : > { %v7904_v23 = vpop.f32.mrf.mxu0 }
0x11b3   : > { %v6538_v44 = vadd.f32 %v7903_v53, %v6537_v8  ;;  %v6539_v37 = vpop.f32.mrf.mxu1 }
0x11b4   : > { %v7905_v39 = vpop.f32.mrf.mxu0 }
0x11b5   : > { %6737 = vst.msk [vmem:[#allocation2 + $0x180] sm:$0xff] %vm13516_vm13, %v6538_v44  ;;  %v7906_v22 = vadd.f32 %v7905_v39, %v7904_v23  ;;  %v6542_v17 = vpop.f32.mrf.mxu1  ;;  %6551 = vrot.lane.b32.xlu1 %v6538_v44, %s13357_s8  ;;  %vm13541_vm13 = vcmask 310272  }
0x11b7   : > { %v6543_v1 = vadd.f32 %v7906_v22, %v6542_v17  ;;  %v6544_v38 = vpop.f32.mrf.mxu1 }
0x11b9   : > { %6738 = vst.msk [vmem:[#allocation2 + $0x1a0] sm:$0xff] %vm13517_vm12, %v6543_v1  ;;  %6554 = vrot.lane.b32.xlu1 %v6543_v1, %s13357_s8  ;;  %vm13542_vm12 = vmmov %vm13518_vm1 }
0x11bb   : > { %v6547_v28 = vpop.f32.mrf.mxu1 }
0x11bd   : > { %v7907_v26 = vpop.f32.mrf.mxu0  ;;  %v6549_v56 = vpop.f32.mrf.mxu1  ;;  %6746 = vrot.lane.b32.xlu1 %v12522_v55, %s13303_s22 }
0x11bf   : > { %v7908_v50 = vpop.f32.mrf.mxu0 }
0x11c0   : > { %v7909_v29 = vadd.f32 %v7908_v50, %v7907_v26 }
0x11c1   : > { %6701 = vrot.lane.b32.xlu1 %v12529_v57, %s13306_s2 }
0x11c2   : > { %v6548_v41 = vadd.f32 %v7909_v29, %v6547_v28 }
0x11c4   : > { %6739 = vst.msk [vmem:[#allocation2 + $0x1c0] sm:$0xff] %vm13518_vm1, %v6548_v41  ;;  %6557 = vrot.lane.b32.xlu0 %v6548_v41, %s13357_s8  ;;  %vm13543_vm1 = vmmov %vm13537_vm3 }
0x11c5   : > { %6659 = vrot.lane.b32.xlu1 %v12536_v27, %s13307_s21 }
0x11c9   : > { %6575 = vrot.lane.b32.xlu1 %v12545_v60, %s13519_s26 }
0x11cd   : > { %6800 = vrot.lane.b32.xlu1 %v12552_v9, %s13520_s0 }
0x1227   : > { %v6552_v34 = vpop.permute.xlu1 %6551 }
0x1228   : > { %v6553_v31 = vsel %vm2991_vm4, %v6552_v34, %v6538_v44 }
0x1229   : > { %6560 = vrot.lane.b32.xlu0 %v6553_v31, %s13357_s8 }
0x122b   : > { %v6555_v48 = vpop.permute.xlu1 %6554 }
0x122c   : > { %v6556_v7 = vsel %vm2991_vm4, %v6555_v48, %v6543_v1  ;;  %v6881_v48 = vld [vmem:[%s13531_s13] sm:$0xff] }
0x122f   : > { %v12583_v49 = vpop.permute.xlu1 %6746 }
0x1233   : > { %v6702_v5 = vpop.permute.xlu1 %6701 }
0x1236   : > { %v6558_v32 = vpop.permute.xlu0 %6557 }
0x1237   : > { %v6559_v30 = vsel %vm2991_vm4, %v6558_v32, %v6548_v41  ;;  %v6660_v4 = vpop.permute.xlu1 %6659 }
0x1238   : > { %6564 = vrot.lane.b32.xlu0 %v6559_v30, %s13357_s8  ;;  %v6849_v30 = vld [vmem:[%s13530_s18 + $0x8] sm:$0xff] }
0x1239   : > { %7791 = vmatprep.mubr.msk.f32.mxu0 %vm2428_vm11, %v6849_v30 }
0x123b   : > { %v6576_v35 = vpop.permute.xlu1 %6575 }
0x123c   : > { %6562 = vrot.lane.b32.xlu0 %v6556_v7, %s13357_s8 }
0x123f   : > { %v6801_v38 = vpop.permute.xlu1 %6800 }
0x1240   : > { %6617 = vrot.lane.b32.xlu0 %v12565_v40, %s13521_s1 }
0x1244   : > { %6827 = vrot.lane.b32.xlu0 %v12572_v46, %s13522_s3 }
0x1248   : > { %6773 = vrot.lane.b32.xlu0 %v12579_v58, %s13523_s30 }
0x129b   : > { %v6561_v59 = vpop.permute.xlu0 %6560 }
0x129c   : > { %v12586_v52 = vsel %vm2991_vm4, %v6561_v59, %v6538_v44  ;;  %v6705_v16 = vmul.f32 %v6702_v5, %v6561_v59  ;;  %v6663_v25 = vmul.f32 %v6660_v4, %v6561_v59  ;;  %v6579_v37 = vmul.f32 %v6576_v35, %v6561_v59 }
0x129d   : > { %v6704_v19 = vmul.f32 %v6702_v5, %v12586_v52  ;;  %v6662_v12 = vmul.f32 %v6660_v4, %v12586_v52  ;;  %v6749_v63 = vmul.f32 %v12583_v49, %v12586_v52  ;;  %v6578_v22 = vmul.f32 %v6576_v35, %v12586_v52 }
0x129e   : > { %6718 = vrot.lane.b32.xlu1 %v6705_v16, %s13524_s16  ;;  %v6803_v56 = vmul.f32 %v6801_v38, %v12586_v52 }
0x129f   : > { %6716 = vrot.lane.b32.xlu0 %v6704_v19, %s13524_s16 }
0x12a2   : > { %6676 = vrot.lane.b32.xlu1 %v6663_v25, %s13525_s28 }
0x12a3   : > { %6674 = vrot.lane.b32.xlu0 %v6662_v12, %s13525_s28 }
0x12a6   : > { %6755 = vrot.lane.b32.xlu1 %v6749_v63, %s13252_s19 }
0x12aa   : > { %v6565_v11 = vpop.permute.xlu0 %6564 }
0x12ab   : > { %v6568_v24 = vsel %vm2991_vm4, %v6565_v11, %v6548_v41  ;;  %v6709_v45 = vmul.f32 %v6702_v5, %v6565_v11  ;;  %v6667_v6 = vmul.f32 %v6660_v4, %v6565_v11  ;;  %v6583_v53 = vmul.f32 %v6576_v35, %v6565_v11 }
0x12ac   : > { %v6708_v51 = vmul.f32 %v6702_v5, %v6568_v24  ;;  %v6666_v15 = vmul.f32 %v6660_v4, %v6568_v24  ;;  %v6582_v44 = vmul.f32 %v6576_v35, %v6568_v24  ;;  %v6805_v28 = vmul.f32 %v6801_v38, %v6568_v24 }
0x12ad   : > { %v6751_v31 = vmul.f32 %v12583_v49, %v6568_v24 }
0x12ae   : > { %v6563_v20 = vpop.permute.xlu0 %6562 }
0x12af   : > { %v12598_v10 = vsel %vm2991_vm4, %v6563_v20, %v6543_v1  ;;  %v6707_v3 = vmul.f32 %v6702_v5, %v6563_v20  ;;  %v6665_v13 = vmul.f32 %v6660_v4, %v6563_v20  ;;  %v6581_v23 = vmul.f32 %v6576_v35, %v6563_v20 }
0x12b0   : > { %v6706_v54 = vmul.f32 %v6702_v5, %v12598_v10  ;;  %v6664_v47 = vmul.f32 %v6660_v4, %v12598_v10  ;;  %v6580_v8 = vmul.f32 %v6576_v35, %v12598_v10  ;;  %v6804_v29 = vmul.f32 %v6801_v38, %v12598_v10  ;;  %v6882_v5 = vld [vmem:[%s13531_s13 + $0x8] sm:$0xff] }
0x12b1   : > { %6722 = vrot.lane.b32.xlu1 %v6707_v3, %s13524_s16  ;;  %v6750_v7 = vmul.f32 %v12583_v49, %v12598_v10  ;;  %v6867_v3 = vld [vmem:[#allocation2 + $0x1a0] sm:$0xff] }
0x12b2   : > { %6720 = vrot.lane.b32.xlu0 %v6706_v54, %s13524_s16  ;;  %v6618_v36 = vpop.permute.xlu0 %6617 }
0x12b3   : > { %v6623_v0 = vmul.f32 %v6618_v36, %v6563_v20  ;;  %v6622_v33 = vmul.f32 %v6618_v36, %v12598_v10  ;;  %v6620_v2 = vmul.f32 %v6618_v36, %v12586_v52  ;;  %v6625_v21 = vmul.f32 %v6618_v36, %v6565_v11  ;;  %v6868_v11 = vld [vmem:[#allocation2 + $0x1c0] sm:$0xff] }
0x12b4   : > { %v6621_v42 = vmul.f32 %v6618_v36, %v6561_v59  ;;  %v6624_v14 = vmul.f32 %v6618_v36, %v6568_v24  ;;  %v6883_v59 = vld [vmem:[%s13531_s13 + $0x10] sm:$0xff] }
0x12b5   : > { %6680 = vrot.lane.b32.xlu1 %v6665_v13, %s13525_s28  ;;  %v6866_v13 = vld [vmem:[#allocation2 + $0x180] sm:$0xff] }
0x12b6   : > { %6678 = vrot.lane.b32.xlu0 %v6664_v47, %s13525_s28  ;;  %v6828_v39 = vpop.permute.xlu0 %6827 }
0x12b7   : > { %v6831_v17 = vmul.f32 %v6828_v39, %v12598_v10  ;;  %v6832_v1 = vmul.f32 %v6828_v39, %v6568_v24  ;;  %v6830_v26 = vmul.f32 %v6828_v39, %v12586_v52 }
0x12b9   : > { %6638 = vrot.lane.b32.xlu1 %v6623_v0, %s13526_s14 }
0x12ba   : > { %6636 = vrot.lane.b32.xlu0 %v6622_v33, %s13526_s14  ;;  %v6774_v50 = vpop.permute.xlu0 %6773 }
0x12bb   : > { %v6777_v41 = vmul.f32 %v6774_v50, %v12598_v10  ;;  %v6778_v34 = vmul.f32 %v6774_v50, %v6568_v24  ;;  %v6776_v32 = vmul.f32 %v6774_v50, %v12586_v52 }
0x12bd   : > { %6726 = vrot.lane.b32.xlu1 %v6709_v45, %s13524_s16 }
0x12be   : > { %6724 = vrot.lane.b32.xlu0 %v6708_v51, %s13524_s16 }
0x12c1   : > { %6684 = vrot.lane.b32.xlu1 %v6667_v6, %s13525_s28 }
0x12c2   : > { %6632 = vrot.lane.b32.xlu0 %v6620_v2, %s13526_s14 }
0x12c5   : > { %6642 = vrot.lane.b32.xlu1 %v6625_v21, %s13526_s14 }
0x12c6   : > { %6682 = vrot.lane.b32.xlu0 %v6666_v15, %s13525_s28 }
0x12c9   : > { %6634 = vrot.lane.b32.xlu1 %v6621_v42, %s13526_s14 }
0x12ca   : > { %6640 = vrot.lane.b32.xlu0 %v6624_v14, %s13526_s14 }
0x12cd   : > { %6600 = vrot.lane.b32.xlu1 %v6583_v53, %s13527_s29 }
0x12ce   : > { %6594 = vrot.lane.b32.xlu0 %v6580_v8, %s13527_s29 }
0x12d1   : > { %6596 = vrot.lane.b32.xlu1 %v6581_v23, %s13527_s29 }
0x12d2   : > { %6598 = vrot.lane.b32.xlu0 %v6582_v44, %s13527_s29 }
0x12d5   : > { %6592 = vrot.lane.b32.xlu1 %v6579_v37, %s13527_s29 }
0x12d6   : > { %6590 = vrot.lane.b32.xlu0 %v6578_v22, %s13527_s29 }
0x12d9   : > { %6838 = vrot.lane.b32.xlu1 %v6831_v17, %s13528_s17 }
0x12da   : > { %6840 = vrot.lane.b32.xlu0 %v6832_v1, %s13528_s17 }
0x12dd   : > { %6813 = vrot.lane.b32.xlu1 %v6805_v28, %s13317_s20 }
0x12de   : > { %6836 = vrot.lane.b32.xlu0 %v6830_v26, %s13528_s17 }
0x12e1   : > { %6809 = vrot.lane.b32.xlu1 %v6803_v56, %s13317_s20 }
0x12e2   : > { %6811 = vrot.lane.b32.xlu0 %v6804_v29, %s13317_s20 }
0x12e5   : > { %6784 = vrot.lane.b32.xlu1 %v6777_v41, %s13529_s5 }
0x12e6   : > { %6786 = vrot.lane.b32.xlu0 %v6778_v34, %s13529_s5 }
0x12e9   : > { %6759 = vrot.lane.b32.xlu1 %v6751_v31, %s13252_s19 }
0x12ea   : > { %6782 = vrot.lane.b32.xlu0 %v6776_v32, %s13529_s5 }
0x12ed   : > { %6886 = vperm.xlu1 %8039, %v6881_v48  }
0x12ee   : > { %6757 = vrot.lane.b32.xlu0 %v6750_v7, %s13252_s19 }
0x12f1   : > { %6891 = vperm.xlu1 %8039, %v6882_v5  }
0x12f2   : > { %6896 = vperm.xlu0 %8040, %v6883_v59  }
0x1310   : > { %v6719_v52 = vpop.permute.xlu1 %6718 }
0x1311   : > { %v6717_v16 = vpop.permute.xlu0 %6716 }
0x1312   : > { %v6728_v19 = vsel %vm13532_vm9, %v6717_v16, %v6719_v52  ;;  %vm13544_vm9 = vmmov %vm13533_vm5 }
0x1313   : > { %6734 = vst.msk [vmem:[#allocation2 + $0x120] sm:$0xff] %vm13533_vm5, %v6728_v19  ;;  %vm13545_vm5 = vmmov %vm13539_vm0 }
0x1314   : > { %v6677_v49 = vpop.permute.xlu1 %6676 }
0x1315   : > { %v6675_v4 = vpop.permute.xlu0 %6674 }
0x1316   : > { %v6686_v25 = vsel %vm13534_vm2, %v6675_v4, %v6677_v49  ;;  %vm13546_vm2 = vmmov %vm13538_vm6 }
0x1317   : > { %6692 = vst.msk [vmem:[#allocation2 + $0xc0] sm:$0xff] %vm13535_vm14, %v6686_v25  ;;  %vm13547_vm14 = vmmov %vm13541_vm13 }
0x1318   : > { %v6756_v12 = vpop.permute.xlu1 %6755 }
0x1319   : > { %6764 = vst.msk [vmem:[#allocation2 + $0x1e0] sm:$0xff] %vm13536_vm10, %v6756_v12  ;;  %vm13548_vm10 = vmmov %vm13546_vm2 }
0x131a   : > { %v6863_v22 = vld [vmem:[#allocation2 + $0x120] sm:$0xff] }
0x131e   : > { %v6860_v41 = vld [vmem:[#allocation2 + $0xc0] sm:$0xff] }
0x1320   : > { %v6869_v63 = vld [vmem:[#allocation2 + $0x1e0] sm:$0xff] }
0x1321   : > { %6909 = vmatpush1.msra.mxu0 %v6869_v63 }
0x1322   : > { %6910 = vmatprep.subr.mxu0 %v13294_v61 }
0x1323   : > { %6911 = vmatpush1.msra.mxu0 %v6868_v11  ;;  %v6723_v20 = vpop.permute.xlu1 %6722 }
0x1324   : > { %v6721_v10 = vpop.permute.xlu0 %6720  ;;  %6912 = vmatprep.subr.mxu0 %v13294_v61 }
0x1325   : > { %v6729_v54 = vsel %vm13537_vm3, %v6721_v10, %v6723_v20  ;;  %6913 = vmatpush1.msra.mxu0 %v6867_v3  ;;  %vm13549_vm3 = vmmov %vm13541_vm13 }
0x1326   : > { %6735 = vst.msk [vmem:[#allocation2 + $0x140] sm:$0xff] %vm13538_vm6, %v6729_v54  ;;  %6914 = vmatprep.subr.mxu0 %v13294_v61  ;;  %vm13550_vm6 = vmmov %vm13546_vm2 }
0x1327   : > { %v6681_v36 = vpop.permute.xlu1 %6680  ;;  %6915 = vmatpush1.msra.mxu0 %v6866_v13 }
0x1328   : > { %v6679_v47 = vpop.permute.xlu0 %6678  ;;  %6916 = vmatprep.subr.mxu0 %v13294_v61 }
0x1329   : > { %v6687_v0 = vsel %vm13539_vm0, %v6679_v47, %v6681_v36  ;;  %vm13551_vm0 = vcmask 318464  }
0x132a   : > { %6693 = vst.msk [vmem:[#allocation2 + $0xe0] sm:$0xff] %vm13540_vm15, %v6687_v0  ;;  %vm13552_vm15 = vmmov %vm13546_vm2 }
0x132b   : > { %v6639_v33 = vpop.permute.xlu1 %6638 }
0x132c   : > { %v6637_v24 = vpop.permute.xlu0 %6636 }
0x132d   : > { %v6645_v45 = vsel %vm13541_vm13, %v6637_v24, %v6639_v33  ;;  %v6864_v23 = vld [vmem:[#allocation2 + $0x140] sm:$0xff]  ;;  %vm13553_vm13 = vmmov %vm13551_vm0 }
0x132e   : > { %6651 = vst.msk [vmem:[#allocation2 + $0x80] sm:$0xff] %vm13542_vm12, %v6645_v45  ;;  %vm13554_vm12 = vmmov %vm13546_vm2 }
0x132f   : > { %v6727_v51 = vpop.permute.xlu1 %6726 }
0x1330   : > { %v6725_v6 = vpop.permute.xlu0 %6724 }
0x1331   : > { %v6730_v2 = vsel %vm13543_vm1, %v6725_v6, %v6727_v51  ;;  %v6861_v26 = vld [vmem:[#allocation2 + $0xe0] sm:$0xff]  ;;  %vm13555_vm1 = vmmov %vm13551_vm0 }
0x1332   : > { %6736 = vst.msk [vmem:[#allocation2 + $0x160] sm:$0xff] %vm13544_vm9, %v6730_v2  ;;  %vm13556_vm9 = vmmov %vm13546_vm2  ;;  %v6848_v2 = vld [vmem:[%s13530_s18] sm:$0xff] }
0x1333   : > { %v6685_v21 = vpop.permute.xlu1 %6684 }
0x1334   : > { %v6633_v15 = vpop.permute.xlu0 %6632 }
0x1335   : > { %v6858_v48 = vld [vmem:[#allocation2 + $0x80] sm:$0xff] }
0x1337   : > { %v6643_v42 = vpop.permute.xlu1 %6642 }
0x1338   : > { %v6683_v14 = vpop.permute.xlu0 %6682 }
0x1339   : > { %v6688_v35 = vsel %vm13545_vm5, %v6683_v14, %v6685_v21  ;;  %v6865_v53 = vld [vmem:[#allocation2 + $0x160] sm:$0xff]  ;;  %vm13557_vm5 = vmmov %vm13546_vm2  ;;  %v6853_v14 = vld [vmem:[%s13530_s18 + $0x28] sm:$0xff] }
0x133a   : > { %6694 = vst.msk [vmem:[#allocation2 + $0x100] sm:$0xff] %vm13546_vm2, %v6688_v35  ;;  %6917 = vmatpush1.msra.mxu0 %v6865_v53  ;;  %v6852_v35 = vld [vmem:[%s13530_s18 + $0x20] sm:$0xff] }
0x133b   : > { %v6635_v8 = vpop.permute.xlu1 %6634  ;;  %6918 = vmatprep.subr.mxu0 %v13294_v61 }
0x133c   : > { %v6644_v44 = vsel %vm13547_vm14, %v6633_v15, %v6635_v8  ;;  %v6641_v37 = vpop.permute.xlu0 %6640  ;;  %6919 = vmatpush1.msra.mxu0 %v6864_v23  ;;  %vm13558_vm14 = vmmov %vm13546_vm2  ;;  %v6851_v15 = vld [vmem:[%s13530_s18 + $0x18] sm:$0xff] }
0x133d   : > { %6650 = vst.msk [vmem:[#allocation2 + $0x60] sm:$0xff] %vm13548_vm10, %v6644_v44  ;;  %v6646_v39 = vsel %vm13549_vm3, %v6641_v37, %v6643_v42  ;;  %6920 = vmatprep.subr.mxu0 %v13294_v61  ;;  %vm13559_vm10 = vmmov %vm13546_vm2  ;;  %v6850_v42 = vld [vmem:[%s13530_s18 + $0x10] sm:$0xff] }
0x133e   : > { %6652 = vst.msk [vmem:[#allocation2 + $0xa0] sm:$0xff] %vm13550_vm6, %v6646_v39  ;;  %6921 = vmatpush1.msra.mxu0 %v6863_v22  ;;  %vm13560_vm3 = vmmov %vm13546_vm2 }
0x133f   : > { %v6601_v17 = vpop.permute.xlu1 %6600  ;;  %6922 = vmatprep.subr.mxu0 %v13294_v61  ;;  %vm13561_vm6 = vmmov %vm13546_vm2 }
0x1340   : > { %v6595_v1 = vpop.permute.xlu0 %6594 }
0x1341   : > { %v6862_v38 = vld [vmem:[#allocation2 + $0x100] sm:$0xff] }
0x1342   : > { %6923 = vmatpush1.msra.mxu0 %v6862_v38 }
0x1343   : > { %v6597_v28 = vpop.permute.xlu1 %6596  ;;  %6924 = vmatprep.subr.mxu0 %v13294_v61 }
0x1344   : > { %v6603_v56 = vsel %vm13551_vm0, %v6595_v1, %v6597_v28  ;;  %v6599_v50 = vpop.permute.xlu0 %6598  ;;  %6925 = vmatpush1.msra.mxu0 %v6861_v26  ;;  %v6857_v5 = vld [vmem:[#allocation2 + $0x60] sm:$0xff]  ;;  %vm13562_vm0 = vmmov %vm13546_vm2 }
0x1345   : > { %6609 = vst.msk [vmem:[#allocation2 + $0x20] sm:$0xff] %vm13552_vm15, %v6603_v56  ;;  %v6604_v29 = vsel %vm13553_vm13, %v6599_v50, %v6601_v17  ;;  %6926 = vmatprep.subr.mxu0 %v13294_v61  ;;  %v6859_v31 = vld [vmem:[#allocation2 + $0xa0] sm:$0xff]  ;;  %vm13563_vm15 = vmmov %vm13562_vm0 }
0x1346   : > { %6610 = vst.msk [vmem:[#allocation2 + $0x40] sm:$0xff] %vm13554_vm12, %v6604_v29  ;;  %6927 = vmatpush1.msra.mxu0 %v6860_v41  ;;  %vm13564_vm13 = vmmov %vm13562_vm0 }
0x1347   : > { %v6593_v34 = vpop.permute.xlu1 %6592  ;;  %6928 = vmatprep.subr.mxu0 %v13294_v61  ;;  %vm13565_vm12 = vmmov %vm13562_vm0 }
0x1348   : > { %v6591_v32 = vpop.permute.xlu0 %6590  ;;  %6929 = vmatpush1.msra.mxu0 %v6859_v31 }
0x1349   : > { %v6602_v30 = vsel %vm13555_vm1, %v6591_v32, %v6593_v34  ;;  %6930 = vmatprep.subr.mxu0 %v13294_v61  ;;  %vm13566_vm1 = vmmov %vm13562_vm0 }
0x134a   : > { %6608 = vst.msk [vmem:[#allocation2] sm:$0xff] %vm13556_vm9, %v6602_v30  ;;  %6931 = vmatpush1.msra.mxu0 %v6858_v48  ;;  %vm13567_vm9 = vmmov %vm13562_vm0 }
0x134b   : > { %v6839_v7 = vpop.permute.xlu1 %6838  ;;  %6932 = vmatprep.subr.mxu0 %v13294_v61 }
0x134c   : > { %6846 = vst.msk [vmem:[#allocation2 + $0x320] sm:$0xff] %vm13557_vm5, %v6839_v7  ;;  %v6841_v59 = vpop.permute.xlu0 %6840  ;;  %6933 = vmatpush1.msra.mxu0 %v6857_v5  ;;  %v6855_v19 = vld [vmem:[#allocation2 + $0x20] sm:$0xff]  ;;  %vm13568_vm5 = vmmov %vm13562_vm0 }
0x134d   : > { %6847 = vst.msk [vmem:[#allocation2 + $0x340] sm:$0xff] %vm13546_vm2, %v6841_v59  ;;  %6934 = vmatprep.subr.mxu0 %v13294_v61  ;;  %v6856_v52 = vld [vmem:[#allocation2 + $0x40] sm:$0xff]  ;;  %vm13569_vm2 = vmmov %vm13562_vm0 }
0x134e   : > { %6935 = vmatpush1.msra.mxu0 %v6856_v52 }
0x134f   : > { %v6814_v16 = vpop.permute.xlu1 %6813  ;;  %6936 = vmatprep.subr.mxu0 %v13294_v61 }
0x1350   : > { %6820 = vst.msk [vmem:[#allocation2 + $0x2e0] sm:$0xff] %vm13558_vm14, %v6814_v16  ;;  %v6837_v49 = vpop.permute.xlu0 %6836  ;;  %6937 = vmatpush1.msra.mxu0 %v6855_v19  ;;  %vm13572_vm14 = vcmask 236544  }
0x1351   : > { %6845 = vst.msk [vmem:[#allocation2 + $0x300] sm:$0xff] %vm13559_vm10, %v6837_v49  ;;  %6938 = vmatprep.subr.mxu0 %v13294_v61  ;;  %v6854_v4 = vld [vmem:[#allocation2] sm:$0xff]  ;;  %vm13573_vm10 = vmmov %vm13562_vm0 }
0x1352   : > { %6939 = vmatpush1.msra.mxu0 %v6854_v4 }
0x1353   : > { %v6810_v25 = vpop.permute.xlu1 %6809  ;;  %6950 = vmatprep.subr.mxu0 %v13294_v61  ;;  %v6879_v11 = vld [vmem:[#allocation2 + $0x320] sm:$0xff] }
0x1354   : > { %6818 = vst.msk [vmem:[#allocation2 + $0x2a0] sm:$0xff] %vm13560_vm3, %v6810_v25  ;;  %v6812_v12 = vpop.permute.xlu0 %6811  ;;  %v6880_v63 = vld [vmem:[#allocation2 + $0x340] sm:$0xff]  ;;  %vm13574_vm3 = vcmask 302080  }
0x1355   : > { %6819 = vst.msk [vmem:[#allocation2 + $0x2c0] sm:$0xff] %vm13561_vm6, %v6812_v12  ;;  %6951 = vmatpush2.msra.mxu0 %v6880_v63  ;;  %vm13575_vm6 = vmmov %vm13562_vm0 }
0x1356   : > { %6952 = vmatprep.subr.mxu0 %v13294_v61 }
0x1357   : > { %v6785_v20 = vpop.permute.xlu1 %6784  ;;  %6953 = vmatpush2.msra.mxu0 %v6879_v11  ;;  %v6877_v54 = vld [vmem:[#allocation2 + $0x2e0] sm:$0xff] }
0x1358   : > { %6792 = vst.msk [vmem:[#allocation2 + $0x260] sm:$0xff] %vm13562_vm0, %v6785_v20  ;;  %v6787_v10 = vpop.permute.xlu0 %6786  ;;  %6954 = vmatprep.subr.mxu0 %v13294_v61  ;;  %v6878_v3 = vld [vmem:[#allocation2 + $0x300] sm:$0xff] }
0x1359   : > { %6793 = vst.msk [vmem:[#allocation2 + $0x280] sm:$0xff] %vm13563_vm15, %v6787_v10  ;;  %6955 = vmatpush2.msra.mxu0 %v6878_v3  ;;  %vm13576_vm15 = vmmov %vm13572_vm14 }
0x135a   : > { %6956 = vmatprep.subr.mxu0 %v13294_v61 }
0x135b   : > { %v6760_v13 = vpop.permute.xlu1 %6759  ;;  %6957 = vmatpush2.msra.mxu0 %v6877_v54  ;;  %v6875_v0 = vld [vmem:[#allocation2 + $0x2a0] sm:$0xff] }
0x135c   : > { %6766 = vst.msk [vmem:[#allocation2 + $0x220] sm:$0xff] %vm13564_vm13, %v6760_v13  ;;  %v6783_v36 = vpop.permute.xlu0 %6782  ;;  %6958 = vmatprep.subr.mxu0 %v13294_v61  ;;  %v6876_v47 = vld [vmem:[#allocation2 + $0x2c0] sm:$0xff]  ;;  %vm13577_vm13 = vmmov %vm13562_vm0 }
0x135d   : > { %6791 = vst.msk [vmem:[#allocation2 + $0x240] sm:$0xff] %vm13565_vm12, %v6783_v36  ;;  %6959 = vmatpush2.msra.mxu0 %v6876_v47  ;;  %vm13578_vm12 = vmmov %vm13574_vm3 }
0x135e   : > { %6960 = vmatprep.subr.mxu0 %v13294_v61 }
0x135f   : > { %6961 = vmatpush2.msra.mxu0 %v6875_v0  ;;  %v6873_v45 = vld [vmem:[#allocation2 + $0x260] sm:$0xff] }
0x1360   : > { %v6758_v33 = vpop.permute.xlu0 %6757  ;;  %6962 = vmatprep.subr.mxu0 %v13294_v61  ;;  %v6874_v24 = vld [vmem:[#allocation2 + $0x280] sm:$0xff] }
0x1361   : > { %6765 = vst.msk [vmem:[#allocation2 + $0x200] sm:$0xff] %vm13566_vm1, %v6758_v33  ;;  %6963 = vmatpush2.msra.mxu0 %v6874_v24  ;;  %vm13579_vm1 = vmmov %vm13562_vm0 }
0x1362   : > { %6964 = vmatprep.subr.mxu0 %v13294_v61 }
0x1363   : > { %6965 = vmatpush2.msra.mxu0 %v6873_v45  ;;  %v6871_v6 = vld [vmem:[#allocation2 + $0x220] sm:$0xff] }
0x1364   : > { %6966 = vmatprep.subr.mxu0 %v13294_v61  ;;  %v6872_v51 = vld [vmem:[#allocation2 + $0x240] sm:$0xff] }
0x1365   : > { %6967 = vmatpush2.msra.mxu0 %v6872_v51 }
0x1366   : > { %6968 = vmatprep.subr.mxu0 %v13294_v61 }
0x1367   : > { %6969 = vmatpush2.msra.mxu0 %v6871_v6 }
0x1368   : > { %6970 = vmatprep.subr.mxu0 %v13294_v61  ;;  %v6870_v21 = vld [vmem:[#allocation2 + $0x200] sm:$0xff]  ;;  %v6887_v53 = vpop.permute.xlu1 %6886 }
0x1369   : > { %6971 = vmatpush2.msra.mxu0 %v6870_v21 }
0x136a   : > { %6973 = vmatmul.mubr.f32.vlgmr.msra.gmra.mxu0 %v6848_v2  ;;  %7961 = vmatprep.subr.mxu0 %v13294_v61 }
0x136b   : > { %7792 = vmatprep.mubr.msk.f32.mxu0 %vm2428_vm11, %v6851_v15 }
0x136c   : > { %v6892_v39 = vpop.permute.xlu1 %6891 }
0x136d   : > { %v6897_v28 = vpop.permute.xlu0 %6896 }
0x136e   : > { %6978 = vmatmul.mubr.f32.gmra.mxu0 %v6850_v42 }
0x136f   : > { %7793 = vmatprep.mubr.msk.f32.mxu0 %vm2428_vm11, %v6853_v14 }
0x1372   : > { %6983 = vmatmul.mubr.f32.gmra.mxu0 %v6852_v35 }
0x1373   : > { %7987 = vmatprep.mubr.msk.f32.mxu0 %vm8136_vm7, %v13294_v61 }
0x142a   : > { %v6974_v8 = vpop.f32.mrf.mxu0 }
0x142b   : > { %v6975_v23 = vadd.f32 %v6974_v8, %v6887_v53 }
0x142c   : > { %v6976_v44 = vpop.f32.mrf.mxu0 }
0x142d   : > { %v6988_v37 = vmax.f32 %v6975_v23, 0.0 }
0x142e   : > { %v6979_v22 = vpop.f32.mrf.mxu0 }
0x142f   : > { %7177 = vst.msk [vmem:[#allocation2 + $0x180] sm:$0xff] %vm13567_vm9, %v6988_v37  ;;  %v6980_v17 = vadd.f32 %v6979_v22, %v6892_v39  ;;  %6991 = vrot.lane.b32.xlu0 %v6988_v37, %s13357_s8  ;;  %vm13580_vm9 = vcmask 310272  }
0x1430   : > { %v6981_v1 = vpop.f32.mrf.mxu0 }
0x1431   : > { %v6989_v38 = vmax.f32 %v6980_v17, 0.0 }
0x1432   : > { %v6984_v26 = vpop.f32.mrf.mxu0 }
0x1433   : > { %7178 = vst.msk [vmem:[#allocation2 + $0x1a0] sm:$0xff] %vm13568_vm5, %v6989_v38  ;;  %v6985_v56 = vadd.f32 %v6984_v26, %v6897_v28  ;;  %6994 = vrot.lane.b32.xlu0 %v6989_v38, %s13357_s8  ;;  %vm13581_vm5 = vmmov %vm13562_vm0 }
0x1434   : > { %v6986_v50 = vpop.f32.mrf.mxu0 }
0x1435   : > { %v6990_v29 = vmax.f32 %v6985_v56, 0.0 }
0x1437   : > { %7179 = vst.msk [vmem:[#allocation2 + $0x1c0] sm:$0xff] %vm13569_vm2, %v6990_v29  ;;  %6997 = vrot.lane.b32.xlu1 %v6990_v29, %s13357_s8  ;;  %7186 = vrot.lane.b32.xlu0 %v12522_v55, %s13303_s22  ;;  %vm13582_vm2 = vmmov %vm13572_vm14 }
0x143b   : > { %7141 = vrot.lane.b32.xlu0 %v12529_v57, %s13306_s2 }
0x143f   : > { %7099 = vrot.lane.b32.xlu0 %v12536_v27, %s13307_s21  ;;  %s13570_s21 = sld [smem:[#allocation40_spill]] }
0x1443   : > { %7015 = vrot.lane.b32.xlu0 %v12545_v60, %s13519_s26 }
0x1445   : > { %v7289_v28 = vld [vmem:[%s13570_s21 + $0x8] sm:$0xff] }
0x1446   : > { %7802 = vmatprep.mubr.msk.f32.mxu1 %vm2428_vm11, %v7289_v28 }
0x1447   : > { %7240 = vrot.lane.b32.xlu0 %v12552_v9, %s13520_s0 }
0x14a1   : > { %v6992_v41 = vpop.permute.xlu0 %6991 }
0x14a2   : > { %v6993_v34 = vsel %vm2991_vm4, %v6992_v41, %v6988_v37 }
0x14a3   : > { %7000 = vrot.lane.b32.xlu1 %v6993_v34, %s13357_s8 }
0x14a5   : > { %v6995_v32 = vpop.permute.xlu0 %6994 }
0x14a6   : > { %v6996_v57 = vsel %vm2991_vm4, %v6995_v32, %v6989_v38 }
0x14a9   : > { %v6998_v31 = vpop.permute.xlu1 %6997  ;;  %v12770_v27 = vpop.permute.xlu0 %7186 }
0x14aa   : > { %v6999_v55 = vsel %vm2991_vm4, %v6998_v31, %v6990_v29 }
0x14ab   : > { %7004 = vrot.lane.b32.xlu1 %v6999_v55, %s13357_s8 }
0x14ad   : > { %v7142_v60 = vpop.permute.xlu0 %7141 }
0x14af   : > { %7002 = vrot.lane.b32.xlu1 %v6996_v57, %s13357_s8 }
0x14b1   : > { %v7100_v5 = vpop.permute.xlu0 %7099 }
0x14b3   : > { %7057 = vrot.lane.b32.xlu1 %v12565_v40, %s13521_s1  ;;  %s13571_s1 = sld [smem:[#allocation41_spill]] }
0x14b5   : > { %v7016_v24 = vpop.permute.xlu0 %7015 }
0x14b7   : > { %7267 = vrot.lane.b32.xlu1 %v12572_v46, %s13522_s3  ;;  %s13609_s3 = sld [smem:[#allocation5_spill]] }
0x14b9   : > { %v7241_v53 = vpop.permute.xlu0 %7240  ;;  %v7321_v26 = vld [vmem:[%s13571_s1] sm:$0xff]  ;;  %v7323_v50 = vld [vmem:[%s13571_s1 + $0x10] sm:$0xff] }
0x14bb   : > { %7213 = vrot.lane.b32.xlu1 %v12579_v58, %s13523_s30 }
0x14bd   : > { %p495_p4 = scmp.lt.s32.totalorder %s13609_s3, 1 }
0x14bf   : > { %s13617_s3 = smov (!%p495_p4, %s13609_s3), 1 }
0x1515   : > { %v7001_v9 = vpop.permute.xlu1 %7000 }
0x1516   : > { %v12773_v30 = vsel %vm2991_vm4, %v7001_v9, %v6988_v37  ;;  %v7145_v48 = vmul.f32 %v7142_v60, %v7001_v9  ;;  %v7103_v40 = vmul.f32 %v7100_v5, %v7001_v9  ;;  %v7019_v21 = vmul.f32 %v7016_v24, %v7001_v9 }
0x1517   : > { %v7144_v7 = vmul.f32 %v7142_v60, %v12773_v30  ;;  %v7102_v46 = vmul.f32 %v7100_v5, %v12773_v30  ;;  %v7189_v59 = vmul.f32 %v12770_v27, %v12773_v30  ;;  %v7018_v42 = vmul.f32 %v7016_v24, %v12773_v30 }
0x1518   : > { %7158 = vrot.lane.b32.xlu0 %v7145_v48, %s13524_s16  ;;  %v7243_v44 = vmul.f32 %v7241_v53, %v12773_v30 }
0x1519   : > { %7156 = vrot.lane.b32.xlu1 %v7144_v7, %s13524_s16 }
0x151c   : > { %7116 = vrot.lane.b32.xlu0 %v7103_v40, %s13525_s28 }
0x151d   : > { %v7005_v58 = vpop.permute.xlu1 %7004  ;;  %7114 = vrot.lane.b32.xlu1 %v7102_v46, %s13525_s28  ;;  %v7308_v46 = vld [vmem:[#allocation2 + $0x1c0] sm:$0xff] }
0x151e   : > { %v7008_v20 = vsel %vm2991_vm4, %v7005_v58, %v6990_v29  ;;  %v7149_v10 = vmul.f32 %v7142_v60, %v7005_v58  ;;  %v7107_v54 = vmul.f32 %v7100_v5, %v7005_v58  ;;  %v7023_v45 = vmul.f32 %v7016_v24, %v7005_v58  ;;  %v7322_v29 = vld [vmem:[%s13571_s1 + $0x8] sm:$0xff] }
0x151f   : > { %v7148_v3 = vmul.f32 %v7142_v60, %v7008_v20  ;;  %v7106_v47 = vmul.f32 %v7100_v5, %v7008_v20  ;;  %v7022_v2 = vmul.f32 %v7016_v24, %v7008_v20  ;;  %v7245_v8 = vmul.f32 %v7241_v53, %v7008_v20 }
0x1520   : > { %7195 = vrot.lane.b32.xlu0 %v7189_v59, %s13252_s19  ;;  %v7191_v1 = vmul.f32 %v12770_v27, %v7008_v20  ;;  %v7307_v59 = vld [vmem:[#allocation2 + $0x1a0] sm:$0xff] }
0x1521   : > { %v7003_v52 = vpop.permute.xlu1 %7002 }
0x1522   : > { %v12785_v16 = vsel %vm2991_vm4, %v7003_v52, %v6989_v38  ;;  %v7147_v19 = vmul.f32 %v7142_v60, %v7003_v52  ;;  %v7105_v4 = vmul.f32 %v7100_v5, %v7003_v52  ;;  %v7021_v6 = vmul.f32 %v7016_v24, %v7003_v52 }
0x1523   : > { %v7146_v49 = vmul.f32 %v7142_v60, %v12785_v16  ;;  %v7104_v12 = vmul.f32 %v7100_v5, %v12785_v16  ;;  %v7020_v51 = vmul.f32 %v7016_v24, %v12785_v16  ;;  %v7244_v39 = vmul.f32 %v7241_v53, %v12785_v16 }
0x1524   : > { %7162 = vrot.lane.b32.xlu0 %v7147_v19, %s13524_s16  ;;  %v7190_v56 = vmul.f32 %v12770_v27, %v12785_v16  ;;  %v7306_v19 = vld [vmem:[#allocation2 + $0x180] sm:$0xff] }
0x1525   : > { %7160 = vrot.lane.b32.xlu1 %v7146_v49, %s13524_s16  ;;  %v7058_v25 = vpop.permute.xlu1 %7057 }
0x1526   : > { %v7063_v63 = vmul.f32 %v7058_v25, %v7003_v52  ;;  %v7062_v11 = vmul.f32 %v7058_v25, %v12785_v16  ;;  %v7060_v13 = vmul.f32 %v7058_v25, %v12773_v30  ;;  %v7065_v36 = vmul.f32 %v7058_v25, %v7005_v58 }
0x1527   : > { %v7061_v0 = vmul.f32 %v7058_v25, %v7001_v9  ;;  %v7064_v33 = vmul.f32 %v7058_v25, %v7008_v20 }
0x1528   : > { %7120 = vrot.lane.b32.xlu0 %v7105_v4, %s13525_s28 }
0x1529   : > { %7118 = vrot.lane.b32.xlu1 %v7104_v12, %s13525_s28  ;;  %v7268_v15 = vpop.permute.xlu1 %7267 }
0x152a   : > { %v7271_v14 = vmul.f32 %v7268_v15, %v12785_v16  ;;  %v7272_v35 = vmul.f32 %v7268_v15, %v7008_v20  ;;  %v7270_v23 = vmul.f32 %v7268_v15, %v12773_v30 }
0x152c   : > { %7078 = vrot.lane.b32.xlu0 %v7063_v63, %s13526_s14 }
0x152d   : > { %7076 = vrot.lane.b32.xlu1 %v7062_v11, %s13526_s14  ;;  %v7214_v37 = vpop.permute.xlu1 %7213 }
0x152e   : > { %v7217_v22 = vmul.f32 %v7214_v37, %v12785_v16  ;;  %v7218_v17 = vmul.f32 %v7214_v37, %v7008_v20  ;;  %v7216_v38 = vmul.f32 %v7214_v37, %v12773_v30 }
0x1530   : > { %7166 = vrot.lane.b32.xlu0 %v7149_v10, %s13524_s16 }
0x1531   : > { %7164 = vrot.lane.b32.xlu1 %v7148_v3, %s13524_s16 }
0x1534   : > { %7124 = vrot.lane.b32.xlu0 %v7107_v54, %s13525_s28 }
0x1535   : > { %7072 = vrot.lane.b32.xlu1 %v7060_v13, %s13526_s14 }
0x1538   : > { %7082 = vrot.lane.b32.xlu0 %v7065_v36, %s13526_s14 }
0x1539   : > { %7122 = vrot.lane.b32.xlu1 %v7106_v47, %s13525_s28  ;;  %s13612_s28 = sld [smem:[#allocation44_spill]] }
0x153c   : > { %7074 = vrot.lane.b32.xlu0 %v7061_v0, %s13526_s14 }
0x153d   : > { %7080 = vrot.lane.b32.xlu1 %v7064_v33, %s13526_s14 }
0x153f   : > { %s497_s14 = scalar_lea.vmem %s13612_s28, %s13617_s3 }
0x1540   : > { %7040 = vrot.lane.b32.xlu0 %v7023_v45, %s13527_s29 }
0x1541   : > { %7034 = vrot.lane.b32.xlu1 %v7020_v51, %s13527_s29 }
0x1544   : > { %7036 = vrot.lane.b32.xlu0 %v7021_v6, %s13527_s29 }
0x1545   : > { %7038 = vrot.lane.b32.xlu1 %v7022_v2, %s13527_s29 }
0x1548   : > { %7032 = vrot.lane.b32.xlu0 %v7019_v21, %s13527_s29 }
0x1549   : > { %7030 = vrot.lane.b32.xlu1 %v7018_v42, %s13527_s29 }
0x154c   : > { %7278 = vrot.lane.b32.xlu0 %v7271_v14, %s13528_s17 }
0x154d   : > { %7280 = vrot.lane.b32.xlu1 %v7272_v35, %s13528_s17 }
0x1550   : > { %7253 = vrot.lane.b32.xlu0 %v7245_v8, %s13317_s20 }
0x1551   : > { %7276 = vrot.lane.b32.xlu1 %v7270_v23, %s13528_s17 }
0x1554   : > { %7249 = vrot.lane.b32.xlu0 %v7243_v44, %s13317_s20 }
0x1555   : > { %7251 = vrot.lane.b32.xlu1 %v7244_v39, %s13317_s20 }
0x1558   : > { %7224 = vrot.lane.b32.xlu0 %v7217_v22, %s13529_s5 }
0x1559   : > { %7226 = vrot.lane.b32.xlu1 %v7218_v17, %s13529_s5 }
0x155c   : > { %7199 = vrot.lane.b32.xlu0 %v7191_v1, %s13252_s19 }
0x155d   : > { %7222 = vrot.lane.b32.xlu1 %v7216_v38, %s13529_s5 }
0x1560   : > { %7326 = vperm.xlu0 %8040, %v7321_v26  }
0x1561   : > { %7197 = vrot.lane.b32.xlu1 %v7190_v56, %s13252_s19 }
0x1564   : > { %7336 = vperm.xlu0 %8040, %v7323_v50  }
0x1565   : > { %7331 = vperm.xlu1 %8039, %v7322_v29  }
0x158a   : > { %v7159_v41 = vpop.permute.xlu0 %7158 }
0x158b   : > { %v7157_v34 = vpop.permute.xlu1 %7156 }
0x158c   : > { %v7168_v31 = vsel %vm13572_vm14, %v7157_v34, %v7159_v41  ;;  %vm13583_vm14 = vmmov %vm13562_vm0 }
0x158d   : > { %7174 = vst.msk [vmem:[#allocation2 + $0x120] sm:$0xff] %vm13573_vm10, %v7168_v31  ;;  %vm13584_vm10 = vmmov %vm13574_vm3 }
0x158e   : > { %v7117_v55 = vpop.permute.xlu0 %7116 }
0x158f   : > { %v7115_v32 = vpop.permute.xlu1 %7114 }
0x1590   : > { %v7126_v57 = vsel %vm13574_vm3, %v7115_v32, %v7117_v55  ;;  %vm13585_vm3 = vmmov %vm13562_vm0 }
0x1591   : > { %7132 = vst.msk [vmem:[#allocation2 + $0xc0] sm:$0xff] %vm13575_vm6, %v7126_v57  ;;  %vm13586_vm6 = vmmov %vm13580_vm9 }
0x1592   : > { %v7196_v27 = vpop.permute.xlu0 %7195 }
0x1593   : > { %7204 = vst.msk [vmem:[#allocation2 + $0x1e0] sm:$0xff] %vm13562_vm0, %v7196_v27 }
0x1594   : > { %v7303_v33 = vld [vmem:[#allocation2 + $0x120] sm:$0xff] }
0x1596   : > { %v7163_v60 = vpop.permute.xlu0 %7162 }
0x1597   : > { %v7161_v9 = vpop.permute.xlu1 %7160 }
0x1598   : > { %v7169_v30 = vsel %vm13576_vm15, %v7161_v9, %v7163_v60  ;;  %vm13587_vm15 = vmmov %vm13586_vm6  ;;  %v7300_v14 = vld [vmem:[#allocation2 + $0xc0] sm:$0xff] }
0x1599   : > { %7175 = vst.msk [vmem:[#allocation2 + $0x140] sm:$0xff] %vm13577_vm13, %v7169_v30  ;;  %vm13588_vm13 = vmmov %vm13562_vm0 }
0x159a   : > { %v7121_v48 = vpop.permute.xlu0 %7120  ;;  %v7309_v7 = vld [vmem:[#allocation2 + $0x1e0] sm:$0xff] }
0x159b   : > { %v7119_v5 = vpop.permute.xlu1 %7118  ;;  %7349 = vmatpush1.msra.mxu1 %v7309_v7 }
0x159c   : > { %v7127_v40 = vsel %vm13578_vm12, %v7119_v5, %v7121_v48  ;;  %7350 = vmatprep.subr.mxu1 %v13294_v61  ;;  %vm13589_vm12 = vcmask 318464  }
0x159d   : > { %7133 = vst.msk [vmem:[#allocation2 + $0xe0] sm:$0xff] %vm13579_vm1, %v7127_v40  ;;  %7351 = vmatpush1.msra.mxu1 %v7308_v46  ;;  %vm13590_vm1 = vmmov %vm13562_vm0  ;;  %v7288_v46 = vld [vmem:[%s13570_s21] sm:$0xff] }
0x159e   : > { %7352 = vmatprep.subr.mxu1 %v13294_v61  ;;  %v7079_v58 = vpop.permute.xlu0 %7078 }
0x159f   : > { %v7077_v52 = vpop.permute.xlu1 %7076  ;;  %7353 = vmatpush1.msra.mxu1 %v7307_v59  ;;  %v7291_v59 = vld [vmem:[%s13570_s21 + $0x18] sm:$0xff] }
0x15a0   : > { %v7085_v16 = vsel %vm13580_vm9, %v7077_v52, %v7079_v58  ;;  %7354 = vmatprep.subr.mxu1 %v13294_v61  ;;  %v7304_v13 = vld [vmem:[#allocation2 + $0x140] sm:$0xff]  ;;  %vm13591_vm9 = vmmov %vm13589_vm12  ;;  %v7290_v52 = vld [vmem:[%s13570_s21 + $0x10] sm:$0xff] }
0x15a1   : > { %7091 = vst.msk [vmem:[#allocation2 + $0x80] sm:$0xff] %vm13581_vm5, %v7085_v16  ;;  %7355 = vmatpush1.msra.mxu1 %v7306_v19  ;;  %vm13592_vm5 = vmmov %vm13562_vm0  ;;  %v7293_v16 = vld [vmem:[%s13570_s21 + $0x28] sm:$0xff]  ;;  %v7292_v19 = vld [vmem:[%s13570_s21 + $0x20] sm:$0xff] }
0x15a2   : > { %v7167_v49 = vpop.permute.xlu0 %7166  ;;  %7356 = vmatprep.subr.mxu1 %v13294_v61 }
0x15a3   : > { %v7165_v4 = vpop.permute.xlu1 %7164 }
0x15a4   : > { %v7170_v25 = vsel %vm13582_vm2, %v7165_v4, %v7167_v49  ;;  %v7301_v2 = vld [vmem:[#allocation2 + $0xe0] sm:$0xff]  ;;  %vm13593_vm2 = vmmov %vm13591_vm9 }
0x15a5   : > { %7176 = vst.msk [vmem:[#allocation2 + $0x160] sm:$0xff] %vm13583_vm14, %v7170_v25  ;;  %vm13594_vm14 = vmmov %vm13562_vm0 }
0x15a6   : > { %v7125_v12 = vpop.permute.xlu0 %7124 }
0x15a7   : > { %v7073_v63 = vpop.permute.xlu1 %7072 }
0x15a8   : > { %v7298_v44 = vld [vmem:[#allocation2 + $0x80] sm:$0xff] }
0x15aa   : > { %v7083_v11 = vpop.permute.xlu0 %7082 }
0x15ab   : > { %v7123_v20 = vpop.permute.xlu1 %7122 }
0x15ac   : > { %v7128_v10 = vsel %vm13584_vm10, %v7123_v20, %v7125_v12  ;;  %v7305_v3 = vld [vmem:[#allocation2 + $0x160] sm:$0xff]  ;;  %vm13595_vm10 = vmmov %vm13562_vm0 }
0x15ad   : > { %7134 = vst.msk [vmem:[#allocation2 + $0x100] sm:$0xff] %vm13585_vm3, %v7128_v10  ;;  %7357 = vmatpush1.msra.mxu1 %v7305_v3  ;;  %vm13596_vm3 = vmmov %vm13562_vm0 }
0x15ae   : > { %v7075_v54 = vpop.permute.xlu0 %7074  ;;  %7358 = vmatprep.subr.mxu1 %v13294_v61 }
0x15af   : > { %v7084_v36 = vsel %vm13586_vm6, %v7073_v63, %v7075_v54  ;;  %v7081_v47 = vpop.permute.xlu1 %7080  ;;  %7359 = vmatpush1.msra.mxu1 %v7304_v13  ;;  %vm13597_vm6 = vmmov %vm13562_vm0 }
0x15b0   : > { %7090 = vst.msk [vmem:[#allocation2 + $0x60] sm:$0xff] %vm13562_vm0, %v7084_v36  ;;  %v7086_v0 = vsel %vm13587_vm15, %v7081_v47, %v7083_v11  ;;  %7360 = vmatprep.subr.mxu1 %v13294_v61  ;;  %vm13598_vm15 = vmmov %vm13562_vm0 }
0x15b1   : > { %7092 = vst.msk [vmem:[#allocation2 + $0xa0] sm:$0xff] %vm13588_vm13, %v7086_v0  ;;  %7361 = vmatpush1.msra.mxu1 %v7303_v33  ;;  %vm13599_vm13 = vmmov %vm13562_vm0 }
0x15b2   : > { %v7041_v24 = vpop.permute.xlu0 %7040  ;;  %7362 = vmatprep.subr.mxu1 %v13294_v61 }
0x15b3   : > { %v7035_v45 = vpop.permute.xlu1 %7034 }
0x15b4   : > { %v7302_v51 = vld [vmem:[#allocation2 + $0x100] sm:$0xff] }
0x15b5   : > { %7363 = vmatpush1.msra.mxu1 %v7302_v51 }
0x15b6   : > { %v7037_v6 = vpop.permute.xlu0 %7036  ;;  %7364 = vmatprep.subr.mxu1 %v13294_v61 }
0x15b7   : > { %v7043_v21 = vsel %vm13589_vm12, %v7035_v45, %v7037_v6  ;;  %v7039_v15 = vpop.permute.xlu1 %7038  ;;  %7365 = vmatpush1.msra.mxu1 %v7301_v2  ;;  %v7297_v39 = vld [vmem:[#allocation2 + $0x60] sm:$0xff]  ;;  %vm13600_vm12 = vmmov %vm13562_vm0 }
0x15b8   : > { %7049 = vst.msk [vmem:[#allocation2 + $0x20] sm:$0xff] %vm13590_vm1, %v7043_v21  ;;  %v7044_v42 = vsel %vm13591_vm9, %v7039_v15, %v7041_v24  ;;  %7366 = vmatprep.subr.mxu1 %v13294_v61  ;;  %v7299_v53 = vld [vmem:[#allocation2 + $0xa0] sm:$0xff]  ;;  %vm13601_vm1 = vmmov %vm13562_vm0 }
0x15b9   : > { %7050 = vst.msk [vmem:[#allocation2 + $0x40] sm:$0xff] %vm13592_vm5, %v7044_v42  ;;  %7367 = vmatpush1.msra.mxu1 %v7300_v14  ;;  %vm13602_vm9 = vmmov %vm13562_vm0 }
0x15ba   : > { %v7033_v35 = vpop.permute.xlu0 %7032  ;;  %7368 = vmatprep.subr.mxu1 %v13294_v61  ;;  %vm13603_vm5 = vmmov %vm13562_vm0 }
0x15bb   : > { %v7031_v8 = vpop.permute.xlu1 %7030  ;;  %7369 = vmatpush1.msra.mxu1 %v7299_v53 }
0x15bc   : > { %v7042_v23 = vsel %vm13593_vm2, %v7031_v8, %v7033_v35  ;;  %7370 = vmatprep.subr.mxu1 %v13294_v61  ;;  %vm13604_vm2 = vmmov %vm13562_vm0 }
0x15bd   : > { %7048 = vst.msk [vmem:[#allocation2] sm:$0xff] %vm13594_vm14, %v7042_v23  ;;  %7371 = vmatpush1.msra.mxu1 %v7298_v44  ;;  %vm13608_vm14 = vmmov %vm13562_vm0 }
0x15be   : > { %v7279_v37 = vpop.permute.xlu0 %7278  ;;  %7372 = vmatprep.subr.mxu1 %v13294_v61 }
0x15bf   : > { %7286 = vst.msk [vmem:[#allocation2 + $0x320] sm:$0xff] %vm13595_vm10, %v7279_v37  ;;  %v7281_v22 = vpop.permute.xlu1 %7280  ;;  %7373 = vmatpush1.msra.mxu1 %v7297_v39  ;;  %v7295_v38 = vld [vmem:[#allocation2 + $0x20] sm:$0xff] }
0x15c0   : > { %7287 = vst.msk [vmem:[#allocation2 + $0x340] sm:$0xff] %vm13596_vm3, %v7281_v22  ;;  %7374 = vmatprep.subr.mxu1 %v13294_v61  ;;  %v7296_v17 = vld [vmem:[#allocation2 + $0x40] sm:$0xff]  ;;  %vm7638_vm3 = vcmask 8192  }
0x15c1   : > { %7375 = vmatpush1.msra.mxu1 %v7296_v17 }
0x15c2   : > { %v7254_v1 = vpop.permute.xlu0 %7253  ;;  %7376 = vmatprep.subr.mxu1 %v13294_v61 }
0x15c3   : > { %7260 = vst.msk [vmem:[#allocation2 + $0x2e0] sm:$0xff] %vm13597_vm6, %v7254_v1  ;;  %v7277_v28 = vpop.permute.xlu1 %7276  ;;  %7377 = vmatpush1.msra.mxu1 %v7295_v38 }
0x15c4   : > { %7285 = vst.msk [vmem:[#allocation2 + $0x300] sm:$0xff] %vm13562_vm0, %v7277_v28  ;;  %7378 = vmatprep.subr.mxu1 %v13294_v61  ;;  %v7294_v26 = vld [vmem:[#allocation2] sm:$0xff] }
0x15c5   : > { %7379 = vmatpush1.msra.mxu1 %v7294_v26 }
0x15c6   : > { %v7250_v56 = vpop.permute.xlu0 %7249  ;;  %7390 = vmatprep.subr.mxu1 %v13294_v61  ;;  %v7319_v41 = vld [vmem:[#allocation2 + $0x320] sm:$0xff] }
0x15c7   : > { %7258 = vst.msk [vmem:[#allocation2 + $0x2a0] sm:$0xff] %vm13598_vm15, %v7250_v56  ;;  %v7252_v50 = vpop.permute.xlu1 %7251  ;;  %v7320_v29 = vld [vmem:[#allocation2 + $0x340] sm:$0xff] }
0x15c8   : > { %7259 = vst.msk [vmem:[#allocation2 + $0x2c0] sm:$0xff] %vm13599_vm13, %v7252_v50  ;;  %7391 = vmatpush2.msra.mxu1 %v7320_v29  ;;  %v7509_v29 = vld [vmem:[%s13372_s6 + $0x60] sm:$0xf] }
0x15c9   : > { %7392 = vmatprep.subr.mxu1 %v13294_v61  ;;  %7962 = vmatpush3.msk.msra.mxu0 %vm3965_vm8, %v7509_v29  ;;  %vm13607_vm8 = vmmov %vm13562_vm0 }
0x15ca   : > { %v7225_v34 = vpop.permute.xlu0 %7224  ;;  %7393 = vmatpush2.msra.mxu1 %v7319_v41  ;;  %v7317_v32 = vld [vmem:[#allocation2 + $0x2e0] sm:$0xff]  ;;  %v7508_v41 = vld [vmem:[%s13372_s6 + $0x58] sm:$0xff]  ;;  %7963 = vmatprep.subr.mxu0 %v13294_v61 }
0x15cb   : > { %7232 = vst.msk [vmem:[#allocation2 + $0x260] sm:$0xff] %vm13600_vm12, %v7225_v34  ;;  %v7227_v31 = vpop.permute.xlu1 %7226  ;;  %7394 = vmatprep.subr.mxu1 %v13294_v61  ;;  %v7318_v55 = vld [vmem:[#allocation2 + $0x300] sm:$0xff]  ;;  %v7507_v34 = vld [vmem:[%s13372_s6 + $0x50] sm:$0xff]  ;;  %7964 = vmatpush3.msra.mxu0 %v7508_v41 }
0x15cc   : > { %7233 = vst.msk [vmem:[#allocation2 + $0x280] sm:$0xff] %vm13601_vm1, %v7227_v31  ;;  %7395 = vmatpush2.msra.mxu1 %v7318_v55  ;;  %7965 = vmatprep.subr.mxu0 %v13294_v61  ;;  %v7506_v31 = vld [vmem:[%s13372_s6 + $0x48] sm:$0xff]  ;;  %v7505_v55 = vld [vmem:[%s13372_s6 + $0x40] sm:$0xff] }
0x15cd   : > { %7396 = vmatprep.subr.mxu1 %v13294_v61  ;;  %7966 = vmatpush3.msra.mxu0 %v7507_v34 }
0x15ce   : > { %v7200_v57 = vpop.permute.xlu0 %7199  ;;  %7397 = vmatpush2.msra.mxu1 %v7317_v32  ;;  %v7315_v9 = vld [vmem:[#allocation2 + $0x2a0] sm:$0xff]  ;;  %7967 = vmatprep.subr.mxu0 %v13294_v61  ;;  %v7504_v32 = vld [vmem:[%s13372_s6 + $0x38] sm:$0xff] }
0x15cf   : > { %7206 = vst.msk [vmem:[#allocation2 + $0x220] sm:$0xff] %vm13602_vm9, %v7200_v57  ;;  %v7223_v27 = vpop.permute.xlu1 %7222  ;;  %7398 = vmatprep.subr.mxu1 %v13294_v61  ;;  %v7316_v60 = vld [vmem:[#allocation2 + $0x2c0] sm:$0xff]  ;;  %7968 = vmatpush3.msra.mxu0 %v7506_v31  ;;  %v7503_v57 = vld [vmem:[%s13372_s6 + $0x30] sm:$0xff] }
0x15d0   : > { %7231 = vst.msk [vmem:[#allocation2 + $0x240] sm:$0xff] %vm13603_vm5, %v7223_v27  ;;  %7399 = vmatpush2.msra.mxu1 %v7316_v60  ;;  %7969 = vmatprep.subr.mxu0 %v13294_v61  ;;  %v7502_v27 = vld [vmem:[%s13372_s6 + $0x28] sm:$0xff]  ;;  %v7501_v60 = vld [vmem:[%s13372_s6 + $0x20] sm:$0xff] }
0x15d1   : > { %7400 = vmatprep.subr.mxu1 %v13294_v61  ;;  %7970 = vmatpush3.msra.mxu0 %v7505_v55  ;;  %v4073_v31 = vld [vmem:[#allocation3] sm:$0x1] }
0x15d2   : > { %7401 = vmatpush2.msra.mxu1 %v7315_v9  ;;  %v7313_v7 = vld [vmem:[#allocation2 + $0x260] sm:$0xff]  ;;  %7971 = vmatprep.subr.mxu0 %v13294_v61  ;;  %v7500_v9 = vld [vmem:[%s13372_s6 + $0x18] sm:$0xff] }
0x15d3   : > { %v7198_v30 = vpop.permute.xlu1 %7197  ;;  %7402 = vmatprep.subr.mxu1 %v13294_v61  ;;  %v7314_v48 = vld [vmem:[#allocation2 + $0x280] sm:$0xff]  ;;  %7972 = vmatpush3.msra.mxu0 %v7504_v32 }
0x15d4   : > { %7205 = vst.msk [vmem:[#allocation2 + $0x200] sm:$0xff] %vm13604_vm2, %v7198_v30  ;;  %7403 = vmatpush2.msra.mxu1 %v7314_v48  ;;  %7973 = vmatprep.subr.mxu0 %v13294_v61  ;;  %v7499_v30 = vld [vmem:[%s13372_s6 + $0x10] sm:$0xff]  ;;  %v7498_v48 = vld [vmem:[%s13372_s6 + $0x8] sm:$0xff] }
0x15d5   : > { %7404 = vmatprep.subr.mxu1 %v13294_v61  ;;  %7974 = vmatpush3.msra.mxu0 %v7503_v57 }
0x15d6   : > { %7405 = vmatpush2.msra.mxu1 %v7313_v7  ;;  %v7311_v40 = vld [vmem:[#allocation2 + $0x220] sm:$0xff]  ;;  %7975 = vmatprep.subr.mxu0 %v13294_v61 }
0x15d7   : > { %7406 = vmatprep.subr.mxu1 %v13294_v61  ;;  %v7312_v5 = vld [vmem:[#allocation2 + $0x240] sm:$0xff]  ;;  %7976 = vmatpush3.msra.mxu0 %v7502_v27 }
0x15d8   : > { %7407 = vmatpush2.msra.mxu1 %v7312_v5  ;;  %7977 = vmatprep.subr.mxu0 %v13294_v61  ;;  %v7497_v7 = vld [vmem:[%s13372_s6] sm:$0xff] }
0x15d9   : > { %7408 = vmatprep.subr.mxu1 %v13294_v61  ;;  %7978 = vmatpush3.msra.mxu0 %v7501_v60  ;;  %v7625_v60 = vld [vmem:[#allocation3] sm:$0x1] }
0x15da   : > { %7409 = vmatpush2.msra.mxu1 %v7311_v40  ;;  %7979 = vmatprep.subr.mxu0 %v13294_v61 }
0x15db   : > { %7410 = vmatprep.subr.mxu1 %v13294_v61  ;;  %v7310_v58 = vld [vmem:[#allocation2 + $0x200] sm:$0xff]  ;;  %v7327_v49 = vpop.permute.xlu0 %7326  ;;  %7980 = vmatpush3.msra.mxu0 %v7500_v9 }
0x15dc   : > { %7411 = vmatpush2.msra.mxu1 %v7310_v58  ;;  %7981 = vmatprep.subr.mxu0 %v13294_v61 }
0x15dd   : > { %7413 = vmatmul.mubr.f32.vlgmr.msra.gmra.mxu1 %v7288_v46  ;;  %7982 = vmatpush3.msra.mxu0 %v7499_v30 }
0x15de   : > { %7803 = vmatprep.mubr.msk.f32.mxu1 %vm2428_vm11, %v7291_v59  ;;  %7983 = vmatprep.subr.mxu0 %v13294_v61 }
0x15df   : > { %v7337_v13 = vpop.permute.xlu0 %7336  ;;  %7984 = vmatpush3.msra.mxu0 %v7498_v48  ;;  %v13610_v48 = vlaneseq }
0x15e0   : > { %v7332_v11 = vpop.permute.xlu1 %7331  ;;  %7985 = vmatprep.subr.mxu0 %v13294_v61 }
0x15e1   : > { %7418 = vmatmul.mubr.f32.gmra.mxu1 %v7290_v52  ;;  %7986 = vmatpush3.msra.mxu0 %v7497_v7  ;;  %v499_v7 = vand.u32 127, %v13610_v48 }
0x15e2   : > { %7804 = vmatprep.mubr.msk.f32.mxu1 %vm2428_vm11, %v7293_v16  ;;  %v4050_v16 = vld [vmem:[%s13605_s12 + $0x8] sm:$0xff]  ;;  %vm4055_vm11 = vcmask 203776  }
0x15e3   : > { %vm7627_vm10 = vcmp.eq.s32.totalorder %v499_v7, 1 }
0x15e5   : > { %7423 = vmatmul.mubr.f32.gmra.mxu1 %v7292_v19  ;;  %v4049_v19 = vld [vmem:[%s13605_s12] sm:$0xff] }
0x169d   : > { %v7414_v4 = vpop.f32.mrf.mxu1 }
0x169e   : > { %v7415_v25 = vadd.f32 %v7414_v4, %v7327_v49  ;;  %v4053_v49 = vmul.f32 %v4050_v16, %v12192_v43  ;;  %v4052_v4 = vmul.f32 %v4049_v19, %v12190_v62 }
0x169f   : > { %v7416_v12 = vpop.f32.mrf.mxu1 }
0x16a0   : > { %v7428_v63 = vmax.f32 %v7415_v25, 0.0  ;;  %v4059_v25 = vsel %vm4055_vm11, %v4053_v49, 0.0  ;;  %v4056_v12 = vsel %vm4055_vm11, %v4052_v4, 0.0 }
0x16a1   : > { %v7419_v20 = vpop.f32.mrf.mxu1 }
0x16a2   : > { %v7420_v10 = vadd.f32 %v7419_v20, %v7332_v11  ;;  %7431 = vrot.lane.b32.xlu1 %v7428_v63, %s13357_s8 }
0x16a3   : > { %v7421_v3 = vpop.f32.mrf.mxu1 }
0x16a4   : > { %v7429_v54 = vmax.f32 %v7420_v10, 0.0  ;;  %v7602_v3 = vld [vmem:[%s13605_s12] sm:$0xff] }
0x16a5   : > { %v7424_v36 = vpop.f32.mrf.mxu1 }
0x16a6   : > { %v7425_v47 = vadd.f32 %v7424_v36, %v7337_v13  ;;  %7434 = vrot.lane.b32.xlu0 %v7429_v54, %s13357_s8 }
0x16a7   : > { %v7426_v0 = vpop.f32.mrf.mxu1 }
0x16a8   : > { %v7430_v33 = vmax.f32 %v7425_v47, 0.0  ;;  %v7603_v0 = vld [vmem:[%s13605_s12 + $0x8] sm:$0xff] }
0x16aa   : > { %7437 = vrot.lane.b32.xlu1 %v7430_v33, %s13357_s8 }
0x1714   : > { %v7432_v24 = vpop.permute.xlu1 %7431 }
0x1715   : > { %v7433_v45 = vsel %vm2991_vm4, %v7432_v24, %v7428_v63 }
0x1716   : > { %7440 = vrot.lane.b32.xlu0 %v7433_v45, %s13357_s8 }
0x1718   : > { %v7435_v51 = vpop.permute.xlu0 %7434 }
0x1719   : > { %v7436_v6 = vsel %vm2991_vm4, %v7435_v51, %v7429_v54 }
0x171a   : > { %7442 = vrot.lane.b32.xlu1 %v7436_v6, %s13357_s8  ;;  %v7604_v6 = vld [vmem:[%s13605_s12 + $0x10] sm:$0xff] }
0x171c   : > { %v7438_v2 = vpop.permute.xlu1 %7437 }
0x171d   : > { %v7439_v21 = vsel %vm2991_vm4, %v7438_v2, %v7430_v33 }
0x171e   : > { %7444 = vrot.lane.b32.xlu0 %v7439_v21, %s13357_s8 }
0x1788   : > { %v7441_v15 = vpop.permute.xlu0 %7440 }
0x1789   : > { %v7446_v42 = vsel %vm2991_vm4, %v7441_v15, %v7428_v63 }
0x178a   : > { %7452 = vrot.lane.b32.xlu1 %v7446_v42, %s13252_s19 }
0x178c   : > { %v7443_v14 = vpop.permute.xlu1 %7442 }
0x178d   : > { %v7447_v35 = vsel %vm2991_vm4, %v7443_v14, %v7429_v54 }
0x178e   : > { %7454 = vrot.lane.b32.xlu0 %v7447_v35, %s13252_s19 }
0x1790   : > { %v7445_v53 = vpop.permute.xlu0 %7444 }
0x1791   : > { %v7448_v8 = vsel %vm2991_vm4, %v7445_v53, %v7430_v33 }
0x1792   : > { %7456 = vrot.lane.b32.xlu1 %v7448_v8, %s13252_s19 }
0x17fc   : > { %v7453_v23 = vpop.permute.xlu1 %7452 }
0x17fd   : > { %v12941_v44 = vmax.f32 %v7428_v63, %v7453_v23 }
0x17ff   : > { %7464 = vrot.lane.b32.xlu0 %v12941_v44, %s13357_s8 }
0x1800   : > { %v7455_v37 = vpop.permute.xlu0 %7454 }
0x1801   : > { %v12945_v39 = vmax.f32 %v7429_v54, %v7455_v37  ;;  %v4051_v54 = vld [vmem:[%s13605_s12 + $0x10] sm:$0xff] }
0x1803   : > { %7467 = vrot.lane.b32.xlu1 %v12945_v39, %s13357_s8 }
0x1804   : > { %v7457_v22 = vpop.permute.xlu1 %7456 }
0x1805   : > { %v12949_v17 = vmax.f32 %v7430_v33, %v7457_v22 }
0x1807   : > { %7470 = vrot.lane.b32.xlu0 %v12949_v17, %s13357_s8 }
0x1871   : > { %v7465_v1 = vpop.permute.xlu0 %7464 }
0x1872   : > { %v7466_v38 = vsel %vm2991_vm4, %v7465_v1, %v12941_v44 }
0x1873   : > { %7473 = vrot.lane.b32.xlu1 %v7466_v38, %s13357_s8 }
0x1875   : > { %v7468_v28 = vpop.permute.xlu1 %7467 }
0x1876   : > { %v7469_v26 = vsel %vm2991_vm4, %v7468_v28, %v12945_v39 }
0x1877   : > { %7475 = vrot.lane.b32.xlu0 %v7469_v26, %s13357_s8 }
0x1879   : > { %v7471_v56 = vpop.permute.xlu0 %7470 }
0x187a   : > { %v7472_v50 = vsel %vm2991_vm4, %v7471_v56, %v12949_v17 }
0x187b   : > { %7477 = vrot.lane.b32.xlu1 %v7472_v50, %s13357_s8 }
0x18e5   : > { %v7474_v5 = vpop.permute.xlu1 %7473 }
0x18e6   : > { %v7479_v40 = vsel %vm2991_vm4, %v7474_v5, %v12941_v44 }
0x18e7   : > { %7485 = vrot.lane.b32.xlu0 %v7479_v40, %s13317_s20  ;;  %v13611_v40 = vld [vmem:[#allocation7_spill] sm:$0xff] }
0x18e9   : > { %v7476_v46 = vpop.permute.xlu0 %7475 }
0x18ea   : > { %v7480_v58 = vsel %vm2991_vm4, %v7476_v46, %v12945_v39 }
0x18eb   : > { %7487 = vrot.lane.b32.xlu1 %v7480_v58, %s13317_s20 }
0x18ed   : > { %v7478_v59 = vpop.permute.xlu1 %7477 }
0x18ee   : > { %v7481_v52 = vsel %vm2991_vm4, %v7478_v59, %v12949_v17  ;;  %vm13606_vm4 = vmmov %vm13562_vm0 }
0x18ef   : > { %7489 = vrot.lane.b32.xlu0 %v7481_v52, %s13317_s20 }
0x190e   : > { %4060 = vadd.xlane.f32.xlu0 %v4059_v25 }
0x190f   : > { %4057 = vadd.xlane.f32.xlu1 %v4056_v12 }
0x1959   : > { %v7486_v63 = vpop.permute.xlu0 %7485 }
0x195a   : > { %v7494_v11 = vmax.f32 %v12941_v44, %v7486_v63 }
0x195c   : > { %7988 = vmatmul.mubr.msk.f32.vlgmr.msra.gmra.mxu0 %vm13606_vm4, %v7494_v11 }
0x195d   : > { %v7488_v20 = vpop.permute.xlu1 %7487  ;;  %7990 = vmatprep.mubr.msk.f32.mxu0 %vm8136_vm7, %v13294_v61 }
0x195e   : > { %v7495_v43 = vmax.f32 %v12945_v39, %v7488_v20 }
0x1960   : > { %7991 = vmatmul.mubr.msk.f32.gmra.mxu0 %vm13607_vm8, %v7495_v43 }
0x1961   : > { %v7490_v62 = vpop.permute.xlu0 %7489  ;;  %7993 = vmatprep.mubr.msk.f32.mxu0 %vm8136_vm7, %v13294_v61  ;;  %v4054_v61 = vmul.f32 %v4051_v54, %v12194_v18  ;;  %vm4075_vm7 = vcmp.eq.s32.totalorder %v499_v7, 0 }
0x1962   : > { %v7496_v10 = vmax.f32 %v12949_v17, %v7490_v62 }
0x1963   : > { %v4062_v2 = vsel %vm4055_vm11, %v4054_v61, 0.0 }
0x1964   : > { %7994 = vmatmul.mubr.msk.f32.gmra.mxu0 %vm13608_vm14, %v7496_v10 }
0x1997   : > { %v4061_v35 = vpop.xlane.xlu0 %4060 }
0x1998   : > { %v4058_v53 = vpop.xlane.xlu1 %4057 }
0x1999   : > { %v4065_v23 = vadd.f32 %v4061_v35, %v4058_v53 }
0x1a1c   : > { %v7588_v13 = vpop.f32.mrf.mxu0 }
0x1a1d   : > { %v7605_v36 = vmul.f32 %v7602_v3, %v7588_v13 }
0x1a1e   : > { %v7989_v47 = vpop.f32.mrf.mxu0 }
0x1a1f   : > { %v7608_v33 = vsel %vm4055_vm11, %v7605_v36, 0.0 }
0x1a20   : > { %7609 = vadd.xlane.f32.xlu0 %v7608_v33  ;;  %v7593_v24 = vpop.f32.mrf.mxu0 }
0x1a21   : > { %v7606_v45 = vmul.f32 %v7603_v0, %v7593_v24 }
0x1a22   : > { %v7992_v51 = vpop.f32.mrf.mxu0 }
0x1a23   : > { %v7611_v21 = vsel %vm4055_vm11, %v7606_v45, 0.0 }
0x1a24   : > { %4063 = vadd.xlane.f32.xlu0 %v4062_v2  ;;  %7612 = vadd.xlane.f32.xlu1 %v7611_v21  ;;  %v7598_v15 = vpop.f32.mrf.mxu0 }
0x1a25   : > { %v7607_v42 = vmul.f32 %v7604_v6, %v7598_v15 }
0x1a26   : > { %v7995_v14 = vpop.f32.mrf.mxu0 }
0x1a27   : > { %v7614_v18 = vsel %vm4055_vm11, %v7607_v42, 0.0 }
0x1a28   : > { %7615 = vadd.xlane.f32.xlu1 %v7614_v18 }
0x1aa9   : > { %v7610_v8 = vpop.xlane.xlu0 %7609 }
0x1aad   : > { %v4064_v44 = vpop.xlane.xlu0 %4063  ;;  %v7613_v37 = vpop.xlane.xlu1 %7612 }
0x1aae   : > { %v4066_v39 = vadd.f32 %v4065_v23, %v4064_v44  ;;  %v7617_v17 = vadd.f32 %v7613_v37, %v7610_v8 }
0x1ab0   : > { %v4067_v22 = vrot.slane %v4066_v39, 4 }
0x1ab1   : > { %v7616_v1 = vpop.xlane.xlu1 %7615 }
0x1ab2   : > { %v4068_v38 = vadd.f32 %v4067_v22, %v4066_v39  ;;  %v7618_v28 = vadd.f32 %v7617_v17, %v7616_v1 }
0x1ab4   : > { %v4069_v26 = vrot.slane %v4068_v38, 2  ;;  %v7619_v56 = vrot.slane %v7618_v28, 4 }
0x1ab6   : > { %v4070_v50 = vadd.f32 %v4069_v26, %v4068_v38  ;;  %v7620_v29 = vadd.f32 %v7619_v56, %v7618_v28 }
0x1ab8   : > { %v4071_v41 = vrot.slane %v4070_v50, 1  ;;  %v7621_v34 = vrot.slane %v7620_v29, 2 }
0x1aba   : > { %v4072_v55 = vadd.f32 %v4071_v41, %v4070_v50  ;;  %v7622_v32 = vadd.f32 %v7621_v34, %v7620_v29 }
0x1abc   : > { %v7623_v57 = vrot.slane %v7622_v32, 1  ;;  %v4074_v27 = vadd.f32 %v4073_v31, %v4072_v55 }
0x1abe   : > { %v7624_v9 = vadd.f32 %v7623_v57, %v7622_v32  ;;  %4078 = vperm.xlu0 %8040, %v4074_v27  }
0x1ac0   : > { %v7626_v30 = vadd.f32 %v7625_v60, %v7624_v9 }
0x1ac2   : > { %7630 = vperm.xlu1 %8039, %v7626_v30  }
0x1b39   : > { %v4079_v5 = vpop.permute.xlu0 %4078 }
0x1b3a   : > { %v4084_v46 = vrot.slane %v4079_v5, %v13611_v40 }
0x1b3c   : > { %v4085_v52 = vsel %vm4075_vm7, %v4084_v46, 0.0 }
0x1b3d   : > { %v7631_v58 = vpop.permute.xlu1 %7630 }
0x1b3e   : > { %v7636_v59 = vrot.slane %v7631_v58, %v13611_v40 }
0x1b40   : > { %v7637_v16 = vsel %vm7627_vm10, %v7636_v59, %v4085_v52 }
0x1b41   : > { %7639 = vst.msk [vmem:[%s497_s14] sm:$0x1] %vm7638_vm3, %v7637_v16 }
0x1b42 PF: > { %s13613_s29 = sld [smem:[#allocation4_spill]] }
0x1b48   : > { %s27_s20 = sadd.s32 1, %s13613_s29  }
0x1b49   : > { %p24_p5 = scmp.ge.s32.totalorder %s27_s20, 4  }
0x1b4b   :  { %26 = sbr.rel (!%p24_p5) target bundleno = 13 (0xd), region = 118 }

</bundles_post_ra>
